<compile_context>
chip_gen: v7x
topology: tpu7x:2x2x1
jax: 0.10.0
libtpu: 0.0.40
codegen_flags: <defaults>
</compile_context>

<pallas_src>
import functools
import numpy as np
import jax
import jax.numpy as jnp
from jax.experimental import pallas as pl
from jax.experimental.pallas import tpu as pltpu


# ---------------------------------------------------------------------------
# In-kernel building blocks (traced helpers; loops are unrolled at trace time,
# so every ref access uses static indices -> trivially lowerable).
# ---------------------------------------------------------------------------

def _lstm_cell(x_t, h_prev, c_prev, w, b, H):
    """One LSTM cell step.

    w : fused [W_ih; W_hh] matrix, shape (IN + H, 4H)
    b : b_ih + b_hh, shape (1, 4H)
    PyTorch gate order (i, f, g, o).  Single MXU matmul per step.
    """
    xh = jnp.concatenate([x_t, h_prev], axis=-1)                  # (B, IN+H)
    gates = jnp.dot(xh, w, preferred_element_type=jnp.float32) + b
    i = jax.nn.sigmoid(gates[:, 0 * H:1 * H])
    f = jax.nn.sigmoid(gates[:, 1 * H:2 * H])
    g = jnp.tanh(gates[:, 2 * H:3 * H])
    o = jax.nn.sigmoid(gates[:, 3 * H:4 * H])
    c_new = f * c_prev + i * g
    h_new = o * jnp.tanh(c_new)
    return h_new, c_new


def _bilstm_layer(xs, wf_ref, bf_ref, wb_ref, bb_ref,
                  h0f, c0f, h0b, c0b, H, need_seq):
    """One bidirectional LSTM layer over a list of (B, IN) time-step values.

    Forward and backward cells are interleaved in the same unrolled loop so the
    two directions' MXU / VPU / EUP work overlaps in the VLIW schedule.
    Returns (seq or None, h_f, c_f, h_b, c_b), where
    seq[t] = concat(out_fwd[t], out_bwd[t]) (only built when a next layer
    actually consumes it).
    """
    L = len(xs)
    w_f, b_f = wf_ref[...], bf_ref[...]
    w_b, b_b = wb_ref[...], bb_ref[...]
    hf, cf, hb, cb = h0f, c0f, h0b, c0b
    outs_f = [None] * L
    outs_b = [None] * L
    for t in range(L):
        tb = L - 1 - t
        hf, cf = _lstm_cell(xs[t], hf, cf, w_f, b_f, H)       # forward dir
        hb, cb = _lstm_cell(xs[tb], hb, cb, w_b, b_b, H)      # backward dir
        if need_seq:
            outs_f[t] = hf
            outs_b[tb] = hb
    seq = None
    if need_seq:
        seq = [jnp.concatenate([outs_f[t], outs_b[t]], axis=-1) for t in range(L)]
    return seq, hf, cf, hb, cb


# ---------------------------------------------------------------------------
# Kernels
# ---------------------------------------------------------------------------

def _make_encoder_kernel(seq_len, num_layers, hidden_dim):
    H = hidden_dim

    def kernel(x_ref, *refs):
        # refs = [w_f, b_f, w_b, b_b] per layer, then hn_ref, cn_ref outputs.
        w_refs = refs[:4 * num_layers]
        hn_ref = refs[4 * num_layers]
        cn_ref = refs[4 * num_layers + 1]

        B = x_ref.shape[0]
        x_all = x_ref[...]                                    # (B, T, D) batch-first
        xs = [x_all[:, t, :] for t in range(seq_len)]         # static slices
        zeros = jnp.zeros((B, H), jnp.float32)                # init_hidden -> zeros

        for l in range(num_layers):
            need_seq = l < num_layers - 1                     # top-layer seq unused
            seq, hf, cf, hb, cb = _bilstm_layer(
                xs,
                w_refs[4 * l + 0], w_refs[4 * l + 1],
                w_refs[4 * l + 2], w_refs[4 * l + 3],
                zeros, zeros, zeros, zeros, H, need_seq)
            # PyTorch packing: index = layer * 2 + direction
            hn_ref[2 * l] = hf
            hn_ref[2 * l + 1] = hb
            cn_ref[2 * l] = cf
            cn_ref[2 * l + 1] = cb
            if need_seq:
                xs = seq

    return kernel


def _make_decoder_kernel(seq_len, pred_len, num_layers, hidden_dim):
    H = hidden_dim

    def kernel(x_ref, h0_ref, c0_ref, *refs):
        # refs = [w_f, b_f, w_b, b_b] per layer, lin_w, lin_b, out_ref.
        w_refs = refs[:4 * num_layers]
        lin_w_ref = refs[4 * num_layers]
        lin_b_ref = refs[4 * num_layers + 1]
        out_ref = refs[4 * num_layers + 2]

        x_all = x_ref[...]                                    # (B, T, D)
        x_last = x_all[:, seq_len - 1, :]                     # decoder_input at t=0

        h0 = h0_ref[...]
        c0 = c0_ref[...]
        hs = [h0[k] for k in range(2 * num_layers)]
        cs = [c0[k] for k in range(2 * num_layers)]

        lin_w = lin_w_ref[...]
        lin_b = lin_b_ref[...]

        outs = []
        for t in range(pred_len):
            # decoder_input: x[:, -1:] at step 0, outputs[:, :t] afterwards.
            xs = [x_last] if t == 0 else list(outs[:t])
            for l in range(num_layers):
                need_seq = l < num_layers - 1
                seq, hf, cf, hb, cb = _bilstm_layer(
                    xs,
                    w_refs[4 * l + 0], w_refs[4 * l + 1],
                    w_refs[4 * l + 2], w_refs[4 * l + 3],
                    hs[2 * l], cs[2 * l], hs[2 * l + 1], cs[2 * l + 1],
                    H, need_seq)
                hs[2 * l], cs[2 * l] = hf, cf
                hs[2 * l + 1], cs[2 * l + 1] = hb, cb
                if need_seq:
                    xs = seq
            # LSTMDecoder epilogue (matches the reference exactly):
            #   out_f = lstm_out[:, -1, :H]  == final fwd hidden of top layer
            #   out_b = lstm_out[:,  0, H:]  == final bwd hidden of top layer
            top = num_layers - 1
            out_cat = jnp.concatenate([hs[2 * top], hs[2 * top + 1]], axis=-1)  # (B, 2H)
            dec = (jnp.dot(out_cat, lin_w, preferred_element_type=jnp.float32)
                   + lin_b)                                                      # (B, D)
            outs.append(dec)

        out_ref[...] = jnp.stack(outs, axis=1)                # (B, pred_len, D)

    return kernel


# ---------------------------------------------------------------------------
# pallas_call wrappers
# ---------------------------------------------------------------------------

_VMEM_SPEC = functools.partial(pl.BlockSpec, memory_space=pltpu.MemorySpace.VMEM)


def encoder_forward(x, enc_params, hidden_dim, num_layers):
    """Multi-layer bidirectional LSTM encoder; returns (h_n, c_n)."""
    B, T, _ = x.shape
    H = hidden_dim
    flat = []
    for l in range(num_layers):
        flat.extend(enc_params[l])                            # (w_f, b_f, w_b, b_b)

    kernel = _make_encoder_kernel(T, num_layers, H)
    n_in = 1 + len(flat)
    hn, cn = pl.pallas_call(
        kernel,
        out_shape=(jax.ShapeDtypeStruct((2 * num_layers, B, H), jnp.float32),
                   jax.ShapeDtypeStruct((2 * num_layers, B, H), jnp.float32)),
        in_specs=[_VMEM_SPEC() for _ in range(n_in)],
        out_specs=(_VMEM_SPEC(), _VMEM_SPEC()),
    )(x, *flat)
    return hn, cn


def decoder_forward(x, h0, c0, dec_params, lin_w, lin_b,
                    hidden_dim, num_layers, pred_len):
    """All pred_len autoregressive decoder steps + Linear in one kernel."""
    B, T, D = x.shape
    H = hidden_dim
    flat = []
    for l in range(num_layers):
        flat.extend(dec_params[l])

    kernel = _make_decoder_kernel(T, pred_len, num_layers, H)
    n_in = 3 + len(flat) + 2
    out = pl.pallas_call(
        kernel,
        out_shape=jax.ShapeDtypeStruct((B, pred_len, D), jnp.float32),
        in_specs=[_VMEM_SPEC() for _ in range(n_in)],
        out_specs=_VMEM_SPEC(),
    )(x, h0, c0, *flat, lin_w, lin_b)
    return out


@functools.partial(jax.jit, static_argnames=("num_layers", "hidden_dim", "pred_len"))
def model_forward(x, enc_params, dec_params, lin_w, lin_b, *,
                  num_layers, hidden_dim, pred_len):
    """Full Model.forward (teacher_forcing=None path): encoder -> autoregressive
    decoder.  Exactly two pallas_calls, no glue ops in between."""
    h_enc, c_enc = encoder_forward(x, enc_params, hidden_dim, num_layers)
    return decoder_forward(x, h_enc, c_enc, dec_params, lin_w, lin_b,
                           hidden_dim, num_layers, pred_len)


# ---------------------------------------------------------------------------
# Deterministic parameter initialization (PyTorch-style uniform(-1/sqrt(H), ..))
# Weights are pre-packed as fused [W_ih; W_hh] (IN+H, 4H) and b = b_ih + b_hh.
# ---------------------------------------------------------------------------

def init_lstm_params(key, num_layers, input_dim, hidden_dim):
    bound = 1.0 / float(np.sqrt(hidden_dim))
    params = []
    for l in range(num_layers):
        in_l = input_dim if l == 0 else 2 * hidden_dim
        layer = []
        for _direction in range(2):                            # fwd, bwd
            key, k1, k2, k3, k4 = jax.random.split(key, 5)
            w_ih = jax.random.uniform(k1, (in_l, 4 * hidden_dim),
                                      jnp.float32, -bound, bound)
            w_hh = jax.random.uniform(k2, (hidden_dim, 4 * hidden_dim),
                                      jnp.float32, -bound, bound)
            b_ih = jax.random.uniform(k3, (4 * hidden_dim,),
                                      jnp.float32, -bound, bound)
            b_hh = jax.random.uniform(k4, (4 * hidden_dim,),
                                      jnp.float32, -bound, bound)
            w = jnp.concatenate([w_ih, w_hh], axis=0)          # (in_l + H, 4H)
            b = (b_ih + b_hh).reshape(1, 4 * hidden_dim)
            layer.extend([w, b])
        params.append(tuple(layer))                            # (w_f, b_f, w_b, b_b)
    return params, key


# ---------------------------------------------------------------------------
# Main
# ---------------------------------------------------------------------------

if __name__ == "__main__":
    # small config consistent with the module's forward
    batch = 2
    seq_len = 8
    pred_len = 4
    input_dim = 4
    hidden_dim = 32
    num_layers = 2
    # bidirectional must be True: the decoder uses Linear(hidden*2, input_dim)
    # and slices lstm_out[:, 0, hidden:] for the backward half.

    key = jax.random.PRNGKey(0)
    key, kx = jax.random.split(key)
    x = jax.random.normal(kx, (batch, seq_len, input_dim), jnp.float32)

    enc_params, key = init_lstm_params(key, num_layers, input_dim, hidden_dim)
    dec_params, key = init_lstm_params(key, num_layers, input_dim, hidden_dim)
    key, kw, kb = jax.random.split(key, 3)
    lin_bound = 1.0 / float(np.sqrt(hidden_dim * 2))
    lin_w = jax.random.uniform(kw, (hidden_dim * 2, input_dim),
                               jnp.float32, -lin_bound, lin_bound)
    lin_b = jax.random.uniform(kb, (1, input_dim),
                               jnp.float32, -lin_bound, lin_bound)

    out = model_forward(x, enc_params, dec_params, lin_w, lin_b,
                        num_layers=num_layers, hidden_dim=hidden_dim,
                        pred_len=pred_len)
    out = jax.block_until_ready(out)
    assert out.shape == (batch, pred_len, input_dim)
    assert bool(jnp.all(jnp.isfinite(out)))
    print("KERNEL_OK")
</pallas_src>

<mosaic_0001>
module attributes {stable_mosaic.version = 11 : i64} {
  func.func @kernel(%arg0: memref<2x8x4xf32, #tpu.memory_space<vmem>>, %arg1: memref<36x128xf32, #tpu.memory_space<vmem>>, %arg2: memref<1x128xf32, #tpu.memory_space<vmem>>, %arg3: memref<36x128xf32, #tpu.memory_space<vmem>>, %arg4: memref<1x128xf32, #tpu.memory_space<vmem>>, %arg5: memref<96x128xf32, #tpu.memory_space<vmem>>, %arg6: memref<1x128xf32, #tpu.memory_space<vmem>>, %arg7: memref<96x128xf32, #tpu.memory_space<vmem>>, %arg8: memref<1x128xf32, #tpu.memory_space<vmem>>, %arg9: memref<4x2x32xf32, #tpu.memory_space<vmem>>, %arg10: memref<4x2x32xf32, #tpu.memory_space<vmem>>) attributes {dimension_semantics = [], scalar_prefetch = 0 : i64, scratch_operands = 0 : i64, tpu.core_type = #tpu.core_type<tc>} {
    %c0 = arith.constant 0 : index
    %c0_0 = arith.constant 0 : index
    %c0_1 = arith.constant 0 : index
    %0 = vector.load %arg0[%c0, %c0_0, %c0_1] : memref<2x8x4xf32, #tpu.memory_space<vmem>>, vector<2x8x4xf32>
    %1 = vector.extract_strided_slice %0 {offsets = [0, 0, 0], sizes = [2, 1, 4], strides = [1, 1, 1]} : vector<2x8x4xf32> to vector<2x1x4xf32>
    %2 = vector.shape_cast %1 : vector<2x1x4xf32> to vector<2x4xf32>
    %3 = vector.extract_strided_slice %0 {offsets = [0, 1, 0], sizes = [2, 1, 4], strides = [1, 1, 1]} : vector<2x8x4xf32> to vector<2x1x4xf32>
    %4 = vector.shape_cast %3 : vector<2x1x4xf32> to vector<2x4xf32>
    %5 = vector.extract_strided_slice %0 {offsets = [0, 2, 0], sizes = [2, 1, 4], strides = [1, 1, 1]} : vector<2x8x4xf32> to vector<2x1x4xf32>
    %6 = vector.shape_cast %5 : vector<2x1x4xf32> to vector<2x4xf32>
    %7 = vector.extract_strided_slice %0 {offsets = [0, 3, 0], sizes = [2, 1, 4], strides = [1, 1, 1]} : vector<2x8x4xf32> to vector<2x1x4xf32>
    %8 = vector.shape_cast %7 : vector<2x1x4xf32> to vector<2x4xf32>
    %9 = vector.extract_strided_slice %0 {offsets = [0, 4, 0], sizes = [2, 1, 4], strides = [1, 1, 1]} : vector<2x8x4xf32> to vector<2x1x4xf32>
    %10 = vector.shape_cast %9 : vector<2x1x4xf32> to vector<2x4xf32>
    %11 = vector.extract_strided_slice %0 {offsets = [0, 5, 0], sizes = [2, 1, 4], strides = [1, 1, 1]} : vector<2x8x4xf32> to vector<2x1x4xf32>
    %12 = vector.shape_cast %11 : vector<2x1x4xf32> to vector<2x4xf32>
    %13 = vector.extract_strided_slice %0 {offsets = [0, 6, 0], sizes = [2, 1, 4], strides = [1, 1, 1]} : vector<2x8x4xf32> to vector<2x1x4xf32>
    %14 = vector.shape_cast %13 : vector<2x1x4xf32> to vector<2x4xf32>
    %15 = vector.extract_strided_slice %0 {offsets = [0, 7, 0], sizes = [2, 1, 4], strides = [1, 1, 1]} : vector<2x8x4xf32> to vector<2x1x4xf32>
    %16 = vector.shape_cast %15 : vector<2x1x4xf32> to vector<2x4xf32>
    %cst = arith.constant 0.000000e+00 : f32
    %17 = vector.broadcast %cst : f32 to vector<2x32xf32>
    %c0_2 = arith.constant 0 : index
    %c0_3 = arith.constant 0 : index
    %18 = vector.load %arg1[%c0_2, %c0_3] : memref<36x128xf32, #tpu.memory_space<vmem>>, vector<36x128xf32>
    %c0_4 = arith.constant 0 : index
    %c0_5 = arith.constant 0 : index
    %19 = vector.load %arg2[%c0_4, %c0_5] : memref<1x128xf32, #tpu.memory_space<vmem>>, vector<1x128xf32>
    %c0_6 = arith.constant 0 : index
    %c0_7 = arith.constant 0 : index
    %20 = vector.load %arg3[%c0_6, %c0_7] : memref<36x128xf32, #tpu.memory_space<vmem>>, vector<36x128xf32>
    %c0_8 = arith.constant 0 : index
    %c0_9 = arith.constant 0 : index
    %21 = vector.load %arg4[%c0_8, %c0_9] : memref<1x128xf32, #tpu.memory_space<vmem>>, vector<1x128xf32>
    %22 = tpu.concatenate %2, %17 in 1 : vector<2x4xf32>, vector<2x32xf32> -> vector<2x36xf32>
    %cst_10 = arith.constant dense<0.000000e+00> : vector<2x128xf32>
    %23 = tpu.matmul %22, %18, %cst_10 {dimension_numbers = #tpu.dot_dimension_numbers<[1], [0], [0], [1], [0, 0, 1, 1], [], []>} : vector<2x36xf32>, vector<36x128xf32>, vector<2x128xf32> -> vector<2x128xf32>
    %24 = vector.broadcast %19 : vector<1x128xf32> to vector<2x128xf32>
    %25 = arith.addf %23, %24 : vector<2x128xf32>
    %26 = vector.extract_strided_slice %25 {offsets = [0, 0], sizes = [2, 32], strides = [1, 1]} : vector<2x128xf32> to vector<2x32xf32>
    %27 = arith.negf %26 : vector<2x32xf32>
    %28 = math.exp %27 : vector<2x32xf32>
    %cst_11 = arith.constant 1.000000e+00 : f32
    %29 = vector.broadcast %cst_11 : f32 to vector<2x32xf32>
    %30 = arith.addf %29, %28 : vector<2x32xf32>
    %31 = arith.divf %29, %30 : vector<2x32xf32>
    %32 = vector.extract_strided_slice %25 {offsets = [0, 32], sizes = [2, 32], strides = [1, 1]} : vector<2x128xf32> to vector<2x32xf32>
    %33 = arith.negf %32 : vector<2x32xf32>
    %34 = math.exp %33 : vector<2x32xf32>
    %cst_12 = arith.constant 1.000000e+00 : f32
    %35 = vector.broadcast %cst_12 : f32 to vector<2x32xf32>
    %36 = arith.addf %35, %34 : vector<2x32xf32>
    %37 = arith.divf %35, %36 : vector<2x32xf32>
    %38 = vector.extract_strided_slice %25 {offsets = [0, 64], sizes = [2, 32], strides = [1, 1]} : vector<2x128xf32> to vector<2x32xf32>
    %39 = math.tanh %38 : vector<2x32xf32>
    %40 = vector.extract_strided_slice %25 {offsets = [0, 96], sizes = [2, 32], strides = [1, 1]} : vector<2x128xf32> to vector<2x32xf32>
    %41 = arith.negf %40 : vector<2x32xf32>
    %42 = math.exp %41 : vector<2x32xf32>
    %cst_13 = arith.constant 1.000000e+00 : f32
    %43 = vector.broadcast %cst_13 : f32 to vector<2x32xf32>
    %44 = arith.addf %43, %42 : vector<2x32xf32>
    %45 = arith.divf %43, %44 : vector<2x32xf32>
    %46 = arith.mulf %37, %17 : vector<2x32xf32>
    %47 = arith.mulf %31, %39 : vector<2x32xf32>
    %48 = arith.addf %46, %47 : vector<2x32xf32>
    %49 = math.tanh %48 : vector<2x32xf32>
    %50 = arith.mulf %45, %49 : vector<2x32xf32>
    %51 = tpu.concatenate %16, %17 in 1 : vector<2x4xf32>, vector<2x32xf32> -> vector<2x36xf32>
    %cst_14 = arith.constant dense<0.000000e+00> : vector<2x128xf32>
    %52 = tpu.matmul %51, %20, %cst_14 {dimension_numbers = #tpu.dot_dimension_numbers<[1], [0], [0], [1], [0, 0, 1, 1], [], []>} : vector<2x36xf32>, vector<36x128xf32>, vector<2x128xf32> -> vector<2x128xf32>
    %53 = vector.broadcast %21 : vector<1x128xf32> to vector<2x128xf32>
    %54 = arith.addf %52, %53 : vector<2x128xf32>
    %55 = vector.extract_strided_slice %54 {offsets = [0, 0], sizes = [2, 32], strides = [1, 1]} : vector<2x128xf32> to vector<2x32xf32>
    %56 = arith.negf %55 : vector<2x32xf32>
    %57 = math.exp %56 : vector<2x32xf32>
    %cst_15 = arith.constant 1.000000e+00 : f32
    %58 = vector.broadcast %cst_15 : f32 to vector<2x32xf32>
    %59 = arith.addf %58, %57 : vector<2x32xf32>
    %60 = arith.divf %58, %59 : vector<2x32xf32>
    %61 = vector.extract_strided_slice %54 {offsets = [0, 32], sizes = [2, 32], strides = [1, 1]} : vector<2x128xf32> to vector<2x32xf32>
    %62 = arith.negf %61 : vector<2x32xf32>
    %63 = math.exp %62 : vector<2x32xf32>
    %cst_16 = arith.constant 1.000000e+00 : f32
    %64 = vector.broadcast %cst_16 : f32 to vector<2x32xf32>
    %65 = arith.addf %64, %63 : vector<2x32xf32>
    %66 = arith.divf %64, %65 : vector<2x32xf32>
    %67 = vector.extract_strided_slice %54 {offsets = [0, 64], sizes = [2, 32], strides = [1, 1]} : vector<2x128xf32> to vector<2x32xf32>
    %68 = math.tanh %67 : vector<2x32xf32>
    %69 = vector.extract_strided_slice %54 {offsets = [0, 96], sizes = [2, 32], strides = [1, 1]} : vector<2x128xf32> to vector<2x32xf32>
    %70 = arith.negf %69 : vector<2x32xf32>
    %71 = math.exp %70 : vector<2x32xf32>
    %cst_17 = arith.constant 1.000000e+00 : f32
    %72 = vector.broadcast %cst_17 : f32 to vector<2x32xf32>
    %73 = arith.addf %72, %71 : vector<2x32xf32>
    %74 = arith.divf %72, %73 : vector<2x32xf32>
    %75 = arith.mulf %66, %17 : vector<2x32xf32>
    %76 = arith.mulf %60, %68 : vector<2x32xf32>
    %77 = arith.addf %75, %76 : vector<2x32xf32>
    %78 = math.tanh %77 : vector<2x32xf32>
    %79 = arith.mulf %74, %78 : vector<2x32xf32>
    %80 = tpu.concatenate %4, %50 in 1 : vector<2x4xf32>, vector<2x32xf32> -> vector<2x36xf32>
    %cst_18 = arith.constant dense<0.000000e+00> : vector<2x128xf32>
    %81 = tpu.matmul %80, %18, %cst_18 {dimension_numbers = #tpu.dot_dimension_numbers<[1], [0], [0], [1], [0, 0, 1, 1], [], []>} : vector<2x36xf32>, vector<36x128xf32>, vector<2x128xf32> -> vector<2x128xf32>
    %82 = vector.broadcast %19 : vector<1x128xf32> to vector<2x128xf32>
    %83 = arith.addf %81, %82 : vector<2x128xf32>
    %84 = vector.extract_strided_slice %83 {offsets = [0, 0], sizes = [2, 32], strides = [1, 1]} : vector<2x128xf32> to vector<2x32xf32>
    %85 = arith.negf %84 : vector<2x32xf32>
    %86 = math.exp %85 : vector<2x32xf32>
    %cst_19 = arith.constant 1.000000e+00 : f32
    %87 = vector.broadcast %cst_19 : f32 to vector<2x32xf32>
    %88 = arith.addf %87, %86 : vector<2x32xf32>
    %89 = arith.divf %87, %88 : vector<2x32xf32>
    %90 = vector.extract_strided_slice %83 {offsets = [0, 32], sizes = [2, 32], strides = [1, 1]} : vector<2x128xf32> to vector<2x32xf32>
    %91 = arith.negf %90 : vector<2x32xf32>
    %92 = math.exp %91 : vector<2x32xf32>
    %cst_20 = arith.constant 1.000000e+00 : f32
    %93 = vector.broadcast %cst_20 : f32 to vector<2x32xf32>
    %94 = arith.addf %93, %92 : vector<2x32xf32>
    %95 = arith.divf %93, %94 : vector<2x32xf32>
    %96 = vector.extract_strided_slice %83 {offsets = [0, 64], sizes = [2, 32], strides = [1, 1]} : vector<2x128xf32> to vector<2x32xf32>
    %97 = math.tanh %96 : vector<2x32xf32>
    %98 = vector.extract_strided_slice %83 {offsets = [0, 96], sizes = [2, 32], strides = [1, 1]} : vector<2x128xf32> to vector<2x32xf32>
    %99 = arith.negf %98 : vector<2x32xf32>
    %100 = math.exp %99 : vector<2x32xf32>
    %cst_21 = arith.constant 1.000000e+00 : f32
    %101 = vector.broadcast %cst_21 : f32 to vector<2x32xf32>
    %102 = arith.addf %101, %100 : vector<2x32xf32>
    %103 = arith.divf %101, %102 : vector<2x32xf32>
    %104 = arith.mulf %95, %48 : vector<2x32xf32>
    %105 = arith.mulf %89, %97 : vector<2x32xf32>
    %106 = arith.addf %104, %105 : vector<2x32xf32>
    %107 = math.tanh %106 : vector<2x32xf32>
    %108 = arith.mulf %103, %107 : vector<2x32xf32>
    %109 = tpu.concatenate %14, %79 in 1 : vector<2x4xf32>, vector<2x32xf32> -> vector<2x36xf32>
    %cst_22 = arith.constant dense<0.000000e+00> : vector<2x128xf32>
    %110 = tpu.matmul %109, %20, %cst_22 {dimension_numbers = #tpu.dot_dimension_numbers<[1], [0], [0], [1], [0, 0, 1, 1], [], []>} : vector<2x36xf32>, vector<36x128xf32>, vector<2x128xf32> -> vector<2x128xf32>
    %111 = vector.broadcast %21 : vector<1x128xf32> to vector<2x128xf32>
    %112 = arith.addf %110, %111 : vector<2x128xf32>
    %113 = vector.extract_strided_slice %112 {offsets = [0, 0], sizes = [2, 32], strides = [1, 1]} : vector<2x128xf32> to vector<2x32xf32>
    %114 = arith.negf %113 : vector<2x32xf32>
    %115 = math.exp %114 : vector<2x32xf32>
    %cst_23 = arith.constant 1.000000e+00 : f32
    %116 = vector.broadcast %cst_23 : f32 to vector<2x32xf32>
    %117 = arith.addf %116, %115 : vector<2x32xf32>
    %118 = arith.divf %116, %117 : vector<2x32xf32>
    %119 = vector.extract_strided_slice %112 {offsets = [0, 32], sizes = [2, 32], strides = [1, 1]} : vector<2x128xf32> to vector<2x32xf32>
    %120 = arith.negf %119 : vector<2x32xf32>
    %121 = math.exp %120 : vector<2x32xf32>
    %cst_24 = arith.constant 1.000000e+00 : f32
    %122 = vector.broadcast %cst_24 : f32 to vector<2x32xf32>
    %123 = arith.addf %122, %121 : vector<2x32xf32>
    %124 = arith.divf %122, %123 : vector<2x32xf32>
    %125 = vector.extract_strided_slice %112 {offsets = [0, 64], sizes = [2, 32], strides = [1, 1]} : vector<2x128xf32> to vector<2x32xf32>
    %126 = math.tanh %125 : vector<2x32xf32>
    %127 = vector.extract_strided_slice %112 {offsets = [0, 96], sizes = [2, 32], strides = [1, 1]} : vector<2x128xf32> to vector<2x32xf32>
    %128 = arith.negf %127 : vector<2x32xf32>
    %129 = math.exp %128 : vector<2x32xf32>
    %cst_25 = arith.constant 1.000000e+00 : f32
    %130 = vector.broadcast %cst_25 : f32 to vector<2x32xf32>
    %131 = arith.addf %130, %129 : vector<2x32xf32>
    %132 = arith.divf %130, %131 : vector<2x32xf32>
    %133 = arith.mulf %124, %77 : vector<2x32xf32>
    %134 = arith.mulf %118, %126 : vector<2x32xf32>
    %135 = arith.addf %133, %134 : vector<2x32xf32>
    %136 = math.tanh %135 : vector<2x32xf32>
    %137 = arith.mulf %132, %136 : vector<2x32xf32>
    %138 = tpu.concatenate %6, %108 in 1 : vector<2x4xf32>, vector<2x32xf32> -> vector<2x36xf32>
    %cst_26 = arith.constant dense<0.000000e+00> : vector<2x128xf32>
    %139 = tpu.matmul %138, %18, %cst_26 {dimension_numbers = #tpu.dot_dimension_numbers<[1], [0], [0], [1], [0, 0, 1, 1], [], []>} : vector<2x36xf32>, vector<36x128xf32>, vector<2x128xf32> -> vector<2x128xf32>
    %140 = vector.broadcast %19 : vector<1x128xf32> to vector<2x128xf32>
    %141 = arith.addf %139, %140 : vector<2x128xf32>
    %142 = vector.extract_strided_slice %141 {offsets = [0, 0], sizes = [2, 32], strides = [1, 1]} : vector<2x128xf32> to vector<2x32xf32>
    %143 = arith.negf %142 : vector<2x32xf32>
    %144 = math.exp %143 : vector<2x32xf32>
    %cst_27 = arith.constant 1.000000e+00 : f32
    %145 = vector.broadcast %cst_27 : f32 to vector<2x32xf32>
    %146 = arith.addf %145, %144 : vector<2x32xf32>
    %147 = arith.divf %145, %146 : vector<2x32xf32>
    %148 = vector.extract_strided_slice %141 {offsets = [0, 32], sizes = [2, 32], strides = [1, 1]} : vector<2x128xf32> to vector<2x32xf32>
    %149 = arith.negf %148 : vector<2x32xf32>
    %150 = math.exp %149 : vector<2x32xf32>
    %cst_28 = arith.constant 1.000000e+00 : f32
    %151 = vector.broadcast %cst_28 : f32 to vector<2x32xf32>
    %152 = arith.addf %151, %150 : vector<2x32xf32>
    %153 = arith.divf %151, %152 : vector<2x32xf32>
    %154 = vector.extract_strided_slice %141 {offsets = [0, 64], sizes = [2, 32], strides = [1, 1]} : vector<2x128xf32> to vector<2x32xf32>
    %155 = math.tanh %154 : vector<2x32xf32>
    %156 = vector.extract_strided_slice %141 {offsets = [0, 96], sizes = [2, 32], strides = [1, 1]} : vector<2x128xf32> to vector<2x32xf32>
    %157 = arith.negf %156 : vector<2x32xf32>
    %158 = math.exp %157 : vector<2x32xf32>
    %cst_29 = arith.constant 1.000000e+00 : f32
    %159 = vector.broadcast %cst_29 : f32 to vector<2x32xf32>
    %160 = arith.addf %159, %158 : vector<2x32xf32>
    %161 = arith.divf %159, %160 : vector<2x32xf32>
    %162 = arith.mulf %153, %106 : vector<2x32xf32>
    %163 = arith.mulf %147, %155 : vector<2x32xf32>
    %164 = arith.addf %162, %163 : vector<2x32xf32>
    %165 = math.tanh %164 : vector<2x32xf32>
    %166 = arith.mulf %161, %165 : vector<2x32xf32>
    %167 = tpu.concatenate %12, %137 in 1 : vector<2x4xf32>, vector<2x32xf32> -> vector<2x36xf32>
    %cst_30 = arith.constant dense<0.000000e+00> : vector<2x128xf32>
    %168 = tpu.matmul %167, %20, %cst_30 {dimension_numbers = #tpu.dot_dimension_numbers<[1], [0], [0], [1], [0, 0, 1, 1], [], []>} : vector<2x36xf32>, vector<36x128xf32>, vector<2x128xf32> -> vector<2x128xf32>
    %169 = vector.broadcast %21 : vector<1x128xf32> to vector<2x128xf32>
    %170 = arith.addf %168, %169 : vector<2x128xf32>
    %171 = vector.extract_strided_slice %170 {offsets = [0, 0], sizes = [2, 32], strides = [1, 1]} : vector<2x128xf32> to vector<2x32xf32>
    %172 = arith.negf %171 : vector<2x32xf32>
    %173 = math.exp %172 : vector<2x32xf32>
    %cst_31 = arith.constant 1.000000e+00 : f32
    %174 = vector.broadcast %cst_31 : f32 to vector<2x32xf32>
    %175 = arith.addf %174, %173 : vector<2x32xf32>
    %176 = arith.divf %174, %175 : vector<2x32xf32>
    %177 = vector.extract_strided_slice %170 {offsets = [0, 32], sizes = [2, 32], strides = [1, 1]} : vector<2x128xf32> to vector<2x32xf32>
    %178 = arith.negf %177 : vector<2x32xf32>
    %179 = math.exp %178 : vector<2x32xf32>
    %cst_32 = arith.constant 1.000000e+00 : f32
    %180 = vector.broadcast %cst_32 : f32 to vector<2x32xf32>
    %181 = arith.addf %180, %179 : vector<2x32xf32>
    %182 = arith.divf %180, %181 : vector<2x32xf32>
    %183 = vector.extract_strided_slice %170 {offsets = [0, 64], sizes = [2, 32], strides = [1, 1]} : vector<2x128xf32> to vector<2x32xf32>
    %184 = math.tanh %183 : vector<2x32xf32>
    %185 = vector.extract_strided_slice %170 {offsets = [0, 96], sizes = [2, 32], strides = [1, 1]} : vector<2x128xf32> to vector<2x32xf32>
    %186 = arith.negf %185 : vector<2x32xf32>
    %187 = math.exp %186 : vector<2x32xf32>
    %cst_33 = arith.constant 1.000000e+00 : f32
    %188 = vector.broadcast %cst_33 : f32 to vector<2x32xf32>
    %189 = arith.addf %188, %187 : vector<2x32xf32>
    %190 = arith.divf %188, %189 : vector<2x32xf32>
    %191 = arith.mulf %182, %135 : vector<2x32xf32>
    %192 = arith.mulf %176, %184 : vector<2x32xf32>
    %193 = arith.addf %191, %192 : vector<2x32xf32>
    %194 = math.tanh %193 : vector<2x32xf32>
    %195 = arith.mulf %190, %194 : vector<2x32xf32>
    %196 = tpu.concatenate %8, %166 in 1 : vector<2x4xf32>, vector<2x32xf32> -> vector<2x36xf32>
    %cst_34 = arith.constant dense<0.000000e+00> : vector<2x128xf32>
    %197 = tpu.matmul %196, %18, %cst_34 {dimension_numbers = #tpu.dot_dimension_numbers<[1], [0], [0], [1], [0, 0, 1, 1], [], []>} : vector<2x36xf32>, vector<36x128xf32>, vector<2x128xf32> -> vector<2x128xf32>
    %198 = vector.broadcast %19 : vector<1x128xf32> to vector<2x128xf32>
    %199 = arith.addf %197, %198 : vector<2x128xf32>
    %200 = vector.extract_strided_slice %199 {offsets = [0, 0], sizes = [2, 32], strides = [1, 1]} : vector<2x128xf32> to vector<2x32xf32>
    %201 = arith.negf %200 : vector<2x32xf32>
    %202 = math.exp %201 : vector<2x32xf32>
    %cst_35 = arith.constant 1.000000e+00 : f32
    %203 = vector.broadcast %cst_35 : f32 to vector<2x32xf32>
    %204 = arith.addf %203, %202 : vector<2x32xf32>
    %205 = arith.divf %203, %204 : vector<2x32xf32>
    %206 = vector.extract_strided_slice %199 {offsets = [0, 32], sizes = [2, 32], strides = [1, 1]} : vector<2x128xf32> to vector<2x32xf32>
    %207 = arith.negf %206 : vector<2x32xf32>
    %208 = math.exp %207 : vector<2x32xf32>
    %cst_36 = arith.constant 1.000000e+00 : f32
    %209 = vector.broadcast %cst_36 : f32 to vector<2x32xf32>
    %210 = arith.addf %209, %208 : vector<2x32xf32>
    %211 = arith.divf %209, %210 : vector<2x32xf32>
    %212 = vector.extract_strided_slice %199 {offsets = [0, 64], sizes = [2, 32], strides = [1, 1]} : vector<2x128xf32> to vector<2x32xf32>
    %213 = math.tanh %212 : vector<2x32xf32>
    %214 = vector.extract_strided_slice %199 {offsets = [0, 96], sizes = [2, 32], strides = [1, 1]} : vector<2x128xf32> to vector<2x32xf32>
    %215 = arith.negf %214 : vector<2x32xf32>
    %216 = math.exp %215 : vector<2x32xf32>
    %cst_37 = arith.constant 1.000000e+00 : f32
    %217 = vector.broadcast %cst_37 : f32 to vector<2x32xf32>
    %218 = arith.addf %217, %216 : vector<2x32xf32>
    %219 = arith.divf %217, %218 : vector<2x32xf32>
    %220 = arith.mulf %211, %164 : vector<2x32xf32>
    %221 = arith.mulf %205, %213 : vector<2x32xf32>
    %222 = arith.addf %220, %221 : vector<2x32xf32>
    %223 = math.tanh %222 : vector<2x32xf32>
    %224 = arith.mulf %219, %223 : vector<2x32xf32>
    %225 = tpu.concatenate %10, %195 in 1 : vector<2x4xf32>, vector<2x32xf32> -> vector<2x36xf32>
    %cst_38 = arith.constant dense<0.000000e+00> : vector<2x128xf32>
    %226 = tpu.matmul %225, %20, %cst_38 {dimension_numbers = #tpu.dot_dimension_numbers<[1], [0], [0], [1], [0, 0, 1, 1], [], []>} : vector<2x36xf32>, vector<36x128xf32>, vector<2x128xf32> -> vector<2x128xf32>
    %227 = vector.broadcast %21 : vector<1x128xf32> to vector<2x128xf32>
    %228 = arith.addf %226, %227 : vector<2x128xf32>
    %229 = vector.extract_strided_slice %228 {offsets = [0, 0], sizes = [2, 32], strides = [1, 1]} : vector<2x128xf32> to vector<2x32xf32>
    %230 = arith.negf %229 : vector<2x32xf32>
    %231 = math.exp %230 : vector<2x32xf32>
    %cst_39 = arith.constant 1.000000e+00 : f32
    %232 = vector.broadcast %cst_39 : f32 to vector<2x32xf32>
    %233 = arith.addf %232, %231 : vector<2x32xf32>
    %234 = arith.divf %232, %233 : vector<2x32xf32>
    %235 = vector.extract_strided_slice %228 {offsets = [0, 32], sizes = [2, 32], strides = [1, 1]} : vector<2x128xf32> to vector<2x32xf32>
    %236 = arith.negf %235 : vector<2x32xf32>
    %237 = math.exp %236 : vector<2x32xf32>
    %cst_40 = arith.constant 1.000000e+00 : f32
    %238 = vector.broadcast %cst_40 : f32 to vector<2x32xf32>
    %239 = arith.addf %238, %237 : vector<2x32xf32>
    %240 = arith.divf %238, %239 : vector<2x32xf32>
    %241 = vector.extract_strided_slice %228 {offsets = [0, 64], sizes = [2, 32], strides = [1, 1]} : vector<2x128xf32> to vector<2x32xf32>
    %242 = math.tanh %241 : vector<2x32xf32>
    %243 = vector.extract_strided_slice %228 {offsets = [0, 96], sizes = [2, 32], strides = [1, 1]} : vector<2x128xf32> to vector<2x32xf32>
    %244 = arith.negf %243 : vector<2x32xf32>
    %245 = math.exp %244 : vector<2x32xf32>
    %cst_41 = arith.constant 1.000000e+00 : f32
    %246 = vector.broadcast %cst_41 : f32 to vector<2x32xf32>
    %247 = arith.addf %246, %245 : vector<2x32xf32>
    %248 = arith.divf %246, %247 : vector<2x32xf32>
    %249 = arith.mulf %240, %193 : vector<2x32xf32>
    %250 = arith.mulf %234, %242 : vector<2x32xf32>
    %251 = arith.addf %249, %250 : vector<2x32xf32>
    %252 = math.tanh %251 : vector<2x32xf32>
    %253 = arith.mulf %248, %252 : vector<2x32xf32>
    %254 = tpu.concatenate %10, %224 in 1 : vector<2x4xf32>, vector<2x32xf32> -> vector<2x36xf32>
    %cst_42 = arith.constant dense<0.000000e+00> : vector<2x128xf32>
    %255 = tpu.matmul %254, %18, %cst_42 {dimension_numbers = #tpu.dot_dimension_numbers<[1], [0], [0], [1], [0, 0, 1, 1], [], []>} : vector<2x36xf32>, vector<36x128xf32>, vector<2x128xf32> -> vector<2x128xf32>
    %256 = vector.broadcast %19 : vector<1x128xf32> to vector<2x128xf32>
    %257 = arith.addf %255, %256 : vector<2x128xf32>
    %258 = vector.extract_strided_slice %257 {offsets = [0, 0], sizes = [2, 32], strides = [1, 1]} : vector<2x128xf32> to vector<2x32xf32>
    %259 = arith.negf %258 : vector<2x32xf32>
    %260 = math.exp %259 : vector<2x32xf32>
    %cst_43 = arith.constant 1.000000e+00 : f32
    %261 = vector.broadcast %cst_43 : f32 to vector<2x32xf32>
    %262 = arith.addf %261, %260 : vector<2x32xf32>
    %263 = arith.divf %261, %262 : vector<2x32xf32>
    %264 = vector.extract_strided_slice %257 {offsets = [0, 32], sizes = [2, 32], strides = [1, 1]} : vector<2x128xf32> to vector<2x32xf32>
    %265 = arith.negf %264 : vector<2x32xf32>
    %266 = math.exp %265 : vector<2x32xf32>
    %cst_44 = arith.constant 1.000000e+00 : f32
    %267 = vector.broadcast %cst_44 : f32 to vector<2x32xf32>
    %268 = arith.addf %267, %266 : vector<2x32xf32>
    %269 = arith.divf %267, %268 : vector<2x32xf32>
    %270 = vector.extract_strided_slice %257 {offsets = [0, 64], sizes = [2, 32], strides = [1, 1]} : vector<2x128xf32> to vector<2x32xf32>
    %271 = math.tanh %270 : vector<2x32xf32>
    %272 = vector.extract_strided_slice %257 {offsets = [0, 96], sizes = [2, 32], strides = [1, 1]} : vector<2x128xf32> to vector<2x32xf32>
    %273 = arith.negf %272 : vector<2x32xf32>
    %274 = math.exp %273 : vector<2x32xf32>
    %cst_45 = arith.constant 1.000000e+00 : f32
    %275 = vector.broadcast %cst_45 : f32 to vector<2x32xf32>
    %276 = arith.addf %275, %274 : vector<2x32xf32>
    %277 = arith.divf %275, %276 : vector<2x32xf32>
    %278 = arith.mulf %269, %222 : vector<2x32xf32>
    %279 = arith.mulf %263, %271 : vector<2x32xf32>
    %280 = arith.addf %278, %279 : vector<2x32xf32>
    %281 = math.tanh %280 : vector<2x32xf32>
    %282 = arith.mulf %277, %281 : vector<2x32xf32>
    %283 = tpu.concatenate %8, %253 in 1 : vector<2x4xf32>, vector<2x32xf32> -> vector<2x36xf32>
    %cst_46 = arith.constant dense<0.000000e+00> : vector<2x128xf32>
    %284 = tpu.matmul %283, %20, %cst_46 {dimension_numbers = #tpu.dot_dimension_numbers<[1], [0], [0], [1], [0, 0, 1, 1], [], []>} : vector<2x36xf32>, vector<36x128xf32>, vector<2x128xf32> -> vector<2x128xf32>
    %285 = vector.broadcast %21 : vector<1x128xf32> to vector<2x128xf32>
    %286 = arith.addf %284, %285 : vector<2x128xf32>
    %287 = vector.extract_strided_slice %286 {offsets = [0, 0], sizes = [2, 32], strides = [1, 1]} : vector<2x128xf32> to vector<2x32xf32>
    %288 = arith.negf %287 : vector<2x32xf32>
    %289 = math.exp %288 : vector<2x32xf32>
    %cst_47 = arith.constant 1.000000e+00 : f32
    %290 = vector.broadcast %cst_47 : f32 to vector<2x32xf32>
    %291 = arith.addf %290, %289 : vector<2x32xf32>
    %292 = arith.divf %290, %291 : vector<2x32xf32>
    %293 = vector.extract_strided_slice %286 {offsets = [0, 32], sizes = [2, 32], strides = [1, 1]} : vector<2x128xf32> to vector<2x32xf32>
    %294 = arith.negf %293 : vector<2x32xf32>
    %295 = math.exp %294 : vector<2x32xf32>
    %cst_48 = arith.constant 1.000000e+00 : f32
    %296 = vector.broadcast %cst_48 : f32 to vector<2x32xf32>
    %297 = arith.addf %296, %295 : vector<2x32xf32>
    %298 = arith.divf %296, %297 : vector<2x32xf32>
    %299 = vector.extract_strided_slice %286 {offsets = [0, 64], sizes = [2, 32], strides = [1, 1]} : vector<2x128xf32> to vector<2x32xf32>
    %300 = math.tanh %299 : vector<2x32xf32>
    %301 = vector.extract_strided_slice %286 {offsets = [0, 96], sizes = [2, 32], strides = [1, 1]} : vector<2x128xf32> to vector<2x32xf32>
    %302 = arith.negf %301 : vector<2x32xf32>
    %303 = math.exp %302 : vector<2x32xf32>
    %cst_49 = arith.constant 1.000000e+00 : f32
    %304 = vector.broadcast %cst_49 : f32 to vector<2x32xf32>
    %305 = arith.addf %304, %303 : vector<2x32xf32>
    %306 = arith.divf %304, %305 : vector<2x32xf32>
    %307 = arith.mulf %298, %251 : vector<2x32xf32>
    %308 = arith.mulf %292, %300 : vector<2x32xf32>
    %309 = arith.addf %307, %308 : vector<2x32xf32>
    %310 = math.tanh %309 : vector<2x32xf32>
    %311 = arith.mulf %306, %310 : vector<2x32xf32>
    %312 = tpu.concatenate %12, %282 in 1 : vector<2x4xf32>, vector<2x32xf32> -> vector<2x36xf32>
    %cst_50 = arith.constant dense<0.000000e+00> : vector<2x128xf32>
    %313 = tpu.matmul %312, %18, %cst_50 {dimension_numbers = #tpu.dot_dimension_numbers<[1], [0], [0], [1], [0, 0, 1, 1], [], []>} : vector<2x36xf32>, vector<36x128xf32>, vector<2x128xf32> -> vector<2x128xf32>
    %314 = vector.broadcast %19 : vector<1x128xf32> to vector<2x128xf32>
    %315 = arith.addf %313, %314 : vector<2x128xf32>
    %316 = vector.extract_strided_slice %315 {offsets = [0, 0], sizes = [2, 32], strides = [1, 1]} : vector<2x128xf32> to vector<2x32xf32>
    %317 = arith.negf %316 : vector<2x32xf32>
    %318 = math.exp %317 : vector<2x32xf32>
    %cst_51 = arith.constant 1.000000e+00 : f32
    %319 = vector.broadcast %cst_51 : f32 to vector<2x32xf32>
    %320 = arith.addf %319, %318 : vector<2x32xf32>
    %321 = arith.divf %319, %320 : vector<2x32xf32>
    %322 = vector.extract_strided_slice %315 {offsets = [0, 32], sizes = [2, 32], strides = [1, 1]} : vector<2x128xf32> to vector<2x32xf32>
    %323 = arith.negf %322 : vector<2x32xf32>
    %324 = math.exp %323 : vector<2x32xf32>
    %cst_52 = arith.constant 1.000000e+00 : f32
    %325 = vector.broadcast %cst_52 : f32 to vector<2x32xf32>
    %326 = arith.addf %325, %324 : vector<2x32xf32>
    %327 = arith.divf %325, %326 : vector<2x32xf32>
    %328 = vector.extract_strided_slice %315 {offsets = [0, 64], sizes = [2, 32], strides = [1, 1]} : vector<2x128xf32> to vector<2x32xf32>
    %329 = math.tanh %328 : vector<2x32xf32>
    %330 = vector.extract_strided_slice %315 {offsets = [0, 96], sizes = [2, 32], strides = [1, 1]} : vector<2x128xf32> to vector<2x32xf32>
    %331 = arith.negf %330 : vector<2x32xf32>
    %332 = math.exp %331 : vector<2x32xf32>
    %cst_53 = arith.constant 1.000000e+00 : f32
    %333 = vector.broadcast %cst_53 : f32 to vector<2x32xf32>
    %334 = arith.addf %333, %332 : vector<2x32xf32>
    %335 = arith.divf %333, %334 : vector<2x32xf32>
    %336 = arith.mulf %327, %280 : vector<2x32xf32>
    %337 = arith.mulf %321, %329 : vector<2x32xf32>
    %338 = arith.addf %336, %337 : vector<2x32xf32>
    %339 = math.tanh %338 : vector<2x32xf32>
    %340 = arith.mulf %335, %339 : vector<2x32xf32>
    %341 = tpu.concatenate %6, %311 in 1 : vector<2x4xf32>, vector<2x32xf32> -> vector<2x36xf32>
    %cst_54 = arith.constant dense<0.000000e+00> : vector<2x128xf32>
    %342 = tpu.matmul %341, %20, %cst_54 {dimension_numbers = #tpu.dot_dimension_numbers<[1], [0], [0], [1], [0, 0, 1, 1], [], []>} : vector<2x36xf32>, vector<36x128xf32>, vector<2x128xf32> -> vector<2x128xf32>
    %343 = vector.broadcast %21 : vector<1x128xf32> to vector<2x128xf32>
    %344 = arith.addf %342, %343 : vector<2x128xf32>
    %345 = vector.extract_strided_slice %344 {offsets = [0, 0], sizes = [2, 32], strides = [1, 1]} : vector<2x128xf32> to vector<2x32xf32>
    %346 = arith.negf %345 : vector<2x32xf32>
    %347 = math.exp %346 : vector<2x32xf32>
    %cst_55 = arith.constant 1.000000e+00 : f32
    %348 = vector.broadcast %cst_55 : f32 to vector<2x32xf32>
    %349 = arith.addf %348, %347 : vector<2x32xf32>
    %350 = arith.divf %348, %349 : vector<2x32xf32>
    %351 = vector.extract_strided_slice %344 {offsets = [0, 32], sizes = [2, 32], strides = [1, 1]} : vector<2x128xf32> to vector<2x32xf32>
    %352 = arith.negf %351 : vector<2x32xf32>
    %353 = math.exp %352 : vector<2x32xf32>
    %cst_56 = arith.constant 1.000000e+00 : f32
    %354 = vector.broadcast %cst_56 : f32 to vector<2x32xf32>
    %355 = arith.addf %354, %353 : vector<2x32xf32>
    %356 = arith.divf %354, %355 : vector<2x32xf32>
    %357 = vector.extract_strided_slice %344 {offsets = [0, 64], sizes = [2, 32], strides = [1, 1]} : vector<2x128xf32> to vector<2x32xf32>
    %358 = math.tanh %357 : vector<2x32xf32>
    %359 = vector.extract_strided_slice %344 {offsets = [0, 96], sizes = [2, 32], strides = [1, 1]} : vector<2x128xf32> to vector<2x32xf32>
    %360 = arith.negf %359 : vector<2x32xf32>
    %361 = math.exp %360 : vector<2x32xf32>
    %cst_57 = arith.constant 1.000000e+00 : f32
    %362 = vector.broadcast %cst_57 : f32 to vector<2x32xf32>
    %363 = arith.addf %362, %361 : vector<2x32xf32>
    %364 = arith.divf %362, %363 : vector<2x32xf32>
    %365 = arith.mulf %356, %309 : vector<2x32xf32>
    %366 = arith.mulf %350, %358 : vector<2x32xf32>
    %367 = arith.addf %365, %366 : vector<2x32xf32>
    %368 = math.tanh %367 : vector<2x32xf32>
    %369 = arith.mulf %364, %368 : vector<2x32xf32>
    %370 = tpu.concatenate %14, %340 in 1 : vector<2x4xf32>, vector<2x32xf32> -> vector<2x36xf32>
    %cst_58 = arith.constant dense<0.000000e+00> : vector<2x128xf32>
    %371 = tpu.matmul %370, %18, %cst_58 {dimension_numbers = #tpu.dot_dimension_numbers<[1], [0], [0], [1], [0, 0, 1, 1], [], []>} : vector<2x36xf32>, vector<36x128xf32>, vector<2x128xf32> -> vector<2x128xf32>
    %372 = vector.broadcast %19 : vector<1x128xf32> to vector<2x128xf32>
    %373 = arith.addf %371, %372 : vector<2x128xf32>
    %374 = vector.extract_strided_slice %373 {offsets = [0, 0], sizes = [2, 32], strides = [1, 1]} : vector<2x128xf32> to vector<2x32xf32>
    %375 = arith.negf %374 : vector<2x32xf32>
    %376 = math.exp %375 : vector<2x32xf32>
    %cst_59 = arith.constant 1.000000e+00 : f32
    %377 = vector.broadcast %cst_59 : f32 to vector<2x32xf32>
    %378 = arith.addf %377, %376 : vector<2x32xf32>
    %379 = arith.divf %377, %378 : vector<2x32xf32>
    %380 = vector.extract_strided_slice %373 {offsets = [0, 32], sizes = [2, 32], strides = [1, 1]} : vector<2x128xf32> to vector<2x32xf32>
    %381 = arith.negf %380 : vector<2x32xf32>
    %382 = math.exp %381 : vector<2x32xf32>
    %cst_60 = arith.constant 1.000000e+00 : f32
    %383 = vector.broadcast %cst_60 : f32 to vector<2x32xf32>
    %384 = arith.addf %383, %382 : vector<2x32xf32>
    %385 = arith.divf %383, %384 : vector<2x32xf32>
    %386 = vector.extract_strided_slice %373 {offsets = [0, 64], sizes = [2, 32], strides = [1, 1]} : vector<2x128xf32> to vector<2x32xf32>
    %387 = math.tanh %386 : vector<2x32xf32>
    %388 = vector.extract_strided_slice %373 {offsets = [0, 96], sizes = [2, 32], strides = [1, 1]} : vector<2x128xf32> to vector<2x32xf32>
    %389 = arith.negf %388 : vector<2x32xf32>
    %390 = math.exp %389 : vector<2x32xf32>
    %cst_61 = arith.constant 1.000000e+00 : f32
    %391 = vector.broadcast %cst_61 : f32 to vector<2x32xf32>
    %392 = arith.addf %391, %390 : vector<2x32xf32>
    %393 = arith.divf %391, %392 : vector<2x32xf32>
    %394 = arith.mulf %385, %338 : vector<2x32xf32>
    %395 = arith.mulf %379, %387 : vector<2x32xf32>
    %396 = arith.addf %394, %395 : vector<2x32xf32>
    %397 = math.tanh %396 : vector<2x32xf32>
    %398 = arith.mulf %393, %397 : vector<2x32xf32>
    %399 = tpu.concatenate %4, %369 in 1 : vector<2x4xf32>, vector<2x32xf32> -> vector<2x36xf32>
    %cst_62 = arith.constant dense<0.000000e+00> : vector<2x128xf32>
    %400 = tpu.matmul %399, %20, %cst_62 {dimension_numbers = #tpu.dot_dimension_numbers<[1], [0], [0], [1], [0, 0, 1, 1], [], []>} : vector<2x36xf32>, vector<36x128xf32>, vector<2x128xf32> -> vector<2x128xf32>
    %401 = vector.broadcast %21 : vector<1x128xf32> to vector<2x128xf32>
    %402 = arith.addf %400, %401 : vector<2x128xf32>
    %403 = vector.extract_strided_slice %402 {offsets = [0, 0], sizes = [2, 32], strides = [1, 1]} : vector<2x128xf32> to vector<2x32xf32>
    %404 = arith.negf %403 : vector<2x32xf32>
    %405 = math.exp %404 : vector<2x32xf32>
    %cst_63 = arith.constant 1.000000e+00 : f32
    %406 = vector.broadcast %cst_63 : f32 to vector<2x32xf32>
    %407 = arith.addf %406, %405 : vector<2x32xf32>
    %408 = arith.divf %406, %407 : vector<2x32xf32>
    %409 = vector.extract_strided_slice %402 {offsets = [0, 32], sizes = [2, 32], strides = [1, 1]} : vector<2x128xf32> to vector<2x32xf32>
    %410 = arith.negf %409 : vector<2x32xf32>
    %411 = math.exp %410 : vector<2x32xf32>
    %cst_64 = arith.constant 1.000000e+00 : f32
    %412 = vector.broadcast %cst_64 : f32 to vector<2x32xf32>
    %413 = arith.addf %412, %411 : vector<2x32xf32>
    %414 = arith.divf %412, %413 : vector<2x32xf32>
    %415 = vector.extract_strided_slice %402 {offsets = [0, 64], sizes = [2, 32], strides = [1, 1]} : vector<2x128xf32> to vector<2x32xf32>
    %416 = math.tanh %415 : vector<2x32xf32>
    %417 = vector.extract_strided_slice %402 {offsets = [0, 96], sizes = [2, 32], strides = [1, 1]} : vector<2x128xf32> to vector<2x32xf32>
    %418 = arith.negf %417 : vector<2x32xf32>
    %419 = math.exp %418 : vector<2x32xf32>
    %cst_65 = arith.constant 1.000000e+00 : f32
    %420 = vector.broadcast %cst_65 : f32 to vector<2x32xf32>
    %421 = arith.addf %420, %419 : vector<2x32xf32>
    %422 = arith.divf %420, %421 : vector<2x32xf32>
    %423 = arith.mulf %414, %367 : vector<2x32xf32>
    %424 = arith.mulf %408, %416 : vector<2x32xf32>
    %425 = arith.addf %423, %424 : vector<2x32xf32>
    %426 = math.tanh %425 : vector<2x32xf32>
    %427 = arith.mulf %422, %426 : vector<2x32xf32>
    %428 = tpu.concatenate %16, %398 in 1 : vector<2x4xf32>, vector<2x32xf32> -> vector<2x36xf32>
    %cst_66 = arith.constant dense<0.000000e+00> : vector<2x128xf32>
    %429 = tpu.matmul %428, %18, %cst_66 {dimension_numbers = #tpu.dot_dimension_numbers<[1], [0], [0], [1], [0, 0, 1, 1], [], []>} : vector<2x36xf32>, vector<36x128xf32>, vector<2x128xf32> -> vector<2x128xf32>
    %430 = vector.broadcast %19 : vector<1x128xf32> to vector<2x128xf32>
    %431 = arith.addf %429, %430 : vector<2x128xf32>
    %432 = vector.extract_strided_slice %431 {offsets = [0, 0], sizes = [2, 32], strides = [1, 1]} : vector<2x128xf32> to vector<2x32xf32>
    %433 = arith.negf %432 : vector<2x32xf32>
    %434 = math.exp %433 : vector<2x32xf32>
    %cst_67 = arith.constant 1.000000e+00 : f32
    %435 = vector.broadcast %cst_67 : f32 to vector<2x32xf32>
    %436 = arith.addf %435, %434 : vector<2x32xf32>
    %437 = arith.divf %435, %436 : vector<2x32xf32>
    %438 = vector.extract_strided_slice %431 {offsets = [0, 32], sizes = [2, 32], strides = [1, 1]} : vector<2x128xf32> to vector<2x32xf32>
    %439 = arith.negf %438 : vector<2x32xf32>
    %440 = math.exp %439 : vector<2x32xf32>
    %cst_68 = arith.constant 1.000000e+00 : f32
    %441 = vector.broadcast %cst_68 : f32 to vector<2x32xf32>
    %442 = arith.addf %441, %440 : vector<2x32xf32>
    %443 = arith.divf %441, %442 : vector<2x32xf32>
    %444 = vector.extract_strided_slice %431 {offsets = [0, 64], sizes = [2, 32], strides = [1, 1]} : vector<2x128xf32> to vector<2x32xf32>
    %445 = math.tanh %444 : vector<2x32xf32>
    %446 = vector.extract_strided_slice %431 {offsets = [0, 96], sizes = [2, 32], strides = [1, 1]} : vector<2x128xf32> to vector<2x32xf32>
    %447 = arith.negf %446 : vector<2x32xf32>
    %448 = math.exp %447 : vector<2x32xf32>
    %cst_69 = arith.constant 1.000000e+00 : f32
    %449 = vector.broadcast %cst_69 : f32 to vector<2x32xf32>
    %450 = arith.addf %449, %448 : vector<2x32xf32>
    %451 = arith.divf %449, %450 : vector<2x32xf32>
    %452 = arith.mulf %443, %396 : vector<2x32xf32>
    %453 = arith.mulf %437, %445 : vector<2x32xf32>
    %454 = arith.addf %452, %453 : vector<2x32xf32>
    %455 = math.tanh %454 : vector<2x32xf32>
    %456 = arith.mulf %451, %455 : vector<2x32xf32>
    %457 = tpu.concatenate %2, %427 in 1 : vector<2x4xf32>, vector<2x32xf32> -> vector<2x36xf32>
    %cst_70 = arith.constant dense<0.000000e+00> : vector<2x128xf32>
    %458 = tpu.matmul %457, %20, %cst_70 {dimension_numbers = #tpu.dot_dimension_numbers<[1], [0], [0], [1], [0, 0, 1, 1], [], []>} : vector<2x36xf32>, vector<36x128xf32>, vector<2x128xf32> -> vector<2x128xf32>
    %459 = vector.broadcast %21 : vector<1x128xf32> to vector<2x128xf32>
    %460 = arith.addf %458, %459 : vector<2x128xf32>
    %461 = vector.extract_strided_slice %460 {offsets = [0, 0], sizes = [2, 32], strides = [1, 1]} : vector<2x128xf32> to vector<2x32xf32>
    %462 = arith.negf %461 : vector<2x32xf32>
    %463 = math.exp %462 : vector<2x32xf32>
    %cst_71 = arith.constant 1.000000e+00 : f32
    %464 = vector.broadcast %cst_71 : f32 to vector<2x32xf32>
    %465 = arith.addf %464, %463 : vector<2x32xf32>
    %466 = arith.divf %464, %465 : vector<2x32xf32>
    %467 = vector.extract_strided_slice %460 {offsets = [0, 32], sizes = [2, 32], strides = [1, 1]} : vector<2x128xf32> to vector<2x32xf32>
    %468 = arith.negf %467 : vector<2x32xf32>
    %469 = math.exp %468 : vector<2x32xf32>
    %cst_72 = arith.constant 1.000000e+00 : f32
    %470 = vector.broadcast %cst_72 : f32 to vector<2x32xf32>
    %471 = arith.addf %470, %469 : vector<2x32xf32>
    %472 = arith.divf %470, %471 : vector<2x32xf32>
    %473 = vector.extract_strided_slice %460 {offsets = [0, 64], sizes = [2, 32], strides = [1, 1]} : vector<2x128xf32> to vector<2x32xf32>
    %474 = math.tanh %473 : vector<2x32xf32>
    %475 = vector.extract_strided_slice %460 {offsets = [0, 96], sizes = [2, 32], strides = [1, 1]} : vector<2x128xf32> to vector<2x32xf32>
    %476 = arith.negf %475 : vector<2x32xf32>
    %477 = math.exp %476 : vector<2x32xf32>
    %cst_73 = arith.constant 1.000000e+00 : f32
    %478 = vector.broadcast %cst_73 : f32 to vector<2x32xf32>
    %479 = arith.addf %478, %477 : vector<2x32xf32>
    %480 = arith.divf %478, %479 : vector<2x32xf32>
    %481 = arith.mulf %472, %425 : vector<2x32xf32>
    %482 = arith.mulf %466, %474 : vector<2x32xf32>
    %483 = arith.addf %481, %482 : vector<2x32xf32>
    %484 = math.tanh %483 : vector<2x32xf32>
    %485 = arith.mulf %480, %484 : vector<2x32xf32>
    %486 = tpu.concatenate %50, %485 in 1 : vector<2x32xf32>, vector<2x32xf32> -> vector<2x64xf32>
    %487 = tpu.concatenate %108, %427 in 1 : vector<2x32xf32>, vector<2x32xf32> -> vector<2x64xf32>
    %488 = tpu.concatenate %166, %369 in 1 : vector<2x32xf32>, vector<2x32xf32> -> vector<2x64xf32>
    %489 = tpu.concatenate %224, %311 in 1 : vector<2x32xf32>, vector<2x32xf32> -> vector<2x64xf32>
    %490 = tpu.concatenate %282, %253 in 1 : vector<2x32xf32>, vector<2x32xf32> -> vector<2x64xf32>
    %491 = tpu.concatenate %340, %195 in 1 : vector<2x32xf32>, vector<2x32xf32> -> vector<2x64xf32>
    %492 = tpu.concatenate %398, %137 in 1 : vector<2x32xf32>, vector<2x32xf32> -> vector<2x64xf32>
    %493 = tpu.concatenate %456, %79 in 1 : vector<2x32xf32>, vector<2x32xf32> -> vector<2x64xf32>
    %c0_74 = arith.constant 0 : index
    %c0_75 = arith.constant 0 : index
    %c0_76 = arith.constant 0 : index
    %494 = vector.load %arg9[%c0_74, %c0_75, %c0_76] : memref<4x2x32xf32, #tpu.memory_space<vmem>>, vector<1x2x32xf32>
    %495 = vector.shape_cast %494 : vector<1x2x32xf32> to vector<2x32xf32>
    %496 = vector.shape_cast %456 : vector<2x32xf32> to vector<1x2x32xf32>
    tpu.vector_store %arg9[%c0_74, %c0_75, %c0_76], %496 {strides = array<i32>} : memref<4x2x32xf32, #tpu.memory_space<vmem>>, vector<1x2x32xf32>,
    %c1 = arith.constant 1 : index
    %c0_77 = arith.constant 0 : index
    %c0_78 = arith.constant 0 : index
    %497 = vector.load %arg9[%c1, %c0_77, %c0_78] : memref<4x2x32xf32, #tpu.memory_space<vmem>>, vector<1x2x32xf32>
    %498 = vector.shape_cast %497 : vector<1x2x32xf32> to vector<2x32xf32>
    %499 = vector.shape_cast %485 : vector<2x32xf32> to vector<1x2x32xf32>
    tpu.vector_store %arg9[%c1, %c0_77, %c0_78], %499 {strides = array<i32>} : memref<4x2x32xf32, #tpu.memory_space<vmem>>, vector<1x2x32xf32>,
    %c0_79 = arith.constant 0 : index
    %c0_80 = arith.constant 0 : index
    %c0_81 = arith.constant 0 : index
    %500 = vector.load %arg10[%c0_79, %c0_80, %c0_81] : memref<4x2x32xf32, #tpu.memory_space<vmem>>, vector<1x2x32xf32>
    %501 = vector.shape_cast %500 : vector<1x2x32xf32> to vector<2x32xf32>
    %502 = vector.shape_cast %454 : vector<2x32xf32> to vector<1x2x32xf32>
    tpu.vector_store %arg10[%c0_79, %c0_80, %c0_81], %502 {strides = array<i32>} : memref<4x2x32xf32, #tpu.memory_space<vmem>>, vector<1x2x32xf32>,
    %c1_82 = arith.constant 1 : index
    %c0_83 = arith.constant 0 : index
    %c0_84 = arith.constant 0 : index
    %503 = vector.load %arg10[%c1_82, %c0_83, %c0_84] : memref<4x2x32xf32, #tpu.memory_space<vmem>>, vector<1x2x32xf32>
    %504 = vector.shape_cast %503 : vector<1x2x32xf32> to vector<2x32xf32>
    %505 = vector.shape_cast %483 : vector<2x32xf32> to vector<1x2x32xf32>
    tpu.vector_store %arg10[%c1_82, %c0_83, %c0_84], %505 {strides = array<i32>} : memref<4x2x32xf32, #tpu.memory_space<vmem>>, vector<1x2x32xf32>,
    %c0_85 = arith.constant 0 : index
    %c0_86 = arith.constant 0 : index
    %506 = vector.load %arg5[%c0_85, %c0_86] : memref<96x128xf32, #tpu.memory_space<vmem>>, vector<96x128xf32>
    %c0_87 = arith.constant 0 : index
    %c0_88 = arith.constant 0 : index
    %507 = vector.load %arg6[%c0_87, %c0_88] : memref<1x128xf32, #tpu.memory_space<vmem>>, vector<1x128xf32>
    %c0_89 = arith.constant 0 : index
    %c0_90 = arith.constant 0 : index
    %508 = vector.load %arg7[%c0_89, %c0_90] : memref<96x128xf32, #tpu.memory_space<vmem>>, vector<96x128xf32>
    %c0_91 = arith.constant 0 : index
    %c0_92 = arith.constant 0 : index
    %509 = vector.load %arg8[%c0_91, %c0_92] : memref<1x128xf32, #tpu.memory_space<vmem>>, vector<1x128xf32>
    %510 = tpu.concatenate %486, %17 in 1 : vector<2x64xf32>, vector<2x32xf32> -> vector<2x96xf32>
    %cst_93 = arith.constant dense<0.000000e+00> : vector<2x128xf32>
    %511 = tpu.matmul %510, %506, %cst_93 {dimension_numbers = #tpu.dot_dimension_numbers<[1], [0], [0], [1], [0, 0, 1, 1], [], []>} : vector<2x96xf32>, vector<96x128xf32>, vector<2x128xf32> -> vector<2x128xf32>
    %512 = vector.broadcast %507 : vector<1x128xf32> to vector<2x128xf32>
    %513 = arith.addf %511, %512 : vector<2x128xf32>
    %514 = vector.extract_strided_slice %513 {offsets = [0, 0], sizes = [2, 32], strides = [1, 1]} : vector<2x128xf32> to vector<2x32xf32>
    %515 = arith.negf %514 : vector<2x32xf32>
    %516 = math.exp %515 : vector<2x32xf32>
    %cst_94 = arith.constant 1.000000e+00 : f32
    %517 = vector.broadcast %cst_94 : f32 to vector<2x32xf32>
    %518 = arith.addf %517, %516 : vector<2x32xf32>
    %519 = arith.divf %517, %518 : vector<2x32xf32>
    %520 = vector.extract_strided_slice %513 {offsets = [0, 32], sizes = [2, 32], strides = [1, 1]} : vector<2x128xf32> to vector<2x32xf32>
    %521 = arith.negf %520 : vector<2x32xf32>
    %522 = math.exp %521 : vector<2x32xf32>
    %cst_95 = arith.constant 1.000000e+00 : f32
    %523 = vector.broadcast %cst_95 : f32 to vector<2x32xf32>
    %524 = arith.addf %523, %522 : vector<2x32xf32>
    %525 = arith.divf %523, %524 : vector<2x32xf32>
    %526 = vector.extract_strided_slice %513 {offsets = [0, 64], sizes = [2, 32], strides = [1, 1]} : vector<2x128xf32> to vector<2x32xf32>
    %527 = math.tanh %526 : vector<2x32xf32>
    %528 = vector.extract_strided_slice %513 {offsets = [0, 96], sizes = [2, 32], strides = [1, 1]} : vector<2x128xf32> to vector<2x32xf32>
    %529 = arith.negf %528 : vector<2x32xf32>
    %530 = math.exp %529 : vector<2x32xf32>
    %cst_96 = arith.constant 1.000000e+00 : f32
    %531 = vector.broadcast %cst_96 : f32 to vector<2x32xf32>
    %532 = arith.addf %531, %530 : vector<2x32xf32>
    %533 = arith.divf %531, %532 : vector<2x32xf32>
    %534 = arith.mulf %525, %17 : vector<2x32xf32>
    %535 = arith.mulf %519, %527 : vector<2x32xf32>
    %536 = arith.addf %534, %535 : vector<2x32xf32>
    %537 = math.tanh %536 : vector<2x32xf32>
    %538 = arith.mulf %533, %537 : vector<2x32xf32>
    %539 = tpu.concatenate %493, %17 in 1 : vector<2x64xf32>, vector<2x32xf32> -> vector<2x96xf32>
    %cst_97 = arith.constant dense<0.000000e+00> : vector<2x128xf32>
    %540 = tpu.matmul %539, %508, %cst_97 {dimension_numbers = #tpu.dot_dimension_numbers<[1], [0], [0], [1], [0, 0, 1, 1], [], []>} : vector<2x96xf32>, vector<96x128xf32>, vector<2x128xf32> -> vector<2x128xf32>
    %541 = vector.broadcast %509 : vector<1x128xf32> to vector<2x128xf32>
    %542 = arith.addf %540, %541 : vector<2x128xf32>
    %543 = vector.extract_strided_slice %542 {offsets = [0, 0], sizes = [2, 32], strides = [1, 1]} : vector<2x128xf32> to vector<2x32xf32>
    %544 = arith.negf %543 : vector<2x32xf32>
    %545 = math.exp %544 : vector<2x32xf32>
    %cst_98 = arith.constant 1.000000e+00 : f32
    %546 = vector.broadcast %cst_98 : f32 to vector<2x32xf32>
    %547 = arith.addf %546, %545 : vector<2x32xf32>
    %548 = arith.divf %546, %547 : vector<2x32xf32>
    %549 = vector.extract_strided_slice %542 {offsets = [0, 32], sizes = [2, 32], strides = [1, 1]} : vector<2x128xf32> to vector<2x32xf32>
    %550 = arith.negf %549 : vector<2x32xf32>
    %551 = math.exp %550 : vector<2x32xf32>
    %cst_99 = arith.constant 1.000000e+00 : f32
    %552 = vector.broadcast %cst_99 : f32 to vector<2x32xf32>
    %553 = arith.addf %552, %551 : vector<2x32xf32>
    %554 = arith.divf %552, %553 : vector<2x32xf32>
    %555 = vector.extract_strided_slice %542 {offsets = [0, 64], sizes = [2, 32], strides = [1, 1]} : vector<2x128xf32> to vector<2x32xf32>
    %556 = math.tanh %555 : vector<2x32xf32>
    %557 = vector.extract_strided_slice %542 {offsets = [0, 96], sizes = [2, 32], strides = [1, 1]} : vector<2x128xf32> to vector<2x32xf32>
    %558 = arith.negf %557 : vector<2x32xf32>
    %559 = math.exp %558 : vector<2x32xf32>
    %cst_100 = arith.constant 1.000000e+00 : f32
    %560 = vector.broadcast %cst_100 : f32 to vector<2x32xf32>
    %561 = arith.addf %560, %559 : vector<2x32xf32>
    %562 = arith.divf %560, %561 : vector<2x32xf32>
    %563 = arith.mulf %554, %17 : vector<2x32xf32>
    %564 = arith.mulf %548, %556 : vector<2x32xf32>
    %565 = arith.addf %563, %564 : vector<2x32xf32>
    %566 = math.tanh %565 : vector<2x32xf32>
    %567 = arith.mulf %562, %566 : vector<2x32xf32>
    %568 = tpu.concatenate %487, %538 in 1 : vector<2x64xf32>, vector<2x32xf32> -> vector<2x96xf32>
    %cst_101 = arith.constant dense<0.000000e+00> : vector<2x128xf32>
    %569 = tpu.matmul %568, %506, %cst_101 {dimension_numbers = #tpu.dot_dimension_numbers<[1], [0], [0], [1], [0, 0, 1, 1], [], []>} : vector<2x96xf32>, vector<96x128xf32>, vector<2x128xf32> -> vector<2x128xf32>
    %570 = vector.broadcast %507 : vector<1x128xf32> to vector<2x128xf32>
    %571 = arith.addf %569, %570 : vector<2x128xf32>
    %572 = vector.extract_strided_slice %571 {offsets = [0, 0], sizes = [2, 32], strides = [1, 1]} : vector<2x128xf32> to vector<2x32xf32>
    %573 = arith.negf %572 : vector<2x32xf32>
    %574 = math.exp %573 : vector<2x32xf32>
    %cst_102 = arith.constant 1.000000e+00 : f32
    %575 = vector.broadcast %cst_102 : f32 to vector<2x32xf32>
    %576 = arith.addf %575, %574 : vector<2x32xf32>
    %577 = arith.divf %575, %576 : vector<2x32xf32>
    %578 = vector.extract_strided_slice %571 {offsets = [0, 32], sizes = [2, 32], strides = [1, 1]} : vector<2x128xf32> to vector<2x32xf32>
    %579 = arith.negf %578 : vector<2x32xf32>
    %580 = math.exp %579 : vector<2x32xf32>
    %cst_103 = arith.constant 1.000000e+00 : f32
    %581 = vector.broadcast %cst_103 : f32 to vector<2x32xf32>
    %582 = arith.addf %581, %580 : vector<2x32xf32>
    %583 = arith.divf %581, %582 : vector<2x32xf32>
    %584 = vector.extract_strided_slice %571 {offsets = [0, 64], sizes = [2, 32], strides = [1, 1]} : vector<2x128xf32> to vector<2x32xf32>
    %585 = math.tanh %584 : vector<2x32xf32>
    %586 = vector.extract_strided_slice %571 {offsets = [0, 96], sizes = [2, 32], strides = [1, 1]} : vector<2x128xf32> to vector<2x32xf32>
    %587 = arith.negf %586 : vector<2x32xf32>
    %588 = math.exp %587 : vector<2x32xf32>
    %cst_104 = arith.constant 1.000000e+00 : f32
    %589 = vector.broadcast %cst_104 : f32 to vector<2x32xf32>
    %590 = arith.addf %589, %588 : vector<2x32xf32>
    %591 = arith.divf %589, %590 : vector<2x32xf32>
    %592 = arith.mulf %583, %536 : vector<2x32xf32>
    %593 = arith.mulf %577, %585 : vector<2x32xf32>
    %594 = arith.addf %592, %593 : vector<2x32xf32>
    %595 = math.tanh %594 : vector<2x32xf32>
    %596 = arith.mulf %591, %595 : vector<2x32xf32>
    %597 = tpu.concatenate %492, %567 in 1 : vector<2x64xf32>, vector<2x32xf32> -> vector<2x96xf32>
    %cst_105 = arith.constant dense<0.000000e+00> : vector<2x128xf32>
    %598 = tpu.matmul %597, %508, %cst_105 {dimension_numbers = #tpu.dot_dimension_numbers<[1], [0], [0], [1], [0, 0, 1, 1], [], []>} : vector<2x96xf32>, vector<96x128xf32>, vector<2x128xf32> -> vector<2x128xf32>
    %599 = vector.broadcast %509 : vector<1x128xf32> to vector<2x128xf32>
    %600 = arith.addf %598, %599 : vector<2x128xf32>
    %601 = vector.extract_strided_slice %600 {offsets = [0, 0], sizes = [2, 32], strides = [1, 1]} : vector<2x128xf32> to vector<2x32xf32>
    %602 = arith.negf %601 : vector<2x32xf32>
    %603 = math.exp %602 : vector<2x32xf32>
    %cst_106 = arith.constant 1.000000e+00 : f32
    %604 = vector.broadcast %cst_106 : f32 to vector<2x32xf32>
    %605 = arith.addf %604, %603 : vector<2x32xf32>
    %606 = arith.divf %604, %605 : vector<2x32xf32>
    %607 = vector.extract_strided_slice %600 {offsets = [0, 32], sizes = [2, 32], strides = [1, 1]} : vector<2x128xf32> to vector<2x32xf32>
    %608 = arith.negf %607 : vector<2x32xf32>
    %609 = math.exp %608 : vector<2x32xf32>
    %cst_107 = arith.constant 1.000000e+00 : f32
    %610 = vector.broadcast %cst_107 : f32 to vector<2x32xf32>
    %611 = arith.addf %610, %609 : vector<2x32xf32>
    %612 = arith.divf %610, %611 : vector<2x32xf32>
    %613 = vector.extract_strided_slice %600 {offsets = [0, 64], sizes = [2, 32], strides = [1, 1]} : vector<2x128xf32> to vector<2x32xf32>
    %614 = math.tanh %613 : vector<2x32xf32>
    %615 = vector.extract_strided_slice %600 {offsets = [0, 96], sizes = [2, 32], strides = [1, 1]} : vector<2x128xf32> to vector<2x32xf32>
    %616 = arith.negf %615 : vector<2x32xf32>
    %617 = math.exp %616 : vector<2x32xf32>
    %cst_108 = arith.constant 1.000000e+00 : f32
    %618 = vector.broadcast %cst_108 : f32 to vector<2x32xf32>
    %619 = arith.addf %618, %617 : vector<2x32xf32>
    %620 = arith.divf %618, %619 : vector<2x32xf32>
    %621 = arith.mulf %612, %565 : vector<2x32xf32>
    %622 = arith.mulf %606, %614 : vector<2x32xf32>
    %623 = arith.addf %621, %622 : vector<2x32xf32>
    %624 = math.tanh %623 : vector<2x32xf32>
    %625 = arith.mulf %620, %624 : vector<2x32xf32>
    %626 = tpu.concatenate %488, %596 in 1 : vector<2x64xf32>, vector<2x32xf32> -> vector<2x96xf32>
    %cst_109 = arith.constant dense<0.000000e+00> : vector<2x128xf32>
    %627 = tpu.matmul %626, %506, %cst_109 {dimension_numbers = #tpu.dot_dimension_numbers<[1], [0], [0], [1], [0, 0, 1, 1], [], []>} : vector<2x96xf32>, vector<96x128xf32>, vector<2x128xf32> -> vector<2x128xf32>
    %628 = vector.broadcast %507 : vector<1x128xf32> to vector<2x128xf32>
    %629 = arith.addf %627, %628 : vector<2x128xf32>
    %630 = vector.extract_strided_slice %629 {offsets = [0, 0], sizes = [2, 32], strides = [1, 1]} : vector<2x128xf32> to vector<2x32xf32>
    %631 = arith.negf %630 : vector<2x32xf32>
    %632 = math.exp %631 : vector<2x32xf32>
    %cst_110 = arith.constant 1.000000e+00 : f32
    %633 = vector.broadcast %cst_110 : f32 to vector<2x32xf32>
    %634 = arith.addf %633, %632 : vector<2x32xf32>
    %635 = arith.divf %633, %634 : vector<2x32xf32>
    %636 = vector.extract_strided_slice %629 {offsets = [0, 32], sizes = [2, 32], strides = [1, 1]} : vector<2x128xf32> to vector<2x32xf32>
    %637 = arith.negf %636 : vector<2x32xf32>
    %638 = math.exp %637 : vector<2x32xf32>
    %cst_111 = arith.constant 1.000000e+00 : f32
    %639 = vector.broadcast %cst_111 : f32 to vector<2x32xf32>
    %640 = arith.addf %639, %638 : vector<2x32xf32>
    %641 = arith.divf %639, %640 : vector<2x32xf32>
    %642 = vector.extract_strided_slice %629 {offsets = [0, 64], sizes = [2, 32], strides = [1, 1]} : vector<2x128xf32> to vector<2x32xf32>
    %643 = math.tanh %642 : vector<2x32xf32>
    %644 = vector.extract_strided_slice %629 {offsets = [0, 96], sizes = [2, 32], strides = [1, 1]} : vector<2x128xf32> to vector<2x32xf32>
    %645 = arith.negf %644 : vector<2x32xf32>
    %646 = math.exp %645 : vector<2x32xf32>
    %cst_112 = arith.constant 1.000000e+00 : f32
    %647 = vector.broadcast %cst_112 : f32 to vector<2x32xf32>
    %648 = arith.addf %647, %646 : vector<2x32xf32>
    %649 = arith.divf %647, %648 : vector<2x32xf32>
    %650 = arith.mulf %641, %594 : vector<2x32xf32>
    %651 = arith.mulf %635, %643 : vector<2x32xf32>
    %652 = arith.addf %650, %651 : vector<2x32xf32>
    %653 = math.tanh %652 : vector<2x32xf32>
    %654 = arith.mulf %649, %653 : vector<2x32xf32>
    %655 = tpu.concatenate %491, %625 in 1 : vector<2x64xf32>, vector<2x32xf32> -> vector<2x96xf32>
    %cst_113 = arith.constant dense<0.000000e+00> : vector<2x128xf32>
    %656 = tpu.matmul %655, %508, %cst_113 {dimension_numbers = #tpu.dot_dimension_numbers<[1], [0], [0], [1], [0, 0, 1, 1], [], []>} : vector<2x96xf32>, vector<96x128xf32>, vector<2x128xf32> -> vector<2x128xf32>
    %657 = vector.broadcast %509 : vector<1x128xf32> to vector<2x128xf32>
    %658 = arith.addf %656, %657 : vector<2x128xf32>
    %659 = vector.extract_strided_slice %658 {offsets = [0, 0], sizes = [2, 32], strides = [1, 1]} : vector<2x128xf32> to vector<2x32xf32>
    %660 = arith.negf %659 : vector<2x32xf32>
    %661 = math.exp %660 : vector<2x32xf32>
    %cst_114 = arith.constant 1.000000e+00 : f32
    %662 = vector.broadcast %cst_114 : f32 to vector<2x32xf32>
    %663 = arith.addf %662, %661 : vector<2x32xf32>
    %664 = arith.divf %662, %663 : vector<2x32xf32>
    %665 = vector.extract_strided_slice %658 {offsets = [0, 32], sizes = [2, 32], strides = [1, 1]} : vector<2x128xf32> to vector<2x32xf32>
    %666 = arith.negf %665 : vector<2x32xf32>
    %667 = math.exp %666 : vector<2x32xf32>
    %cst_115 = arith.constant 1.000000e+00 : f32
    %668 = vector.broadcast %cst_115 : f32 to vector<2x32xf32>
    %669 = arith.addf %668, %667 : vector<2x32xf32>
    %670 = arith.divf %668, %669 : vector<2x32xf32>
    %671 = vector.extract_strided_slice %658 {offsets = [0, 64], sizes = [2, 32], strides = [1, 1]} : vector<2x128xf32> to vector<2x32xf32>
    %672 = math.tanh %671 : vector<2x32xf32>
    %673 = vector.extract_strided_slice %658 {offsets = [0, 96], sizes = [2, 32], strides = [1, 1]} : vector<2x128xf32> to vector<2x32xf32>
    %674 = arith.negf %673 : vector<2x32xf32>
    %675 = math.exp %674 : vector<2x32xf32>
    %cst_116 = arith.constant 1.000000e+00 : f32
    %676 = vector.broadcast %cst_116 : f32 to vector<2x32xf32>
    %677 = arith.addf %676, %675 : vector<2x32xf32>
    %678 = arith.divf %676, %677 : vector<2x32xf32>
    %679 = arith.mulf %670, %623 : vector<2x32xf32>
    %680 = arith.mulf %664, %672 : vector<2x32xf32>
    %681 = arith.addf %679, %680 : vector<2x32xf32>
    %682 = math.tanh %681 : vector<2x32xf32>
    %683 = arith.mulf %678, %682 : vector<2x32xf32>
    %684 = tpu.concatenate %489, %654 in 1 : vector<2x64xf32>, vector<2x32xf32> -> vector<2x96xf32>
    %cst_117 = arith.constant dense<0.000000e+00> : vector<2x128xf32>
    %685 = tpu.matmul %684, %506, %cst_117 {dimension_numbers = #tpu.dot_dimension_numbers<[1], [0], [0], [1], [0, 0, 1, 1], [], []>} : vector<2x96xf32>, vector<96x128xf32>, vector<2x128xf32> -> vector<2x128xf32>
    %686 = vector.broadcast %507 : vector<1x128xf32> to vector<2x128xf32>
    %687 = arith.addf %685, %686 : vector<2x128xf32>
    %688 = vector.extract_strided_slice %687 {offsets = [0, 0], sizes = [2, 32], strides = [1, 1]} : vector<2x128xf32> to vector<2x32xf32>
    %689 = arith.negf %688 : vector<2x32xf32>
    %690 = math.exp %689 : vector<2x32xf32>
    %cst_118 = arith.constant 1.000000e+00 : f32
    %691 = vector.broadcast %cst_118 : f32 to vector<2x32xf32>
    %692 = arith.addf %691, %690 : vector<2x32xf32>
    %693 = arith.divf %691, %692 : vector<2x32xf32>
    %694 = vector.extract_strided_slice %687 {offsets = [0, 32], sizes = [2, 32], strides = [1, 1]} : vector<2x128xf32> to vector<2x32xf32>
    %695 = arith.negf %694 : vector<2x32xf32>
    %696 = math.exp %695 : vector<2x32xf32>
    %cst_119 = arith.constant 1.000000e+00 : f32
    %697 = vector.broadcast %cst_119 : f32 to vector<2x32xf32>
    %698 = arith.addf %697, %696 : vector<2x32xf32>
    %699 = arith.divf %697, %698 : vector<2x32xf32>
    %700 = vector.extract_strided_slice %687 {offsets = [0, 64], sizes = [2, 32], strides = [1, 1]} : vector<2x128xf32> to vector<2x32xf32>
    %701 = math.tanh %700 : vector<2x32xf32>
    %702 = vector.extract_strided_slice %687 {offsets = [0, 96], sizes = [2, 32], strides = [1, 1]} : vector<2x128xf32> to vector<2x32xf32>
    %703 = arith.negf %702 : vector<2x32xf32>
    %704 = math.exp %703 : vector<2x32xf32>
    %cst_120 = arith.constant 1.000000e+00 : f32
    %705 = vector.broadcast %cst_120 : f32 to vector<2x32xf32>
    %706 = arith.addf %705, %704 : vector<2x32xf32>
    %707 = arith.divf %705, %706 : vector<2x32xf32>
    %708 = arith.mulf %699, %652 : vector<2x32xf32>
    %709 = arith.mulf %693, %701 : vector<2x32xf32>
    %710 = arith.addf %708, %709 : vector<2x32xf32>
    %711 = math.tanh %710 : vector<2x32xf32>
    %712 = arith.mulf %707, %711 : vector<2x32xf32>
    %713 = tpu.concatenate %490, %683 in 1 : vector<2x64xf32>, vector<2x32xf32> -> vector<2x96xf32>
    %cst_121 = arith.constant dense<0.000000e+00> : vector<2x128xf32>
    %714 = tpu.matmul %713, %508, %cst_121 {dimension_numbers = #tpu.dot_dimension_numbers<[1], [0], [0], [1], [0, 0, 1, 1], [], []>} : vector<2x96xf32>, vector<96x128xf32>, vector<2x128xf32> -> vector<2x128xf32>
    %715 = vector.broadcast %509 : vector<1x128xf32> to vector<2x128xf32>
    %716 = arith.addf %714, %715 : vector<2x128xf32>
    %717 = vector.extract_strided_slice %716 {offsets = [0, 0], sizes = [2, 32], strides = [1, 1]} : vector<2x128xf32> to vector<2x32xf32>
    %718 = arith.negf %717 : vector<2x32xf32>
    %719 = math.exp %718 : vector<2x32xf32>
    %cst_122 = arith.constant 1.000000e+00 : f32
    %720 = vector.broadcast %cst_122 : f32 to vector<2x32xf32>
    %721 = arith.addf %720, %719 : vector<2x32xf32>
    %722 = arith.divf %720, %721 : vector<2x32xf32>
    %723 = vector.extract_strided_slice %716 {offsets = [0, 32], sizes = [2, 32], strides = [1, 1]} : vector<2x128xf32> to vector<2x32xf32>
    %724 = arith.negf %723 : vector<2x32xf32>
    %725 = math.exp %724 : vector<2x32xf32>
    %cst_123 = arith.constant 1.000000e+00 : f32
    %726 = vector.broadcast %cst_123 : f32 to vector<2x32xf32>
    %727 = arith.addf %726, %725 : vector<2x32xf32>
    %728 = arith.divf %726, %727 : vector<2x32xf32>
    %729 = vector.extract_strided_slice %716 {offsets = [0, 64], sizes = [2, 32], strides = [1, 1]} : vector<2x128xf32> to vector<2x32xf32>
    %730 = math.tanh %729 : vector<2x32xf32>
    %731 = vector.extract_strided_slice %716 {offsets = [0, 96], sizes = [2, 32], strides = [1, 1]} : vector<2x128xf32> to vector<2x32xf32>
    %732 = arith.negf %731 : vector<2x32xf32>
    %733 = math.exp %732 : vector<2x32xf32>
    %cst_124 = arith.constant 1.000000e+00 : f32
    %734 = vector.broadcast %cst_124 : f32 to vector<2x32xf32>
    %735 = arith.addf %734, %733 : vector<2x32xf32>
    %736 = arith.divf %734, %735 : vector<2x32xf32>
    %737 = arith.mulf %728, %681 : vector<2x32xf32>
    %738 = arith.mulf %722, %730 : vector<2x32xf32>
    %739 = arith.addf %737, %738 : vector<2x32xf32>
    %740 = math.tanh %739 : vector<2x32xf32>
    %741 = arith.mulf %736, %740 : vector<2x32xf32>
    %742 = tpu.concatenate %490, %712 in 1 : vector<2x64xf32>, vector<2x32xf32> -> vector<2x96xf32>
    %cst_125 = arith.constant dense<0.000000e+00> : vector<2x128xf32>
    %743 = tpu.matmul %742, %506, %cst_125 {dimension_numbers = #tpu.dot_dimension_numbers<[1], [0], [0], [1], [0, 0, 1, 1], [], []>} : vector<2x96xf32>, vector<96x128xf32>, vector<2x128xf32> -> vector<2x128xf32>
    %744 = vector.broadcast %507 : vector<1x128xf32> to vector<2x128xf32>
    %745 = arith.addf %743, %744 : vector<2x128xf32>
    %746 = vector.extract_strided_slice %745 {offsets = [0, 0], sizes = [2, 32], strides = [1, 1]} : vector<2x128xf32> to vector<2x32xf32>
    %747 = arith.negf %746 : vector<2x32xf32>
    %748 = math.exp %747 : vector<2x32xf32>
    %cst_126 = arith.constant 1.000000e+00 : f32
    %749 = vector.broadcast %cst_126 : f32 to vector<2x32xf32>
    %750 = arith.addf %749, %748 : vector<2x32xf32>
    %751 = arith.divf %749, %750 : vector<2x32xf32>
    %752 = vector.extract_strided_slice %745 {offsets = [0, 32], sizes = [2, 32], strides = [1, 1]} : vector<2x128xf32> to vector<2x32xf32>
    %753 = arith.negf %752 : vector<2x32xf32>
    %754 = math.exp %753 : vector<2x32xf32>
    %cst_127 = arith.constant 1.000000e+00 : f32
    %755 = vector.broadcast %cst_127 : f32 to vector<2x32xf32>
    %756 = arith.addf %755, %754 : vector<2x32xf32>
    %757 = arith.divf %755, %756 : vector<2x32xf32>
    %758 = vector.extract_strided_slice %745 {offsets = [0, 64], sizes = [2, 32], strides = [1, 1]} : vector<2x128xf32> to vector<2x32xf32>
    %759 = math.tanh %758 : vector<2x32xf32>
    %760 = vector.extract_strided_slice %745 {offsets = [0, 96], sizes = [2, 32], strides = [1, 1]} : vector<2x128xf32> to vector<2x32xf32>
    %761 = arith.negf %760 : vector<2x32xf32>
    %762 = math.exp %761 : vector<2x32xf32>
    %cst_128 = arith.constant 1.000000e+00 : f32
    %763 = vector.broadcast %cst_128 : f32 to vector<2x32xf32>
    %764 = arith.addf %763, %762 : vector<2x32xf32>
    %765 = arith.divf %763, %764 : vector<2x32xf32>
    %766 = arith.mulf %757, %710 : vector<2x32xf32>
    %767 = arith.mulf %751, %759 : vector<2x32xf32>
    %768 = arith.addf %766, %767 : vector<2x32xf32>
    %769 = math.tanh %768 : vector<2x32xf32>
    %770 = arith.mulf %765, %769 : vector<2x32xf32>
    %771 = tpu.concatenate %489, %741 in 1 : vector<2x64xf32>, vector<2x32xf32> -> vector<2x96xf32>
    %cst_129 = arith.constant dense<0.000000e+00> : vector<2x128xf32>
    %772 = tpu.matmul %771, %508, %cst_129 {dimension_numbers = #tpu.dot_dimension_numbers<[1], [0], [0], [1], [0, 0, 1, 1], [], []>} : vector<2x96xf32>, vector<96x128xf32>, vector<2x128xf32> -> vector<2x128xf32>
    %773 = vector.broadcast %509 : vector<1x128xf32> to vector<2x128xf32>
    %774 = arith.addf %772, %773 : vector<2x128xf32>
    %775 = vector.extract_strided_slice %774 {offsets = [0, 0], sizes = [2, 32], strides = [1, 1]} : vector<2x128xf32> to vector<2x32xf32>
    %776 = arith.negf %775 : vector<2x32xf32>
    %777 = math.exp %776 : vector<2x32xf32>
    %cst_130 = arith.constant 1.000000e+00 : f32
    %778 = vector.broadcast %cst_130 : f32 to vector<2x32xf32>
    %779 = arith.addf %778, %777 : vector<2x32xf32>
    %780 = arith.divf %778, %779 : vector<2x32xf32>
    %781 = vector.extract_strided_slice %774 {offsets = [0, 32], sizes = [2, 32], strides = [1, 1]} : vector<2x128xf32> to vector<2x32xf32>
    %782 = arith.negf %781 : vector<2x32xf32>
    %783 = math.exp %782 : vector<2x32xf32>
    %cst_131 = arith.constant 1.000000e+00 : f32
    %784 = vector.broadcast %cst_131 : f32 to vector<2x32xf32>
    %785 = arith.addf %784, %783 : vector<2x32xf32>
    %786 = arith.divf %784, %785 : vector<2x32xf32>
    %787 = vector.extract_strided_slice %774 {offsets = [0, 64], sizes = [2, 32], strides = [1, 1]} : vector<2x128xf32> to vector<2x32xf32>
    %788 = math.tanh %787 : vector<2x32xf32>
    %789 = vector.extract_strided_slice %774 {offsets = [0, 96], sizes = [2, 32], strides = [1, 1]} : vector<2x128xf32> to vector<2x32xf32>
    %790 = arith.negf %789 : vector<2x32xf32>
    %791 = math.exp %790 : vector<2x32xf32>
    %cst_132 = arith.constant 1.000000e+00 : f32
    %792 = vector.broadcast %cst_132 : f32 to vector<2x32xf32>
    %793 = arith.addf %792, %791 : vector<2x32xf32>
    %794 = arith.divf %792, %793 : vector<2x32xf32>
    %795 = arith.mulf %786, %739 : vector<2x32xf32>
    %796 = arith.mulf %780, %788 : vector<2x32xf32>
    %797 = arith.addf %795, %796 : vector<2x32xf32>
    %798 = math.tanh %797 : vector<2x32xf32>
    %799 = arith.mulf %794, %798 : vector<2x32xf32>
    %800 = tpu.concatenate %491, %770 in 1 : vector<2x64xf32>, vector<2x32xf32> -> vector<2x96xf32>
    %cst_133 = arith.constant dense<0.000000e+00> : vector<2x128xf32>
    %801 = tpu.matmul %800, %506, %cst_133 {dimension_numbers = #tpu.dot_dimension_numbers<[1], [0], [0], [1], [0, 0, 1, 1], [], []>} : vector<2x96xf32>, vector<96x128xf32>, vector<2x128xf32> -> vector<2x128xf32>
    %802 = vector.broadcast %507 : vector<1x128xf32> to vector<2x128xf32>
    %803 = arith.addf %801, %802 : vector<2x128xf32>
    %804 = vector.extract_strided_slice %803 {offsets = [0, 0], sizes = [2, 32], strides = [1, 1]} : vector<2x128xf32> to vector<2x32xf32>
    %805 = arith.negf %804 : vector<2x32xf32>
    %806 = math.exp %805 : vector<2x32xf32>
    %cst_134 = arith.constant 1.000000e+00 : f32
    %807 = vector.broadcast %cst_134 : f32 to vector<2x32xf32>
    %808 = arith.addf %807, %806 : vector<2x32xf32>
    %809 = arith.divf %807, %808 : vector<2x32xf32>
    %810 = vector.extract_strided_slice %803 {offsets = [0, 32], sizes = [2, 32], strides = [1, 1]} : vector<2x128xf32> to vector<2x32xf32>
    %811 = arith.negf %810 : vector<2x32xf32>
    %812 = math.exp %811 : vector<2x32xf32>
    %cst_135 = arith.constant 1.000000e+00 : f32
    %813 = vector.broadcast %cst_135 : f32 to vector<2x32xf32>
    %814 = arith.addf %813, %812 : vector<2x32xf32>
    %815 = arith.divf %813, %814 : vector<2x32xf32>
    %816 = vector.extract_strided_slice %803 {offsets = [0, 64], sizes = [2, 32], strides = [1, 1]} : vector<2x128xf32> to vector<2x32xf32>
    %817 = math.tanh %816 : vector<2x32xf32>
    %818 = vector.extract_strided_slice %803 {offsets = [0, 96], sizes = [2, 32], strides = [1, 1]} : vector<2x128xf32> to vector<2x32xf32>
    %819 = arith.negf %818 : vector<2x32xf32>
    %820 = math.exp %819 : vector<2x32xf32>
    %cst_136 = arith.constant 1.000000e+00 : f32
    %821 = vector.broadcast %cst_136 : f32 to vector<2x32xf32>
    %822 = arith.addf %821, %820 : vector<2x32xf32>
    %823 = arith.divf %821, %822 : vector<2x32xf32>
    %824 = arith.mulf %815, %768 : vector<2x32xf32>
    %825 = arith.mulf %809, %817 : vector<2x32xf32>
    %826 = arith.addf %824, %825 : vector<2x32xf32>
    %827 = math.tanh %826 : vector<2x32xf32>
    %828 = arith.mulf %823, %827 : vector<2x32xf32>
    %829 = tpu.concatenate %488, %799 in 1 : vector<2x64xf32>, vector<2x32xf32> -> vector<2x96xf32>
    %cst_137 = arith.constant dense<0.000000e+00> : vector<2x128xf32>
    %830 = tpu.matmul %829, %508, %cst_137 {dimension_numbers = #tpu.dot_dimension_numbers<[1], [0], [0], [1], [0, 0, 1, 1], [], []>} : vector<2x96xf32>, vector<96x128xf32>, vector<2x128xf32> -> vector<2x128xf32>
    %831 = vector.broadcast %509 : vector<1x128xf32> to vector<2x128xf32>
    %832 = arith.addf %830, %831 : vector<2x128xf32>
    %833 = vector.extract_strided_slice %832 {offsets = [0, 0], sizes = [2, 32], strides = [1, 1]} : vector<2x128xf32> to vector<2x32xf32>
    %834 = arith.negf %833 : vector<2x32xf32>
    %835 = math.exp %834 : vector<2x32xf32>
    %cst_138 = arith.constant 1.000000e+00 : f32
    %836 = vector.broadcast %cst_138 : f32 to vector<2x32xf32>
    %837 = arith.addf %836, %835 : vector<2x32xf32>
    %838 = arith.divf %836, %837 : vector<2x32xf32>
    %839 = vector.extract_strided_slice %832 {offsets = [0, 32], sizes = [2, 32], strides = [1, 1]} : vector<2x128xf32> to vector<2x32xf32>
    %840 = arith.negf %839 : vector<2x32xf32>
    %841 = math.exp %840 : vector<2x32xf32>
    %cst_139 = arith.constant 1.000000e+00 : f32
    %842 = vector.broadcast %cst_139 : f32 to vector<2x32xf32>
    %843 = arith.addf %842, %841 : vector<2x32xf32>
    %844 = arith.divf %842, %843 : vector<2x32xf32>
    %845 = vector.extract_strided_slice %832 {offsets = [0, 64], sizes = [2, 32], strides = [1, 1]} : vector<2x128xf32> to vector<2x32xf32>
    %846 = math.tanh %845 : vector<2x32xf32>
    %847 = vector.extract_strided_slice %832 {offsets = [0, 96], sizes = [2, 32], strides = [1, 1]} : vector<2x128xf32> to vector<2x32xf32>
    %848 = arith.negf %847 : vector<2x32xf32>
    %849 = math.exp %848 : vector<2x32xf32>
    %cst_140 = arith.constant 1.000000e+00 : f32
    %850 = vector.broadcast %cst_140 : f32 to vector<2x32xf32>
    %851 = arith.addf %850, %849 : vector<2x32xf32>
    %852 = arith.divf %850, %851 : vector<2x32xf32>
    %853 = arith.mulf %844, %797 : vector<2x32xf32>
    %854 = arith.mulf %838, %846 : vector<2x32xf32>
    %855 = arith.addf %853, %854 : vector<2x32xf32>
    %856 = math.tanh %855 : vector<2x32xf32>
    %857 = arith.mulf %852, %856 : vector<2x32xf32>
    %858 = tpu.concatenate %492, %828 in 1 : vector<2x64xf32>, vector<2x32xf32> -> vector<2x96xf32>
    %cst_141 = arith.constant dense<0.000000e+00> : vector<2x128xf32>
    %859 = tpu.matmul %858, %506, %cst_141 {dimension_numbers = #tpu.dot_dimension_numbers<[1], [0], [0], [1], [0, 0, 1, 1], [], []>} : vector<2x96xf32>, vector<96x128xf32>, vector<2x128xf32> -> vector<2x128xf32>
    %860 = vector.broadcast %507 : vector<1x128xf32> to vector<2x128xf32>
    %861 = arith.addf %859, %860 : vector<2x128xf32>
    %862 = vector.extract_strided_slice %861 {offsets = [0, 0], sizes = [2, 32], strides = [1, 1]} : vector<2x128xf32> to vector<2x32xf32>
    %863 = arith.negf %862 : vector<2x32xf32>
    %864 = math.exp %863 : vector<2x32xf32>
    %cst_142 = arith.constant 1.000000e+00 : f32
    %865 = vector.broadcast %cst_142 : f32 to vector<2x32xf32>
    %866 = arith.addf %865, %864 : vector<2x32xf32>
    %867 = arith.divf %865, %866 : vector<2x32xf32>
    %868 = vector.extract_strided_slice %861 {offsets = [0, 32], sizes = [2, 32], strides = [1, 1]} : vector<2x128xf32> to vector<2x32xf32>
    %869 = arith.negf %868 : vector<2x32xf32>
    %870 = math.exp %869 : vector<2x32xf32>
    %cst_143 = arith.constant 1.000000e+00 : f32
    %871 = vector.broadcast %cst_143 : f32 to vector<2x32xf32>
    %872 = arith.addf %871, %870 : vector<2x32xf32>
    %873 = arith.divf %871, %872 : vector<2x32xf32>
    %874 = vector.extract_strided_slice %861 {offsets = [0, 64], sizes = [2, 32], strides = [1, 1]} : vector<2x128xf32> to vector<2x32xf32>
    %875 = math.tanh %874 : vector<2x32xf32>
    %876 = vector.extract_strided_slice %861 {offsets = [0, 96], sizes = [2, 32], strides = [1, 1]} : vector<2x128xf32> to vector<2x32xf32>
    %877 = arith.negf %876 : vector<2x32xf32>
    %878 = math.exp %877 : vector<2x32xf32>
    %cst_144 = arith.constant 1.000000e+00 : f32
    %879 = vector.broadcast %cst_144 : f32 to vector<2x32xf32>
    %880 = arith.addf %879, %878 : vector<2x32xf32>
    %881 = arith.divf %879, %880 : vector<2x32xf32>
    %882 = arith.mulf %873, %826 : vector<2x32xf32>
    %883 = arith.mulf %867, %875 : vector<2x32xf32>
    %884 = arith.addf %882, %883 : vector<2x32xf32>
    %885 = math.tanh %884 : vector<2x32xf32>
    %886 = arith.mulf %881, %885 : vector<2x32xf32>
    %887 = tpu.concatenate %487, %857 in 1 : vector<2x64xf32>, vector<2x32xf32> -> vector<2x96xf32>
    %cst_145 = arith.constant dense<0.000000e+00> : vector<2x128xf32>
    %888 = tpu.matmul %887, %508, %cst_145 {dimension_numbers = #tpu.dot_dimension_numbers<[1], [0], [0], [1], [0, 0, 1, 1], [], []>} : vector<2x96xf32>, vector<96x128xf32>, vector<2x128xf32> -> vector<2x128xf32>
    %889 = vector.broadcast %509 : vector<1x128xf32> to vector<2x128xf32>
    %890 = arith.addf %888, %889 : vector<2x128xf32>
    %891 = vector.extract_strided_slice %890 {offsets = [0, 0], sizes = [2, 32], strides = [1, 1]} : vector<2x128xf32> to vector<2x32xf32>
    %892 = arith.negf %891 : vector<2x32xf32>
    %893 = math.exp %892 : vector<2x32xf32>
    %cst_146 = arith.constant 1.000000e+00 : f32
    %894 = vector.broadcast %cst_146 : f32 to vector<2x32xf32>
    %895 = arith.addf %894, %893 : vector<2x32xf32>
    %896 = arith.divf %894, %895 : vector<2x32xf32>
    %897 = vector.extract_strided_slice %890 {offsets = [0, 32], sizes = [2, 32], strides = [1, 1]} : vector<2x128xf32> to vector<2x32xf32>
    %898 = arith.negf %897 : vector<2x32xf32>
    %899 = math.exp %898 : vector<2x32xf32>
    %cst_147 = arith.constant 1.000000e+00 : f32
    %900 = vector.broadcast %cst_147 : f32 to vector<2x32xf32>
    %901 = arith.addf %900, %899 : vector<2x32xf32>
    %902 = arith.divf %900, %901 : vector<2x32xf32>
    %903 = vector.extract_strided_slice %890 {offsets = [0, 64], sizes = [2, 32], strides = [1, 1]} : vector<2x128xf32> to vector<2x32xf32>
    %904 = math.tanh %903 : vector<2x32xf32>
    %905 = vector.extract_strided_slice %890 {offsets = [0, 96], sizes = [2, 32], strides = [1, 1]} : vector<2x128xf32> to vector<2x32xf32>
    %906 = arith.negf %905 : vector<2x32xf32>
    %907 = math.exp %906 : vector<2x32xf32>
    %cst_148 = arith.constant 1.000000e+00 : f32
    %908 = vector.broadcast %cst_148 : f32 to vector<2x32xf32>
    %909 = arith.addf %908, %907 : vector<2x32xf32>
    %910 = arith.divf %908, %909 : vector<2x32xf32>
    %911 = arith.mulf %902, %855 : vector<2x32xf32>
    %912 = arith.mulf %896, %904 : vector<2x32xf32>
    %913 = arith.addf %911, %912 : vector<2x32xf32>
    %914 = math.tanh %913 : vector<2x32xf32>
    %915 = arith.mulf %910, %914 : vector<2x32xf32>
    %916 = tpu.concatenate %493, %886 in 1 : vector<2x64xf32>, vector<2x32xf32> -> vector<2x96xf32>
    %cst_149 = arith.constant dense<0.000000e+00> : vector<2x128xf32>
    %917 = tpu.matmul %916, %506, %cst_149 {dimension_numbers = #tpu.dot_dimension_numbers<[1], [0], [0], [1], [0, 0, 1, 1], [], []>} : vector<2x96xf32>, vector<96x128xf32>, vector<2x128xf32> -> vector<2x128xf32>
    %918 = vector.broadcast %507 : vector<1x128xf32> to vector<2x128xf32>
    %919 = arith.addf %917, %918 : vector<2x128xf32>
    %920 = vector.extract_strided_slice %919 {offsets = [0, 0], sizes = [2, 32], strides = [1, 1]} : vector<2x128xf32> to vector<2x32xf32>
    %921 = arith.negf %920 : vector<2x32xf32>
    %922 = math.exp %921 : vector<2x32xf32>
    %cst_150 = arith.constant 1.000000e+00 : f32
    %923 = vector.broadcast %cst_150 : f32 to vector<2x32xf32>
    %924 = arith.addf %923, %922 : vector<2x32xf32>
    %925 = arith.divf %923, %924 : vector<2x32xf32>
    %926 = vector.extract_strided_slice %919 {offsets = [0, 32], sizes = [2, 32], strides = [1, 1]} : vector<2x128xf32> to vector<2x32xf32>
    %927 = arith.negf %926 : vector<2x32xf32>
    %928 = math.exp %927 : vector<2x32xf32>
    %cst_151 = arith.constant 1.000000e+00 : f32
    %929 = vector.broadcast %cst_151 : f32 to vector<2x32xf32>
    %930 = arith.addf %929, %928 : vector<2x32xf32>
    %931 = arith.divf %929, %930 : vector<2x32xf32>
    %932 = vector.extract_strided_slice %919 {offsets = [0, 64], sizes = [2, 32], strides = [1, 1]} : vector<2x128xf32> to vector<2x32xf32>
    %933 = math.tanh %932 : vector<2x32xf32>
    %934 = vector.extract_strided_slice %919 {offsets = [0, 96], sizes = [2, 32], strides = [1, 1]} : vector<2x128xf32> to vector<2x32xf32>
    %935 = arith.negf %934 : vector<2x32xf32>
    %936 = math.exp %935 : vector<2x32xf32>
    %cst_152 = arith.constant 1.000000e+00 : f32
    %937 = vector.broadcast %cst_152 : f32 to vector<2x32xf32>
    %938 = arith.addf %937, %936 : vector<2x32xf32>
    %939 = arith.divf %937, %938 : vector<2x32xf32>
    %940 = arith.mulf %931, %884 : vector<2x32xf32>
    %941 = arith.mulf %925, %933 : vector<2x32xf32>
    %942 = arith.addf %940, %941 : vector<2x32xf32>
    %943 = math.tanh %942 : vector<2x32xf32>
    %944 = arith.mulf %939, %943 : vector<2x32xf32>
    %945 = tpu.concatenate %486, %915 in 1 : vector<2x64xf32>, vector<2x32xf32> -> vector<2x96xf32>
    %cst_153 = arith.constant dense<0.000000e+00> : vector<2x128xf32>
    %946 = tpu.matmul %945, %508, %cst_153 {dimension_numbers = #tpu.dot_dimension_numbers<[1], [0], [0], [1], [0, 0, 1, 1], [], []>} : vector<2x96xf32>, vector<96x128xf32>, vector<2x128xf32> -> vector<2x128xf32>
    %947 = vector.broadcast %509 : vector<1x128xf32> to vector<2x128xf32>
    %948 = arith.addf %946, %947 : vector<2x128xf32>
    %949 = vector.extract_strided_slice %948 {offsets = [0, 0], sizes = [2, 32], strides = [1, 1]} : vector<2x128xf32> to vector<2x32xf32>
    %950 = arith.negf %949 : vector<2x32xf32>
    %951 = math.exp %950 : vector<2x32xf32>
    %cst_154 = arith.constant 1.000000e+00 : f32
    %952 = vector.broadcast %cst_154 : f32 to vector<2x32xf32>
    %953 = arith.addf %952, %951 : vector<2x32xf32>
    %954 = arith.divf %952, %953 : vector<2x32xf32>
    %955 = vector.extract_strided_slice %948 {offsets = [0, 32], sizes = [2, 32], strides = [1, 1]} : vector<2x128xf32> to vector<2x32xf32>
    %956 = arith.negf %955 : vector<2x32xf32>
    %957 = math.exp %956 : vector<2x32xf32>
    %cst_155 = arith.constant 1.000000e+00 : f32
    %958 = vector.broadcast %cst_155 : f32 to vector<2x32xf32>
    %959 = arith.addf %958, %957 : vector<2x32xf32>
    %960 = arith.divf %958, %959 : vector<2x32xf32>
    %961 = vector.extract_strided_slice %948 {offsets = [0, 64], sizes = [2, 32], strides = [1, 1]} : vector<2x128xf32> to vector<2x32xf32>
    %962 = math.tanh %961 : vector<2x32xf32>
    %963 = vector.extract_strided_slice %948 {offsets = [0, 96], sizes = [2, 32], strides = [1, 1]} : vector<2x128xf32> to vector<2x32xf32>
    %964 = arith.negf %963 : vector<2x32xf32>
    %965 = math.exp %964 : vector<2x32xf32>
    %cst_156 = arith.constant 1.000000e+00 : f32
    %966 = vector.broadcast %cst_156 : f32 to vector<2x32xf32>
    %967 = arith.addf %966, %965 : vector<2x32xf32>
    %968 = arith.divf %966, %967 : vector<2x32xf32>
    %969 = arith.mulf %960, %913 : vector<2x32xf32>
    %970 = arith.mulf %954, %962 : vector<2x32xf32>
    %971 = arith.addf %969, %970 : vector<2x32xf32>
    %972 = math.tanh %971 : vector<2x32xf32>
    %973 = arith.mulf %968, %972 : vector<2x32xf32>
    %c2 = arith.constant 2 : index
    %c0_157 = arith.constant 0 : index
    %c0_158 = arith.constant 0 : index
    %974 = vector.load %arg9[%c2, %c0_157, %c0_158] : memref<4x2x32xf32, #tpu.memory_space<vmem>>, vector<1x2x32xf32>
    %975 = vector.shape_cast %974 : vector<1x2x32xf32> to vector<2x32xf32>
    %976 = vector.shape_cast %944 : vector<2x32xf32> to vector<1x2x32xf32>
    tpu.vector_store %arg9[%c2, %c0_157, %c0_158], %976 {strides = array<i32>} : memref<4x2x32xf32, #tpu.memory_space<vmem>>, vector<1x2x32xf32>,
    %c3 = arith.constant 3 : index
    %c0_159 = arith.constant 0 : index
    %c0_160 = arith.constant 0 : index
    %977 = vector.load %arg9[%c3, %c0_159, %c0_160] : memref<4x2x32xf32, #tpu.memory_space<vmem>>, vector<1x2x32xf32>
    %978 = vector.shape_cast %977 : vector<1x2x32xf32> to vector<2x32xf32>
    %979 = vector.shape_cast %973 : vector<2x32xf32> to vector<1x2x32xf32>
    tpu.vector_store %arg9[%c3, %c0_159, %c0_160], %979 {strides = array<i32>} : memref<4x2x32xf32, #tpu.memory_space<vmem>>, vector<1x2x32xf32>,
    %c2_161 = arith.constant 2 : index
    %c0_162 = arith.constant 0 : index
    %c0_163 = arith.constant 0 : index
    %980 = vector.load %arg10[%c2_161, %c0_162, %c0_163] : memref<4x2x32xf32, #tpu.memory_space<vmem>>, vector<1x2x32xf32>
    %981 = vector.shape_cast %980 : vector<1x2x32xf32> to vector<2x32xf32>
    %982 = vector.shape_cast %942 : vector<2x32xf32> to vector<1x2x32xf32>
    tpu.vector_store %arg10[%c2_161, %c0_162, %c0_163], %982 {strides = array<i32>} : memref<4x2x32xf32, #tpu.memory_space<vmem>>, vector<1x2x32xf32>,
    %c3_164 = arith.constant 3 : index
    %c0_165 = arith.constant 0 : index
    %c0_166 = arith.constant 0 : index
    %983 = vector.load %arg10[%c3_164, %c0_165, %c0_166] : memref<4x2x32xf32, #tpu.memory_space<vmem>>, vector<1x2x32xf32>
    %984 = vector.shape_cast %983 : vector<1x2x32xf32> to vector<2x32xf32>
    %985 = vector.shape_cast %971 : vector<2x32xf32> to vector<1x2x32xf32>
    tpu.vector_store %arg10[%c3_164, %c0_165, %c0_166], %985 {strides = array<i32>} : memref<4x2x32xf32, #tpu.memory_space<vmem>>, vector<1x2x32xf32>,
    return
  }
}

module attributes {stable_mosaic.version = 11 : i64} {
  func.func @kernel(%arg0: memref<2x8x4xf32, #tpu.memory_space<vmem>>, %arg1: memref<4x2x32xf32, #tpu.memory_space<vmem>>, %arg2: memref<4x2x32xf32, #tpu.memory_space<vmem>>, %arg3: memref<36x128xf32, #tpu.memory_space<vmem>>, %arg4: memref<1x128xf32, #tpu.memory_space<vmem>>, %arg5: memref<36x128xf32, #tpu.memory_space<vmem>>, %arg6: memref<1x128xf32, #tpu.memory_space<vmem>>, %arg7: memref<96x128xf32, #tpu.memory_space<vmem>>, %arg8: memref<1x128xf32, #tpu.memory_space<vmem>>, %arg9: memref<96x128xf32, #tpu.memory_space<vmem>>, %arg10: memref<1x128xf32, #tpu.memory_space<vmem>>, %arg11: memref<64x4xf32, #tpu.memory_space<vmem>>, %arg12: memref<1x4xf32, #tpu.memory_space<vmem>>, %arg13: memref<2x4x4xf32, #tpu.memory_space<vmem>>) attributes {dimension_semantics = [], scalar_prefetch = 0 : i64, scratch_operands = 0 : i64, tpu.core_type = #tpu.core_type<tc>} {
    %c0 = arith.constant 0 : index
    %c0_0 = arith.constant 0 : index
    %c0_1 = arith.constant 0 : index
    %0 = vector.load %arg0[%c0, %c0_0, %c0_1] : memref<2x8x4xf32, #tpu.memory_space<vmem>>, vector<2x8x4xf32>
    %1 = vector.extract_strided_slice %0 {offsets = [0, 7, 0], sizes = [2, 1, 4], strides = [1, 1, 1]} : vector<2x8x4xf32> to vector<2x1x4xf32>
    %2 = vector.shape_cast %1 : vector<2x1x4xf32> to vector<2x4xf32>
    %c0_2 = arith.constant 0 : index
    %c0_3 = arith.constant 0 : index
    %c0_4 = arith.constant 0 : index
    %3 = vector.load %arg1[%c0_2, %c0_3, %c0_4] : memref<4x2x32xf32, #tpu.memory_space<vmem>>, vector<4x2x32xf32>
    %c0_5 = arith.constant 0 : index
    %c0_6 = arith.constant 0 : index
    %c0_7 = arith.constant 0 : index
    %4 = vector.load %arg2[%c0_5, %c0_6, %c0_7] : memref<4x2x32xf32, #tpu.memory_space<vmem>>, vector<4x2x32xf32>
    %5 = vector.extract_strided_slice %3 {offsets = [0, 0, 0], sizes = [1, 2, 32], strides = [1, 1, 1]} : vector<4x2x32xf32> to vector<1x2x32xf32>
    %6 = vector.shape_cast %5 : vector<1x2x32xf32> to vector<2x32xf32>
    %7 = vector.extract_strided_slice %3 {offsets = [1, 0, 0], sizes = [1, 2, 32], strides = [1, 1, 1]} : vector<4x2x32xf32> to vector<1x2x32xf32>
    %8 = vector.shape_cast %7 : vector<1x2x32xf32> to vector<2x32xf32>
    %9 = vector.extract_strided_slice %3 {offsets = [2, 0, 0], sizes = [1, 2, 32], strides = [1, 1, 1]} : vector<4x2x32xf32> to vector<1x2x32xf32>
    %10 = vector.shape_cast %9 : vector<1x2x32xf32> to vector<2x32xf32>
    %11 = vector.extract_strided_slice %3 {offsets = [3, 0, 0], sizes = [1, 2, 32], strides = [1, 1, 1]} : vector<4x2x32xf32> to vector<1x2x32xf32>
    %12 = vector.shape_cast %11 : vector<1x2x32xf32> to vector<2x32xf32>
    %13 = vector.extract_strided_slice %4 {offsets = [0, 0, 0], sizes = [1, 2, 32], strides = [1, 1, 1]} : vector<4x2x32xf32> to vector<1x2x32xf32>
    %14 = vector.shape_cast %13 : vector<1x2x32xf32> to vector<2x32xf32>
    %15 = vector.extract_strided_slice %4 {offsets = [1, 0, 0], sizes = [1, 2, 32], strides = [1, 1, 1]} : vector<4x2x32xf32> to vector<1x2x32xf32>
    %16 = vector.shape_cast %15 : vector<1x2x32xf32> to vector<2x32xf32>
    %17 = vector.extract_strided_slice %4 {offsets = [2, 0, 0], sizes = [1, 2, 32], strides = [1, 1, 1]} : vector<4x2x32xf32> to vector<1x2x32xf32>
    %18 = vector.shape_cast %17 : vector<1x2x32xf32> to vector<2x32xf32>
    %19 = vector.extract_strided_slice %4 {offsets = [3, 0, 0], sizes = [1, 2, 32], strides = [1, 1, 1]} : vector<4x2x32xf32> to vector<1x2x32xf32>
    %20 = vector.shape_cast %19 : vector<1x2x32xf32> to vector<2x32xf32>
    %c0_8 = arith.constant 0 : index
    %c0_9 = arith.constant 0 : index
    %21 = vector.load %arg11[%c0_8, %c0_9] : memref<64x4xf32, #tpu.memory_space<vmem>>, vector<64x4xf32>
    %c0_10 = arith.constant 0 : index
    %c0_11 = arith.constant 0 : index
    %22 = vector.load %arg12[%c0_10, %c0_11] : memref<1x4xf32, #tpu.memory_space<vmem>>, vector<1x4xf32>
    %c0_12 = arith.constant 0 : index
    %c0_13 = arith.constant 0 : index
    %23 = vector.load %arg3[%c0_12, %c0_13] : memref<36x128xf32, #tpu.memory_space<vmem>>, vector<36x128xf32>
    %c0_14 = arith.constant 0 : index
    %c0_15 = arith.constant 0 : index
    %24 = vector.load %arg4[%c0_14, %c0_15] : memref<1x128xf32, #tpu.memory_space<vmem>>, vector<1x128xf32>
    %c0_16 = arith.constant 0 : index
    %c0_17 = arith.constant 0 : index
    %25 = vector.load %arg5[%c0_16, %c0_17] : memref<36x128xf32, #tpu.memory_space<vmem>>, vector<36x128xf32>
    %c0_18 = arith.constant 0 : index
    %c0_19 = arith.constant 0 : index
    %26 = vector.load %arg6[%c0_18, %c0_19] : memref<1x128xf32, #tpu.memory_space<vmem>>, vector<1x128xf32>
    %27 = tpu.concatenate %2, %6 in 1 : vector<2x4xf32>, vector<2x32xf32> -> vector<2x36xf32>
    %cst = arith.constant dense<0.000000e+00> : vector<2x128xf32>
    %28 = tpu.matmul %27, %23, %cst {dimension_numbers = #tpu.dot_dimension_numbers<[1], [0], [0], [1], [0, 0, 1, 1], [], []>} : vector<2x36xf32>, vector<36x128xf32>, vector<2x128xf32> -> vector<2x128xf32>
    %29 = vector.broadcast %24 : vector<1x128xf32> to vector<2x128xf32>
    %30 = arith.addf %28, %29 : vector<2x128xf32>
    %31 = vector.extract_strided_slice %30 {offsets = [0, 0], sizes = [2, 32], strides = [1, 1]} : vector<2x128xf32> to vector<2x32xf32>
    %32 = arith.negf %31 : vector<2x32xf32>
    %33 = math.exp %32 : vector<2x32xf32>
    %cst_20 = arith.constant 1.000000e+00 : f32
    %34 = vector.broadcast %cst_20 : f32 to vector<2x32xf32>
    %35 = arith.addf %34, %33 : vector<2x32xf32>
    %36 = arith.divf %34, %35 : vector<2x32xf32>
    %37 = vector.extract_strided_slice %30 {offsets = [0, 32], sizes = [2, 32], strides = [1, 1]} : vector<2x128xf32> to vector<2x32xf32>
    %38 = arith.negf %37 : vector<2x32xf32>
    %39 = math.exp %38 : vector<2x32xf32>
    %cst_21 = arith.constant 1.000000e+00 : f32
    %40 = vector.broadcast %cst_21 : f32 to vector<2x32xf32>
    %41 = arith.addf %40, %39 : vector<2x32xf32>
    %42 = arith.divf %40, %41 : vector<2x32xf32>
    %43 = vector.extract_strided_slice %30 {offsets = [0, 64], sizes = [2, 32], strides = [1, 1]} : vector<2x128xf32> to vector<2x32xf32>
    %44 = math.tanh %43 : vector<2x32xf32>
    %45 = vector.extract_strided_slice %30 {offsets = [0, 96], sizes = [2, 32], strides = [1, 1]} : vector<2x128xf32> to vector<2x32xf32>
    %46 = arith.negf %45 : vector<2x32xf32>
    %47 = math.exp %46 : vector<2x32xf32>
    %cst_22 = arith.constant 1.000000e+00 : f32
    %48 = vector.broadcast %cst_22 : f32 to vector<2x32xf32>
    %49 = arith.addf %48, %47 : vector<2x32xf32>
    %50 = arith.divf %48, %49 : vector<2x32xf32>
    %51 = arith.mulf %42, %14 : vector<2x32xf32>
    %52 = arith.mulf %36, %44 : vector<2x32xf32>
    %53 = arith.addf %51, %52 : vector<2x32xf32>
    %54 = math.tanh %53 : vector<2x32xf32>
    %55 = arith.mulf %50, %54 : vector<2x32xf32>
    %56 = tpu.concatenate %2, %8 in 1 : vector<2x4xf32>, vector<2x32xf32> -> vector<2x36xf32>
    %cst_23 = arith.constant dense<0.000000e+00> : vector<2x128xf32>
    %57 = tpu.matmul %56, %25, %cst_23 {dimension_numbers = #tpu.dot_dimension_numbers<[1], [0], [0], [1], [0, 0, 1, 1], [], []>} : vector<2x36xf32>, vector<36x128xf32>, vector<2x128xf32> -> vector<2x128xf32>
    %58 = vector.broadcast %26 : vector<1x128xf32> to vector<2x128xf32>
    %59 = arith.addf %57, %58 : vector<2x128xf32>
    %60 = vector.extract_strided_slice %59 {offsets = [0, 0], sizes = [2, 32], strides = [1, 1]} : vector<2x128xf32> to vector<2x32xf32>
    %61 = arith.negf %60 : vector<2x32xf32>
    %62 = math.exp %61 : vector<2x32xf32>
    %cst_24 = arith.constant 1.000000e+00 : f32
    %63 = vector.broadcast %cst_24 : f32 to vector<2x32xf32>
    %64 = arith.addf %63, %62 : vector<2x32xf32>
    %65 = arith.divf %63, %64 : vector<2x32xf32>
    %66 = vector.extract_strided_slice %59 {offsets = [0, 32], sizes = [2, 32], strides = [1, 1]} : vector<2x128xf32> to vector<2x32xf32>
    %67 = arith.negf %66 : vector<2x32xf32>
    %68 = math.exp %67 : vector<2x32xf32>
    %cst_25 = arith.constant 1.000000e+00 : f32
    %69 = vector.broadcast %cst_25 : f32 to vector<2x32xf32>
    %70 = arith.addf %69, %68 : vector<2x32xf32>
    %71 = arith.divf %69, %70 : vector<2x32xf32>
    %72 = vector.extract_strided_slice %59 {offsets = [0, 64], sizes = [2, 32], strides = [1, 1]} : vector<2x128xf32> to vector<2x32xf32>
    %73 = math.tanh %72 : vector<2x32xf32>
    %74 = vector.extract_strided_slice %59 {offsets = [0, 96], sizes = [2, 32], strides = [1, 1]} : vector<2x128xf32> to vector<2x32xf32>
    %75 = arith.negf %74 : vector<2x32xf32>
    %76 = math.exp %75 : vector<2x32xf32>
    %cst_26 = arith.constant 1.000000e+00 : f32
    %77 = vector.broadcast %cst_26 : f32 to vector<2x32xf32>
    %78 = arith.addf %77, %76 : vector<2x32xf32>
    %79 = arith.divf %77, %78 : vector<2x32xf32>
    %80 = arith.mulf %71, %16 : vector<2x32xf32>
    %81 = arith.mulf %65, %73 : vector<2x32xf32>
    %82 = arith.addf %80, %81 : vector<2x32xf32>
    %83 = math.tanh %82 : vector<2x32xf32>
    %84 = arith.mulf %79, %83 : vector<2x32xf32>
    %85 = tpu.concatenate %55, %84 in 1 : vector<2x32xf32>, vector<2x32xf32> -> vector<2x64xf32>
    %c0_27 = arith.constant 0 : index
    %c0_28 = arith.constant 0 : index
    %86 = vector.load %arg7[%c0_27, %c0_28] : memref<96x128xf32, #tpu.memory_space<vmem>>, vector<96x128xf32>
    %c0_29 = arith.constant 0 : index
    %c0_30 = arith.constant 0 : index
    %87 = vector.load %arg8[%c0_29, %c0_30] : memref<1x128xf32, #tpu.memory_space<vmem>>, vector<1x128xf32>
    %c0_31 = arith.constant 0 : index
    %c0_32 = arith.constant 0 : index
    %88 = vector.load %arg9[%c0_31, %c0_32] : memref<96x128xf32, #tpu.memory_space<vmem>>, vector<96x128xf32>
    %c0_33 = arith.constant 0 : index
    %c0_34 = arith.constant 0 : index
    %89 = vector.load %arg10[%c0_33, %c0_34] : memref<1x128xf32, #tpu.memory_space<vmem>>, vector<1x128xf32>
    %90 = tpu.concatenate %85, %10 in 1 : vector<2x64xf32>, vector<2x32xf32> -> vector<2x96xf32>
    %cst_35 = arith.constant dense<0.000000e+00> : vector<2x128xf32>
    %91 = tpu.matmul %90, %86, %cst_35 {dimension_numbers = #tpu.dot_dimension_numbers<[1], [0], [0], [1], [0, 0, 1, 1], [], []>} : vector<2x96xf32>, vector<96x128xf32>, vector<2x128xf32> -> vector<2x128xf32>
    %92 = vector.broadcast %87 : vector<1x128xf32> to vector<2x128xf32>
    %93 = arith.addf %91, %92 : vector<2x128xf32>
    %94 = vector.extract_strided_slice %93 {offsets = [0, 0], sizes = [2, 32], strides = [1, 1]} : vector<2x128xf32> to vector<2x32xf32>
    %95 = arith.negf %94 : vector<2x32xf32>
    %96 = math.exp %95 : vector<2x32xf32>
    %cst_36 = arith.constant 1.000000e+00 : f32
    %97 = vector.broadcast %cst_36 : f32 to vector<2x32xf32>
    %98 = arith.addf %97, %96 : vector<2x32xf32>
    %99 = arith.divf %97, %98 : vector<2x32xf32>
    %100 = vector.extract_strided_slice %93 {offsets = [0, 32], sizes = [2, 32], strides = [1, 1]} : vector<2x128xf32> to vector<2x32xf32>
    %101 = arith.negf %100 : vector<2x32xf32>
    %102 = math.exp %101 : vector<2x32xf32>
    %cst_37 = arith.constant 1.000000e+00 : f32
    %103 = vector.broadcast %cst_37 : f32 to vector<2x32xf32>
    %104 = arith.addf %103, %102 : vector<2x32xf32>
    %105 = arith.divf %103, %104 : vector<2x32xf32>
    %106 = vector.extract_strided_slice %93 {offsets = [0, 64], sizes = [2, 32], strides = [1, 1]} : vector<2x128xf32> to vector<2x32xf32>
    %107 = math.tanh %106 : vector<2x32xf32>
    %108 = vector.extract_strided_slice %93 {offsets = [0, 96], sizes = [2, 32], strides = [1, 1]} : vector<2x128xf32> to vector<2x32xf32>
    %109 = arith.negf %108 : vector<2x32xf32>
    %110 = math.exp %109 : vector<2x32xf32>
    %cst_38 = arith.constant 1.000000e+00 : f32
    %111 = vector.broadcast %cst_38 : f32 to vector<2x32xf32>
    %112 = arith.addf %111, %110 : vector<2x32xf32>
    %113 = arith.divf %111, %112 : vector<2x32xf32>
    %114 = arith.mulf %105, %18 : vector<2x32xf32>
    %115 = arith.mulf %99, %107 : vector<2x32xf32>
    %116 = arith.addf %114, %115 : vector<2x32xf32>
    %117 = math.tanh %116 : vector<2x32xf32>
    %118 = arith.mulf %113, %117 : vector<2x32xf32>
    %119 = tpu.concatenate %85, %12 in 1 : vector<2x64xf32>, vector<2x32xf32> -> vector<2x96xf32>
    %cst_39 = arith.constant dense<0.000000e+00> : vector<2x128xf32>
    %120 = tpu.matmul %119, %88, %cst_39 {dimension_numbers = #tpu.dot_dimension_numbers<[1], [0], [0], [1], [0, 0, 1, 1], [], []>} : vector<2x96xf32>, vector<96x128xf32>, vector<2x128xf32> -> vector<2x128xf32>
    %121 = vector.broadcast %89 : vector<1x128xf32> to vector<2x128xf32>
    %122 = arith.addf %120, %121 : vector<2x128xf32>
    %123 = vector.extract_strided_slice %122 {offsets = [0, 0], sizes = [2, 32], strides = [1, 1]} : vector<2x128xf32> to vector<2x32xf32>
    %124 = arith.negf %123 : vector<2x32xf32>
    %125 = math.exp %124 : vector<2x32xf32>
    %cst_40 = arith.constant 1.000000e+00 : f32
    %126 = vector.broadcast %cst_40 : f32 to vector<2x32xf32>
    %127 = arith.addf %126, %125 : vector<2x32xf32>
    %128 = arith.divf %126, %127 : vector<2x32xf32>
    %129 = vector.extract_strided_slice %122 {offsets = [0, 32], sizes = [2, 32], strides = [1, 1]} : vector<2x128xf32> to vector<2x32xf32>
    %130 = arith.negf %129 : vector<2x32xf32>
    %131 = math.exp %130 : vector<2x32xf32>
    %cst_41 = arith.constant 1.000000e+00 : f32
    %132 = vector.broadcast %cst_41 : f32 to vector<2x32xf32>
    %133 = arith.addf %132, %131 : vector<2x32xf32>
    %134 = arith.divf %132, %133 : vector<2x32xf32>
    %135 = vector.extract_strided_slice %122 {offsets = [0, 64], sizes = [2, 32], strides = [1, 1]} : vector<2x128xf32> to vector<2x32xf32>
    %136 = math.tanh %135 : vector<2x32xf32>
    %137 = vector.extract_strided_slice %122 {offsets = [0, 96], sizes = [2, 32], strides = [1, 1]} : vector<2x128xf32> to vector<2x32xf32>
    %138 = arith.negf %137 : vector<2x32xf32>
    %139 = math.exp %138 : vector<2x32xf32>
    %cst_42 = arith.constant 1.000000e+00 : f32
    %140 = vector.broadcast %cst_42 : f32 to vector<2x32xf32>
    %141 = arith.addf %140, %139 : vector<2x32xf32>
    %142 = arith.divf %140, %141 : vector<2x32xf32>
    %143 = arith.mulf %134, %20 : vector<2x32xf32>
    %144 = arith.mulf %128, %136 : vector<2x32xf32>
    %145 = arith.addf %143, %144 : vector<2x32xf32>
    %146 = math.tanh %145 : vector<2x32xf32>
    %147 = arith.mulf %142, %146 : vector<2x32xf32>
    %148 = tpu.concatenate %118, %147 in 1 : vector<2x32xf32>, vector<2x32xf32> -> vector<2x64xf32>
    %cst_43 = arith.constant dense<0.000000e+00> : vector<2x4xf32>
    %149 = tpu.matmul %148, %21, %cst_43 {dimension_numbers = #tpu.dot_dimension_numbers<[1], [0], [0], [1], [0, 0, 1, 1], [], []>} : vector<2x64xf32>, vector<64x4xf32>, vector<2x4xf32> -> vector<2x4xf32>
    %150 = vector.broadcast %22 : vector<1x4xf32> to vector<2x4xf32>
    %151 = arith.addf %149, %150 : vector<2x4xf32>
    %c0_44 = arith.constant 0 : index
    %c0_45 = arith.constant 0 : index
    %152 = vector.load %arg3[%c0_44, %c0_45] : memref<36x128xf32, #tpu.memory_space<vmem>>, vector<36x128xf32>
    %c0_46 = arith.constant 0 : index
    %c0_47 = arith.constant 0 : index
    %153 = vector.load %arg4[%c0_46, %c0_47] : memref<1x128xf32, #tpu.memory_space<vmem>>, vector<1x128xf32>
    %c0_48 = arith.constant 0 : index
    %c0_49 = arith.constant 0 : index
    %154 = vector.load %arg5[%c0_48, %c0_49] : memref<36x128xf32, #tpu.memory_space<vmem>>, vector<36x128xf32>
    %c0_50 = arith.constant 0 : index
    %c0_51 = arith.constant 0 : index
    %155 = vector.load %arg6[%c0_50, %c0_51] : memref<1x128xf32, #tpu.memory_space<vmem>>, vector<1x128xf32>
    %156 = tpu.concatenate %151, %55 in 1 : vector<2x4xf32>, vector<2x32xf32> -> vector<2x36xf32>
    %cst_52 = arith.constant dense<0.000000e+00> : vector<2x128xf32>
    %157 = tpu.matmul %156, %152, %cst_52 {dimension_numbers = #tpu.dot_dimension_numbers<[1], [0], [0], [1], [0, 0, 1, 1], [], []>} : vector<2x36xf32>, vector<36x128xf32>, vector<2x128xf32> -> vector<2x128xf32>
    %158 = vector.broadcast %153 : vector<1x128xf32> to vector<2x128xf32>
    %159 = arith.addf %157, %158 : vector<2x128xf32>
    %160 = vector.extract_strided_slice %159 {offsets = [0, 0], sizes = [2, 32], strides = [1, 1]} : vector<2x128xf32> to vector<2x32xf32>
    %161 = arith.negf %160 : vector<2x32xf32>
    %162 = math.exp %161 : vector<2x32xf32>
    %cst_53 = arith.constant 1.000000e+00 : f32
    %163 = vector.broadcast %cst_53 : f32 to vector<2x32xf32>
    %164 = arith.addf %163, %162 : vector<2x32xf32>
    %165 = arith.divf %163, %164 : vector<2x32xf32>
    %166 = vector.extract_strided_slice %159 {offsets = [0, 32], sizes = [2, 32], strides = [1, 1]} : vector<2x128xf32> to vector<2x32xf32>
    %167 = arith.negf %166 : vector<2x32xf32>
    %168 = math.exp %167 : vector<2x32xf32>
    %cst_54 = arith.constant 1.000000e+00 : f32
    %169 = vector.broadcast %cst_54 : f32 to vector<2x32xf32>
    %170 = arith.addf %169, %168 : vector<2x32xf32>
    %171 = arith.divf %169, %170 : vector<2x32xf32>
    %172 = vector.extract_strided_slice %159 {offsets = [0, 64], sizes = [2, 32], strides = [1, 1]} : vector<2x128xf32> to vector<2x32xf32>
    %173 = math.tanh %172 : vector<2x32xf32>
    %174 = vector.extract_strided_slice %159 {offsets = [0, 96], sizes = [2, 32], strides = [1, 1]} : vector<2x128xf32> to vector<2x32xf32>
    %175 = arith.negf %174 : vector<2x32xf32>
    %176 = math.exp %175 : vector<2x32xf32>
    %cst_55 = arith.constant 1.000000e+00 : f32
    %177 = vector.broadcast %cst_55 : f32 to vector<2x32xf32>
    %178 = arith.addf %177, %176 : vector<2x32xf32>
    %179 = arith.divf %177, %178 : vector<2x32xf32>
    %180 = arith.mulf %171, %53 : vector<2x32xf32>
    %181 = arith.mulf %165, %173 : vector<2x32xf32>
    %182 = arith.addf %180, %181 : vector<2x32xf32>
    %183 = math.tanh %182 : vector<2x32xf32>
    %184 = arith.mulf %179, %183 : vector<2x32xf32>
    %185 = tpu.concatenate %151, %84 in 1 : vector<2x4xf32>, vector<2x32xf32> -> vector<2x36xf32>
    %cst_56 = arith.constant dense<0.000000e+00> : vector<2x128xf32>
    %186 = tpu.matmul %185, %154, %cst_56 {dimension_numbers = #tpu.dot_dimension_numbers<[1], [0], [0], [1], [0, 0, 1, 1], [], []>} : vector<2x36xf32>, vector<36x128xf32>, vector<2x128xf32> -> vector<2x128xf32>
    %187 = vector.broadcast %155 : vector<1x128xf32> to vector<2x128xf32>
    %188 = arith.addf %186, %187 : vector<2x128xf32>
    %189 = vector.extract_strided_slice %188 {offsets = [0, 0], sizes = [2, 32], strides = [1, 1]} : vector<2x128xf32> to vector<2x32xf32>
    %190 = arith.negf %189 : vector<2x32xf32>
    %191 = math.exp %190 : vector<2x32xf32>
    %cst_57 = arith.constant 1.000000e+00 : f32
    %192 = vector.broadcast %cst_57 : f32 to vector<2x32xf32>
    %193 = arith.addf %192, %191 : vector<2x32xf32>
    %194 = arith.divf %192, %193 : vector<2x32xf32>
    %195 = vector.extract_strided_slice %188 {offsets = [0, 32], sizes = [2, 32], strides = [1, 1]} : vector<2x128xf32> to vector<2x32xf32>
    %196 = arith.negf %195 : vector<2x32xf32>
    %197 = math.exp %196 : vector<2x32xf32>
    %cst_58 = arith.constant 1.000000e+00 : f32
    %198 = vector.broadcast %cst_58 : f32 to vector<2x32xf32>
    %199 = arith.addf %198, %197 : vector<2x32xf32>
    %200 = arith.divf %198, %199 : vector<2x32xf32>
    %201 = vector.extract_strided_slice %188 {offsets = [0, 64], sizes = [2, 32], strides = [1, 1]} : vector<2x128xf32> to vector<2x32xf32>
    %202 = math.tanh %201 : vector<2x32xf32>
    %203 = vector.extract_strided_slice %188 {offsets = [0, 96], sizes = [2, 32], strides = [1, 1]} : vector<2x128xf32> to vector<2x32xf32>
    %204 = arith.negf %203 : vector<2x32xf32>
    %205 = math.exp %204 : vector<2x32xf32>
    %cst_59 = arith.constant 1.000000e+00 : f32
    %206 = vector.broadcast %cst_59 : f32 to vector<2x32xf32>
    %207 = arith.addf %206, %205 : vector<2x32xf32>
    %208 = arith.divf %206, %207 : vector<2x32xf32>
    %209 = arith.mulf %200, %82 : vector<2x32xf32>
    %210 = arith.mulf %194, %202 : vector<2x32xf32>
    %211 = arith.addf %209, %210 : vector<2x32xf32>
    %212 = math.tanh %211 : vector<2x32xf32>
    %213 = arith.mulf %208, %212 : vector<2x32xf32>
    %214 = tpu.concatenate %184, %213 in 1 : vector<2x32xf32>, vector<2x32xf32> -> vector<2x64xf32>
    %c0_60 = arith.constant 0 : index
    %c0_61 = arith.constant 0 : index
    %215 = vector.load %arg7[%c0_60, %c0_61] : memref<96x128xf32, #tpu.memory_space<vmem>>, vector<96x128xf32>
    %c0_62 = arith.constant 0 : index
    %c0_63 = arith.constant 0 : index
    %216 = vector.load %arg8[%c0_62, %c0_63] : memref<1x128xf32, #tpu.memory_space<vmem>>, vector<1x128xf32>
    %c0_64 = arith.constant 0 : index
    %c0_65 = arith.constant 0 : index
    %217 = vector.load %arg9[%c0_64, %c0_65] : memref<96x128xf32, #tpu.memory_space<vmem>>, vector<96x128xf32>
    %c0_66 = arith.constant 0 : index
    %c0_67 = arith.constant 0 : index
    %218 = vector.load %arg10[%c0_66, %c0_67] : memref<1x128xf32, #tpu.memory_space<vmem>>, vector<1x128xf32>
    %219 = tpu.concatenate %214, %118 in 1 : vector<2x64xf32>, vector<2x32xf32> -> vector<2x96xf32>
    %cst_68 = arith.constant dense<0.000000e+00> : vector<2x128xf32>
    %220 = tpu.matmul %219, %215, %cst_68 {dimension_numbers = #tpu.dot_dimension_numbers<[1], [0], [0], [1], [0, 0, 1, 1], [], []>} : vector<2x96xf32>, vector<96x128xf32>, vector<2x128xf32> -> vector<2x128xf32>
    %221 = vector.broadcast %216 : vector<1x128xf32> to vector<2x128xf32>
    %222 = arith.addf %220, %221 : vector<2x128xf32>
    %223 = vector.extract_strided_slice %222 {offsets = [0, 0], sizes = [2, 32], strides = [1, 1]} : vector<2x128xf32> to vector<2x32xf32>
    %224 = arith.negf %223 : vector<2x32xf32>
    %225 = math.exp %224 : vector<2x32xf32>
    %cst_69 = arith.constant 1.000000e+00 : f32
    %226 = vector.broadcast %cst_69 : f32 to vector<2x32xf32>
    %227 = arith.addf %226, %225 : vector<2x32xf32>
    %228 = arith.divf %226, %227 : vector<2x32xf32>
    %229 = vector.extract_strided_slice %222 {offsets = [0, 32], sizes = [2, 32], strides = [1, 1]} : vector<2x128xf32> to vector<2x32xf32>
    %230 = arith.negf %229 : vector<2x32xf32>
    %231 = math.exp %230 : vector<2x32xf32>
    %cst_70 = arith.constant 1.000000e+00 : f32
    %232 = vector.broadcast %cst_70 : f32 to vector<2x32xf32>
    %233 = arith.addf %232, %231 : vector<2x32xf32>
    %234 = arith.divf %232, %233 : vector<2x32xf32>
    %235 = vector.extract_strided_slice %222 {offsets = [0, 64], sizes = [2, 32], strides = [1, 1]} : vector<2x128xf32> to vector<2x32xf32>
    %236 = math.tanh %235 : vector<2x32xf32>
    %237 = vector.extract_strided_slice %222 {offsets = [0, 96], sizes = [2, 32], strides = [1, 1]} : vector<2x128xf32> to vector<2x32xf32>
    %238 = arith.negf %237 : vector<2x32xf32>
    %239 = math.exp %238 : vector<2x32xf32>
    %cst_71 = arith.constant 1.000000e+00 : f32
    %240 = vector.broadcast %cst_71 : f32 to vector<2x32xf32>
    %241 = arith.addf %240, %239 : vector<2x32xf32>
    %242 = arith.divf %240, %241 : vector<2x32xf32>
    %243 = arith.mulf %234, %116 : vector<2x32xf32>
    %244 = arith.mulf %228, %236 : vector<2x32xf32>
    %245 = arith.addf %243, %244 : vector<2x32xf32>
    %246 = math.tanh %245 : vector<2x32xf32>
    %247 = arith.mulf %242, %246 : vector<2x32xf32>
    %248 = tpu.concatenate %214, %147 in 1 : vector<2x64xf32>, vector<2x32xf32> -> vector<2x96xf32>
    %cst_72 = arith.constant dense<0.000000e+00> : vector<2x128xf32>
    %249 = tpu.matmul %248, %217, %cst_72 {dimension_numbers = #tpu.dot_dimension_numbers<[1], [0], [0], [1], [0, 0, 1, 1], [], []>} : vector<2x96xf32>, vector<96x128xf32>, vector<2x128xf32> -> vector<2x128xf32>
    %250 = vector.broadcast %218 : vector<1x128xf32> to vector<2x128xf32>
    %251 = arith.addf %249, %250 : vector<2x128xf32>
    %252 = vector.extract_strided_slice %251 {offsets = [0, 0], sizes = [2, 32], strides = [1, 1]} : vector<2x128xf32> to vector<2x32xf32>
    %253 = arith.negf %252 : vector<2x32xf32>
    %254 = math.exp %253 : vector<2x32xf32>
    %cst_73 = arith.constant 1.000000e+00 : f32
    %255 = vector.broadcast %cst_73 : f32 to vector<2x32xf32>
    %256 = arith.addf %255, %254 : vector<2x32xf32>
    %257 = arith.divf %255, %256 : vector<2x32xf32>
    %258 = vector.extract_strided_slice %251 {offsets = [0, 32], sizes = [2, 32], strides = [1, 1]} : vector<2x128xf32> to vector<2x32xf32>
    %259 = arith.negf %258 : vector<2x32xf32>
    %260 = math.exp %259 : vector<2x32xf32>
    %cst_74 = arith.constant 1.000000e+00 : f32
    %261 = vector.broadcast %cst_74 : f32 to vector<2x32xf32>
    %262 = arith.addf %261, %260 : vector<2x32xf32>
    %263 = arith.divf %261, %262 : vector<2x32xf32>
    %264 = vector.extract_strided_slice %251 {offsets = [0, 64], sizes = [2, 32], strides = [1, 1]} : vector<2x128xf32> to vector<2x32xf32>
    %265 = math.tanh %264 : vector<2x32xf32>
    %266 = vector.extract_strided_slice %251 {offsets = [0, 96], sizes = [2, 32], strides = [1, 1]} : vector<2x128xf32> to vector<2x32xf32>
    %267 = arith.negf %266 : vector<2x32xf32>
    %268 = math.exp %267 : vector<2x32xf32>
    %cst_75 = arith.constant 1.000000e+00 : f32
    %269 = vector.broadcast %cst_75 : f32 to vector<2x32xf32>
    %270 = arith.addf %269, %268 : vector<2x32xf32>
    %271 = arith.divf %269, %270 : vector<2x32xf32>
    %272 = arith.mulf %263, %145 : vector<2x32xf32>
    %273 = arith.mulf %257, %265 : vector<2x32xf32>
    %274 = arith.addf %272, %273 : vector<2x32xf32>
    %275 = math.tanh %274 : vector<2x32xf32>
    %276 = arith.mulf %271, %275 : vector<2x32xf32>
    %277 = tpu.concatenate %247, %276 in 1 : vector<2x32xf32>, vector<2x32xf32> -> vector<2x64xf32>
    %cst_76 = arith.constant dense<0.000000e+00> : vector<2x4xf32>
    %278 = tpu.matmul %277, %21, %cst_76 {dimension_numbers = #tpu.dot_dimension_numbers<[1], [0], [0], [1], [0, 0, 1, 1], [], []>} : vector<2x64xf32>, vector<64x4xf32>, vector<2x4xf32> -> vector<2x4xf32>
    %279 = vector.broadcast %22 : vector<1x4xf32> to vector<2x4xf32>
    %280 = arith.addf %278, %279 : vector<2x4xf32>
    %c0_77 = arith.constant 0 : index
    %c0_78 = arith.constant 0 : index
    %281 = vector.load %arg3[%c0_77, %c0_78] : memref<36x128xf32, #tpu.memory_space<vmem>>, vector<36x128xf32>
    %c0_79 = arith.constant 0 : index
    %c0_80 = arith.constant 0 : index
    %282 = vector.load %arg4[%c0_79, %c0_80] : memref<1x128xf32, #tpu.memory_space<vmem>>, vector<1x128xf32>
    %c0_81 = arith.constant 0 : index
    %c0_82 = arith.constant 0 : index
    %283 = vector.load %arg5[%c0_81, %c0_82] : memref<36x128xf32, #tpu.memory_space<vmem>>, vector<36x128xf32>
    %c0_83 = arith.constant 0 : index
    %c0_84 = arith.constant 0 : index
    %284 = vector.load %arg6[%c0_83, %c0_84] : memref<1x128xf32, #tpu.memory_space<vmem>>, vector<1x128xf32>
    %285 = tpu.concatenate %151, %184 in 1 : vector<2x4xf32>, vector<2x32xf32> -> vector<2x36xf32>
    %cst_85 = arith.constant dense<0.000000e+00> : vector<2x128xf32>
    %286 = tpu.matmul %285, %281, %cst_85 {dimension_numbers = #tpu.dot_dimension_numbers<[1], [0], [0], [1], [0, 0, 1, 1], [], []>} : vector<2x36xf32>, vector<36x128xf32>, vector<2x128xf32> -> vector<2x128xf32>
    %287 = vector.broadcast %282 : vector<1x128xf32> to vector<2x128xf32>
    %288 = arith.addf %286, %287 : vector<2x128xf32>
    %289 = vector.extract_strided_slice %288 {offsets = [0, 0], sizes = [2, 32], strides = [1, 1]} : vector<2x128xf32> to vector<2x32xf32>
    %290 = arith.negf %289 : vector<2x32xf32>
    %291 = math.exp %290 : vector<2x32xf32>
    %cst_86 = arith.constant 1.000000e+00 : f32
    %292 = vector.broadcast %cst_86 : f32 to vector<2x32xf32>
    %293 = arith.addf %292, %291 : vector<2x32xf32>
    %294 = arith.divf %292, %293 : vector<2x32xf32>
    %295 = vector.extract_strided_slice %288 {offsets = [0, 32], sizes = [2, 32], strides = [1, 1]} : vector<2x128xf32> to vector<2x32xf32>
    %296 = arith.negf %295 : vector<2x32xf32>
    %297 = math.exp %296 : vector<2x32xf32>
    %cst_87 = arith.constant 1.000000e+00 : f32
    %298 = vector.broadcast %cst_87 : f32 to vector<2x32xf32>
    %299 = arith.addf %298, %297 : vector<2x32xf32>
    %300 = arith.divf %298, %299 : vector<2x32xf32>
    %301 = vector.extract_strided_slice %288 {offsets = [0, 64], sizes = [2, 32], strides = [1, 1]} : vector<2x128xf32> to vector<2x32xf32>
    %302 = math.tanh %301 : vector<2x32xf32>
    %303 = vector.extract_strided_slice %288 {offsets = [0, 96], sizes = [2, 32], strides = [1, 1]} : vector<2x128xf32> to vector<2x32xf32>
    %304 = arith.negf %303 : vector<2x32xf32>
    %305 = math.exp %304 : vector<2x32xf32>
    %cst_88 = arith.constant 1.000000e+00 : f32
    %306 = vector.broadcast %cst_88 : f32 to vector<2x32xf32>
    %307 = arith.addf %306, %305 : vector<2x32xf32>
    %308 = arith.divf %306, %307 : vector<2x32xf32>
    %309 = arith.mulf %300, %182 : vector<2x32xf32>
    %310 = arith.mulf %294, %302 : vector<2x32xf32>
    %311 = arith.addf %309, %310 : vector<2x32xf32>
    %312 = math.tanh %311 : vector<2x32xf32>
    %313 = arith.mulf %308, %312 : vector<2x32xf32>
    %314 = tpu.concatenate %280, %213 in 1 : vector<2x4xf32>, vector<2x32xf32> -> vector<2x36xf32>
    %cst_89 = arith.constant dense<0.000000e+00> : vector<2x128xf32>
    %315 = tpu.matmul %314, %283, %cst_89 {dimension_numbers = #tpu.dot_dimension_numbers<[1], [0], [0], [1], [0, 0, 1, 1], [], []>} : vector<2x36xf32>, vector<36x128xf32>, vector<2x128xf32> -> vector<2x128xf32>
    %316 = vector.broadcast %284 : vector<1x128xf32> to vector<2x128xf32>
    %317 = arith.addf %315, %316 : vector<2x128xf32>
    %318 = vector.extract_strided_slice %317 {offsets = [0, 0], sizes = [2, 32], strides = [1, 1]} : vector<2x128xf32> to vector<2x32xf32>
    %319 = arith.negf %318 : vector<2x32xf32>
    %320 = math.exp %319 : vector<2x32xf32>
    %cst_90 = arith.constant 1.000000e+00 : f32
    %321 = vector.broadcast %cst_90 : f32 to vector<2x32xf32>
    %322 = arith.addf %321, %320 : vector<2x32xf32>
    %323 = arith.divf %321, %322 : vector<2x32xf32>
    %324 = vector.extract_strided_slice %317 {offsets = [0, 32], sizes = [2, 32], strides = [1, 1]} : vector<2x128xf32> to vector<2x32xf32>
    %325 = arith.negf %324 : vector<2x32xf32>
    %326 = math.exp %325 : vector<2x32xf32>
    %cst_91 = arith.constant 1.000000e+00 : f32
    %327 = vector.broadcast %cst_91 : f32 to vector<2x32xf32>
    %328 = arith.addf %327, %326 : vector<2x32xf32>
    %329 = arith.divf %327, %328 : vector<2x32xf32>
    %330 = vector.extract_strided_slice %317 {offsets = [0, 64], sizes = [2, 32], strides = [1, 1]} : vector<2x128xf32> to vector<2x32xf32>
    %331 = math.tanh %330 : vector<2x32xf32>
    %332 = vector.extract_strided_slice %317 {offsets = [0, 96], sizes = [2, 32], strides = [1, 1]} : vector<2x128xf32> to vector<2x32xf32>
    %333 = arith.negf %332 : vector<2x32xf32>
    %334 = math.exp %333 : vector<2x32xf32>
    %cst_92 = arith.constant 1.000000e+00 : f32
    %335 = vector.broadcast %cst_92 : f32 to vector<2x32xf32>
    %336 = arith.addf %335, %334 : vector<2x32xf32>
    %337 = arith.divf %335, %336 : vector<2x32xf32>
    %338 = arith.mulf %329, %211 : vector<2x32xf32>
    %339 = arith.mulf %323, %331 : vector<2x32xf32>
    %340 = arith.addf %338, %339 : vector<2x32xf32>
    %341 = math.tanh %340 : vector<2x32xf32>
    %342 = arith.mulf %337, %341 : vector<2x32xf32>
    %343 = tpu.concatenate %280, %313 in 1 : vector<2x4xf32>, vector<2x32xf32> -> vector<2x36xf32>
    %cst_93 = arith.constant dense<0.000000e+00> : vector<2x128xf32>
    %344 = tpu.matmul %343, %281, %cst_93 {dimension_numbers = #tpu.dot_dimension_numbers<[1], [0], [0], [1], [0, 0, 1, 1], [], []>} : vector<2x36xf32>, vector<36x128xf32>, vector<2x128xf32> -> vector<2x128xf32>
    %345 = vector.broadcast %282 : vector<1x128xf32> to vector<2x128xf32>
    %346 = arith.addf %344, %345 : vector<2x128xf32>
    %347 = vector.extract_strided_slice %346 {offsets = [0, 0], sizes = [2, 32], strides = [1, 1]} : vector<2x128xf32> to vector<2x32xf32>
    %348 = arith.negf %347 : vector<2x32xf32>
    %349 = math.exp %348 : vector<2x32xf32>
    %cst_94 = arith.constant 1.000000e+00 : f32
    %350 = vector.broadcast %cst_94 : f32 to vector<2x32xf32>
    %351 = arith.addf %350, %349 : vector<2x32xf32>
    %352 = arith.divf %350, %351 : vector<2x32xf32>
    %353 = vector.extract_strided_slice %346 {offsets = [0, 32], sizes = [2, 32], strides = [1, 1]} : vector<2x128xf32> to vector<2x32xf32>
    %354 = arith.negf %353 : vector<2x32xf32>
    %355 = math.exp %354 : vector<2x32xf32>
    %cst_95 = arith.constant 1.000000e+00 : f32
    %356 = vector.broadcast %cst_95 : f32 to vector<2x32xf32>
    %357 = arith.addf %356, %355 : vector<2x32xf32>
    %358 = arith.divf %356, %357 : vector<2x32xf32>
    %359 = vector.extract_strided_slice %346 {offsets = [0, 64], sizes = [2, 32], strides = [1, 1]} : vector<2x128xf32> to vector<2x32xf32>
    %360 = math.tanh %359 : vector<2x32xf32>
    %361 = vector.extract_strided_slice %346 {offsets = [0, 96], sizes = [2, 32], strides = [1, 1]} : vector<2x128xf32> to vector<2x32xf32>
    %362 = arith.negf %361 : vector<2x32xf32>
    %363 = math.exp %362 : vector<2x32xf32>
    %cst_96 = arith.constant 1.000000e+00 : f32
    %364 = vector.broadcast %cst_96 : f32 to vector<2x32xf32>
    %365 = arith.addf %364, %363 : vector<2x32xf32>
    %366 = arith.divf %364, %365 : vector<2x32xf32>
    %367 = arith.mulf %358, %311 : vector<2x32xf32>
    %368 = arith.mulf %352, %360 : vector<2x32xf32>
    %369 = arith.addf %367, %368 : vector<2x32xf32>
    %370 = math.tanh %369 : vector<2x32xf32>
    %371 = arith.mulf %366, %370 : vector<2x32xf32>
    %372 = tpu.concatenate %151, %342 in 1 : vector<2x4xf32>, vector<2x32xf32> -> vector<2x36xf32>
    %cst_97 = arith.constant dense<0.000000e+00> : vector<2x128xf32>
    %373 = tpu.matmul %372, %283, %cst_97 {dimension_numbers = #tpu.dot_dimension_numbers<[1], [0], [0], [1], [0, 0, 1, 1], [], []>} : vector<2x36xf32>, vector<36x128xf32>, vector<2x128xf32> -> vector<2x128xf32>
    %374 = vector.broadcast %284 : vector<1x128xf32> to vector<2x128xf32>
    %375 = arith.addf %373, %374 : vector<2x128xf32>
    %376 = vector.extract_strided_slice %375 {offsets = [0, 0], sizes = [2, 32], strides = [1, 1]} : vector<2x128xf32> to vector<2x32xf32>
    %377 = arith.negf %376 : vector<2x32xf32>
    %378 = math.exp %377 : vector<2x32xf32>
    %cst_98 = arith.constant 1.000000e+00 : f32
    %379 = vector.broadcast %cst_98 : f32 to vector<2x32xf32>
    %380 = arith.addf %379, %378 : vector<2x32xf32>
    %381 = arith.divf %379, %380 : vector<2x32xf32>
    %382 = vector.extract_strided_slice %375 {offsets = [0, 32], sizes = [2, 32], strides = [1, 1]} : vector<2x128xf32> to vector<2x32xf32>
    %383 = arith.negf %382 : vector<2x32xf32>
    %384 = math.exp %383 : vector<2x32xf32>
    %cst_99 = arith.constant 1.000000e+00 : f32
    %385 = vector.broadcast %cst_99 : f32 to vector<2x32xf32>
    %386 = arith.addf %385, %384 : vector<2x32xf32>
    %387 = arith.divf %385, %386 : vector<2x32xf32>
    %388 = vector.extract_strided_slice %375 {offsets = [0, 64], sizes = [2, 32], strides = [1, 1]} : vector<2x128xf32> to vector<2x32xf32>
    %389 = math.tanh %388 : vector<2x32xf32>
    %390 = vector.extract_strided_slice %375 {offsets = [0, 96], sizes = [2, 32], strides = [1, 1]} : vector<2x128xf32> to vector<2x32xf32>
    %391 = arith.negf %390 : vector<2x32xf32>
    %392 = math.exp %391 : vector<2x32xf32>
    %cst_100 = arith.constant 1.000000e+00 : f32
    %393 = vector.broadcast %cst_100 : f32 to vector<2x32xf32>
    %394 = arith.addf %393, %392 : vector<2x32xf32>
    %395 = arith.divf %393, %394 : vector<2x32xf32>
    %396 = arith.mulf %387, %340 : vector<2x32xf32>
    %397 = arith.mulf %381, %389 : vector<2x32xf32>
    %398 = arith.addf %396, %397 : vector<2x32xf32>
    %399 = math.tanh %398 : vector<2x32xf32>
    %400 = arith.mulf %395, %399 : vector<2x32xf32>
    %401 = tpu.concatenate %313, %400 in 1 : vector<2x32xf32>, vector<2x32xf32> -> vector<2x64xf32>
    %402 = tpu.concatenate %371, %342 in 1 : vector<2x32xf32>, vector<2x32xf32> -> vector<2x64xf32>
    %c0_101 = arith.constant 0 : index
    %c0_102 = arith.constant 0 : index
    %403 = vector.load %arg7[%c0_101, %c0_102] : memref<96x128xf32, #tpu.memory_space<vmem>>, vector<96x128xf32>
    %c0_103 = arith.constant 0 : index
    %c0_104 = arith.constant 0 : index
    %404 = vector.load %arg8[%c0_103, %c0_104] : memref<1x128xf32, #tpu.memory_space<vmem>>, vector<1x128xf32>
    %c0_105 = arith.constant 0 : index
    %c0_106 = arith.constant 0 : index
    %405 = vector.load %arg9[%c0_105, %c0_106] : memref<96x128xf32, #tpu.memory_space<vmem>>, vector<96x128xf32>
    %c0_107 = arith.constant 0 : index
    %c0_108 = arith.constant 0 : index
    %406 = vector.load %arg10[%c0_107, %c0_108] : memref<1x128xf32, #tpu.memory_space<vmem>>, vector<1x128xf32>
    %407 = tpu.concatenate %401, %247 in 1 : vector<2x64xf32>, vector<2x32xf32> -> vector<2x96xf32>
    %cst_109 = arith.constant dense<0.000000e+00> : vector<2x128xf32>
    %408 = tpu.matmul %407, %403, %cst_109 {dimension_numbers = #tpu.dot_dimension_numbers<[1], [0], [0], [1], [0, 0, 1, 1], [], []>} : vector<2x96xf32>, vector<96x128xf32>, vector<2x128xf32> -> vector<2x128xf32>
    %409 = vector.broadcast %404 : vector<1x128xf32> to vector<2x128xf32>
    %410 = arith.addf %408, %409 : vector<2x128xf32>
    %411 = vector.extract_strided_slice %410 {offsets = [0, 0], sizes = [2, 32], strides = [1, 1]} : vector<2x128xf32> to vector<2x32xf32>
    %412 = arith.negf %411 : vector<2x32xf32>
    %413 = math.exp %412 : vector<2x32xf32>
    %cst_110 = arith.constant 1.000000e+00 : f32
    %414 = vector.broadcast %cst_110 : f32 to vector<2x32xf32>
    %415 = arith.addf %414, %413 : vector<2x32xf32>
    %416 = arith.divf %414, %415 : vector<2x32xf32>
    %417 = vector.extract_strided_slice %410 {offsets = [0, 32], sizes = [2, 32], strides = [1, 1]} : vector<2x128xf32> to vector<2x32xf32>
    %418 = arith.negf %417 : vector<2x32xf32>
    %419 = math.exp %418 : vector<2x32xf32>
    %cst_111 = arith.constant 1.000000e+00 : f32
    %420 = vector.broadcast %cst_111 : f32 to vector<2x32xf32>
    %421 = arith.addf %420, %419 : vector<2x32xf32>
    %422 = arith.divf %420, %421 : vector<2x32xf32>
    %423 = vector.extract_strided_slice %410 {offsets = [0, 64], sizes = [2, 32], strides = [1, 1]} : vector<2x128xf32> to vector<2x32xf32>
    %424 = math.tanh %423 : vector<2x32xf32>
    %425 = vector.extract_strided_slice %410 {offsets = [0, 96], sizes = [2, 32], strides = [1, 1]} : vector<2x128xf32> to vector<2x32xf32>
    %426 = arith.negf %425 : vector<2x32xf32>
    %427 = math.exp %426 : vector<2x32xf32>
    %cst_112 = arith.constant 1.000000e+00 : f32
    %428 = vector.broadcast %cst_112 : f32 to vector<2x32xf32>
    %429 = arith.addf %428, %427 : vector<2x32xf32>
    %430 = arith.divf %428, %429 : vector<2x32xf32>
    %431 = arith.mulf %422, %245 : vector<2x32xf32>
    %432 = arith.mulf %416, %424 : vector<2x32xf32>
    %433 = arith.addf %431, %432 : vector<2x32xf32>
    %434 = math.tanh %433 : vector<2x32xf32>
    %435 = arith.mulf %430, %434 : vector<2x32xf32>
    %436 = tpu.concatenate %402, %276 in 1 : vector<2x64xf32>, vector<2x32xf32> -> vector<2x96xf32>
    %cst_113 = arith.constant dense<0.000000e+00> : vector<2x128xf32>
    %437 = tpu.matmul %436, %405, %cst_113 {dimension_numbers = #tpu.dot_dimension_numbers<[1], [0], [0], [1], [0, 0, 1, 1], [], []>} : vector<2x96xf32>, vector<96x128xf32>, vector<2x128xf32> -> vector<2x128xf32>
    %438 = vector.broadcast %406 : vector<1x128xf32> to vector<2x128xf32>
    %439 = arith.addf %437, %438 : vector<2x128xf32>
    %440 = vector.extract_strided_slice %439 {offsets = [0, 0], sizes = [2, 32], strides = [1, 1]} : vector<2x128xf32> to vector<2x32xf32>
    %441 = arith.negf %440 : vector<2x32xf32>
    %442 = math.exp %441 : vector<2x32xf32>
    %cst_114 = arith.constant 1.000000e+00 : f32
    %443 = vector.broadcast %cst_114 : f32 to vector<2x32xf32>
    %444 = arith.addf %443, %442 : vector<2x32xf32>
    %445 = arith.divf %443, %444 : vector<2x32xf32>
    %446 = vector.extract_strided_slice %439 {offsets = [0, 32], sizes = [2, 32], strides = [1, 1]} : vector<2x128xf32> to vector<2x32xf32>
    %447 = arith.negf %446 : vector<2x32xf32>
    %448 = math.exp %447 : vector<2x32xf32>
    %cst_115 = arith.constant 1.000000e+00 : f32
    %449 = vector.broadcast %cst_115 : f32 to vector<2x32xf32>
    %450 = arith.addf %449, %448 : vector<2x32xf32>
    %451 = arith.divf %449, %450 : vector<2x32xf32>
    %452 = vector.extract_strided_slice %439 {offsets = [0, 64], sizes = [2, 32], strides = [1, 1]} : vector<2x128xf32> to vector<2x32xf32>
    %453 = math.tanh %452 : vector<2x32xf32>
    %454 = vector.extract_strided_slice %439 {offsets = [0, 96], sizes = [2, 32], strides = [1, 1]} : vector<2x128xf32> to vector<2x32xf32>
    %455 = arith.negf %454 : vector<2x32xf32>
    %456 = math.exp %455 : vector<2x32xf32>
    %cst_116 = arith.constant 1.000000e+00 : f32
    %457 = vector.broadcast %cst_116 : f32 to vector<2x32xf32>
    %458 = arith.addf %457, %456 : vector<2x32xf32>
    %459 = arith.divf %457, %458 : vector<2x32xf32>
    %460 = arith.mulf %451, %274 : vector<2x32xf32>
    %461 = arith.mulf %445, %453 : vector<2x32xf32>
    %462 = arith.addf %460, %461 : vector<2x32xf32>
    %463 = math.tanh %462 : vector<2x32xf32>
    %464 = arith.mulf %459, %463 : vector<2x32xf32>
    %465 = tpu.concatenate %402, %435 in 1 : vector<2x64xf32>, vector<2x32xf32> -> vector<2x96xf32>
    %cst_117 = arith.constant dense<0.000000e+00> : vector<2x128xf32>
    %466 = tpu.matmul %465, %403, %cst_117 {dimension_numbers = #tpu.dot_dimension_numbers<[1], [0], [0], [1], [0, 0, 1, 1], [], []>} : vector<2x96xf32>, vector<96x128xf32>, vector<2x128xf32> -> vector<2x128xf32>
    %467 = vector.broadcast %404 : vector<1x128xf32> to vector<2x128xf32>
    %468 = arith.addf %466, %467 : vector<2x128xf32>
    %469 = vector.extract_strided_slice %468 {offsets = [0, 0], sizes = [2, 32], strides = [1, 1]} : vector<2x128xf32> to vector<2x32xf32>
    %470 = arith.negf %469 : vector<2x32xf32>
    %471 = math.exp %470 : vector<2x32xf32>
    %cst_118 = arith.constant 1.000000e+00 : f32
    %472 = vector.broadcast %cst_118 : f32 to vector<2x32xf32>
    %473 = arith.addf %472, %471 : vector<2x32xf32>
    %474 = arith.divf %472, %473 : vector<2x32xf32>
    %475 = vector.extract_strided_slice %468 {offsets = [0, 32], sizes = [2, 32], strides = [1, 1]} : vector<2x128xf32> to vector<2x32xf32>
    %476 = arith.negf %475 : vector<2x32xf32>
    %477 = math.exp %476 : vector<2x32xf32>
    %cst_119 = arith.constant 1.000000e+00 : f32
    %478 = vector.broadcast %cst_119 : f32 to vector<2x32xf32>
    %479 = arith.addf %478, %477 : vector<2x32xf32>
    %480 = arith.divf %478, %479 : vector<2x32xf32>
    %481 = vector.extract_strided_slice %468 {offsets = [0, 64], sizes = [2, 32], strides = [1, 1]} : vector<2x128xf32> to vector<2x32xf32>
    %482 = math.tanh %481 : vector<2x32xf32>
    %483 = vector.extract_strided_slice %468 {offsets = [0, 96], sizes = [2, 32], strides = [1, 1]} : vector<2x128xf32> to vector<2x32xf32>
    %484 = arith.negf %483 : vector<2x32xf32>
    %485 = math.exp %484 : vector<2x32xf32>
    %cst_120 = arith.constant 1.000000e+00 : f32
    %486 = vector.broadcast %cst_120 : f32 to vector<2x32xf32>
    %487 = arith.addf %486, %485 : vector<2x32xf32>
    %488 = arith.divf %486, %487 : vector<2x32xf32>
    %489 = arith.mulf %480, %433 : vector<2x32xf32>
    %490 = arith.mulf %474, %482 : vector<2x32xf32>
    %491 = arith.addf %489, %490 : vector<2x32xf32>
    %492 = math.tanh %491 : vector<2x32xf32>
    %493 = arith.mulf %488, %492 : vector<2x32xf32>
    %494 = tpu.concatenate %401, %464 in 1 : vector<2x64xf32>, vector<2x32xf32> -> vector<2x96xf32>
    %cst_121 = arith.constant dense<0.000000e+00> : vector<2x128xf32>
    %495 = tpu.matmul %494, %405, %cst_121 {dimension_numbers = #tpu.dot_dimension_numbers<[1], [0], [0], [1], [0, 0, 1, 1], [], []>} : vector<2x96xf32>, vector<96x128xf32>, vector<2x128xf32> -> vector<2x128xf32>
    %496 = vector.broadcast %406 : vector<1x128xf32> to vector<2x128xf32>
    %497 = arith.addf %495, %496 : vector<2x128xf32>
    %498 = vector.extract_strided_slice %497 {offsets = [0, 0], sizes = [2, 32], strides = [1, 1]} : vector<2x128xf32> to vector<2x32xf32>
    %499 = arith.negf %498 : vector<2x32xf32>
    %500 = math.exp %499 : vector<2x32xf32>
    %cst_122 = arith.constant 1.000000e+00 : f32
    %501 = vector.broadcast %cst_122 : f32 to vector<2x32xf32>
    %502 = arith.addf %501, %500 : vector<2x32xf32>
    %503 = arith.divf %501, %502 : vector<2x32xf32>
    %504 = vector.extract_strided_slice %497 {offsets = [0, 32], sizes = [2, 32], strides = [1, 1]} : vector<2x128xf32> to vector<2x32xf32>
    %505 = arith.negf %504 : vector<2x32xf32>
    %506 = math.exp %505 : vector<2x32xf32>
    %cst_123 = arith.constant 1.000000e+00 : f32
    %507 = vector.broadcast %cst_123 : f32 to vector<2x32xf32>
    %508 = arith.addf %507, %506 : vector<2x32xf32>
    %509 = arith.divf %507, %508 : vector<2x32xf32>
    %510 = vector.extract_strided_slice %497 {offsets = [0, 64], sizes = [2, 32], strides = [1, 1]} : vector<2x128xf32> to vector<2x32xf32>
    %511 = math.tanh %510 : vector<2x32xf32>
    %512 = vector.extract_strided_slice %497 {offsets = [0, 96], sizes = [2, 32], strides = [1, 1]} : vector<2x128xf32> to vector<2x32xf32>
    %513 = arith.negf %512 : vector<2x32xf32>
    %514 = math.exp %513 : vector<2x32xf32>
    %cst_124 = arith.constant 1.000000e+00 : f32
    %515 = vector.broadcast %cst_124 : f32 to vector<2x32xf32>
    %516 = arith.addf %515, %514 : vector<2x32xf32>
    %517 = arith.divf %515, %516 : vector<2x32xf32>
    %518 = arith.mulf %509, %462 : vector<2x32xf32>
    %519 = arith.mulf %503, %511 : vector<2x32xf32>
    %520 = arith.addf %518, %519 : vector<2x32xf32>
    %521 = math.tanh %520 : vector<2x32xf32>
    %522 = arith.mulf %517, %521 : vector<2x32xf32>
    %523 = tpu.concatenate %493, %522 in 1 : vector<2x32xf32>, vector<2x32xf32> -> vector<2x64xf32>
    %cst_125 = arith.constant dense<0.000000e+00> : vector<2x4xf32>
    %524 = tpu.matmul %523, %21, %cst_125 {dimension_numbers = #tpu.dot_dimension_numbers<[1], [0], [0], [1], [0, 0, 1, 1], [], []>} : vector<2x64xf32>, vector<64x4xf32>, vector<2x4xf32> -> vector<2x4xf32>
    %525 = vector.broadcast %22 : vector<1x4xf32> to vector<2x4xf32>
    %526 = arith.addf %524, %525 : vector<2x4xf32>
    %c0_126 = arith.constant 0 : index
    %c0_127 = arith.constant 0 : index
    %527 = vector.load %arg3[%c0_126, %c0_127] : memref<36x128xf32, #tpu.memory_space<vmem>>, vector<36x128xf32>
    %c0_128 = arith.constant 0 : index
    %c0_129 = arith.constant 0 : index
    %528 = vector.load %arg4[%c0_128, %c0_129] : memref<1x128xf32, #tpu.memory_space<vmem>>, vector<1x128xf32>
    %c0_130 = arith.constant 0 : index
    %c0_131 = arith.constant 0 : index
    %529 = vector.load %arg5[%c0_130, %c0_131] : memref<36x128xf32, #tpu.memory_space<vmem>>, vector<36x128xf32>
    %c0_132 = arith.constant 0 : index
    %c0_133 = arith.constant 0 : index
    %530 = vector.load %arg6[%c0_132, %c0_133] : memref<1x128xf32, #tpu.memory_space<vmem>>, vector<1x128xf32>
    %531 = tpu.concatenate %151, %371 in 1 : vector<2x4xf32>, vector<2x32xf32> -> vector<2x36xf32>
    %cst_134 = arith.constant dense<0.000000e+00> : vector<2x128xf32>
    %532 = tpu.matmul %531, %527, %cst_134 {dimension_numbers = #tpu.dot_dimension_numbers<[1], [0], [0], [1], [0, 0, 1, 1], [], []>} : vector<2x36xf32>, vector<36x128xf32>, vector<2x128xf32> -> vector<2x128xf32>
    %533 = vector.broadcast %528 : vector<1x128xf32> to vector<2x128xf32>
    %534 = arith.addf %532, %533 : vector<2x128xf32>
    %535 = vector.extract_strided_slice %534 {offsets = [0, 0], sizes = [2, 32], strides = [1, 1]} : vector<2x128xf32> to vector<2x32xf32>
    %536 = arith.negf %535 : vector<2x32xf32>
    %537 = math.exp %536 : vector<2x32xf32>
    %cst_135 = arith.constant 1.000000e+00 : f32
    %538 = vector.broadcast %cst_135 : f32 to vector<2x32xf32>
    %539 = arith.addf %538, %537 : vector<2x32xf32>
    %540 = arith.divf %538, %539 : vector<2x32xf32>
    %541 = vector.extract_strided_slice %534 {offsets = [0, 32], sizes = [2, 32], strides = [1, 1]} : vector<2x128xf32> to vector<2x32xf32>
    %542 = arith.negf %541 : vector<2x32xf32>
    %543 = math.exp %542 : vector<2x32xf32>
    %cst_136 = arith.constant 1.000000e+00 : f32
    %544 = vector.broadcast %cst_136 : f32 to vector<2x32xf32>
    %545 = arith.addf %544, %543 : vector<2x32xf32>
    %546 = arith.divf %544, %545 : vector<2x32xf32>
    %547 = vector.extract_strided_slice %534 {offsets = [0, 64], sizes = [2, 32], strides = [1, 1]} : vector<2x128xf32> to vector<2x32xf32>
    %548 = math.tanh %547 : vector<2x32xf32>
    %549 = vector.extract_strided_slice %534 {offsets = [0, 96], sizes = [2, 32], strides = [1, 1]} : vector<2x128xf32> to vector<2x32xf32>
    %550 = arith.negf %549 : vector<2x32xf32>
    %551 = math.exp %550 : vector<2x32xf32>
    %cst_137 = arith.constant 1.000000e+00 : f32
    %552 = vector.broadcast %cst_137 : f32 to vector<2x32xf32>
    %553 = arith.addf %552, %551 : vector<2x32xf32>
    %554 = arith.divf %552, %553 : vector<2x32xf32>
    %555 = arith.mulf %546, %369 : vector<2x32xf32>
    %556 = arith.mulf %540, %548 : vector<2x32xf32>
    %557 = arith.addf %555, %556 : vector<2x32xf32>
    %558 = math.tanh %557 : vector<2x32xf32>
    %559 = arith.mulf %554, %558 : vector<2x32xf32>
    %560 = tpu.concatenate %526, %400 in 1 : vector<2x4xf32>, vector<2x32xf32> -> vector<2x36xf32>
    %cst_138 = arith.constant dense<0.000000e+00> : vector<2x128xf32>
    %561 = tpu.matmul %560, %529, %cst_138 {dimension_numbers = #tpu.dot_dimension_numbers<[1], [0], [0], [1], [0, 0, 1, 1], [], []>} : vector<2x36xf32>, vector<36x128xf32>, vector<2x128xf32> -> vector<2x128xf32>
    %562 = vector.broadcast %530 : vector<1x128xf32> to vector<2x128xf32>
    %563 = arith.addf %561, %562 : vector<2x128xf32>
    %564 = vector.extract_strided_slice %563 {offsets = [0, 0], sizes = [2, 32], strides = [1, 1]} : vector<2x128xf32> to vector<2x32xf32>
    %565 = arith.negf %564 : vector<2x32xf32>
    %566 = math.exp %565 : vector<2x32xf32>
    %cst_139 = arith.constant 1.000000e+00 : f32
    %567 = vector.broadcast %cst_139 : f32 to vector<2x32xf32>
    %568 = arith.addf %567, %566 : vector<2x32xf32>
    %569 = arith.divf %567, %568 : vector<2x32xf32>
    %570 = vector.extract_strided_slice %563 {offsets = [0, 32], sizes = [2, 32], strides = [1, 1]} : vector<2x128xf32> to vector<2x32xf32>
    %571 = arith.negf %570 : vector<2x32xf32>
    %572 = math.exp %571 : vector<2x32xf32>
    %cst_140 = arith.constant 1.000000e+00 : f32
    %573 = vector.broadcast %cst_140 : f32 to vector<2x32xf32>
    %574 = arith.addf %573, %572 : vector<2x32xf32>
    %575 = arith.divf %573, %574 : vector<2x32xf32>
    %576 = vector.extract_strided_slice %563 {offsets = [0, 64], sizes = [2, 32], strides = [1, 1]} : vector<2x128xf32> to vector<2x32xf32>
    %577 = math.tanh %576 : vector<2x32xf32>
    %578 = vector.extract_strided_slice %563 {offsets = [0, 96], sizes = [2, 32], strides = [1, 1]} : vector<2x128xf32> to vector<2x32xf32>
    %579 = arith.negf %578 : vector<2x32xf32>
    %580 = math.exp %579 : vector<2x32xf32>
    %cst_141 = arith.constant 1.000000e+00 : f32
    %581 = vector.broadcast %cst_141 : f32 to vector<2x32xf32>
    %582 = arith.addf %581, %580 : vector<2x32xf32>
    %583 = arith.divf %581, %582 : vector<2x32xf32>
    %584 = arith.mulf %575, %398 : vector<2x32xf32>
    %585 = arith.mulf %569, %577 : vector<2x32xf32>
    %586 = arith.addf %584, %585 : vector<2x32xf32>
    %587 = math.tanh %586 : vector<2x32xf32>
    %588 = arith.mulf %583, %587 : vector<2x32xf32>
    %589 = tpu.concatenate %280, %559 in 1 : vector<2x4xf32>, vector<2x32xf32> -> vector<2x36xf32>
    %cst_142 = arith.constant dense<0.000000e+00> : vector<2x128xf32>
    %590 = tpu.matmul %589, %527, %cst_142 {dimension_numbers = #tpu.dot_dimension_numbers<[1], [0], [0], [1], [0, 0, 1, 1], [], []>} : vector<2x36xf32>, vector<36x128xf32>, vector<2x128xf32> -> vector<2x128xf32>
    %591 = vector.broadcast %528 : vector<1x128xf32> to vector<2x128xf32>
    %592 = arith.addf %590, %591 : vector<2x128xf32>
    %593 = vector.extract_strided_slice %592 {offsets = [0, 0], sizes = [2, 32], strides = [1, 1]} : vector<2x128xf32> to vector<2x32xf32>
    %594 = arith.negf %593 : vector<2x32xf32>
    %595 = math.exp %594 : vector<2x32xf32>
    %cst_143 = arith.constant 1.000000e+00 : f32
    %596 = vector.broadcast %cst_143 : f32 to vector<2x32xf32>
    %597 = arith.addf %596, %595 : vector<2x32xf32>
    %598 = arith.divf %596, %597 : vector<2x32xf32>
    %599 = vector.extract_strided_slice %592 {offsets = [0, 32], sizes = [2, 32], strides = [1, 1]} : vector<2x128xf32> to vector<2x32xf32>
    %600 = arith.negf %599 : vector<2x32xf32>
    %601 = math.exp %600 : vector<2x32xf32>
    %cst_144 = arith.constant 1.000000e+00 : f32
    %602 = vector.broadcast %cst_144 : f32 to vector<2x32xf32>
    %603 = arith.addf %602, %601 : vector<2x32xf32>
    %604 = arith.divf %602, %603 : vector<2x32xf32>
    %605 = vector.extract_strided_slice %592 {offsets = [0, 64], sizes = [2, 32], strides = [1, 1]} : vector<2x128xf32> to vector<2x32xf32>
    %606 = math.tanh %605 : vector<2x32xf32>
    %607 = vector.extract_strided_slice %592 {offsets = [0, 96], sizes = [2, 32], strides = [1, 1]} : vector<2x128xf32> to vector<2x32xf32>
    %608 = arith.negf %607 : vector<2x32xf32>
    %609 = math.exp %608 : vector<2x32xf32>
    %cst_145 = arith.constant 1.000000e+00 : f32
    %610 = vector.broadcast %cst_145 : f32 to vector<2x32xf32>
    %611 = arith.addf %610, %609 : vector<2x32xf32>
    %612 = arith.divf %610, %611 : vector<2x32xf32>
    %613 = arith.mulf %604, %557 : vector<2x32xf32>
    %614 = arith.mulf %598, %606 : vector<2x32xf32>
    %615 = arith.addf %613, %614 : vector<2x32xf32>
    %616 = math.tanh %615 : vector<2x32xf32>
    %617 = arith.mulf %612, %616 : vector<2x32xf32>
    %618 = tpu.concatenate %280, %588 in 1 : vector<2x4xf32>, vector<2x32xf32> -> vector<2x36xf32>
    %cst_146 = arith.constant dense<0.000000e+00> : vector<2x128xf32>
    %619 = tpu.matmul %618, %529, %cst_146 {dimension_numbers = #tpu.dot_dimension_numbers<[1], [0], [0], [1], [0, 0, 1, 1], [], []>} : vector<2x36xf32>, vector<36x128xf32>, vector<2x128xf32> -> vector<2x128xf32>
    %620 = vector.broadcast %530 : vector<1x128xf32> to vector<2x128xf32>
    %621 = arith.addf %619, %620 : vector<2x128xf32>
    %622 = vector.extract_strided_slice %621 {offsets = [0, 0], sizes = [2, 32], strides = [1, 1]} : vector<2x128xf32> to vector<2x32xf32>
    %623 = arith.negf %622 : vector<2x32xf32>
    %624 = math.exp %623 : vector<2x32xf32>
    %cst_147 = arith.constant 1.000000e+00 : f32
    %625 = vector.broadcast %cst_147 : f32 to vector<2x32xf32>
    %626 = arith.addf %625, %624 : vector<2x32xf32>
    %627 = arith.divf %625, %626 : vector<2x32xf32>
    %628 = vector.extract_strided_slice %621 {offsets = [0, 32], sizes = [2, 32], strides = [1, 1]} : vector<2x128xf32> to vector<2x32xf32>
    %629 = arith.negf %628 : vector<2x32xf32>
    %630 = math.exp %629 : vector<2x32xf32>
    %cst_148 = arith.constant 1.000000e+00 : f32
    %631 = vector.broadcast %cst_148 : f32 to vector<2x32xf32>
    %632 = arith.addf %631, %630 : vector<2x32xf32>
    %633 = arith.divf %631, %632 : vector<2x32xf32>
    %634 = vector.extract_strided_slice %621 {offsets = [0, 64], sizes = [2, 32], strides = [1, 1]} : vector<2x128xf32> to vector<2x32xf32>
    %635 = math.tanh %634 : vector<2x32xf32>
    %636 = vector.extract_strided_slice %621 {offsets = [0, 96], sizes = [2, 32], strides = [1, 1]} : vector<2x128xf32> to vector<2x32xf32>
    %637 = arith.negf %636 : vector<2x32xf32>
    %638 = math.exp %637 : vector<2x32xf32>
    %cst_149 = arith.constant 1.000000e+00 : f32
    %639 = vector.broadcast %cst_149 : f32 to vector<2x32xf32>
    %640 = arith.addf %639, %638 : vector<2x32xf32>
    %641 = arith.divf %639, %640 : vector<2x32xf32>
    %642 = arith.mulf %633, %586 : vector<2x32xf32>
    %643 = arith.mulf %627, %635 : vector<2x32xf32>
    %644 = arith.addf %642, %643 : vector<2x32xf32>
    %645 = math.tanh %644 : vector<2x32xf32>
    %646 = arith.mulf %641, %645 : vector<2x32xf32>
    %647 = tpu.concatenate %526, %617 in 1 : vector<2x4xf32>, vector<2x32xf32> -> vector<2x36xf32>
    %cst_150 = arith.constant dense<0.000000e+00> : vector<2x128xf32>
    %648 = tpu.matmul %647, %527, %cst_150 {dimension_numbers = #tpu.dot_dimension_numbers<[1], [0], [0], [1], [0, 0, 1, 1], [], []>} : vector<2x36xf32>, vector<36x128xf32>, vector<2x128xf32> -> vector<2x128xf32>
    %649 = vector.broadcast %528 : vector<1x128xf32> to vector<2x128xf32>
    %650 = arith.addf %648, %649 : vector<2x128xf32>
    %651 = vector.extract_strided_slice %650 {offsets = [0, 0], sizes = [2, 32], strides = [1, 1]} : vector<2x128xf32> to vector<2x32xf32>
    %652 = arith.negf %651 : vector<2x32xf32>
    %653 = math.exp %652 : vector<2x32xf32>
    %cst_151 = arith.constant 1.000000e+00 : f32
    %654 = vector.broadcast %cst_151 : f32 to vector<2x32xf32>
    %655 = arith.addf %654, %653 : vector<2x32xf32>
    %656 = arith.divf %654, %655 : vector<2x32xf32>
    %657 = vector.extract_strided_slice %650 {offsets = [0, 32], sizes = [2, 32], strides = [1, 1]} : vector<2x128xf32> to vector<2x32xf32>
    %658 = arith.negf %657 : vector<2x32xf32>
    %659 = math.exp %658 : vector<2x32xf32>
    %cst_152 = arith.constant 1.000000e+00 : f32
    %660 = vector.broadcast %cst_152 : f32 to vector<2x32xf32>
    %661 = arith.addf %660, %659 : vector<2x32xf32>
    %662 = arith.divf %660, %661 : vector<2x32xf32>
    %663 = vector.extract_strided_slice %650 {offsets = [0, 64], sizes = [2, 32], strides = [1, 1]} : vector<2x128xf32> to vector<2x32xf32>
    %664 = math.tanh %663 : vector<2x32xf32>
    %665 = vector.extract_strided_slice %650 {offsets = [0, 96], sizes = [2, 32], strides = [1, 1]} : vector<2x128xf32> to vector<2x32xf32>
    %666 = arith.negf %665 : vector<2x32xf32>
    %667 = math.exp %666 : vector<2x32xf32>
    %cst_153 = arith.constant 1.000000e+00 : f32
    %668 = vector.broadcast %cst_153 : f32 to vector<2x32xf32>
    %669 = arith.addf %668, %667 : vector<2x32xf32>
    %670 = arith.divf %668, %669 : vector<2x32xf32>
    %671 = arith.mulf %662, %615 : vector<2x32xf32>
    %672 = arith.mulf %656, %664 : vector<2x32xf32>
    %673 = arith.addf %671, %672 : vector<2x32xf32>
    %674 = math.tanh %673 : vector<2x32xf32>
    %675 = arith.mulf %670, %674 : vector<2x32xf32>
    %676 = tpu.concatenate %151, %646 in 1 : vector<2x4xf32>, vector<2x32xf32> -> vector<2x36xf32>
    %cst_154 = arith.constant dense<0.000000e+00> : vector<2x128xf32>
    %677 = tpu.matmul %676, %529, %cst_154 {dimension_numbers = #tpu.dot_dimension_numbers<[1], [0], [0], [1], [0, 0, 1, 1], [], []>} : vector<2x36xf32>, vector<36x128xf32>, vector<2x128xf32> -> vector<2x128xf32>
    %678 = vector.broadcast %530 : vector<1x128xf32> to vector<2x128xf32>
    %679 = arith.addf %677, %678 : vector<2x128xf32>
    %680 = vector.extract_strided_slice %679 {offsets = [0, 0], sizes = [2, 32], strides = [1, 1]} : vector<2x128xf32> to vector<2x32xf32>
    %681 = arith.negf %680 : vector<2x32xf32>
    %682 = math.exp %681 : vector<2x32xf32>
    %cst_155 = arith.constant 1.000000e+00 : f32
    %683 = vector.broadcast %cst_155 : f32 to vector<2x32xf32>
    %684 = arith.addf %683, %682 : vector<2x32xf32>
    %685 = arith.divf %683, %684 : vector<2x32xf32>
    %686 = vector.extract_strided_slice %679 {offsets = [0, 32], sizes = [2, 32], strides = [1, 1]} : vector<2x128xf32> to vector<2x32xf32>
    %687 = arith.negf %686 : vector<2x32xf32>
    %688 = math.exp %687 : vector<2x32xf32>
    %cst_156 = arith.constant 1.000000e+00 : f32
    %689 = vector.broadcast %cst_156 : f32 to vector<2x32xf32>
    %690 = arith.addf %689, %688 : vector<2x32xf32>
    %691 = arith.divf %689, %690 : vector<2x32xf32>
    %692 = vector.extract_strided_slice %679 {offsets = [0, 64], sizes = [2, 32], strides = [1, 1]} : vector<2x128xf32> to vector<2x32xf32>
    %693 = math.tanh %692 : vector<2x32xf32>
    %694 = vector.extract_strided_slice %679 {offsets = [0, 96], sizes = [2, 32], strides = [1, 1]} : vector<2x128xf32> to vector<2x32xf32>
    %695 = arith.negf %694 : vector<2x32xf32>
    %696 = math.exp %695 : vector<2x32xf32>
    %cst_157 = arith.constant 1.000000e+00 : f32
    %697 = vector.broadcast %cst_157 : f32 to vector<2x32xf32>
    %698 = arith.addf %697, %696 : vector<2x32xf32>
    %699 = arith.divf %697, %698 : vector<2x32xf32>
    %700 = arith.mulf %691, %644 : vector<2x32xf32>
    %701 = arith.mulf %685, %693 : vector<2x32xf32>
    %702 = arith.addf %700, %701 : vector<2x32xf32>
    %703 = math.tanh %702 : vector<2x32xf32>
    %704 = arith.mulf %699, %703 : vector<2x32xf32>
    %705 = tpu.concatenate %559, %704 in 1 : vector<2x32xf32>, vector<2x32xf32> -> vector<2x64xf32>
    %706 = tpu.concatenate %617, %646 in 1 : vector<2x32xf32>, vector<2x32xf32> -> vector<2x64xf32>
    %707 = tpu.concatenate %675, %588 in 1 : vector<2x32xf32>, vector<2x32xf32> -> vector<2x64xf32>
    %c0_158 = arith.constant 0 : index
    %c0_159 = arith.constant 0 : index
    %708 = vector.load %arg7[%c0_158, %c0_159] : memref<96x128xf32, #tpu.memory_space<vmem>>, vector<96x128xf32>
    %c0_160 = arith.constant 0 : index
    %c0_161 = arith.constant 0 : index
    %709 = vector.load %arg8[%c0_160, %c0_161] : memref<1x128xf32, #tpu.memory_space<vmem>>, vector<1x128xf32>
    %c0_162 = arith.constant 0 : index
    %c0_163 = arith.constant 0 : index
    %710 = vector.load %arg9[%c0_162, %c0_163] : memref<96x128xf32, #tpu.memory_space<vmem>>, vector<96x128xf32>
    %c0_164 = arith.constant 0 : index
    %c0_165 = arith.constant 0 : index
    %711 = vector.load %arg10[%c0_164, %c0_165] : memref<1x128xf32, #tpu.memory_space<vmem>>, vector<1x128xf32>
    %712 = tpu.concatenate %705, %493 in 1 : vector<2x64xf32>, vector<2x32xf32> -> vector<2x96xf32>
    %cst_166 = arith.constant dense<0.000000e+00> : vector<2x128xf32>
    %713 = tpu.matmul %712, %708, %cst_166 {dimension_numbers = #tpu.dot_dimension_numbers<[1], [0], [0], [1], [0, 0, 1, 1], [], []>} : vector<2x96xf32>, vector<96x128xf32>, vector<2x128xf32> -> vector<2x128xf32>
    %714 = vector.broadcast %709 : vector<1x128xf32> to vector<2x128xf32>
    %715 = arith.addf %713, %714 : vector<2x128xf32>
    %716 = vector.extract_strided_slice %715 {offsets = [0, 0], sizes = [2, 32], strides = [1, 1]} : vector<2x128xf32> to vector<2x32xf32>
    %717 = arith.negf %716 : vector<2x32xf32>
    %718 = math.exp %717 : vector<2x32xf32>
    %cst_167 = arith.constant 1.000000e+00 : f32
    %719 = vector.broadcast %cst_167 : f32 to vector<2x32xf32>
    %720 = arith.addf %719, %718 : vector<2x32xf32>
    %721 = arith.divf %719, %720 : vector<2x32xf32>
    %722 = vector.extract_strided_slice %715 {offsets = [0, 32], sizes = [2, 32], strides = [1, 1]} : vector<2x128xf32> to vector<2x32xf32>
    %723 = arith.negf %722 : vector<2x32xf32>
    %724 = math.exp %723 : vector<2x32xf32>
    %cst_168 = arith.constant 1.000000e+00 : f32
    %725 = vector.broadcast %cst_168 : f32 to vector<2x32xf32>
    %726 = arith.addf %725, %724 : vector<2x32xf32>
    %727 = arith.divf %725, %726 : vector<2x32xf32>
    %728 = vector.extract_strided_slice %715 {offsets = [0, 64], sizes = [2, 32], strides = [1, 1]} : vector<2x128xf32> to vector<2x32xf32>
    %729 = math.tanh %728 : vector<2x32xf32>
    %730 = vector.extract_strided_slice %715 {offsets = [0, 96], sizes = [2, 32], strides = [1, 1]} : vector<2x128xf32> to vector<2x32xf32>
    %731 = arith.negf %730 : vector<2x32xf32>
    %732 = math.exp %731 : vector<2x32xf32>
    %cst_169 = arith.constant 1.000000e+00 : f32
    %733 = vector.broadcast %cst_169 : f32 to vector<2x32xf32>
    %734 = arith.addf %733, %732 : vector<2x32xf32>
    %735 = arith.divf %733, %734 : vector<2x32xf32>
    %736 = arith.mulf %727, %491 : vector<2x32xf32>
    %737 = arith.mulf %721, %729 : vector<2x32xf32>
    %738 = arith.addf %736, %737 : vector<2x32xf32>
    %739 = math.tanh %738 : vector<2x32xf32>
    %740 = arith.mulf %735, %739 : vector<2x32xf32>
    %741 = tpu.concatenate %707, %522 in 1 : vector<2x64xf32>, vector<2x32xf32> -> vector<2x96xf32>
    %cst_170 = arith.constant dense<0.000000e+00> : vector<2x128xf32>
    %742 = tpu.matmul %741, %710, %cst_170 {dimension_numbers = #tpu.dot_dimension_numbers<[1], [0], [0], [1], [0, 0, 1, 1], [], []>} : vector<2x96xf32>, vector<96x128xf32>, vector<2x128xf32> -> vector<2x128xf32>
    %743 = vector.broadcast %711 : vector<1x128xf32> to vector<2x128xf32>
    %744 = arith.addf %742, %743 : vector<2x128xf32>
    %745 = vector.extract_strided_slice %744 {offsets = [0, 0], sizes = [2, 32], strides = [1, 1]} : vector<2x128xf32> to vector<2x32xf32>
    %746 = arith.negf %745 : vector<2x32xf32>
    %747 = math.exp %746 : vector<2x32xf32>
    %cst_171 = arith.constant 1.000000e+00 : f32
    %748 = vector.broadcast %cst_171 : f32 to vector<2x32xf32>
    %749 = arith.addf %748, %747 : vector<2x32xf32>
    %750 = arith.divf %748, %749 : vector<2x32xf32>
    %751 = vector.extract_strided_slice %744 {offsets = [0, 32], sizes = [2, 32], strides = [1, 1]} : vector<2x128xf32> to vector<2x32xf32>
    %752 = arith.negf %751 : vector<2x32xf32>
    %753 = math.exp %752 : vector<2x32xf32>
    %cst_172 = arith.constant 1.000000e+00 : f32
    %754 = vector.broadcast %cst_172 : f32 to vector<2x32xf32>
    %755 = arith.addf %754, %753 : vector<2x32xf32>
    %756 = arith.divf %754, %755 : vector<2x32xf32>
    %757 = vector.extract_strided_slice %744 {offsets = [0, 64], sizes = [2, 32], strides = [1, 1]} : vector<2x128xf32> to vector<2x32xf32>
    %758 = math.tanh %757 : vector<2x32xf32>
    %759 = vector.extract_strided_slice %744 {offsets = [0, 96], sizes = [2, 32], strides = [1, 1]} : vector<2x128xf32> to vector<2x32xf32>
    %760 = arith.negf %759 : vector<2x32xf32>
    %761 = math.exp %760 : vector<2x32xf32>
    %cst_173 = arith.constant 1.000000e+00 : f32
    %762 = vector.broadcast %cst_173 : f32 to vector<2x32xf32>
    %763 = arith.addf %762, %761 : vector<2x32xf32>
    %764 = arith.divf %762, %763 : vector<2x32xf32>
    %765 = arith.mulf %756, %520 : vector<2x32xf32>
    %766 = arith.mulf %750, %758 : vector<2x32xf32>
    %767 = arith.addf %765, %766 : vector<2x32xf32>
    %768 = math.tanh %767 : vector<2x32xf32>
    %769 = arith.mulf %764, %768 : vector<2x32xf32>
    %770 = tpu.concatenate %706, %740 in 1 : vector<2x64xf32>, vector<2x32xf32> -> vector<2x96xf32>
    %cst_174 = arith.constant dense<0.000000e+00> : vector<2x128xf32>
    %771 = tpu.matmul %770, %708, %cst_174 {dimension_numbers = #tpu.dot_dimension_numbers<[1], [0], [0], [1], [0, 0, 1, 1], [], []>} : vector<2x96xf32>, vector<96x128xf32>, vector<2x128xf32> -> vector<2x128xf32>
    %772 = vector.broadcast %709 : vector<1x128xf32> to vector<2x128xf32>
    %773 = arith.addf %771, %772 : vector<2x128xf32>
    %774 = vector.extract_strided_slice %773 {offsets = [0, 0], sizes = [2, 32], strides = [1, 1]} : vector<2x128xf32> to vector<2x32xf32>
    %775 = arith.negf %774 : vector<2x32xf32>
    %776 = math.exp %775 : vector<2x32xf32>
    %cst_175 = arith.constant 1.000000e+00 : f32
    %777 = vector.broadcast %cst_175 : f32 to vector<2x32xf32>
    %778 = arith.addf %777, %776 : vector<2x32xf32>
    %779 = arith.divf %777, %778 : vector<2x32xf32>
    %780 = vector.extract_strided_slice %773 {offsets = [0, 32], sizes = [2, 32], strides = [1, 1]} : vector<2x128xf32> to vector<2x32xf32>
    %781 = arith.negf %780 : vector<2x32xf32>
    %782 = math.exp %781 : vector<2x32xf32>
    %cst_176 = arith.constant 1.000000e+00 : f32
    %783 = vector.broadcast %cst_176 : f32 to vector<2x32xf32>
    %784 = arith.addf %783, %782 : vector<2x32xf32>
    %785 = arith.divf %783, %784 : vector<2x32xf32>
    %786 = vector.extract_strided_slice %773 {offsets = [0, 64], sizes = [2, 32], strides = [1, 1]} : vector<2x128xf32> to vector<2x32xf32>
    %787 = math.tanh %786 : vector<2x32xf32>
    %788 = vector.extract_strided_slice %773 {offsets = [0, 96], sizes = [2, 32], strides = [1, 1]} : vector<2x128xf32> to vector<2x32xf32>
    %789 = arith.negf %788 : vector<2x32xf32>
    %790 = math.exp %789 : vector<2x32xf32>
    %cst_177 = arith.constant 1.000000e+00 : f32
    %791 = vector.broadcast %cst_177 : f32 to vector<2x32xf32>
    %792 = arith.addf %791, %790 : vector<2x32xf32>
    %793 = arith.divf %791, %792 : vector<2x32xf32>
    %794 = arith.mulf %785, %738 : vector<2x32xf32>
    %795 = arith.mulf %779, %787 : vector<2x32xf32>
    %796 = arith.addf %794, %795 : vector<2x32xf32>
    %797 = math.tanh %796 : vector<2x32xf32>
    %798 = arith.mulf %793, %797 : vector<2x32xf32>
    %799 = tpu.concatenate %706, %769 in 1 : vector<2x64xf32>, vector<2x32xf32> -> vector<2x96xf32>
    %cst_178 = arith.constant dense<0.000000e+00> : vector<2x128xf32>
    %800 = tpu.matmul %799, %710, %cst_178 {dimension_numbers = #tpu.dot_dimension_numbers<[1], [0], [0], [1], [0, 0, 1, 1], [], []>} : vector<2x96xf32>, vector<96x128xf32>, vector<2x128xf32> -> vector<2x128xf32>
    %801 = vector.broadcast %711 : vector<1x128xf32> to vector<2x128xf32>
    %802 = arith.addf %800, %801 : vector<2x128xf32>
    %803 = vector.extract_strided_slice %802 {offsets = [0, 0], sizes = [2, 32], strides = [1, 1]} : vector<2x128xf32> to vector<2x32xf32>
    %804 = arith.negf %803 : vector<2x32xf32>
    %805 = math.exp %804 : vector<2x32xf32>
    %cst_179 = arith.constant 1.000000e+00 : f32
    %806 = vector.broadcast %cst_179 : f32 to vector<2x32xf32>
    %807 = arith.addf %806, %805 : vector<2x32xf32>
    %808 = arith.divf %806, %807 : vector<2x32xf32>
    %809 = vector.extract_strided_slice %802 {offsets = [0, 32], sizes = [2, 32], strides = [1, 1]} : vector<2x128xf32> to vector<2x32xf32>
    %810 = arith.negf %809 : vector<2x32xf32>
    %811 = math.exp %810 : vector<2x32xf32>
    %cst_180 = arith.constant 1.000000e+00 : f32
    %812 = vector.broadcast %cst_180 : f32 to vector<2x32xf32>
    %813 = arith.addf %812, %811 : vector<2x32xf32>
    %814 = arith.divf %812, %813 : vector<2x32xf32>
    %815 = vector.extract_strided_slice %802 {offsets = [0, 64], sizes = [2, 32], strides = [1, 1]} : vector<2x128xf32> to vector<2x32xf32>
    %816 = math.tanh %815 : vector<2x32xf32>
    %817 = vector.extract_strided_slice %802 {offsets = [0, 96], sizes = [2, 32], strides = [1, 1]} : vector<2x128xf32> to vector<2x32xf32>
    %818 = arith.negf %817 : vector<2x32xf32>
    %819 = math.exp %818 : vector<2x32xf32>
    %cst_181 = arith.constant 1.000000e+00 : f32
    %820 = vector.broadcast %cst_181 : f32 to vector<2x32xf32>
    %821 = arith.addf %820, %819 : vector<2x32xf32>
    %822 = arith.divf %820, %821 : vector<2x32xf32>
    %823 = arith.mulf %814, %767 : vector<2x32xf32>
    %824 = arith.mulf %808, %816 : vector<2x32xf32>
    %825 = arith.addf %823, %824 : vector<2x32xf32>
    %826 = math.tanh %825 : vector<2x32xf32>
    %827 = arith.mulf %822, %826 : vector<2x32xf32>
    %828 = tpu.concatenate %707, %798 in 1 : vector<2x64xf32>, vector<2x32xf32> -> vector<2x96xf32>
    %cst_182 = arith.constant dense<0.000000e+00> : vector<2x128xf32>
    %829 = tpu.matmul %828, %708, %cst_182 {dimension_numbers = #tpu.dot_dimension_numbers<[1], [0], [0], [1], [0, 0, 1, 1], [], []>} : vector<2x96xf32>, vector<96x128xf32>, vector<2x128xf32> -> vector<2x128xf32>
    %830 = vector.broadcast %709 : vector<1x128xf32> to vector<2x128xf32>
    %831 = arith.addf %829, %830 : vector<2x128xf32>
    %832 = vector.extract_strided_slice %831 {offsets = [0, 0], sizes = [2, 32], strides = [1, 1]} : vector<2x128xf32> to vector<2x32xf32>
    %833 = arith.negf %832 : vector<2x32xf32>
    %834 = math.exp %833 : vector<2x32xf32>
    %cst_183 = arith.constant 1.000000e+00 : f32
    %835 = vector.broadcast %cst_183 : f32 to vector<2x32xf32>
    %836 = arith.addf %835, %834 : vector<2x32xf32>
    %837 = arith.divf %835, %836 : vector<2x32xf32>
    %838 = vector.extract_strided_slice %831 {offsets = [0, 32], sizes = [2, 32], strides = [1, 1]} : vector<2x128xf32> to vector<2x32xf32>
    %839 = arith.negf %838 : vector<2x32xf32>
    %840 = math.exp %839 : vector<2x32xf32>
    %cst_184 = arith.constant 1.000000e+00 : f32
    %841 = vector.broadcast %cst_184 : f32 to vector<2x32xf32>
    %842 = arith.addf %841, %840 : vector<2x32xf32>
    %843 = arith.divf %841, %842 : vector<2x32xf32>
    %844 = vector.extract_strided_slice %831 {offsets = [0, 64], sizes = [2, 32], strides = [1, 1]} : vector<2x128xf32> to vector<2x32xf32>
    %845 = math.tanh %844 : vector<2x32xf32>
    %846 = vector.extract_strided_slice %831 {offsets = [0, 96], sizes = [2, 32], strides = [1, 1]} : vector<2x128xf32> to vector<2x32xf32>
    %847 = arith.negf %846 : vector<2x32xf32>
    %848 = math.exp %847 : vector<2x32xf32>
    %cst_185 = arith.constant 1.000000e+00 : f32
    %849 = vector.broadcast %cst_185 : f32 to vector<2x32xf32>
    %850 = arith.addf %849, %848 : vector<2x32xf32>
    %851 = arith.divf %849, %850 : vector<2x32xf32>
    %852 = arith.mulf %843, %796 : vector<2x32xf32>
    %853 = arith.mulf %837, %845 : vector<2x32xf32>
    %854 = arith.addf %852, %853 : vector<2x32xf32>
    %855 = math.tanh %854 : vector<2x32xf32>
    %856 = arith.mulf %851, %855 : vector<2x32xf32>
    %857 = tpu.concatenate %705, %827 in 1 : vector<2x64xf32>, vector<2x32xf32> -> vector<2x96xf32>
    %cst_186 = arith.constant dense<0.000000e+00> : vector<2x128xf32>
    %858 = tpu.matmul %857, %710, %cst_186 {dimension_numbers = #tpu.dot_dimension_numbers<[1], [0], [0], [1], [0, 0, 1, 1], [], []>} : vector<2x96xf32>, vector<96x128xf32>, vector<2x128xf32> -> vector<2x128xf32>
    %859 = vector.broadcast %711 : vector<1x128xf32> to vector<2x128xf32>
    %860 = arith.addf %858, %859 : vector<2x128xf32>
    %861 = vector.extract_strided_slice %860 {offsets = [0, 0], sizes = [2, 32], strides = [1, 1]} : vector<2x128xf32> to vector<2x32xf32>
    %862 = arith.negf %861 : vector<2x32xf32>
    %863 = math.exp %862 : vector<2x32xf32>
    %cst_187 = arith.constant 1.000000e+00 : f32
    %864 = vector.broadcast %cst_187 : f32 to vector<2x32xf32>
    %865 = arith.addf %864, %863 : vector<2x32xf32>
    %866 = arith.divf %864, %865 : vector<2x32xf32>
    %867 = vector.extract_strided_slice %860 {offsets = [0, 32], sizes = [2, 32], strides = [1, 1]} : vector<2x128xf32> to vector<2x32xf32>
    %868 = arith.negf %867 : vector<2x32xf32>
    %869 = math.exp %868 : vector<2x32xf32>
    %cst_188 = arith.constant 1.000000e+00 : f32
    %870 = vector.broadcast %cst_188 : f32 to vector<2x32xf32>
    %871 = arith.addf %870, %869 : vector<2x32xf32>
    %872 = arith.divf %870, %871 : vector<2x32xf32>
    %873 = vector.extract_strided_slice %860 {offsets = [0, 64], sizes = [2, 32], strides = [1, 1]} : vector<2x128xf32> to vector<2x32xf32>
    %874 = math.tanh %873 : vector<2x32xf32>
    %875 = vector.extract_strided_slice %860 {offsets = [0, 96], sizes = [2, 32], strides = [1, 1]} : vector<2x128xf32> to vector<2x32xf32>
    %876 = arith.negf %875 : vector<2x32xf32>
    %877 = math.exp %876 : vector<2x32xf32>
    %cst_189 = arith.constant 1.000000e+00 : f32
    %878 = vector.broadcast %cst_189 : f32 to vector<2x32xf32>
    %879 = arith.addf %878, %877 : vector<2x32xf32>
    %880 = arith.divf %878, %879 : vector<2x32xf32>
    %881 = arith.mulf %872, %825 : vector<2x32xf32>
    %882 = arith.mulf %866, %874 : vector<2x32xf32>
    %883 = arith.addf %881, %882 : vector<2x32xf32>
    %884 = math.tanh %883 : vector<2x32xf32>
    %885 = arith.mulf %880, %884 : vector<2x32xf32>
    %886 = tpu.concatenate %856, %885 in 1 : vector<2x32xf32>, vector<2x32xf32> -> vector<2x64xf32>
    %cst_190 = arith.constant dense<0.000000e+00> : vector<2x4xf32>
    %887 = tpu.matmul %886, %21, %cst_190 {dimension_numbers = #tpu.dot_dimension_numbers<[1], [0], [0], [1], [0, 0, 1, 1], [], []>} : vector<2x64xf32>, vector<64x4xf32>, vector<2x4xf32> -> vector<2x4xf32>
    %888 = vector.broadcast %22 : vector<1x4xf32> to vector<2x4xf32>
    %889 = arith.addf %887, %888 : vector<2x4xf32>
    %890 = vector.shape_cast %151 : vector<2x4xf32> to vector<2x1x4xf32>
    %891 = vector.shape_cast %280 : vector<2x4xf32> to vector<2x1x4xf32>
    %892 = vector.shape_cast %526 : vector<2x4xf32> to vector<2x1x4xf32>
    %893 = vector.shape_cast %889 : vector<2x4xf32> to vector<2x1x4xf32>
    %894 = tpu.concatenate %890, %891, %892, %893 in 1 : vector<2x1x4xf32>, vector<2x1x4xf32>, vector<2x1x4xf32>, vector<2x1x4xf32> -> vector<2x4x4xf32>
    %c0_191 = arith.constant 0 : index
    %c0_192 = arith.constant 0 : index
    %c0_193 = arith.constant 0 : index
    %895 = vector.load %arg13[%c0_191, %c0_192, %c0_193] : memref<2x4x4xf32, #tpu.memory_space<vmem>>, vector<2x4x4xf32>
    tpu.vector_store %arg13[%c0_191, %c0_192, %c0_193], %894 {strides = array<i32>} : memref<2x4x4xf32, #tpu.memory_space<vmem>>, vector<2x4x4xf32>,
    return
  }
}

</mosaic_0001>

<bundles_post_ra>
// kernel: model_forward.3
= control target key start
LH: loop header
LB: loop body
LE: loop exit
PB: predicated region body
PF: predicated region fallthrough
CT: control target
= control target key end

     0   :  { %v5224_v3 = vmov 0.0|0.0   ;;  %s5225_s24 = smov 4   ;;  %vm5226_vm0 = vmmov 0   ;;  %v5227_v13 = vmov 0.0   ;;  %s6392_s0 = inlined_call_operand.vmem [shape: f32[2,8,4], index: 0, kind: input, shape index: {}]   ;;  %s6393_s1 = inlined_call_operand.vmem [shape: f32[4,2,32], index: 1, kind: input, shape index: {}]   ;;  %s6394_s2 = inlined_call_operand.vmem [shape: f32[4,2,32], index: 2, kind: input, shape index: {}]   ;;  %s6395_s3 = inlined_call_operand.vmem [shape: f32[36,128], index: 3, kind: input, shape index: {}]   ;;  %s6396_s4 = inlined_call_operand.vmem [shape: f32[1,128], index: 4, kind: input, shape index: {}]   ;;  %s6397_s5 = inlined_call_operand.vmem [shape: f32[36,128], index: 5, kind: input, shape index: {}]   ;;  %s6398_s6 = inlined_call_operand.vmem [shape: f32[1,128], index: 6, kind: input, shape index: {}]   ;;  %s6399_s7 = inlined_call_operand.vmem [shape: f32[96,128], index: 7, kind: input, shape index: {}]   ;;  %s6400_s8 = inlined_call_operand.vmem [shape: f32[1,128], index: 8, kind: input, shape index: {}]   ;;  %s6401_s9 = inlined_call_operand.vmem [shape: f32[96,128], index: 9, kind: input, shape index: {}]   ;;  %s6402_s10 = inlined_call_operand.vmem [shape: f32[1,128], index: 10, kind: input, shape index: {}]   ;;  %s6403_s11 = inlined_call_operand.vmem [shape: f32[64,4], index: 11, kind: input, shape index: {}]   ;;  %s6404_s12 = inlined_call_operand.vmem [shape: f32[1,4], index: 12, kind: input, shape index: {}]   ;;  %s6405_s13 = inlined_call_operand.hbm [shape: f32[2,4,4], index: 13, kind: output, shape index: {}]  }
   0x1   :  { %v47_v0 = vld [vmem:[%s6393_s1] sm:$0x3]  ;;  %v48_v1 = vld [vmem:[%s6393_s1 + $0x2] sm:$0x3]  ;;  %4575 = vmatprep.subr.bf16.mxu0 %v5224_v3  ;;  %v65_v5 = vld [vmem:[%s6395_s3 + $0x8] sm:$0xff]  ;;  %4581 = vmatprep.subr.bf16.mxu1 %v5224_v3 }
   0x2   :  { %v82_v2 = vrot.slane %v47_v0, 1  ;;  %v64_v4 = vld [vmem:[%s6395_s3] sm:$0xff]  ;;  %v66_v6 = vld [vmem:[%s6395_s3 + $0x10] sm:$0xff]  ;;  %v67_v8 = vld [vmem:[%s6395_s3 + $0x18] sm:$0xff]  ;;  %v207_v11 = vrot.slane %v48_v1, 1  ;;  %3949 = vmatprep.mubr.msk.f32.mxu0 %vm5226_vm0, %v5227_v13  ;;  %3962 = vmatprep.mubr.msk.f32.mxu1 %vm5226_vm0, %v5227_v13 }
   0x3   :  { %v5321_v7 = vpack.c.bf16 %v65_v5, %v64_v4  ;;  %v70_v9 = vld [vmem:[%s6397_s5] sm:$0xff]  ;;  %v71_v10 = vld [vmem:[%s6397_s5 + $0x8] sm:$0xff]  ;;  %v5338_v14 = vpack.c.bf16 %v67_v8, %v66_v6  ;;  %v72_v15 = vld [vmem:[%s6397_s5 + $0x10] sm:$0xff] }
   0x4   :  { %83 = vrot.lane.b32.xlu0 %v82_v2, %s5225_s24  ;;  %v5333_v12 = vpack.c.bf16 %v71_v10, %v70_v9  ;;  %v73_v16 = vld [vmem:[%s6397_s5 + $0x18] sm:$0xff] }
   0x5   :  { %4577 = vmatpush3.bf16.msra.mxu0 %v5321_v7  ;;  %v5350_v17 = vpack.c.bf16 %v73_v16, %v72_v15 }
   0x6   :  { %4578 = vmatprep.subr.bf16.mxu0 %v5224_v3  ;;  %4583 = vmatpush3.bf16.msra.mxu1 %v5333_v12 }
   0x7   :  { %18 = vsyncpa [#allocation3], 0  ;;  %4584 = vmatprep.subr.bf16.mxu1 %v5224_v3  ;;  %v51_v18 = vld [vmem:[%s6394_s2] sm:$0x3]  ;;  %vm104_vm1 = vcmask 1043456   ;;  %s5228_s18 = smov 32  }
   0x8   :  { %208 = vrot.lane.b32.xlu0 %v207_v11, %s5225_s24  ;;  %v5362_v19 = vld [vmem:[%s6395_s3 + $0x20] sm:$0xf]  ;;  %v46_v21 = vld [vmem:[%s6392_s0 + $0x8] sm:$0xff]  ;;  %vm86_vm2 = vcmask 31744   ;;  %vm97_vm3 = vcmask 1040384   ;;  %vm101_vm4 = vcmask 293888  }
   0x9   :  { %4580 = vmatpush3.bf16.msra.mxu0 %v5338_v14  ;;  %v5369_v20 = vld [vmem:[%s6397_s5 + $0x20] sm:$0xf]  ;;  %v78_v22 = vrot.slane %v46_v21, 7  ;;  %s5229_s27 = smov 64   ;;  %v338_v5 = vld [vmem:[%s6399_s7 + $0x8] sm:$0xff]  ;;  %v339_v10 = vld [vmem:[%s6399_s7 + $0x10] sm:$0xff] }
   0xa   :  { %3947 = vmatprep.subr.mxu0 %v5227_v13  ;;  %4586 = vmatpush3.bf16.msra.mxu1 %v5350_v17  ;;  %v45_v23 = vld [vmem:[%s6392_s0] sm:$0xff]  ;;  %v351_v9 = vld [vmem:[%s6401_s9 + $0x8] sm:$0xff]  ;;  %v340_v11 = vld [vmem:[%s6399_s7 + $0x18] sm:$0xff]  ;;  %vm335_vm5 = vcmask 261120   ;;  %vm367_vm6 = vcmask 523264   ;;  %vm375_vm7 = vcmask 785408  }
   0xb   :  { %3960 = vmatprep.subr.mxu1 %v5227_v13  ;;  %v5399_v36 = vld [vmem:[%s6396_s4] ss:$0 sm:$0xff]  ;;  %v52_v46 = vld [vmem:[%s6394_s2 + $0x2] sm:$0x3]  ;;  %v353_v21 = vld [vmem:[%s6401_s9 + $0x18] sm:$0xff]  ;;  %s5230_s0 = smov 36  }
   0xc   :  { %186 = vrot.lane.b32.xlu0 %v51_v18, %s5228_s18  ;;  %v5405_v40 = vld [vmem:[%s6398_s6] ss:$0 sm:$0xff]  ;;  %v352_v18 = vld [vmem:[%s6401_s9 + $0x10] sm:$0xff]  ;;  %s5231_s25 = smov 96   ;;  %vm3533_vm8 = vcmask 1041408   ;;  %vm3536_vm9 = vcmask 1042432  }
   0xd   :  { %3948 = vmatpush3.msk.msra.mxu0 %vm104_vm1, %v5362_v19  ;;  %v337_v4 = vld [vmem:[%s6399_s7] sm:$0xff]  ;;  %vm3539_vm10 = vcmask 27648  }
   0xe   :  { %3961 = vmatpush3.msk.msra.mxu1 %vm104_vm1, %v5369_v20  ;;  %4587 = vmatprep.subr.bf16.mxu0 %v5224_v3  ;;  %v350_v6 = vld [vmem:[%s6401_s9] sm:$0xff]  ;;  %v5439_v8 = vpack.c.bf16 %v338_v5, %v337_v4 }
   0xf   :  { %4605 = vmatprep.subr.bf16.mxu1 %v5224_v3  ;;  %v5450_v16 = vpack.c.bf16 %v351_v9, %v350_v6  ;;  %v5595_v9 = vld [vmem:[%s6402_s10] ss:$0 sm:$0xff] }
  0x76   :  { %v84_v24 = vpop.permute.xlu0 %83 }
  0x77   :  { %v87_v25 = vsel %vm86_vm2, %v45_v23, %v84_v24  ;;  %v88_v26 = vsel %vm86_vm2, %v78_v22, %v84_v24  ;;  %v341_v24 = vld [vmem:[%s6399_s7 + $0x20] sm:$0xff] }
  0x78   :  { %v98_v27 = vrot.slane %v87_v25, 7  ;;  %v99_v28 = vrot.slane %v88_v26, 7  ;;  %v342_v25 = vld [vmem:[%s6399_s7 + $0x28] sm:$0xff]  ;;  %v354_v26 = vld [vmem:[%s6401_s9 + $0x20] sm:$0xff] }
  0x7a   :  { %v209_v29 = vpop.permute.xlu0 %208  ;;  %v100_v30 = vsel %vm97_vm3, %v98_v27, %v99_v28  ;;  %v355_v27 = vld [vmem:[%s6401_s9 + $0x28] sm:$0xff] }
  0x7b   :  { %v211_v31 = vsel %vm86_vm2, %v45_v23, %v209_v29  ;;  %v212_v32 = vsel %vm86_vm2, %v78_v22, %v209_v29  ;;  %3950 = vmatmul.mubr.msk.f32.vlgmr.msra.gmra.mrb[0].mxu0 %vm101_vm4, %v100_v30  ;;  %v5460_v22 = vpack.c.bf16 %v340_v11, %v339_v10  ;;  %v5464_v23 = vpack.c.bf16 %v353_v21, %v352_v18  ;;  %v53_v21 = vld [vmem:[%s6394_s2 + $0x4] sm:$0x3] }
  0x7c   :  { %v221_v33 = vrot.slane %v211_v31, 7  ;;  %v222_v34 = vrot.slane %v212_v32, 7  ;;  %3989 = vmatprep.mubr.msk.f32.mxu0 %vm5226_vm0, %v5227_v13  ;;  %4589 = vmatpush3.bf16.msra.mxu0 %v5439_v8  ;;  %v5481_v29 = vpack.c.bf16 %v342_v25, %v341_v24  ;;  %v5485_v30 = vpack.c.bf16 %v355_v27, %v354_v26  ;;  %v343_v31 = vld [vmem:[%s6399_s7 + $0x30] sm:$0xff]  ;;  %v344_v32 = vld [vmem:[%s6399_s7 + $0x38] sm:$0xff]  ;;  %v54_v25 = vld [vmem:[%s6394_s2 + $0x6] sm:$0x3] }
  0x7d   :  { %4590 = vmatprep.subr.bf16.mxu0 %v5224_v3 }
  0x7e   :  { %v223_v35 = vsel %vm97_vm3, %v221_v33, %v222_v34  ;;  %v187_v59 = vpop.permute.xlu0 %186  ;;  %v356_v33 = vld [vmem:[%s6401_s9 + $0x30] sm:$0xff]  ;;  %v357_v34 = vld [vmem:[%s6401_s9 + $0x38] sm:$0xff] }
  0x7f   :  { %3963 = vmatmul.mubr.msk.f32.vlgmr.msra.gmra.mrb[0].mxu1 %vm101_vm4, %v223_v35  ;;  %v5501_v35 = vpack.c.bf16 %v344_v32, %v343_v31 }
  0x80   :  { %4016 = vmatprep.mubr.msk.f32.mxu1 %vm5226_vm0, %v5227_v13  ;;  %4607 = vmatpush3.bf16.msra.mxu1 %v5450_v16 }
  0x81   :  { %4608 = vmatprep.subr.bf16.mxu1 %v5224_v3  ;;  %4592 = vmatpush3.bf16.msra.mxu0 %v5460_v22 }
  0x82   :  { %4593 = vmatprep.subr.bf16.mxu0 %v5224_v3 }
  0x84   :  { %4610 = vmatpush3.bf16.msra.mxu1 %v5464_v23 }
  0x85   :  { %4611 = vmatprep.subr.bf16.mxu1 %v5224_v3  ;;  %4595 = vmatpush3.bf16.msra.mxu0 %v5481_v29 }
  0x86   :  { %4596 = vmatprep.subr.bf16.mxu0 %v5224_v3 }
  0x88   :  { %4613 = vmatpush3.bf16.msra.mxu1 %v5485_v30 }
  0x89   :  { %4614 = vmatprep.subr.bf16.mxu1 %v5224_v3  ;;  %4598 = vmatpush3.bf16.msra.mxu0 %v5501_v35 }
  0x8a   :  { %4599 = vmatprep.subr.bf16.mxu0 %v5224_v3 }
 0x14e   :  { %v174_v37 = vpop.f32.mrb[0].mxu0 }
 0x14f   :  { %v175_v38 = vadd.f32 %v5399_v36, %v174_v37  ;;  %v3951_v39 = vpop.f32.mrb[1].mxu0  ;;  %v5505_v37 = vpack.c.bf16 %v357_v34, %v356_v33 }
 0x150   :  { %v346_v39 = vld [vmem:[%s6399_s7 + $0x48] sm:$0xff] }
 0x151   :  { %4969 = vtanh.f32 %v175_v38  ;;  %v3561_v47 = vmul.f32 -1.442695, %v175_v38  ;;  %v345_v38 = vld [vmem:[%s6399_s7 + $0x40] sm:$0xff]  ;;  %4616 = vmatpush3.bf16.msra.mxu1 %v5505_v37 }
 0x152   :  { %v295_v41 = vpop.f32.mrb[0].mxu1  ;;  %4617 = vmatprep.subr.bf16.mxu1 %v5224_v3 }
 0x153   :  { %v296_v42 = vadd.f32 %v5405_v40, %v295_v41  ;;  %v3964_v43 = vpop.f32.mrb[1].mxu1  ;;  %v5515_v41 = vpack.c.bf16 %v346_v39, %v345_v38 }
 0x154   :  { %v359_v43 = vld [vmem:[%s6401_s9 + $0x48] sm:$0xff] }
 0x155   :  { %4971 = vtanh.f32 %v296_v42  ;;  %v3565_v48 = vmul.f32 -1.442695, %v296_v42  ;;  %4601 = vmatpush3.bf16.msra.mxu0 %v5515_v41  ;;  %v358_v42 = vld [vmem:[%s6401_s9 + $0x40] sm:$0xff] }
 0x156   :  { %4973 = vpow2.f32 %v3561_v47  ;;  %4602 = vmatprep.subr.bf16.mxu0 %v5224_v3 }
 0x157   :  { %4975 = vpow2.f32 %v3565_v48  ;;  %v360_v48 = vld [vmem:[%s6401_s9 + $0x50] sm:$0xff] }
 0x15b   :  { %v4970_v44 = vpop.eup %4969 }
 0x15c   :  { %191 = vrot.lane.b32.xlu1 %v4970_v44, %s5229_s27  ;;  %v347_v44 = vld [vmem:[%s6399_s7 + $0x50] sm:$0xff] }
 0x15f   :  { %v4972_v45 = vpop.eup %4971 }
 0x160   :  { %312 = vrot.lane.b32.xlu1 %v4972_v45, %s5229_s27  ;;  %v4974_v49 = vpop.eup %4973  ;;  %v5531_v45 = vpack.c.bf16 %v359_v43, %v358_v42 }
 0x161   :  { %v181_v50 = vadd.f32 1.0, %v4974_v49  ;;  %v4976_v51 = vpop.eup %4975  ;;  %v361_v49 = vld [vmem:[%s6401_s9 + $0x58] sm:$0xff] }
 0x162   :  { %v302_v52 = vadd.f32 1.0, %v4976_v51  ;;  %4619 = vmatpush3.bf16.msra.mxu1 %v5531_v45 }
 0x163   :  { %4977 = vrcp.f32 %v181_v50  ;;  %4620 = vmatprep.subr.bf16.mxu1 %v5224_v3  ;;  %v5547_v50 = vpack.c.bf16 %v361_v49, %v360_v48 }
 0x164   :  { %307 = vrot.lane.b32.xlu1 %v52_v46, %s5228_s18  ;;  %4979 = vrcp.f32 %v302_v52  ;;  %v348_v46 = vld [vmem:[%s6399_s7 + $0x58] sm:$0xff] }
 0x165   :  { %v5536_v47 = vpack.c.bf16 %v348_v46, %v347_v44 }
 0x166   :  { %4622 = vmatpush3.bf16.msra.mxu1 %v5547_v50 }
 0x167   :  { %4604 = vmatpush3.bf16.msra.mxu0 %v5536_v47  ;;  %4635 = vmatprep.subr.bf16.mxu1 %v5224_v3 }
 0x168   :  { %4623 = vmatprep.subr.bf16.mxu0 %v5224_v3 }
 0x16d   :  { %v5414_v53 = vpop.eup %4977 }
 0x16e   :  { %v5418_v56 = vpop.eup %4979  ;;  %v189_v60 = vmul.f32 %v5414_v53, %v187_v59 }
 0x1ce   :  { %v192_v54 = vpop.permute.xlu1 %191 }
 0x1cf   :  { %v194_v55 = vmul.f32 %v5414_v53, %v192_v54 }
 0x1d1   :  { %196 = vrot.lane.b32.xlu0 %v194_v55, %s5228_s18  ;;  %v49_v55 = vld [vmem:[%s6393_s1 + $0x4] sm:$0x3] }
 0x1d2   :  { %v313_v57 = vpop.permute.xlu1 %312 }
 0x1d3   :  { %v315_v58 = vmul.f32 %v5418_v56, %v313_v57 }
 0x1d5   :  { %317 = vrot.lane.b32.xlu1 %v315_v58, %s5228_s18 }
 0x1d6   :  { %v308_v61 = vpop.permute.xlu1 %307 }
 0x1d7   :  { %v310_v0 = vmul.f32 %v5418_v56, %v308_v61 }
 0x243   :  { %v197_v62 = vpop.permute.xlu0 %196 }
 0x244   :  { %v5423_v63 = vadd.f32 %v197_v62, %v189_v60 }
 0x246   :  { %4981 = vtanh.f32 %v5423_v63 }
 0x247   :  { %v318_v1 = vpop.permute.xlu1 %317 }
 0x248   :  { %v5427_v2 = vadd.f32 %v318_v1, %v310_v0  ;;  %v5589_v1 = vld [vmem:[%s6400_s8] ss:$0 sm:$0xff] }
 0x24a   :  { %4983 = vtanh.f32 %v5427_v2 }
 0x250   :  { %v4982_v15 = vpop.eup %4981 }
 0x251   :  { %202 = vrot.lane.b32.xlu0 %v4982_v15, %s5229_s27 }
 0x254   :  { %v4984_v28 = vpop.eup %4983 }
 0x255   :  { %323 = vrot.lane.b32.xlu1 %v4984_v28, %s5229_s27 }
 0x2c3   :  { %v203_v51 = vpop.permute.xlu0 %202 }
 0x2c4   :  { %v5553_v52 = vmul.f32 %v5414_v53, %v203_v51  ;;  %v50_v53 = vld [vmem:[%s6393_s1 + $0x6] sm:$0x3] }
 0x2c6   :  { %328 = vrot.lane.b32.xlu0 %v5553_v52, %s5228_s18 }
 0x2c7   :  { %v324_v54 = vpop.permute.xlu1 %323 }
 0x2c8   :  { %v5561_v57 = vmul.f32 %v5418_v56, %v324_v54 }
 0x2ca   :  { %332 = vrot.lane.b32.xlu1 %v5561_v57, %s5229_s27  ;;  %364 = vrot.lane.b32.xlu0 %v49_v55, %s5229_s27 }
 0x2ce   :  { %478 = vrot.lane.b32.xlu1 %v50_v53, %s5229_s27 }
 0x338   :  { %v329_v58 = vpop.permute.xlu0 %328 }
 0x33c   :  { %v333_v59 = vpop.permute.xlu1 %332  ;;  %v365_v60 = vpop.permute.xlu0 %364 }
 0x33d   :  { %v336_v56 = vsel %vm335_vm5, %v329_v58, %v333_v59  ;;  %v55_v59 = vld [vmem:[%s6403_s11] sm:$0xff] }
 0x33e   :  { %v368_v61 = vsel %vm367_vm6, %v336_v56, %v365_v60  ;;  %v56_v60 = vld [vmem:[%s6403_s11 + $0x8] sm:$0xff] }
 0x33f   :  { %3990 = vmatmul.mubr.msk.f32.vlgmr.msra.gmra.mrb[2].mxu0 %vm375_vm7, %v368_v61  ;;  %v5625_v61 = vpack.c.bf16 %v56_v60, %v55_v59 }
 0x340   :  { %v479_v62 = vpop.permute.xlu1 %478  ;;  %4035 = vmatprep.mubr.msk.f32.mxu0 %vm5226_vm0, %v5227_v13 }
 0x341   :  { %v481_v0 = vsel %vm367_vm6, %v336_v56, %v479_v62  ;;  %v57_v56 = vld [vmem:[%s6403_s11 + $0x10] sm:$0xff]  ;;  %v58_v62 = vld [vmem:[%s6403_s11 + $0x18] sm:$0xff]  ;;  %4625 = vmatpush3.bf16.msra.mxu0 %v5625_v61 }
 0x342   :  { %4017 = vmatmul.mubr.msk.f32.vlgmr.msra.gmra.mrb[2].mxu1 %vm375_vm7, %v481_v0  ;;  %4626 = vmatprep.subr.bf16.mxu0 %v5224_v3 }
 0x343   :  { %4637 = vmatpush3.bf16.msra.mxu1 %v5321_v7  ;;  %4048 = vmatprep.mubr.msk.f32.mxu1 %vm5226_vm0, %v5227_v13 }
 0x344   :  { %4638 = vmatprep.subr.bf16.mxu1 %v5224_v3 }
 0x347   :  { %4640 = vmatpush3.bf16.msra.mxu1 %v5338_v14 }
 0x348   :  { %4046 = vmatprep.subr.mxu1 %v5227_v13 }
 0x34b   :  { %4047 = vmatpush3.msk.msra.mxu1 %vm104_vm1, %v5362_v19 }
 0x34c   :  { %4641 = vmatprep.subr.bf16.mxu1 %v5224_v3 }
 0x412   :  { %v445_v4 = vpop.f32.mrb[2].mxu0 }
 0x413   :  { %v446_v5 = vadd.f32 %v5589_v1, %v445_v4  ;;  %v3991_v6 = vpop.f32.mrb[3].mxu0  ;;  %v5631_v4 = vpack.c.bf16 %v58_v62, %v57_v56 }
 0x414   :  { %v60_v6 = vld [vmem:[%s6403_s11 + $0x28] sm:$0xff] }
 0x415   :  { %4985 = vtanh.f32 %v446_v5  ;;  %v557_v10 = vpop.f32.mrb[2].mxu1  ;;  %v3568_v26 = vmul.f32 -1.442695, %v446_v5  ;;  %v59_v5 = vld [vmem:[%s6403_s11 + $0x20] sm:$0xff]  ;;  %4628 = vmatpush3.bf16.msra.mxu0 %v5631_v4 }
 0x416   :  { %v558_v11 = vadd.f32 %v5595_v9, %v557_v10  ;;  %v4018_v15 = vpop.f32.mrb[3].mxu1  ;;  %4629 = vmatprep.subr.bf16.mxu0 %v5224_v3 }
 0x417   :  { %v61_v15 = vld [vmem:[%s6403_s11 + $0x30] sm:$0xff] }
 0x418   :  { %4987 = vtanh.f32 %v558_v11  ;;  %v3571_v27 = vmul.f32 -1.442695, %v558_v11  ;;  %v5643_v11 = vpack.c.bf16 %v60_v6, %v59_v5 }
 0x419   :  { %4989 = vpow2.f32 %v3568_v26 }
 0x41a   :  { %4991 = vpow2.f32 %v3571_v27  ;;  %4631 = vmatpush3.bf16.msra.mxu0 %v5643_v11 }
 0x41b   :  { %4632 = vmatprep.subr.bf16.mxu0 %v5224_v3 }
 0x41f   :  { %v4986_v18 = vpop.eup %4985 }
 0x420   :  { %462 = vrot.lane.b32.xlu0 %v4986_v18, %s5229_s27  ;;  %v62_v18 = vld [vmem:[%s6403_s11 + $0x38] sm:$0xff] }
 0x422   :  { %v4988_v24 = vpop.eup %4987 }
 0x423   :  { %574 = vrot.lane.b32.xlu1 %v4988_v24, %s5229_s27  ;;  %v4990_v28 = vpop.eup %4989 }
 0x424   :  { %457 = vrot.lane.b32.xlu0 %v53_v21, %s5228_s18  ;;  %v4992_v31 = vpop.eup %4991  ;;  %v452_v32 = vadd.f32 1.0, %v4990_v28  ;;  %v5654_v21 = vpack.c.bf16 %v62_v18, %v61_v15 }
 0x425   :  { %v564_v33 = vadd.f32 1.0, %v4992_v31 }
 0x426   :  { %4993 = vrcp.f32 %v452_v32  ;;  %4634 = vmatpush3.bf16.msra.mxu0 %v5654_v21 }
 0x427   :  { %569 = vrot.lane.b32.xlu1 %v54_v25, %s5228_s18  ;;  %4995 = vrcp.f32 %v564_v33  ;;  %4647 = vmatprep.subr.bf16.mxu0 %v5224_v3 }
 0x430   :  { %v4994_v34 = vpop.eup %4993 }
 0x431   :  { %v4996_v42 = vpop.eup %4995 }
 0x492   :  { %v463_v38 = vpop.permute.xlu0 %462 }
 0x493   :  { %v465_v39 = vmul.f32 %v4994_v34, %v463_v38 }
 0x495   :  { %v575_v43 = vpop.permute.xlu1 %574  ;;  %467 = vrot.lane.b32.xlu0 %v465_v39, %s5228_s18 }
 0x496   :  { %v577_v44 = vmul.f32 %v4996_v42, %v575_v43  ;;  %v458_v46 = vpop.permute.xlu0 %457 }
 0x497   :  { %v460_v48 = vmul.f32 %v4994_v34, %v458_v46 }
 0x498   :  { %579 = vrot.lane.b32.xlu1 %v577_v44, %s5228_s18 }
 0x499   :  { %v570_v49 = vpop.permute.xlu1 %569 }
 0x49a   :  { %v572_v55 = vmul.f32 %v4996_v42, %v570_v49 }
 0x507   :  { %v468_v51 = vpop.permute.xlu0 %467 }
 0x508   :  { %v5610_v54 = vadd.f32 %v468_v51, %v460_v48 }
 0x50a   :  { %4997 = vtanh.f32 %v5610_v54  ;;  %v580_v53 = vpop.permute.xlu1 %579 }
 0x50b   :  { %v5613_v58 = vadd.f32 %v580_v53, %v572_v55 }
 0x50d   :  { %4999 = vtanh.f32 %v5613_v58 }
 0x514   :  { %v4998_v0 = vpop.eup %4997 }
 0x515   :  { %473 = vrot.lane.b32.xlu0 %v4998_v0, %s5229_s27 }
 0x517   :  { %v5000_v10 = vpop.eup %4999 }
 0x518   :  { %585 = vrot.lane.b32.xlu1 %v5000_v10, %s5229_s27 }
 0x587   :  { %v474_v24 = vpop.permute.xlu0 %473 }
 0x588   :  { %v5658_v25 = vmul.f32 %v4994_v34, %v474_v24 }
 0x58a   :  { %v586_v26 = vpop.permute.xlu1 %585  ;;  %590 = vrot.lane.b32.xlu0 %v5658_v25, %s5228_s18 }
 0x58b   :  { %v5662_v27 = vmul.f32 %v4996_v42, %v586_v26 }
 0x58d   :  { %594 = vrot.lane.b32.xlu1 %v5662_v27, %s5229_s27 }
 0x58e   :  { %677 = vrot.lane.b32.xlu0 %v5553_v52, %s5230_s0  ;;  %v5689_v52 = vld [vmem:[%s6404_s12] ss:$0 sm:$0xff] }
 0x591   :  { %778 = vrot.lane.b32.xlu1 %v5561_v57, %s5230_s0 }
 0x5fc   :  { %v591_v28 = vpop.permute.xlu0 %590 }
 0x5ff   :  { %v595_v31 = vpop.permute.xlu1 %594 }
 0x600   :  { %v597_v32 = vsel %vm335_vm5, %v591_v28, %v595_v31  ;;  %v678_v38 = vpop.permute.xlu0 %677 }
 0x601   :  { %4036 = vmatmul.mubr.msk.f32.vlgmr.msra.gmra.mrb[4].mxu0 %vm367_vm6, %v597_v32 }
 0x602   :  { %4649 = vmatpush3.bf16.msra.mxu0 %v5439_v8  ;;  %4088 = vmatprep.mubr.msk.f32.mxu0 %vm5226_vm0, %v5227_v13 }
 0x603   :  { %4650 = vmatprep.subr.bf16.mxu0 %v5224_v3  ;;  %v779_v42 = vpop.permute.xlu1 %778 }
 0x606   :  { %4652 = vmatpush3.bf16.msra.mxu0 %v5460_v22 }
 0x607   :  { %4653 = vmatprep.subr.bf16.mxu0 %v5224_v3 }
 0x60a   :  { %4655 = vmatpush3.bf16.msra.mxu0 %v5481_v29 }
 0x60b   :  { %4656 = vmatprep.subr.bf16.mxu0 %v5224_v3 }
 0x60e   :  { %4658 = vmatpush3.bf16.msra.mxu0 %v5501_v35 }
 0x60f   :  { %4659 = vmatprep.subr.bf16.mxu0 %v5224_v3 }
 0x612   :  { %4661 = vmatpush3.bf16.msra.mxu0 %v5515_v41 }
 0x613   :  { %4662 = vmatprep.subr.bf16.mxu0 %v5224_v3 }
 0x616   :  { %4664 = vmatpush3.bf16.msra.mxu0 %v5536_v47 }
 0x617   :  { %4683 = vmatprep.subr.bf16.mxu0 %v5224_v3 }
 0x6d4   :  { %v673_v57 = vpop.f32.mrb[4].mxu0 }
 0x6d5   :  { %v5692_v33 = vadd.f32 %v5689_v52, %v673_v57  ;;  %v4037_v34 = vpop.f32.mrb[5].mxu0 }
 0x6d7   :  { %v680_v39 = vsel %vm86_vm2, %v5692_v33, %v678_v38  ;;  %v781_v43 = vsel %vm86_vm2, %v5692_v33, %v779_v42 }
 0x6d8   :  { %4049 = vmatmul.mubr.msk.f32.vlgmr.msra.gmra.mrb[4].mxu1 %vm101_vm4, %v680_v39 }
 0x6d9   :  { %4643 = vmatpush3.bf16.msra.mxu1 %v5333_v12  ;;  %4061 = vmatprep.mubr.msk.f32.mxu1 %vm5226_vm0, %v5227_v13 }
 0x6da   :  { %4644 = vmatprep.subr.bf16.mxu1 %v5224_v3 }
 0x6dd   :  { %4646 = vmatpush3.bf16.msra.mxu1 %v5350_v17 }
 0x6de   :  { %4059 = vmatprep.subr.mxu1 %v5227_v13 }
 0x6e1   :  { %4060 = vmatpush3.msk.msra.mxu1 %vm104_vm1, %v5369_v20 }
 0x6e2   :  { %4062 = vmatmul.mubr.msk.f32.vlgmr.msra.gmra.mrb[6].mxu1 %vm101_vm4, %v781_v43  ;;  %4665 = vmatprep.subr.bf16.mxu1 %v5224_v3 }
 0x6e3   :  { %4667 = vmatpush3.bf16.msra.mxu1 %v5450_v16  ;;  %4115 = vmatprep.mubr.msk.f32.mxu1 %vm5226_vm0, %v5227_v13 }
 0x6e4   :  { %4668 = vmatprep.subr.bf16.mxu1 %v5224_v3 }
 0x6e7   :  { %4670 = vmatpush3.bf16.msra.mxu1 %v5464_v23 }
 0x6e8   :  { %4671 = vmatprep.subr.bf16.mxu1 %v5224_v3 }
 0x6eb   :  { %4673 = vmatpush3.bf16.msra.mxu1 %v5485_v30 }
 0x6ec   :  { %4674 = vmatprep.subr.bf16.mxu1 %v5224_v3 }
 0x6ef   :  { %4676 = vmatpush3.bf16.msra.mxu1 %v5505_v37 }
 0x6f0   :  { %4677 = vmatprep.subr.bf16.mxu1 %v5224_v3 }
 0x6f3   :  { %4679 = vmatpush3.bf16.msra.mxu1 %v5531_v45 }
 0x6f4   :  { %4680 = vmatprep.subr.bf16.mxu1 %v5224_v3 }
 0x6f7   :  { %4682 = vmatpush3.bf16.msra.mxu1 %v5547_v50 }
 0x6f8   :  { %4695 = vmatprep.subr.bf16.mxu1 %v5224_v3 }
 0x7ab   :  { %v750_v44 = vpop.f32.mrb[4].mxu1 }
 0x7ac   :  { %v751_v46 = vadd.f32 %v5399_v36, %v750_v44  ;;  %v4050_v48 = vpop.f32.mrb[5].mxu1 }
 0x7ae   :  { %5001 = vtanh.f32 %v751_v46  ;;  %v3576_v60 = vmul.f32 -1.442695, %v751_v46 }
 0x7b5   :  { %v851_v49 = vpop.f32.mrb[6].mxu1 }
 0x7b6   :  { %v852_v51 = vadd.f32 %v5405_v40, %v851_v49  ;;  %v4063_v55 = vpop.f32.mrb[7].mxu1 }
 0x7b8   :  { %v5002_v53 = vpop.eup %5001  ;;  %5003 = vtanh.f32 %v852_v51  ;;  %v3579_v56 = vmul.f32 -1.442695, %v852_v51 }
 0x7b9   :  { %763 = vrot.lane.b32.xlu0 %v5002_v53, %s5229_s27  ;;  %5005 = vpow2.f32 %v3576_v60 }
 0x7ba   :  { %5007 = vpow2.f32 %v3579_v56 }
 0x7c2   :  { %v5004_v59 = vpop.eup %5003 }
 0x7c3   :  { %864 = vrot.lane.b32.xlu1 %v5004_v59, %s5229_s27  ;;  %v5006_v62 = vpop.eup %5005 }
 0x7c4   :  { %v757_v0 = vadd.f32 1.0, %v5006_v62  ;;  %v5008_v5 = vpop.eup %5007 }
 0x7c5   :  { %v858_v6 = vadd.f32 1.0, %v5008_v5 }
 0x7c6   :  { %5009 = vrcp.f32 %v757_v0 }
 0x7c7   :  { %5011 = vrcp.f32 %v858_v6 }
 0x7d0   :  { %v5010_v10 = vpop.eup %5009 }
 0x7d1   :  { %v5012_v24 = vpop.eup %5011  ;;  %v761_v31 = vmul.f32 %v5010_v10, %v5423_v63 }
 0x7d2   :  { %v862_v34 = vmul.f32 %v5012_v24, %v5427_v2 }
 0x82b   :  { %v764_v15 = vpop.permute.xlu0 %763 }
 0x82c   :  { %v766_v18 = vmul.f32 %v5010_v10, %v764_v15 }
 0x82e   :  { %768 = vrot.lane.b32.xlu0 %v766_v18, %s5228_s18 }
 0x835   :  { %v865_v26 = vpop.permute.xlu1 %864 }
 0x836   :  { %v867_v28 = vmul.f32 %v5012_v24, %v865_v26 }
 0x838   :  { %869 = vrot.lane.b32.xlu1 %v867_v28, %s5228_s18 }
 0x8a0   :  { %v769_v32 = vpop.permute.xlu0 %768 }
 0x8a1   :  { %v5730_v57 = vadd.f32 %v769_v32, %v761_v31 }
 0x8a3   :  { %5013 = vtanh.f32 %v5730_v57 }
 0x8aa   :  { %v870_v38 = vpop.permute.xlu1 %869 }
 0x8ab   :  { %v5734_v39 = vadd.f32 %v870_v38, %v862_v34 }
 0x8ad   :  { %v5014_v42 = vpop.eup %5013  ;;  %5015 = vtanh.f32 %v5734_v39 }
 0x8ae   :  { %774 = vrot.lane.b32.xlu0 %v5014_v42, %s5229_s27 }
 0x8b7   :  { %v5016_v43 = vpop.eup %5015 }
 0x8b8   :  { %875 = vrot.lane.b32.xlu1 %v5016_v43, %s5229_s27 }
 0x920   :  { %v775_v44 = vpop.permute.xlu0 %774 }
 0x921   :  { %v5739_v63 = vmul.f32 %v5010_v10, %v775_v44 }
 0x923   :  { %880 = vrot.lane.b32.xlu0 %v5739_v63, %s5228_s18 }
 0x927   :  { %888 = vrot.lane.b32.xlu0 %v5658_v25, %s5231_s25 }
 0x92a   :  { %v876_v2 = vpop.permute.xlu1 %875 }
 0x92b   :  { %v5745_v46 = vmul.f32 %v5012_v24, %v876_v2 }
 0x92d   :  { %884 = vrot.lane.b32.xlu1 %v5745_v46, %s5229_s27 }
 0x931   :  { %989 = vrot.lane.b32.xlu1 %v5662_v27, %s5231_s25 }
 0x995   :  { %v881_v48 = vpop.permute.xlu0 %880 }
 0x999   :  { %v889_v51 = vpop.permute.xlu0 %888 }
 0x99f   :  { %v885_v49 = vpop.permute.xlu1 %884 }
 0x9a0   :  { %v887_v55 = vsel %vm335_vm5, %v881_v48, %v885_v49 }
 0x9a1   :  { %v891_v53 = vsel %vm367_vm6, %v887_v55, %v889_v51 }
 0x9a2   :  { %4089 = vmatmul.mubr.msk.f32.vlgmr.msra.gmra.mrb[6].mxu0 %vm375_vm7, %v891_v53 }
 0x9a3   :  { %v990_v59 = vpop.permute.xlu1 %989  ;;  %4685 = vmatpush3.bf16.msra.mxu0 %v5625_v61  ;;  %4134 = vmatprep.mubr.msk.f32.mxu0 %vm5226_vm0, %v5227_v13 }
 0x9a4   :  { %v992_v25 = vsel %vm367_vm6, %v887_v55, %v990_v59  ;;  %4686 = vmatprep.subr.bf16.mxu0 %v5224_v3 }
 0x9a5   :  { %4116 = vmatmul.mubr.msk.f32.vlgmr.msra.gmra.mrb[8].mxu1 %vm375_vm7, %v992_v25 }
 0x9a6   :  { %4697 = vmatpush3.bf16.msra.mxu1 %v5321_v7  ;;  %4147 = vmatprep.mubr.msk.f32.mxu1 %vm5226_vm0, %v5227_v13 }
 0x9a7   :  { %4688 = vmatpush3.bf16.msra.mxu0 %v5631_v4  ;;  %4698 = vmatprep.subr.bf16.mxu1 %v5224_v3 }
 0x9a8   :  { %4689 = vmatprep.subr.bf16.mxu0 %v5224_v3 }
 0x9aa   :  { %4700 = vmatpush3.bf16.msra.mxu1 %v5338_v14 }
 0x9ab   :  { %4691 = vmatpush3.bf16.msra.mxu0 %v5643_v11  ;;  %4145 = vmatprep.subr.mxu1 %v5227_v13 }
 0x9ac   :  { %4692 = vmatprep.subr.bf16.mxu0 %v5224_v3 }
 0x9ae   :  { %4146 = vmatpush3.msk.msra.mxu1 %vm104_vm1, %v5362_v19 }
 0x9af   :  { %4694 = vmatpush3.bf16.msra.mxu0 %v5654_v21  ;;  %4701 = vmatprep.subr.bf16.mxu1 %v5224_v3 }
 0x9b0   :  { %4707 = vmatprep.subr.bf16.mxu0 %v5224_v3 }
 0xa75   :  { %v961_v27 = vpop.f32.mrb[6].mxu0 }
 0xa76   :  { %v962_v60 = vadd.f32 %v5589_v1, %v961_v27  ;;  %v4090_v56 = vpop.f32.mrb[7].mxu0 }
 0xa78   :  { %5017 = vtanh.f32 %v962_v60  ;;  %v1062_v62 = vpop.f32.mrb[8].mxu1  ;;  %v3581_v15 = vmul.f32 -1.442695, %v962_v60 }
 0xa79   :  { %v1063_v0 = vadd.f32 %v5595_v9, %v1062_v62  ;;  %v4117_v5 = vpop.f32.mrb[9].mxu1 }
 0xa7b   :  { %5019 = vtanh.f32 %v1063_v0  ;;  %v3583_v18 = vmul.f32 -1.442695, %v1063_v0 }
 0xa7c   :  { %5021 = vpow2.f32 %v3581_v15 }
 0xa7d   :  { %5023 = vpow2.f32 %v3583_v18 }
 0xa82   :  { %v5018_v6 = vpop.eup %5017 }
 0xa83   :  { %974 = vrot.lane.b32.xlu0 %v5018_v6, %s5229_s27 }
 0xa85   :  { %v5020_v10 = vpop.eup %5019 }
 0xa86   :  { %1075 = vrot.lane.b32.xlu1 %v5020_v10, %s5229_s27  ;;  %v5022_v24 = vpop.eup %5021 }
 0xa87   :  { %v5024_v26 = vpop.eup %5023  ;;  %v968_v28 = vadd.f32 1.0, %v5022_v24 }
 0xa88   :  { %v1069_v31 = vadd.f32 1.0, %v5024_v26 }
 0xa89   :  { %5025 = vrcp.f32 %v968_v28 }
 0xa8a   :  { %5027 = vrcp.f32 %v1069_v31 }
 0xa93   :  { %v5026_v32 = vpop.eup %5025 }
 0xa94   :  { %v5028_v42 = vpop.eup %5027  ;;  %v972_v2 = vmul.f32 %v5026_v32, %v5610_v54 }
 0xa95   :  { %v1073_v51 = vmul.f32 %v5028_v42, %v5613_v58 }
 0xaf5   :  { %v975_v34 = vpop.permute.xlu0 %974 }
 0xaf6   :  { %v977_v38 = vmul.f32 %v5026_v32, %v975_v34 }
 0xaf8   :  { %v1076_v43 = vpop.permute.xlu1 %1075  ;;  %979 = vrot.lane.b32.xlu0 %v977_v38, %s5228_s18 }
 0xaf9   :  { %v1078_v44 = vmul.f32 %v5028_v42, %v1076_v43 }
 0xafb   :  { %1080 = vrot.lane.b32.xlu1 %v1078_v44, %s5228_s18 }
 0xb6a   :  { %v980_v48 = vpop.permute.xlu0 %979 }
 0xb6b   :  { %v5782_v49 = vadd.f32 %v980_v48, %v972_v2 }
 0xb6d   :  { %5029 = vtanh.f32 %v5782_v49  ;;  %v1081_v55 = vpop.permute.xlu1 %1080 }
 0xb6e   :  { %v5786_v53 = vadd.f32 %v1081_v55, %v1073_v51 }
 0xb70   :  { %5031 = vtanh.f32 %v5786_v53 }
 0xb77   :  { %v5030_v59 = vpop.eup %5029 }
 0xb78   :  { %985 = vrot.lane.b32.xlu0 %v5030_v59, %s5229_s27 }
 0xb7a   :  { %v5032_v25 = vpop.eup %5031 }
 0xb7b   :  { %1086 = vrot.lane.b32.xlu1 %v5032_v25, %s5229_s27 }
 0xbea   :  { %v986_v27 = vpop.permute.xlu0 %985 }
 0xbeb   :  { %v5791_v54 = vmul.f32 %v5026_v32, %v986_v27 }
 0xbed   :  { %v1087_v60 = vpop.permute.xlu1 %1086  ;;  %1091 = vrot.lane.b32.xlu0 %v5791_v54, %s5228_s18 }
 0xbee   :  { %v5795_v58 = vmul.f32 %v5028_v42, %v1087_v60 }
 0xbf0   :  { %1095 = vrot.lane.b32.xlu1 %v5795_v58, %s5229_s27 }
 0xbf1   :  { %1172 = vrot.lane.b32.xlu0 %v5739_v63, %s5230_s0 }
 0xbf4   :  { %1273 = vrot.lane.b32.xlu1 %v5745_v46, %s5230_s0 }
 0xc5f   :  { %v1092_v56 = vpop.permute.xlu0 %1091 }
 0xc62   :  { %v1096_v62 = vpop.permute.xlu1 %1095 }
 0xc63   :  { %v1098_v0 = vsel %vm335_vm5, %v1092_v56, %v1096_v62  ;;  %v1173_v5 = vpop.permute.xlu0 %1172 }
 0xc64   :  { %v1175_v6 = vsel %vm86_vm2, %v5692_v33, %v1173_v5  ;;  %4135 = vmatmul.mubr.msk.f32.vlgmr.msra.gmra.mrb[8].mxu0 %vm367_vm6, %v1098_v0 }
 0xc65   :  { %4148 = vmatmul.mubr.msk.f32.vlgmr.msra.gmra.mrb[10].mxu1 %vm101_vm4, %v1175_v6  ;;  %4709 = vmatpush3.bf16.msra.mxu0 %v5321_v7 }
 0xc66   :  { %4703 = vmatpush3.bf16.msra.mxu1 %v5333_v12  ;;  %4160 = vmatprep.mubr.msk.f32.mxu1 %vm5226_vm0, %v5227_v13  ;;  %v1274_v18 = vpop.permute.xlu1 %1273 }
 0xc67   :  { %4704 = vmatprep.subr.bf16.mxu1 %v5224_v3  ;;  %4710 = vmatprep.subr.bf16.mxu0 %v5224_v3 }
 0xc68   :  { %4173 = vmatprep.mubr.msk.f32.mxu0 %vm5226_vm0, %v5227_v13 }
 0xc69   :  { %4712 = vmatpush3.bf16.msra.mxu0 %v5338_v14 }
 0xc6a   :  { %4706 = vmatpush3.bf16.msra.mxu1 %v5350_v17  ;;  %4171 = vmatprep.subr.mxu0 %v5227_v13 }
 0xc6b   :  { %4158 = vmatprep.subr.mxu1 %v5227_v13 }
 0xc6d   :  { %4172 = vmatpush3.msk.msra.mxu0 %vm104_vm1, %v5362_v19 }
 0xc6e   :  { %4159 = vmatpush3.msk.msra.mxu1 %vm104_vm1, %v5369_v20  ;;  %4719 = vmatprep.subr.bf16.mxu0 %v5224_v3 }
 0xc6f   :  { %4713 = vmatprep.subr.bf16.mxu1 %v5224_v3 }
 0xd37   :  { %v1168_v63 = vpop.f32.mrb[8].mxu0 }
 0xd38   :  { %v5827_v46 = vadd.f32 %v5689_v52, %v1168_v63  ;;  %v4136_v10 = vpop.f32.mrb[9].mxu0  ;;  %v1245_v15 = vpop.f32.mrb[10].mxu1 }
 0xd39   :  { %v1246_v24 = vadd.f32 %v5399_v36, %v1245_v15  ;;  %v4149_v26 = vpop.f32.mrb[11].mxu1 }
 0xd3a   :  { %v1276_v19 = vsel %vm86_vm2, %v5827_v46, %v1274_v18 }
 0xd3b   :  { %5033 = vtanh.f32 %v1246_v24  ;;  %4161 = vmatmul.mubr.msk.f32.vlgmr.msra.gmra.mrb[12].mxu1 %vm101_vm4, %v1276_v19  ;;  %v3587_v31 = vmul.f32 -1.442695, %v1246_v24 }
 0xd3c   :  { %4715 = vmatpush3.bf16.msra.mxu1 %v5333_v12  ;;  %4186 = vmatprep.mubr.msk.f32.mxu1 %vm5226_vm0, %v5227_v13 }
 0xd3d   :  { %4716 = vmatprep.subr.bf16.mxu1 %v5224_v3  ;;  %5035 = vpow2.f32 %v3587_v31 }
 0xd40   :  { %4718 = vmatpush3.bf16.msra.mxu1 %v5350_v17 }
 0xd41   :  { %4184 = vmatprep.subr.mxu1 %v5227_v13 }
 0xd44   :  { %4185 = vmatpush3.msk.msra.mxu1 %vm104_vm1, %v5369_v20 }
 0xd45   :  { %v5034_v28 = vpop.eup %5033  ;;  %4737 = vmatprep.subr.bf16.mxu1 %v5224_v3 }
 0xd46   :  { %1258 = vrot.lane.b32.xlu0 %v5034_v28, %s5229_s27 }
 0xd47   :  { %v5036_v32 = vpop.eup %5035 }
 0xd48   :  { %v1252_v34 = vadd.f32 1.0, %v5036_v32 }
 0xd4a   :  { %5037 = vrcp.f32 %v1252_v34 }
 0xd54   :  { %v5038_v38 = vpop.eup %5037 }
 0xd55   :  { %v1256_v51 = vmul.f32 %v5038_v38, %v5730_v57 }
 0xdb8   :  { %v1259_v42 = vpop.permute.xlu0 %1258 }
 0xdb9   :  { %v1261_v43 = vmul.f32 %v5038_v38, %v1259_v42 }
 0xdbb   :  { %1263 = vrot.lane.b32.xlu0 %v1261_v43, %s5228_s18 }
 0xe0e   :  { %v1346_v44 = vpop.f32.mrb[12].mxu1 }
 0xe0f   :  { %v1347_v2 = vadd.f32 %v5405_v40, %v1346_v44  ;;  %v4162_v48 = vpop.f32.mrb[13].mxu1 }
 0xe11   :  { %5039 = vtanh.f32 %v1347_v2  ;;  %v3590_v27 = vmul.f32 -1.442695, %v1347_v2 }
 0xe1b   :  { %v5040_v20 = vpop.eup %5039 }
 0xe1c   :  { %1359 = vrot.lane.b32.xlu1 %v5040_v20, %s5229_s27 }
 0xe2d   :  { %v1264_v55 = vpop.permute.xlu0 %1263 }
 0xe2e   :  { %v5847_v59 = vadd.f32 %v1264_v55, %v1256_v51  ;;  %v5905_v51 = vld [vmem:[%s6398_s6] ss:$0 sm:$0xff] }
 0xe30   :  { %5041 = vtanh.f32 %v5847_v59 }
 0xe31   :  { %5043 = vpow2.f32 %v3590_v27 }
 0xe3a   :  { %v5042_v25 = vpop.eup %5041 }
 0xe3b   :  { %1269 = vrot.lane.b32.xlu0 %v5042_v25, %s5229_s27  ;;  %v5044_v60 = vpop.eup %5043 }
 0xe3c   :  { %v1353_v56 = vadd.f32 1.0, %v5044_v60 }
 0xe3e   :  { %5045 = vrcp.f32 %v1353_v56 }
 0xe48   :  { %v5046_v40 = vpop.eup %5045 }
 0xe49   :  { %v1357_v6 = vmul.f32 %v5046_v40, %v5734_v39 }
 0xe8e   :  { %v1360_v62 = vpop.permute.xlu1 %1359 }
 0xe8f   :  { %v1362_v0 = vmul.f32 %v5046_v40, %v1360_v62 }
 0xe91   :  { %1364 = vrot.lane.b32.xlu1 %v1362_v0, %s5228_s18 }
 0xead   :  { %v1270_v5 = vpop.permute.xlu0 %1269 }
 0xeae   :  { %v5852_v57 = vmul.f32 %v5038_v38, %v1270_v5 }
 0xeb0   :  { %1375 = vrot.lane.b32.xlu0 %v5852_v57, %s5230_s0 }
 0xf03   :  { %v1365_v63 = vpop.permute.xlu1 %1364 }
 0xf04   :  { %v5857_v10 = vadd.f32 %v1365_v63, %v1357_v6 }
 0xf06   :  { %5047 = vtanh.f32 %v5857_v10 }
 0xf10   :  { %v5048_v15 = vpop.eup %5047 }
 0xf11   :  { %1370 = vrot.lane.b32.xlu1 %v5048_v15, %s5229_s27 }
 0xf22   :  { %v1376_v18 = vpop.permute.xlu0 %1375 }
 0xf23   :  { %v1378_v24 = vsel %vm86_vm2, %v5827_v46, %v1376_v18 }
 0xf24   :  { %4174 = vmatmul.mubr.msk.f32.vlgmr.msra.gmra.mrb[10].mxu0 %vm101_vm4, %v1378_v24 }
 0xf25   :  { %4721 = vmatpush3.bf16.msra.mxu0 %v5439_v8  ;;  %4213 = vmatprep.mubr.msk.f32.mxu0 %vm5226_vm0, %v5227_v13 }
 0xf26   :  { %4722 = vmatprep.subr.bf16.mxu0 %v5224_v3 }
 0xf29   :  { %4724 = vmatpush3.bf16.msra.mxu0 %v5460_v22 }
 0xf2a   :  { %4725 = vmatprep.subr.bf16.mxu0 %v5224_v3 }
 0xf2d   :  { %4727 = vmatpush3.bf16.msra.mxu0 %v5481_v29 }
 0xf2e   :  { %4728 = vmatprep.subr.bf16.mxu0 %v5224_v3 }
 0xf31   :  { %4730 = vmatpush3.bf16.msra.mxu0 %v5501_v35 }
 0xf32   :  { %4731 = vmatprep.subr.bf16.mxu0 %v5224_v3 }
 0xf35   :  { %4733 = vmatpush3.bf16.msra.mxu0 %v5515_v41 }
 0xf36   :  { %4734 = vmatprep.subr.bf16.mxu0 %v5224_v3 }
 0xf39   :  { %4736 = vmatpush3.bf16.msra.mxu0 %v5536_v47 }
 0xf3a   :  { %4755 = vmatprep.subr.bf16.mxu0 %v5224_v3 }
 0xf83   :  { %v1371_v39 = vpop.permute.xlu1 %1370 }
 0xf84   :  { %v5878_v26 = vmul.f32 %v5046_v40, %v1371_v39 }
 0xf86   :  { %1477 = vrot.lane.b32.xlu1 %v5878_v26, %s5230_s0 }
 0xff7   :  { %v1448_v19 = vpop.f32.mrb[10].mxu0 }
 0xff8   :  { %v1449_v28 = vadd.f32 %v5399_v36, %v1448_v19  ;;  %v1478_v31 = vpop.permute.xlu1 %1477  ;;  %v4175_v32 = vpop.f32.mrb[11].mxu0 }
 0xff9   :  { %v1480_v34 = vsel %vm86_vm2, %v5692_v33, %v1478_v31 }
 0xffa   :  { %5049 = vtanh.f32 %v1449_v28  ;;  %4187 = vmatmul.mubr.msk.f32.vlgmr.msra.gmra.mrb[14].mxu1 %vm101_vm4, %v1480_v34  ;;  %v3593_v38 = vmul.f32 -1.442695, %v1449_v28 }
 0xffb   :  { %4739 = vmatpush3.bf16.msra.mxu1 %v5450_v16  ;;  %4240 = vmatprep.mubr.msk.f32.mxu1 %vm5226_vm0, %v5227_v13 }
 0xffc   :  { %4740 = vmatprep.subr.bf16.mxu1 %v5224_v3  ;;  %5051 = vpow2.f32 %v3593_v38 }
 0xfff   :  { %4742 = vmatpush3.bf16.msra.mxu1 %v5464_v23 }
0x1000   :  { %4743 = vmatprep.subr.bf16.mxu1 %v5224_v3 }
0x1003   :  { %4745 = vmatpush3.bf16.msra.mxu1 %v5485_v30 }
0x1004   :  { %v5050_v36 = vpop.eup %5049  ;;  %4746 = vmatprep.subr.bf16.mxu1 %v5224_v3 }
0x1005   :  { %1461 = vrot.lane.b32.xlu0 %v5050_v36, %s5229_s27 }
0x1006   :  { %v5052_v42 = vpop.eup %5051 }
0x1007   :  { %4748 = vmatpush3.bf16.msra.mxu1 %v5505_v37  ;;  %v1455_v43 = vadd.f32 1.0, %v5052_v42 }
0x1008   :  { %4749 = vmatprep.subr.bf16.mxu1 %v5224_v3 }
0x1009   :  { %5053 = vrcp.f32 %v1455_v43 }
0x100b   :  { %4751 = vmatpush3.bf16.msra.mxu1 %v5531_v45 }
0x100c   :  { %4752 = vmatprep.subr.bf16.mxu1 %v5224_v3 }
0x100f   :  { %4754 = vmatpush3.bf16.msra.mxu1 %v5547_v50 }
0x1010   :  { %4773 = vmatprep.subr.bf16.mxu1 %v5224_v3 }
0x1013   :  { %v5054_v44 = vpop.eup %5053 }
0x1014   :  { %v1459_v60 = vmul.f32 %v5054_v44, %v5847_v59 }
0x1077   :  { %v1462_v2 = vpop.permute.xlu0 %1461 }
0x1078   :  { %v1464_v48 = vmul.f32 %v5054_v44, %v1462_v2 }
0x107a   :  { %1466 = vrot.lane.b32.xlu0 %v1464_v48, %s5228_s18 }
0x10cd   :  { %v1550_v20 = vpop.f32.mrb[14].mxu1 }
0x10ce   :  { %v1551_v55 = vadd.f32 %v5905_v51, %v1550_v20  ;;  %v4188_v25 = vpop.f32.mrb[15].mxu1 }
0x10d0   :  { %5055 = vtanh.f32 %v1551_v55  ;;  %v3596_v0 = vmul.f32 -1.442695, %v1551_v55 }
0x10da   :  { %v5056_v27 = vpop.eup %5055 }
0x10db   :  { %1563 = vrot.lane.b32.xlu1 %v5056_v27, %s5229_s27 }
0x10ec   :  { %v1467_v56 = vpop.permute.xlu0 %1466 }
0x10ed   :  { %v5910_v40 = vadd.f32 %v1467_v56, %v1459_v60 }
0x10ef   :  { %5057 = vtanh.f32 %v5910_v40 }
0x10f0   :  { %5059 = vpow2.f32 %v3596_v0 }
0x10f9   :  { %v5058_v62 = vpop.eup %5057 }
0x10fa   :  { %1472 = vrot.lane.b32.xlu0 %v5058_v62, %s5229_s27  ;;  %v5060_v5 = vpop.eup %5059 }
0x10fb   :  { %v1557_v6 = vadd.f32 1.0, %v5060_v5 }
0x10fd   :  { %5061 = vrcp.f32 %v1557_v6 }
0x10fe   :  { %1578 = vrot.lane.b32.xlu0 %v5852_v57, %s5228_s18 }
0x1107   :  { %v5062_v63 = vpop.eup %5061 }
0x1108   :  { %v1561_v57 = vmul.f32 %v5062_v63, %v5857_v10 }
0x114d   :  { %v1564_v15 = vpop.permute.xlu1 %1563 }
0x114e   :  { %v1566_v18 = vmul.f32 %v5062_v63, %v1564_v15 }
0x1150   :  { %1568 = vrot.lane.b32.xlu1 %v1566_v18, %s5228_s18 }
0x116c   :  { %v1473_v59 = vpop.permute.xlu0 %1472 }
0x116d   :  { %v5917_v24 = vmul.f32 %v5054_v44, %v1473_v59 }
0x116f   :  { %1587 = vrot.lane.b32.xlu0 %v5917_v24, %s5228_s18 }
0x1173   :  { %1594 = vrot.lane.b32.xlu0 %v5791_v54, %s5231_s25  ;;  %v1579_v54 = vpop.permute.xlu0 %1578 }
0x11c2   :  { %v1569_v39 = vpop.permute.xlu1 %1568 }
0x11c3   :  { %v5924_v19 = vadd.f32 %v1569_v39, %v1561_v57 }
0x11c5   :  { %5063 = vtanh.f32 %v5924_v19 }
0x11cf   :  { %v5064_v28 = vpop.eup %5063 }
0x11d0   :  { %1574 = vrot.lane.b32.xlu1 %v5064_v28, %s5229_s27 }
0x11d4   :  { %1590 = vrot.lane.b32.xlu1 %v5878_v26, %s5229_s27 }
0x11e1   :  { %v1588_v10 = vpop.permute.xlu0 %1587 }
0x11e5   :  { %v1595_v38 = vpop.permute.xlu0 %1594 }
0x1242   :  { %v1575_v31 = vpop.permute.xlu1 %1574 }
0x1243   :  { %v5930_v32 = vmul.f32 %v5062_v63, %v1575_v31 }
0x1245   :  { %1582 = vrot.lane.b32.xlu1 %v5930_v32, %s5229_s27 }
0x1246   :  { %v1591_v34 = vpop.permute.xlu1 %1590 }
0x1247   :  { %v5943_v43 = vsel %vm335_vm5, %v1588_v10, %v1591_v34 }
0x1249   :  { %1695 = vrot.lane.b32.xlu1 %v5795_v58, %s5231_s25 }
0x12b7   :  { %v1583_v36 = vpop.permute.xlu1 %1582 }
0x12b8   :  { %v5937_v42 = vsel %vm335_vm5, %v1579_v54, %v1583_v36 }
0x12b9   :  { %v1597_v26 = vsel %vm367_vm6, %v5937_v42, %v1595_v38 }
0x12ba   :  { %4214 = vmatmul.mubr.msk.f32.vlgmr.msra.gmra.mrb[12].mxu0 %vm375_vm7, %v1597_v26 }
0x12bb   :  { %v1696_v44 = vpop.permute.xlu1 %1695  ;;  %4757 = vmatpush3.bf16.msra.mxu0 %v5439_v8  ;;  %4267 = vmatprep.mubr.msk.f32.mxu0 %vm5226_vm0, %v5227_v13 }
0x12bc   :  { %v1698_v58 = vsel %vm367_vm6, %v5943_v43, %v1696_v44  ;;  %4758 = vmatprep.subr.bf16.mxu0 %v5224_v3 }
0x12bd   :  { %4241 = vmatmul.mubr.msk.f32.vlgmr.msra.gmra.mrb[16].mxu1 %vm375_vm7, %v1698_v58 }
0x12be   :  { %4775 = vmatpush3.bf16.msra.mxu1 %v5450_v16  ;;  %4294 = vmatprep.mubr.msk.f32.mxu1 %vm5226_vm0, %v5227_v13 }
0x12bf   :  { %4760 = vmatpush3.bf16.msra.mxu0 %v5460_v22  ;;  %4776 = vmatprep.subr.bf16.mxu1 %v5224_v3 }
0x12c0   :  { %4761 = vmatprep.subr.bf16.mxu0 %v5224_v3 }
0x12c2   :  { %4778 = vmatpush3.bf16.msra.mxu1 %v5464_v23 }
0x12c3   :  { %4763 = vmatpush3.bf16.msra.mxu0 %v5481_v29  ;;  %4779 = vmatprep.subr.bf16.mxu1 %v5224_v3 }
0x12c4   :  { %4764 = vmatprep.subr.bf16.mxu0 %v5224_v3 }
0x12c6   :  { %4781 = vmatpush3.bf16.msra.mxu1 %v5485_v30 }
0x12c7   :  { %4766 = vmatpush3.bf16.msra.mxu0 %v5501_v35  ;;  %4782 = vmatprep.subr.bf16.mxu1 %v5224_v3 }
0x12c8   :  { %4767 = vmatprep.subr.bf16.mxu0 %v5224_v3 }
0x12ca   :  { %4784 = vmatpush3.bf16.msra.mxu1 %v5505_v37 }
0x12cb   :  { %4769 = vmatpush3.bf16.msra.mxu0 %v5515_v41  ;;  %4785 = vmatprep.subr.bf16.mxu1 %v5224_v3 }
0x12cc   :  { %4770 = vmatprep.subr.bf16.mxu0 %v5224_v3 }
0x12ce   :  { %4787 = vmatpush3.bf16.msra.mxu1 %v5531_v45 }
0x12cf   :  { %4772 = vmatpush3.bf16.msra.mxu0 %v5536_v47  ;;  %4788 = vmatprep.subr.bf16.mxu1 %v5224_v3 }
0x12d0   :  { %4791 = vmatprep.subr.bf16.mxu0 %v5224_v3 }
0x12d2   :  { %4790 = vmatpush3.bf16.msra.mxu1 %v5547_v50 }
0x12d3   :  { %4803 = vmatprep.subr.bf16.mxu1 %v5224_v3 }
0x138d   :  { %v1667_v2 = vpop.f32.mrb[12].mxu0 }
0x138e   :  { %v1668_v48 = vadd.f32 %v5589_v1, %v1667_v2  ;;  %v4215_v20 = vpop.f32.mrb[13].mxu0 }
0x1390   :  { %5065 = vtanh.f32 %v1668_v48  ;;  %v1768_v55 = vpop.f32.mrb[16].mxu1  ;;  %v3598_v62 = vmul.f32 -1.442695, %v1668_v48 }
0x1391   :  { %v1769_v25 = vadd.f32 %v5595_v9, %v1768_v55  ;;  %v4242_v27 = vpop.f32.mrb[17].mxu1 }
0x1393   :  { %5067 = vtanh.f32 %v1769_v25  ;;  %v3600_v0 = vmul.f32 -1.442695, %v1769_v25  ;;  %v6027_v25 = vld [vmem:[%s6400_s8] ss:$0 sm:$0xff] }
0x1394   :  { %5069 = vpow2.f32 %v3598_v62  ;;  %v6033_v62 = vld [vmem:[%s6402_s10] ss:$0 sm:$0xff] }
0x1395   :  { %5071 = vpow2.f32 %v3600_v0 }
0x139a   :  { %v5066_v60 = vpop.eup %5065 }
0x139b   :  { %1680 = vrot.lane.b32.xlu0 %v5066_v60, %s5229_s27 }
0x139d   :  { %v5068_v56 = vpop.eup %5067 }
0x139e   :  { %1781 = vrot.lane.b32.xlu1 %v5068_v56, %s5229_s27  ;;  %v5070_v5 = vpop.eup %5069 }
0x139f   :  { %v5072_v6 = vpop.eup %5071  ;;  %v1674_v1 = vadd.f32 1.0, %v5070_v5 }
0x13a0   :  { %v1775_v63 = vadd.f32 1.0, %v5072_v6 }
0x13a1   :  { %5073 = vrcp.f32 %v1674_v1 }
0x13a2   :  { %5075 = vrcp.f32 %v1775_v63 }
0x13ab   :  { %v5074_v15 = vpop.eup %5073 }
0x13ac   :  { %v5076_v59 = vpop.eup %5075  ;;  %v1678_v28 = vmul.f32 %v5074_v15, %v5782_v49 }
0x13ad   :  { %v1779_v10 = vmul.f32 %v5076_v59, %v5786_v53 }
0x140d   :  { %v1681_v9 = vpop.permute.xlu0 %1680 }
0x140e   :  { %v1683_v18 = vmul.f32 %v5074_v15, %v1681_v9 }
0x1410   :  { %v1782_v57 = vpop.permute.xlu1 %1781  ;;  %1685 = vrot.lane.b32.xlu0 %v1683_v18, %s5228_s18 }
0x1411   :  { %v1784_v39 = vmul.f32 %v5076_v59, %v1782_v57 }
0x1413   :  { %1786 = vrot.lane.b32.xlu1 %v1784_v39, %s5228_s18 }
0x1482   :  { %v1686_v31 = vpop.permute.xlu0 %1685 }
0x1483   :  { %v5983_v54 = vadd.f32 %v1686_v31, %v1678_v28 }
0x1485   :  { %5077 = vtanh.f32 %v5983_v54  ;;  %v1787_v34 = vpop.permute.xlu1 %1786 }
0x1486   :  { %v5987_v36 = vadd.f32 %v1787_v34, %v1779_v10 }
0x1488   :  { %5079 = vtanh.f32 %v5987_v36 }
0x148f   :  { %v5078_v38 = vpop.eup %5077 }
0x1490   :  { %1691 = vrot.lane.b32.xlu0 %v5078_v38, %s5229_s27 }
0x1492   :  { %v5080_v26 = vpop.eup %5079 }
0x1493   :  { %1792 = vrot.lane.b32.xlu1 %v5080_v26, %s5229_s27 }
0x1502   :  { %v1692_v44 = vpop.permute.xlu0 %1691 }
0x1503   :  { %v1694_v49 = vmul.f32 %v5074_v15, %v1692_v44 }
0x1505   :  { %v1793_v58 = vpop.permute.xlu1 %1792  ;;  %1797 = vrot.lane.b32.xlu0 %v1694_v49, %s5231_s25 }
0x1506   :  { %v1795_v2 = vmul.f32 %v5076_v59, %v1793_v58 }
0x1508   :  { %1899 = vrot.lane.b32.xlu1 %v1795_v2, %s5231_s25 }
0x1577   :  { %v1798_v53 = vpop.permute.xlu0 %1797 }
0x1578   :  { %v1800_v48 = vsel %vm367_vm6, %v5943_v43, %v1798_v53 }
0x1579   :  { %4268 = vmatmul.mubr.msk.f32.vlgmr.msra.gmra.mrb[14].mxu0 %vm375_vm7, %v1800_v48 }
0x157a   :  { %v1900_v20 = vpop.permute.xlu1 %1899  ;;  %4793 = vmatpush3.bf16.msra.mxu0 %v5625_v61  ;;  %4313 = vmatprep.mubr.msk.f32.mxu0 %vm5226_vm0, %v5227_v13 }
0x157b   :  { %v1902_v55 = vsel %vm367_vm6, %v5937_v42, %v1900_v20  ;;  %4794 = vmatprep.subr.bf16.mxu0 %v5224_v3  ;;  %v6017_v42 = vld [vmem:[%s6395_s3 + $0x20] sm:$0xf] }
0x157c   :  { %4295 = vmatmul.mubr.msk.f32.vlgmr.msra.gmra.mrb[18].mxu1 %vm375_vm7, %v1902_v55 }
0x157d   :  { %4805 = vmatpush3.bf16.msra.mxu1 %v5321_v7  ;;  %4326 = vmatprep.mubr.msk.f32.mxu1 %vm5226_vm0, %v5227_v13 }
0x157e   :  { %4796 = vmatpush3.bf16.msra.mxu0 %v5631_v4  ;;  %4806 = vmatprep.subr.bf16.mxu1 %v5224_v3 }
0x157f   :  { %4797 = vmatprep.subr.bf16.mxu0 %v5224_v3 }
0x1581   :  { %4808 = vmatpush3.bf16.msra.mxu1 %v5338_v14 }
0x1582   :  { %4799 = vmatpush3.bf16.msra.mxu0 %v5643_v11  ;;  %4324 = vmatprep.subr.mxu1 %v5227_v13 }
0x1583   :  { %4800 = vmatprep.subr.bf16.mxu0 %v5224_v3 }
0x1585   :  { %4325 = vmatpush3.msk.msra.mxu1 %vm104_vm1, %v6017_v42 }
0x1586   :  { %4802 = vmatpush3.bf16.msra.mxu0 %v5654_v21  ;;  %4815 = vmatprep.subr.bf16.mxu1 %v5224_v3 }
0x1587   :  { %4809 = vmatprep.subr.bf16.mxu0 %v5224_v3 }
0x164c   :  { %v1870_v43 = vpop.f32.mrb[14].mxu0 }
0x164d   :  { %v1871_v27 = vadd.f32 %v6027_v25, %v1870_v43  ;;  %v4269_v60 = vpop.f32.mrb[15].mxu0 }
0x164f   :  { %5081 = vtanh.f32 %v1871_v27  ;;  %v1972_v56 = vpop.f32.mrb[18].mxu1  ;;  %v3602_v63 = vmul.f32 -1.442695, %v1871_v27 }
0x1650   :  { %v1973_v0 = vadd.f32 %v6033_v62, %v1972_v56  ;;  %v4296_v5 = vpop.f32.mrb[19].mxu1 }
0x1652   :  { %5083 = vtanh.f32 %v1973_v0  ;;  %v3604_v15 = vmul.f32 -1.442695, %v1973_v0 }
0x1653   :  { %5085 = vpow2.f32 %v3602_v63 }
0x1654   :  { %5087 = vpow2.f32 %v3604_v15 }
0x1659   :  { %v5082_v6 = vpop.eup %5081 }
0x165a   :  { %1883 = vrot.lane.b32.xlu0 %v5082_v6, %s5229_s27 }
0x165c   :  { %v5084_v1 = vpop.eup %5083 }
0x165d   :  { %1985 = vrot.lane.b32.xlu1 %v5084_v1, %s5229_s27  ;;  %v5086_v9 = vpop.eup %5085 }
0x165e   :  { %v5088_v18 = vpop.eup %5087  ;;  %v1877_v59 = vadd.f32 1.0, %v5086_v9  ;;  %v6096_v9 = vld [vmem:[%s6396_s4] ss:$0 sm:$0xff] }
0x165f   :  { %v1979_v57 = vadd.f32 1.0, %v5088_v18 }
0x1660   :  { %5089 = vrcp.f32 %v1877_v59 }
0x1661   :  { %5091 = vrcp.f32 %v1979_v57 }
0x166a   :  { %v5090_v39 = vpop.eup %5089 }
0x166b   :  { %v5092_v10 = vpop.eup %5091  ;;  %v1881_v26 = vmul.f32 %v5090_v39, %v5983_v54 }
0x166c   :  { %v1983_v58 = vmul.f32 %v5092_v10, %v5987_v36 }
0x16cc   :  { %v1884_v28 = vpop.permute.xlu0 %1883 }
0x16cd   :  { %v1886_v31 = vmul.f32 %v5090_v39, %v1884_v28 }
0x16cf   :  { %v1986_v34 = vpop.permute.xlu1 %1985  ;;  %1888 = vrot.lane.b32.xlu0 %v1886_v31, %s5228_s18 }
0x16d0   :  { %v1988_v38 = vmul.f32 %v5092_v10, %v1986_v34 }
0x16d2   :  { %1990 = vrot.lane.b32.xlu1 %v1988_v38, %s5228_s18 }
0x1741   :  { %v1889_v44 = vpop.permute.xlu0 %1888 }
0x1742   :  { %v6041_v49 = vadd.f32 %v1889_v44, %v1881_v26 }
0x1744   :  { %5093 = vtanh.f32 %v6041_v49  ;;  %v1991_v2 = vpop.permute.xlu1 %1990 }
0x1745   :  { %v6045_v53 = vadd.f32 %v1991_v2, %v1983_v58 }
0x1747   :  { %5095 = vtanh.f32 %v6045_v53 }
0x174e   :  { %v5094_v48 = vpop.eup %5093 }
0x174f   :  { %1894 = vrot.lane.b32.xlu0 %v5094_v48, %s5229_s27 }
0x1751   :  { %v5096_v20 = vpop.eup %5095 }
0x1752   :  { %1996 = vrot.lane.b32.xlu1 %v5096_v20, %s5229_s27 }
0x17c1   :  { %v1895_v55 = vpop.permute.xlu0 %1894 }
0x17c2   :  { %v6050_v54 = vmul.f32 %v5090_v39, %v1895_v55 }
0x17c4   :  { %v1997_v43 = vpop.permute.xlu1 %1996  ;;  %2001 = vrot.lane.b32.xlu0 %v6050_v54, %s5228_s18 }
0x17c5   :  { %v6054_v36 = vmul.f32 %v5092_v10, %v1997_v43 }
0x17c7   :  { %2005 = vrot.lane.b32.xlu1 %v6054_v36, %s5229_s27 }
0x17c8   :  { %2082 = vrot.lane.b32.xlu0 %v5917_v24, %s5230_s0  ;;  %v6082_v24 = vld [vmem:[%s6397_s5 + $0x20] sm:$0xf] }
0x17cb   :  { %2183 = vrot.lane.b32.xlu1 %v5930_v32, %s5230_s0 }
0x1836   :  { %v2002_v27 = vpop.permute.xlu0 %2001 }
0x1839   :  { %v2006_v60 = vpop.permute.xlu1 %2005 }
0x183a   :  { %v2008_v56 = vsel %vm335_vm5, %v2002_v27, %v2006_v60  ;;  %v2083_v0 = vpop.permute.xlu0 %2082 }
0x183b   :  { %v2085_v5 = vsel %vm86_vm2, %v5692_v33, %v2083_v0  ;;  %4314 = vmatmul.mubr.msk.f32.vlgmr.msra.gmra.mrb[16].mxu0 %vm367_vm6, %v2008_v56 }
0x183c   :  { %4327 = vmatmul.mubr.msk.f32.vlgmr.msra.gmra.mrb[20].mxu1 %vm101_vm4, %v2085_v5  ;;  %4811 = vmatpush3.bf16.msra.mxu0 %v5333_v12 }
0x183d   :  { %4812 = vmatprep.subr.bf16.mxu0 %v5224_v3  ;;  %4339 = vmatprep.mubr.msk.f32.mxu0 %vm5226_vm0, %v5227_v13  ;;  %v2184_v15 = vpop.permute.xlu1 %2183 }
0x183e   :  { %4817 = vmatpush3.bf16.msra.mxu1 %v5321_v7  ;;  %4352 = vmatprep.mubr.msk.f32.mxu1 %vm5226_vm0, %v5227_v13 }
0x183f   :  { %4818 = vmatprep.subr.bf16.mxu1 %v5224_v3 }
0x1840   :  { %4814 = vmatpush3.bf16.msra.mxu0 %v5350_v17 }
0x1841   :  { %4337 = vmatprep.subr.mxu0 %v5227_v13 }
0x1842   :  { %4820 = vmatpush3.bf16.msra.mxu1 %v5338_v14 }
0x1843   :  { %4350 = vmatprep.subr.mxu1 %v5227_v13 }
0x1844   :  { %4338 = vmatpush3.msk.msra.mxu0 %vm104_vm1, %v6082_v24 }
0x1845   :  { %4821 = vmatprep.subr.bf16.mxu0 %v5224_v3 }
0x1846   :  { %4351 = vmatpush3.msk.msra.mxu1 %vm104_vm1, %v6017_v42 }
0x1847   :  { %4827 = vmatprep.subr.bf16.mxu1 %v5224_v3 }
0x190e   :  { %v2078_v32 = vpop.f32.mrb[16].mxu0 }
0x190f   :  { %v6091_v6 = vadd.f32 %v5689_v52, %v2078_v32  ;;  %v4315_v1 = vpop.f32.mrb[17].mxu0  ;;  %v2155_v63 = vpop.f32.mrb[20].mxu1 }
0x1910   :  { %v2156_v18 = vadd.f32 %v6096_v9, %v2155_v63  ;;  %v4328_v59 = vpop.f32.mrb[21].mxu1 }
0x1911   :  { %v2186_v57 = vsel %vm86_vm2, %v6091_v6, %v2184_v15 }
0x1912   :  { %5097 = vtanh.f32 %v2156_v18  ;;  %4340 = vmatmul.mubr.msk.f32.vlgmr.msra.gmra.mrb[18].mxu0 %vm101_vm4, %v2186_v57  ;;  %v3608_v39 = vmul.f32 -1.442695, %v2156_v18 }
0x1913   :  { %4823 = vmatpush3.bf16.msra.mxu0 %v5333_v12  ;;  %4365 = vmatprep.mubr.msk.f32.mxu0 %vm5226_vm0, %v5227_v13 }
0x1914   :  { %4824 = vmatprep.subr.bf16.mxu0 %v5224_v3  ;;  %5099 = vpow2.f32 %v3608_v39 }
0x1917   :  { %4826 = vmatpush3.bf16.msra.mxu0 %v5350_v17 }
0x1918   :  { %4363 = vmatprep.subr.mxu0 %v5227_v13 }
0x191b   :  { %4364 = vmatpush3.msk.msra.mxu0 %vm104_vm1, %v6082_v24 }
0x191c   :  { %v5098_v52 = vpop.eup %5097  ;;  %4833 = vmatprep.subr.bf16.mxu0 %v5224_v3 }
0x191d   :  { %2168 = vrot.lane.b32.xlu0 %v5098_v52, %s5229_s27 }
0x191e   :  { %v5100_v28 = vpop.eup %5099 }
0x191f   :  { %v2162_v31 = vadd.f32 1.0, %v5100_v28 }
0x1921   :  { %5101 = vrcp.f32 %v2162_v31 }
0x192b   :  { %v5102_v10 = vpop.eup %5101 }
0x192c   :  { %v2166_v48 = vmul.f32 %v5102_v10, %v5910_v40 }
0x198f   :  { %v2169_v34 = vpop.permute.xlu0 %2168 }
0x1990   :  { %v2171_v38 = vmul.f32 %v5102_v10, %v2169_v34 }
0x1992   :  { %2173 = vrot.lane.b32.xlu0 %v2171_v38, %s5228_s18 }
0x19e5   :  { %v2256_v26 = vpop.f32.mrb[18].mxu0 }
0x19e6   :  { %v2257_v44 = vadd.f32 %v5905_v51, %v2256_v26  ;;  %v4341_v58 = vpop.f32.mrb[19].mxu0 }
0x19e8   :  { %5103 = vtanh.f32 %v2257_v44  ;;  %v3611_v27 = vmul.f32 -1.442695, %v2257_v44 }
0x19f2   :  { %v5104_v2 = vpop.eup %5103 }
0x19f3   :  { %2269 = vrot.lane.b32.xlu1 %v5104_v2, %s5229_s27 }
0x1a04   :  { %v2174_v20 = vpop.permute.xlu0 %2173 }
0x1a05   :  { %v6116_v55 = vadd.f32 %v2174_v20, %v2166_v48 }
0x1a07   :  { %5105 = vtanh.f32 %v6116_v55 }
0x1a08   :  { %5107 = vpow2.f32 %v3611_v27 }
0x1a11   :  { %v5106_v43 = vpop.eup %5105 }
0x1a12   :  { %2179 = vrot.lane.b32.xlu0 %v5106_v43, %s5229_s27  ;;  %v5108_v60 = vpop.eup %5107 }
0x1a13   :  { %v2263_v56 = vadd.f32 1.0, %v5108_v60 }
0x1a15   :  { %5109 = vrcp.f32 %v2263_v56 }
0x1a1f   :  { %v5110_v0 = vpop.eup %5109 }
0x1a20   :  { %v2267_v63 = vmul.f32 %v5110_v0, %v5924_v19 }
0x1a65   :  { %v2270_v5 = vpop.permute.xlu1 %2269 }
0x1a66   :  { %v2272_v32 = vmul.f32 %v5110_v0, %v2270_v5 }
0x1a68   :  { %2274 = vrot.lane.b32.xlu1 %v2272_v32, %s5228_s18 }
0x1a84   :  { %v2180_v1 = vpop.permute.xlu0 %2179 }
0x1a85   :  { %v6121_v40 = vmul.f32 %v5102_v10, %v2180_v1 }
0x1a87   :  { %2285 = vrot.lane.b32.xlu0 %v6121_v40, %s5230_s0 }
0x1ada   :  { %v2275_v15 = vpop.permute.xlu1 %2274 }
0x1adb   :  { %v6126_v18 = vadd.f32 %v2275_v15, %v2267_v63 }
0x1add   :  { %5111 = vtanh.f32 %v6126_v18 }
0x1ae7   :  { %v5112_v59 = vpop.eup %5111 }
0x1ae8   :  { %2280 = vrot.lane.b32.xlu1 %v5112_v59, %s5229_s27 }
0x1af9   :  { %v2286_v57 = vpop.permute.xlu0 %2285 }
0x1afa   :  { %v2288_v52 = vsel %vm86_vm2, %v5827_v46, %v2286_v57 }
0x1afb   :  { %4353 = vmatmul.mubr.msk.f32.vlgmr.msra.gmra.mrb[22].mxu1 %vm101_vm4, %v2288_v52 }
0x1afc   :  { %4829 = vmatpush3.bf16.msra.mxu1 %v5321_v7  ;;  %4378 = vmatprep.mubr.msk.f32.mxu1 %vm5226_vm0, %v5227_v13 }
0x1afd   :  { %4830 = vmatprep.subr.bf16.mxu1 %v5224_v3 }
0x1b00   :  { %4832 = vmatpush3.bf16.msra.mxu1 %v5338_v14 }
0x1b01   :  { %4376 = vmatprep.subr.mxu1 %v5227_v13 }
0x1b04   :  { %4377 = vmatpush3.msk.msra.mxu1 %vm104_vm1, %v6017_v42 }
0x1b05   :  { %4839 = vmatprep.subr.bf16.mxu1 %v5224_v3 }
0x1b5a   :  { %v2281_v19 = vpop.permute.xlu1 %2280 }
0x1b5b   :  { %v6142_v39 = vmul.f32 %v5110_v0, %v2281_v19 }
0x1b5d   :  { %2387 = vrot.lane.b32.xlu1 %v6142_v39, %s5230_s0 }
0x1bce   :  { %v2358_v7 = vpop.f32.mrb[22].mxu1 }
0x1bcf   :  { %v2359_v28 = vadd.f32 %v6096_v9, %v2358_v7  ;;  %v4354_v31 = vpop.f32.mrb[23].mxu1  ;;  %v2388_v10 = vpop.permute.xlu1 %2387 }
0x1bd0   :  { %v2390_v14 = vsel %vm86_vm2, %v5827_v46, %v2388_v10 }
0x1bd1   :  { %5113 = vtanh.f32 %v2359_v28  ;;  %4366 = vmatmul.mubr.msk.f32.vlgmr.msra.gmra.mrb[20].mxu0 %vm101_vm4, %v2390_v14  ;;  %v3614_v34 = vmul.f32 -1.442695, %v2359_v28 }
0x1bd2   :  { %4835 = vmatpush3.bf16.msra.mxu0 %v5333_v12  ;;  %4391 = vmatprep.mubr.msk.f32.mxu0 %vm5226_vm0, %v5227_v13 }
0x1bd3   :  { %4836 = vmatprep.subr.bf16.mxu0 %v5224_v3  ;;  %5115 = vpow2.f32 %v3614_v34 }
0x1bd6   :  { %4838 = vmatpush3.bf16.msra.mxu0 %v5350_v17 }
0x1bd7   :  { %4389 = vmatprep.subr.mxu0 %v5227_v13 }
0x1bda   :  { %4390 = vmatpush3.msk.msra.mxu0 %vm104_vm1, %v6082_v24 }
0x1bdb   :  { %v5114_v42 = vpop.eup %5113  ;;  %4857 = vmatprep.subr.bf16.mxu0 %v5224_v3 }
0x1bdc   :  { %2371 = vrot.lane.b32.xlu0 %v5114_v42, %s5229_s27 }
0x1bdd   :  { %v5116_v12 = vpop.eup %5115 }
0x1bde   :  { %v2365_v38 = vadd.f32 1.0, %v5116_v12 }
0x1be0   :  { %5117 = vrcp.f32 %v2365_v38 }
0x1bea   :  { %v5118_v26 = vpop.eup %5117 }
0x1beb   :  { %v2369_v20 = vmul.f32 %v5118_v26, %v6116_v55 }
0x1c4e   :  { %v2372_v44 = vpop.permute.xlu0 %2371 }
0x1c4f   :  { %v2374_v58 = vmul.f32 %v5118_v26, %v2372_v44 }
0x1c51   :  { %2376 = vrot.lane.b32.xlu0 %v2374_v58, %s5228_s18 }
0x1ca4   :  { %v2460_v17 = vpop.f32.mrb[20].mxu0 }
0x1ca5   :  { %v2461_v2 = vadd.f32 %v5905_v51, %v2460_v17  ;;  %v4367_v48 = vpop.f32.mrb[21].mxu0 }
0x1ca7   :  { %5119 = vtanh.f32 %v2461_v2  ;;  %v3617_v56 = vmul.f32 -1.442695, %v2461_v2 }
0x1cb1   :  { %v5120_v24 = vpop.eup %5119 }
0x1cb2   :  { %2473 = vrot.lane.b32.xlu1 %v5120_v24, %s5229_s27 }
0x1cc3   :  { %v2377_v43 = vpop.permute.xlu0 %2376 }
0x1cc4   :  { %v6164_v27 = vadd.f32 %v2377_v43, %v2369_v20 }
0x1cc6   :  { %5121 = vtanh.f32 %v6164_v27 }
0x1cc7   :  { %5123 = vpow2.f32 %v3617_v56 }
0x1cd0   :  { %v5122_v60 = vpop.eup %5121 }
0x1cd1   :  { %2382 = vrot.lane.b32.xlu0 %v5122_v60, %s5229_s27  ;;  %v5124_v0 = vpop.eup %5123 }
0x1cd2   :  { %v2467_v5 = vadd.f32 1.0, %v5124_v0 }
0x1cd4   :  { %5125 = vrcp.f32 %v2467_v5 }
0x1cde   :  { %v5126_v32 = vpop.eup %5125 }
0x1cdf   :  { %v2471_v59 = vmul.f32 %v5126_v32, %v6126_v18 }
0x1d24   :  { %v2474_v1 = vpop.permute.xlu1 %2473 }
0x1d25   :  { %v2476_v63 = vmul.f32 %v5126_v32, %v2474_v1 }
0x1d27   :  { %2478 = vrot.lane.b32.xlu1 %v2476_v63, %s5228_s18 }
0x1d43   :  { %v2383_v15 = vpop.permute.xlu0 %2382 }
0x1d44   :  { %v6169_v55 = vmul.f32 %v5118_v26, %v2383_v15 }
0x1d46   :  { %2489 = vrot.lane.b32.xlu0 %v6169_v55, %s5230_s0 }
0x1d99   :  { %v2479_v57 = vpop.permute.xlu1 %2478 }
0x1d9a   :  { %v6174_v52 = vadd.f32 %v2479_v57, %v2471_v59 }
0x1d9c   :  { %5127 = vtanh.f32 %v6174_v52 }
0x1da6   :  { %v5128_v19 = vpop.eup %5127 }
0x1da7   :  { %2484 = vrot.lane.b32.xlu1 %v5128_v19, %s5229_s27 }
0x1db8   :  { %v2490_v7 = vpop.permute.xlu0 %2489 }
0x1db9   :  { %v2492_v28 = vsel %vm86_vm2, %v6091_v6, %v2490_v7 }
0x1dba   :  { %4379 = vmatmul.mubr.msk.f32.vlgmr.msra.gmra.mrb[24].mxu1 %vm101_vm4, %v2492_v28 }
0x1dbb   :  { %4841 = vmatpush3.bf16.msra.mxu1 %v5439_v8  ;;  %4418 = vmatprep.mubr.msk.f32.mxu1 %vm5226_vm0, %v5227_v13 }
0x1dbc   :  { %4842 = vmatprep.subr.bf16.mxu1 %v5224_v3 }
0x1dbf   :  { %4844 = vmatpush3.bf16.msra.mxu1 %v5460_v22 }
0x1dc0   :  { %4845 = vmatprep.subr.bf16.mxu1 %v5224_v3 }
0x1dc3   :  { %4847 = vmatpush3.bf16.msra.mxu1 %v5481_v29 }
0x1dc4   :  { %4848 = vmatprep.subr.bf16.mxu1 %v5224_v3 }
0x1dc7   :  { %4850 = vmatpush3.bf16.msra.mxu1 %v5501_v35 }
0x1dc8   :  { %4851 = vmatprep.subr.bf16.mxu1 %v5224_v3 }
0x1dcb   :  { %4853 = vmatpush3.bf16.msra.mxu1 %v5515_v41 }
0x1dcc   :  { %4854 = vmatprep.subr.bf16.mxu1 %v5224_v3 }
0x1dcf   :  { %4856 = vmatpush3.bf16.msra.mxu1 %v5536_v47 }
0x1dd0   :  { %4875 = vmatprep.subr.bf16.mxu1 %v5224_v3 }
0x1e19   :  { %v2485_v18 = vpop.permute.xlu1 %2484 }
0x1e1a   :  { %v6195_v31 = vmul.f32 %v5126_v32, %v2485_v18 }
0x1e1c   :  { %2591 = vrot.lane.b32.xlu1 %v6195_v31, %s5230_s0 }
0x1e8d   :  { %v2562_v10 = vpop.f32.mrb[24].mxu1 }
0x1e8e   :  { %v2563_v14 = vadd.f32 %v6096_v9, %v2562_v10  ;;  %v4380_v42 = vpop.f32.mrb[25].mxu1  ;;  %v2592_v34 = vpop.permute.xlu1 %2591 }
0x1e8f   :  { %v2594_v12 = vsel %vm86_vm2, %v5692_v33, %v2592_v34 }
0x1e90   :  { %5129 = vtanh.f32 %v2563_v14  ;;  %4392 = vmatmul.mubr.msk.f32.vlgmr.msra.gmra.mrb[22].mxu0 %vm101_vm4, %v2594_v12  ;;  %v3620_v38 = vmul.f32 -1.442695, %v2563_v14 }
0x1e91   :  { %4859 = vmatpush3.bf16.msra.mxu0 %v5450_v16  ;;  %4445 = vmatprep.mubr.msk.f32.mxu0 %vm5226_vm0, %v5227_v13 }
0x1e92   :  { %4860 = vmatprep.subr.bf16.mxu0 %v5224_v3  ;;  %5131 = vpow2.f32 %v3620_v38 }
0x1e95   :  { %4862 = vmatpush3.bf16.msra.mxu0 %v5464_v23 }
0x1e96   :  { %4863 = vmatprep.subr.bf16.mxu0 %v5224_v3 }
0x1e99   :  { %4865 = vmatpush3.bf16.msra.mxu0 %v5485_v30 }
0x1e9a   :  { %v5130_v9 = vpop.eup %5129  ;;  %4866 = vmatprep.subr.bf16.mxu0 %v5224_v3 }
0x1e9b   :  { %2575 = vrot.lane.b32.xlu0 %v5130_v9, %s5229_s27 }
0x1e9c   :  { %v5132_v26 = vpop.eup %5131 }
0x1e9d   :  { %4868 = vmatpush3.bf16.msra.mxu0 %v5505_v37  ;;  %v2569_v44 = vadd.f32 1.0, %v5132_v26 }
0x1e9e   :  { %4869 = vmatprep.subr.bf16.mxu0 %v5224_v3 }
0x1e9f   :  { %5133 = vrcp.f32 %v2569_v44 }
0x1ea1   :  { %4871 = vmatpush3.bf16.msra.mxu0 %v5531_v45 }
0x1ea2   :  { %4872 = vmatprep.subr.bf16.mxu0 %v5224_v3 }
0x1ea5   :  { %4874 = vmatpush3.bf16.msra.mxu0 %v5547_v50 }
0x1ea6   :  { %4893 = vmatprep.subr.bf16.mxu0 %v5224_v3 }
0x1ea9   :  { %v5134_v58 = vpop.eup %5133 }
0x1eaa   :  { %v2573_v60 = vmul.f32 %v5134_v58, %v6164_v27 }
0x1f0d   :  { %v2576_v17 = vpop.permute.xlu0 %2575 }
0x1f0e   :  { %v2578_v2 = vmul.f32 %v5134_v58, %v2576_v17 }
0x1f10   :  { %2580 = vrot.lane.b32.xlu0 %v2578_v2, %s5228_s18 }
0x1f63   :  { %v2664_v48 = vpop.f32.mrb[22].mxu0 }
0x1f64   :  { %v2665_v24 = vadd.f32 %v5905_v51, %v2664_v48  ;;  %v4393_v20 = vpop.f32.mrb[23].mxu0 }
0x1f66   :  { %5135 = vtanh.f32 %v2665_v24  ;;  %v3623_v32 = vmul.f32 -1.442695, %v2665_v24 }
0x1f70   :  { %v5136_v43 = vpop.eup %5135 }
0x1f71   :  { %2677 = vrot.lane.b32.xlu1 %v5136_v43, %s5229_s27 }
0x1f82   :  { %v2581_v56 = vpop.permute.xlu0 %2580 }
0x1f83   :  { %v2583_v0 = vadd.f32 %v2581_v56, %v2573_v60 }
0x1f85   :  { %5137 = vtanh.f32 %v2583_v0 }
0x1f86   :  { %5139 = vpow2.f32 %v3623_v32 }
0x1f8f   :  { %v5138_v5 = vpop.eup %5137 }
0x1f90   :  { %2586 = vrot.lane.b32.xlu0 %v5138_v5, %s5229_s27  ;;  %v5140_v1 = vpop.eup %5139 }
0x1f91   :  { %v2671_v51 = vadd.f32 1.0, %v5140_v1 }
0x1f93   :  { %5141 = vrcp.f32 %v2671_v51 }
0x1f94   :  { %2692 = vrot.lane.b32.xlu0 %v6121_v40, %s5228_s18 }
0x1f9d   :  { %v5142_v63 = vpop.eup %5141 }
0x1f9e   :  { %v2675_v19 = vmul.f32 %v5142_v63, %v6174_v52 }
0x1fe3   :  { %v2678_v15 = vpop.permute.xlu1 %2677 }
0x1fe4   :  { %v2680_v59 = vmul.f32 %v5142_v63, %v2678_v15 }
0x1fe6   :  { %2682 = vrot.lane.b32.xlu1 %v2680_v59, %s5228_s18 }
0x2002   :  { %v2587_v27 = vpop.permute.xlu0 %2586 }
0x2003   :  { %v2589_v57 = vmul.f32 %v5134_v58, %v2587_v27 }
0x2005   :  { %2708 = vrot.lane.b32.xlu0 %v2589_v57, %s5228_s18 }
0x2006   :  { %v2693_v14 = vpop.permute.xlu0 %2692 }
0x2009   :  { %2715 = vrot.lane.b32.xlu0 %v6050_v54, %s5231_s25 }
0x2058   :  { %v2683_v40 = vpop.permute.xlu1 %2682 }
0x2059   :  { %v2685_v7 = vadd.f32 %v2683_v40, %v2675_v19 }
0x205b   :  { %5143 = vtanh.f32 %v2685_v7 }
0x2065   :  { %v5144_v28 = vpop.eup %5143 }
0x2066   :  { %2688 = vrot.lane.b32.xlu1 %v5144_v28, %s5229_s27 }
0x206a   :  { %2711 = vrot.lane.b32.xlu1 %v6142_v39, %s5229_s27 }
0x2077   :  { %v2709_v54 = vpop.permute.xlu0 %2708 }
0x207b   :  { %v2716_v34 = vpop.permute.xlu0 %2715 }
0x20d8   :  { %v2689_v18 = vpop.permute.xlu1 %2688 }
0x20d9   :  { %v2691_v10 = vmul.f32 %v5142_v63, %v2689_v18 }
0x20db   :  { %2696 = vrot.lane.b32.xlu1 %v2691_v10, %s5229_s27 }
0x20dc   :  { %v2712_v42 = vpop.permute.xlu1 %2711 }
0x20dd   :  { %v6243_v39 = vsel %vm335_vm5, %v2709_v54, %v2712_v42 }
0x20df   :  { %2816 = vrot.lane.b32.xlu1 %v6054_v36, %s5231_s25 }
0x214d   :  { %v2697_v52 = vpop.permute.xlu1 %2696 }
0x214e   :  { %v6237_v12 = vsel %vm335_vm5, %v2693_v14, %v2697_v52 }
0x214f   :  { %v2718_v9 = vsel %vm367_vm6, %v6237_v12, %v2716_v34 }
0x2150   :  { %4419 = vmatmul.mubr.msk.f32.vlgmr.msra.gmra.mrb[26].mxu1 %vm375_vm7, %v2718_v9 }
0x2151   :  { %v2817_v38 = vpop.permute.xlu1 %2816  ;;  %4877 = vmatpush3.bf16.msra.mxu1 %v5439_v8  ;;  %4472 = vmatprep.mubr.msk.f32.mxu1 %vm5226_vm0, %v5227_v13 }
0x2152   :  { %v2819_v36 = vsel %vm367_vm6, %v6243_v39, %v2817_v38  ;;  %4878 = vmatprep.subr.bf16.mxu1 %v5224_v3 }
0x2153   :  { %4446 = vmatmul.mubr.msk.f32.vlgmr.msra.gmra.mrb[24].mxu0 %vm375_vm7, %v2819_v36 }
0x2154   :  { %4895 = vmatpush3.bf16.msra.mxu0 %v5450_v16  ;;  %4499 = vmatprep.mubr.msk.f32.mxu0 %vm5226_vm0, %v5227_v13 }
0x2155   :  { %4880 = vmatpush3.bf16.msra.mxu1 %v5460_v22  ;;  %4896 = vmatprep.subr.bf16.mxu0 %v5224_v3 }
0x2156   :  { %4881 = vmatprep.subr.bf16.mxu1 %v5224_v3 }
0x2158   :  { %4898 = vmatpush3.bf16.msra.mxu0 %v5464_v23 }
0x2159   :  { %4883 = vmatpush3.bf16.msra.mxu1 %v5481_v29  ;;  %4899 = vmatprep.subr.bf16.mxu0 %v5224_v3 }
0x215a   :  { %4884 = vmatprep.subr.bf16.mxu1 %v5224_v3 }
0x215c   :  { %4901 = vmatpush3.bf16.msra.mxu0 %v5485_v30 }
0x215d   :  { %4886 = vmatpush3.bf16.msra.mxu1 %v5501_v35  ;;  %4902 = vmatprep.subr.bf16.mxu0 %v5224_v3 }
0x215e   :  { %4887 = vmatprep.subr.bf16.mxu1 %v5224_v3 }
0x2160   :  { %4904 = vmatpush3.bf16.msra.mxu0 %v5505_v37 }
0x2161   :  { %4889 = vmatpush3.bf16.msra.mxu1 %v5515_v41  ;;  %4905 = vmatprep.subr.bf16.mxu0 %v5224_v3 }
0x2162   :  { %4890 = vmatprep.subr.bf16.mxu1 %v5224_v3 }
0x2164   :  { %4907 = vmatpush3.bf16.msra.mxu0 %v5531_v45 }
0x2165   :  { %4892 = vmatpush3.bf16.msra.mxu1 %v5536_v47  ;;  %4908 = vmatprep.subr.bf16.mxu0 %v5224_v3 }
0x2166   :  { %4911 = vmatprep.subr.bf16.mxu1 %v5224_v3 }
0x2168   :  { %4910 = vmatpush3.bf16.msra.mxu0 %v5547_v50 }
0x2169   :  { %4929 = vmatprep.subr.bf16.mxu0 %v5224_v3 }
0x2223   :  { %v2788_v26 = vpop.f32.mrb[26].mxu1 }
0x2224   :  { %v2789_v44 = vadd.f32 %v6027_v25, %v2788_v26  ;;  %v4420_v58 = vpop.f32.mrb[27].mxu1 }
0x2226   :  { %5145 = vtanh.f32 %v2789_v44  ;;  %v2889_v17 = vpop.f32.mrb[24].mxu0  ;;  %v3625_v43 = vmul.f32 -1.442695, %v2789_v44 }
0x2227   :  { %v2890_v2 = vadd.f32 %v6033_v62, %v2889_v17  ;;  %v4447_v48 = vpop.f32.mrb[25].mxu0 }
0x2229   :  { %5147 = vtanh.f32 %v2890_v2  ;;  %v3627_v60 = vmul.f32 -1.442695, %v2890_v2 }
0x222a   :  { %5149 = vpow2.f32 %v3625_v43 }
0x222b   :  { %5151 = vpow2.f32 %v3627_v60 }
0x2230   :  { %v5146_v24 = vpop.eup %5145 }
0x2231   :  { %2801 = vrot.lane.b32.xlu0 %v5146_v24, %s5229_s27 }
0x2233   :  { %v5148_v20 = vpop.eup %5147 }
0x2234   :  { %2902 = vrot.lane.b32.xlu1 %v5148_v20, %s5229_s27  ;;  %v5150_v56 = vpop.eup %5149 }
0x2235   :  { %v5152_v0 = vpop.eup %5151  ;;  %v2795_v5 = vadd.f32 1.0, %v5150_v56 }
0x2236   :  { %v2896_v32 = vadd.f32 1.0, %v5152_v0 }
0x2237   :  { %5153 = vrcp.f32 %v2795_v5 }
0x2238   :  { %5155 = vrcp.f32 %v2896_v32 }
0x2241   :  { %v5154_v1 = vpop.eup %5153 }
0x2242   :  { %v5156_v15 = vpop.eup %5155  ;;  %v2799_v57 = vmul.f32 %v5154_v1, %v6041_v49 }
0x2243   :  { %v2900_v7 = vmul.f32 %v5156_v15, %v6045_v53 }
0x22a3   :  { %v2802_v51 = vpop.permute.xlu0 %2801 }
0x22a4   :  { %v2804_v63 = vmul.f32 %v5154_v1, %v2802_v51 }
0x22a6   :  { %2806 = vrot.lane.b32.xlu0 %v2804_v63, %s5228_s18  ;;  %v2903_v59 = vpop.permute.xlu1 %2902 }
0x22a7   :  { %v2905_v27 = vmul.f32 %v5156_v15, %v2903_v59 }
0x22a9   :  { %2907 = vrot.lane.b32.xlu1 %v2905_v27, %s5228_s18 }
0x2318   :  { %v2807_v19 = vpop.permute.xlu0 %2806 }
0x2319   :  { %v6283_v40 = vadd.f32 %v2807_v19, %v2799_v57 }
0x231b   :  { %5157 = vtanh.f32 %v6283_v40  ;;  %v2908_v28 = vpop.permute.xlu1 %2907 }
0x231c   :  { %v6287_v18 = vadd.f32 %v2908_v28, %v2900_v7 }
0x231e   :  { %5159 = vtanh.f32 %v6287_v18 }
0x2325   :  { %v5158_v10 = vpop.eup %5157 }
0x2326   :  { %2812 = vrot.lane.b32.xlu0 %v5158_v10, %s5229_s27 }
0x2328   :  { %v5160_v14 = vpop.eup %5159 }
0x2329   :  { %2913 = vrot.lane.b32.xlu1 %v5160_v14, %s5229_s27 }
0x232a   :  { %2700 = vrot.lane.b32.xlu0 %v6169_v55, %s5228_s18 }
0x232d   :  { %2703 = vrot.lane.b32.xlu1 %v6195_v31, %s5229_s27 }
0x2398   :  { %v2813_v49 = vpop.permute.xlu0 %2812 }
0x2399   :  { %v2815_v53 = vmul.f32 %v5154_v1, %v2813_v49 }
0x239b   :  { %2918 = vrot.lane.b32.xlu0 %v2815_v53, %s5231_s25  ;;  %v2914_v54 = vpop.permute.xlu1 %2913 }
0x239c   :  { %v2916_v42 = vmul.f32 %v5156_v15, %v2914_v54  ;;  %v2701_v52 = vpop.permute.xlu0 %2700 }
0x239e   :  { %3020 = vrot.lane.b32.xlu1 %v2916_v42, %s5231_s25 }
0x239f   :  { %v2704_v34 = vpop.permute.xlu1 %2703 }
0x23a0   :  { %v2706_v9 = vsel %vm335_vm5, %v2701_v52, %v2704_v34 }
0x240d   :  { %v2919_v38 = vpop.permute.xlu0 %2918 }
0x240e   :  { %v2921_v36 = vsel %vm367_vm6, %v2706_v9, %v2919_v38 }
0x240f   :  { %4473 = vmatmul.mubr.msk.f32.vlgmr.msra.gmra.mrb[28].mxu1 %vm375_vm7, %v2921_v36 }
0x2410   :  { %v3021_v55 = vpop.permute.xlu1 %3020  ;;  %4913 = vmatpush3.bf16.msra.mxu1 %v5439_v8  ;;  %4526 = vmatprep.mubr.msk.f32.mxu1 %vm5226_vm0, %v5227_v13 }
0x2411   :  { %v3023_v31 = vsel %vm367_vm6, %v2706_v9, %v3021_v55  ;;  %4914 = vmatprep.subr.bf16.mxu1 %v5224_v3 }
0x2412   :  { %4500 = vmatmul.mubr.msk.f32.vlgmr.msra.gmra.mrb[26].mxu0 %vm375_vm7, %v3023_v31 }
0x2413   :  { %4931 = vmatpush3.bf16.msra.mxu0 %v5450_v16  ;;  %4553 = vmatprep.mubr.msk.f32.mxu0 %vm5226_vm0, %v5227_v13 }
0x2414   :  { %4916 = vmatpush3.bf16.msra.mxu1 %v5460_v22  ;;  %4932 = vmatprep.subr.bf16.mxu0 %v5224_v3 }
0x2415   :  { %4917 = vmatprep.subr.bf16.mxu1 %v5224_v3 }
0x2417   :  { %4934 = vmatpush3.bf16.msra.mxu0 %v5464_v23 }
0x2418   :  { %4919 = vmatpush3.bf16.msra.mxu1 %v5481_v29  ;;  %4935 = vmatprep.subr.bf16.mxu0 %v5224_v3 }
0x2419   :  { %4920 = vmatprep.subr.bf16.mxu1 %v5224_v3 }
0x241b   :  { %4937 = vmatpush3.bf16.msra.mxu0 %v5485_v30 }
0x241c   :  { %4922 = vmatpush3.bf16.msra.mxu1 %v5501_v35  ;;  %4938 = vmatprep.subr.bf16.mxu0 %v5224_v3 }
0x241d   :  { %4923 = vmatprep.subr.bf16.mxu1 %v5224_v3 }
0x241f   :  { %4940 = vmatpush3.bf16.msra.mxu0 %v5505_v37 }
0x2420   :  { %4925 = vmatpush3.bf16.msra.mxu1 %v5515_v41  ;;  %4941 = vmatprep.subr.bf16.mxu0 %v5224_v3 }
0x2421   :  { %4926 = vmatprep.subr.bf16.mxu1 %v5224_v3 }
0x2423   :  { %4943 = vmatpush3.bf16.msra.mxu0 %v5531_v45 }
0x2424   :  { %4928 = vmatpush3.bf16.msra.mxu1 %v5536_v47  ;;  %4944 = vmatprep.subr.bf16.mxu0 %v5224_v3 }
0x2425   :  { %4947 = vmatprep.subr.bf16.mxu1 %v5224_v3 }
0x2427   :  { %4946 = vmatpush3.bf16.msra.mxu0 %v5547_v50 }
0x24e2   :  { %v2991_v8 = vpop.f32.mrb[28].mxu1 }
0x24e3   :  { %v2992_v16 = vadd.f32 %v6027_v25, %v2991_v8  ;;  %v4474_v22 = vpop.f32.mrb[29].mxu1 }
0x24e5   :  { %5161 = vtanh.f32 %v2992_v16  ;;  %v3093_v23 = vpop.f32.mrb[26].mxu0  ;;  %v3629_v41 = vmul.f32 -1.442695, %v2992_v16 }
0x24e6   :  { %v3094_v29 = vadd.f32 %v6033_v62, %v3093_v23  ;;  %v4501_v30 = vpop.f32.mrb[27].mxu0 }
0x24e8   :  { %5163 = vtanh.f32 %v3094_v29  ;;  %v3631_v45 = vmul.f32 -1.442695, %v3094_v29 }
0x24e9   :  { %5165 = vpow2.f32 %v3629_v41 }
0x24ea   :  { %5167 = vpow2.f32 %v3631_v45 }
0x24ef   :  { %v5162_v35 = vpop.eup %5161 }
0x24f0   :  { %3004 = vrot.lane.b32.xlu0 %v5162_v35, %s5229_s27 }
0x24f2   :  { %v5164_v37 = vpop.eup %5163 }
0x24f3   :  { %3106 = vrot.lane.b32.xlu1 %v5164_v37, %s5229_s27  ;;  %v5166_v47 = vpop.eup %5165 }
0x24f4   :  { %v5168_v50 = vpop.eup %5167  ;;  %v2998_v26 = vadd.f32 1.0, %v5166_v47  ;;  %v5232_v47 = vmov 1966171168  }
0x24f5   :  { %v3100_v44 = vadd.f32 1.0, %v5168_v50  ;;  %v3409_v50 = vunpack.c.l.s4 %v5232_v47 }
0x24f6   :  { %5169 = vrcp.f32 %v2998_v26  ;;  %v3411_v26 = vlaneseq }
0x24f7   :  { %5171 = vrcp.f32 %v3100_v44  ;;  %v3410_v44 = vunpack.c.0.s8 %v3409_v50 }
0x2500   :  { %v5170_v58 = vpop.eup %5169 }
0x2501   :  { %v5172_v48 = vpop.eup %5171  ;;  %v3002_v43 = vmul.f32 %v5170_v58, %v6283_v40 }
0x2502   :  { %v3104_v0 = vmul.f32 %v5172_v48, %v6287_v18 }
0x2562   :  { %v3005_v17 = vpop.permute.xlu0 %3004 }
0x2563   :  { %v3007_v2 = vmul.f32 %v5170_v58, %v3005_v17 }
0x2565   :  { %3009 = vrot.lane.b32.xlu0 %v3007_v2, %s5228_s18  ;;  %v3107_v24 = vpop.permute.xlu1 %3106 }
0x2566   :  { %v3109_v20 = vmul.f32 %v5172_v48, %v3107_v24 }
0x2568   :  { %3111 = vrot.lane.b32.xlu1 %v3109_v20, %s5228_s18 }
0x25d7   :  { %v3010_v60 = vpop.permute.xlu0 %3009 }
0x25d8   :  { %v3012_v56 = vadd.f32 %v3010_v60, %v3002_v43 }
0x25da   :  { %5173 = vtanh.f32 %v3012_v56  ;;  %v3112_v5 = vpop.permute.xlu1 %3111 }
0x25db   :  { %v3114_v32 = vadd.f32 %v3112_v5, %v3104_v0 }
0x25dd   :  { %5175 = vtanh.f32 %v3114_v32 }
0x25e4   :  { %v5174_v1 = vpop.eup %5173 }
0x25e5   :  { %3015 = vrot.lane.b32.xlu0 %v5174_v1, %s5229_s27  ;;  %v5199_v1 = vld [vmem:[%s6404_s12] ss:$0 sm:$0xff]  ;;  %s5233_s12 = smov [#allocation2]  }
0x25e6   :  { %s3547_s7 = sshll.u32 %s5233_s12, 4  ;;  %s3548_s7 = int_to_ptr.vmem [resolvable:$true] %s3547_s7 }
0x25e7   :  { %v5176_v51 = vpop.eup %5175  ;;  %s5200_s16 = scalar_lea.vmem %s3548_s7, 128  ;;  %p5205_p1 = scmp.lt.s32.totalorder %s3548_s7, %s3548_s7 }
0x25e8   :  { %3117 = vrot.lane.b32.xlu1 %v5176_v51, %s5229_s27  ;;  %p5201_p0 = scmp.ne.s32.totalorder %s3548_s7, %s5200_s16  ;;  %p5206_p2 = scmp.lt.s32.totalorder %s5200_s16, %s5200_s16 }
0x25ea   :  { %p5207_p3 = por %p5206_p2, %p5205_p1 }
0x25ec   :  { %p5208_p4 = pnand %p5207_p3, %p5201_p0 }
0x2657   :  { %v3016_v63 = vpop.permute.xlu0 %3015 }
0x2658   :  { %v3018_v15 = vmul.f32 %v5170_v58, %v3016_v63  ;;  %v3412_v58 = vshrl.u32 %v3411_v26, 7 }
0x265a   :  { %3122 = vrot.lane.b32.xlu0 %v3018_v15, %s5231_s25  ;;  %v3118_v59 = vpop.permute.xlu1 %3117  ;;  %v3413_v17 = vsub.s32 %v3410_v44, %v3412_v58 }
0x265b   :  { %v3120_v27 = vmul.f32 %v5172_v48, %v3118_v59 }
0x265c   :  { %v3439_v2 = vrot.slane %v5827_v46, %v3413_v17  ;;  %v3462_v48 = vrot.slane %v6091_v6, %v3413_v17  ;;  %v3414_v43 = vrot.slane %v5692_v33, %v3413_v17 }
0x265d   :  { %3224 = vrot.lane.b32.xlu1 %v3120_v27, %s5231_s25 }
0x265e   :  { %v3440_v24 = vcombine.high %v3439_v2, %v3439_v2  ;;  %v3463_v20 = vcombine.high %v3462_v48, %v3462_v48  ;;  %v3447_v60 = vrot.slane %v3439_v2, %v3413_v17  ;;  %v3470_v0 = vrot.slane %v3462_v48, %v3413_v17 }
0x265f   :  { %v3415_v59 = vcombine.high %v3414_v43, %v3414_v43 }
0x2660   :  { %v3477_v15 = vrot.slane %v3463_v20, %v3413_v17 }
0x26cc   :  { %v3123_v57 = vpop.permute.xlu0 %3122 }
0x26cd   :  { %v3125_v19 = vsel %vm367_vm6, %v6243_v39, %v3123_v57  ;;  %v3422_v57 = vrot.slane %v3414_v43, %v3413_v17 }
0x26ce   :  { %4527 = vmatmul.mubr.msk.f32.vlgmr.msra.gmra.mrb[30].mxu1 %vm375_vm7, %v3125_v19 }
0x26cf   :  { %v3225_v40 = vpop.permute.xlu1 %3224  ;;  %4949 = vmatpush3.bf16.msra.mxu1 %v5625_v61  ;;  %4572 = vmatprep.mubr.msk.f32.mxu1 %vm5226_vm0, %v5227_v13 }
0x26d0   :  { %v3227_v7 = vsel %vm367_vm6, %v6237_v12, %v3225_v40  ;;  %4950 = vmatprep.subr.bf16.mxu1 %v5224_v3 }
0x26d1   :  { %4554 = vmatmul.mubr.msk.f32.vlgmr.msra.gmra.mrb[28].mxu0 %vm375_vm7, %v3227_v7 }
0x26d3   :  { %4952 = vmatpush3.bf16.msra.mxu1 %v5631_v4 }
0x26d4   :  { %4953 = vmatprep.subr.bf16.mxu1 %v5224_v3 }
0x26d7   :  { %4955 = vmatpush3.bf16.msra.mxu1 %v5643_v11 }
0x26d8   :  { %4956 = vmatprep.subr.bf16.mxu1 %v5224_v3 }
0x26db   :  { %4958 = vmatpush3.bf16.msra.mxu1 %v5654_v21 }
0x27a1   :  { %v3195_v61 = vpop.f32.mrb[30].mxu1 }
0x27a2   :  { %v3196_v13 = vadd.f32 %v6027_v25, %v3195_v61  ;;  %v4528_v39 = vpop.f32.mrb[31].mxu1  ;;  %v3429_v61 = vrot.slane %v3415_v59, %v3413_v17 }
0x27a4   :  { %5177 = vtanh.f32 %v3196_v13  ;;  %v3297_v12 = vpop.f32.mrb[28].mxu0  ;;  %v3633_v11 = vmul.f32 -1.442695, %v3196_v13 }
0x27a5   :  { %v3298_v28 = vadd.f32 %v6033_v62, %v3297_v12  ;;  %v4555_v18 = vpop.f32.mrb[29].mxu0 }
0x27a7   :  { %5179 = vtanh.f32 %v3298_v28  ;;  %v3635_v3 = vmul.f32 -1.442695, %v3298_v28 }
0x27a8   :  { %5181 = vpow2.f32 %v3633_v11 }
0x27a9   :  { %5183 = vpow2.f32 %v3635_v3 }
0x27ae   :  { %v5178_v10 = vpop.eup %5177 }
0x27af   :  { %3208 = vrot.lane.b32.xlu0 %v5178_v10, %s5229_s27 }
0x27b1   :  { %v5180_v4 = vpop.eup %5179 }
0x27b2   :  { %3310 = vrot.lane.b32.xlu1 %v5180_v4, %s5229_s27  ;;  %v5182_v21 = vpop.eup %5181 }
0x27b3   :  { %v5184_v14 = vpop.eup %5183  ;;  %v3202_v25 = vadd.f32 1.0, %v5182_v21 }
0x27b4   :  { %v3304_v49 = vadd.f32 1.0, %v5184_v14 }
0x27b5   :  { %5185 = vrcp.f32 %v3202_v25 }
0x27b6   :  { %5187 = vrcp.f32 %v3304_v49 }
0x27bf   :  { %v5186_v53 = vpop.eup %5185 }
0x27c0   :  { %v5188_v42 = vpop.eup %5187  ;;  %v3206_v9 = vmul.f32 %v5186_v53, %v3012_v56  ;;  %v3503_v56 = vsub.s32 0, %v3412_v58 }
0x27c1   :  { %v3308_v55 = vmul.f32 %v5188_v42, %v3114_v32  ;;  %v3454_v32 = vrot.slane %v3440_v24, %v3413_v17 }
0x27c2   :  { %v3504_v46 = vrot.slane %v3447_v60, %v3503_v56  ;;  %v3514_v6 = vrot.slane %v3470_v0, %v3503_v56  ;;  %v3518_v7 = vrot.slane %v3477_v15, %v3503_v56 }
0x27c3   :  { %v3508_v33 = vrot.slane %v3454_v32, %v3503_v56 }
0x27c4   :  { %v3531_v12 = vsel %vm97_vm3, %v3422_v57, %v3504_v46 }
0x27c5   :  { %v3534_v28 = vsel %vm3533_vm8, %v3531_v12, %v3514_v6  ;;  %v3532_v10 = vsel %vm97_vm3, %v3429_v61, %v3508_v33 }
0x27c6   :  { %v3535_v11 = vsel %vm3533_vm8, %v3532_v10, %v3518_v7 }
0x2821   :  { %v3209_v62 = vpop.permute.xlu0 %3208 }
0x2822   :  { %v3211_v54 = vmul.f32 %v5186_v53, %v3209_v62 }
0x2824   :  { %3213 = vrot.lane.b32.xlu0 %v3211_v54, %s5228_s18  ;;  %v3311_v52 = vpop.permute.xlu1 %3310 }
0x2825   :  { %v3313_v34 = vmul.f32 %v5188_v42, %v3311_v52 }
0x2827   :  { %3315 = vrot.lane.b32.xlu1 %v3313_v34, %s5228_s18 }
0x2896   :  { %v3214_v38 = vpop.permute.xlu0 %3213 }
0x2897   :  { %v3216_v36 = vadd.f32 %v3214_v38, %v3206_v9 }
0x2899   :  { %5189 = vtanh.f32 %v3216_v36  ;;  %v3316_v31 = vpop.permute.xlu1 %3315 }
0x289a   :  { %v3318_v8 = vadd.f32 %v3316_v31, %v3308_v55 }
0x289c   :  { %5191 = vtanh.f32 %v3318_v8 }
0x28a3   :  { %v5190_v16 = vpop.eup %5189 }
0x28a4   :  { %3219 = vrot.lane.b32.xlu0 %v5190_v16, %s5229_s27 }
0x28a6   :  { %v5192_v22 = vpop.eup %5191 }
0x28a7   :  { %3321 = vrot.lane.b32.xlu1 %v5192_v22, %s5229_s27 }
0x2916   :  { %v3220_v23 = vpop.permute.xlu0 %3219 }
0x2917   :  { %v3222_v29 = vmul.f32 %v5186_v53, %v3220_v23 }
0x2919   :  { %3326 = vrot.lane.b32.xlu0 %v3222_v29, %s5228_s18  ;;  %v3322_v30 = vpop.permute.xlu1 %3321 }
0x291a   :  { %v3324_v35 = vmul.f32 %v5188_v42, %v3322_v30 }
0x291c   :  { %3330 = vrot.lane.b32.xlu1 %v3324_v35, %s5229_s27 }
0x298b   :  { %v3327_v37 = vpop.permute.xlu0 %3326 }
0x298e   :  { %v3331_v41 = vpop.permute.xlu1 %3330 }
0x298f   :  { %v3333_v45 = vsel %vm335_vm5, %v3327_v37, %v3331_v41 }
0x2990   :  { %4573 = vmatmul.mubr.msk.f32.vlgmr.msra.gmra.mrb[32].mxu1 %vm367_vm6, %v3333_v45 }
0x2a63   :  { %v3403_v5 = vpop.f32.mrb[32].mxu1 }
0x2a64   :  { %v3404_v51 = vadd.f32 %v5199_v1, %v3403_v5  ;;  %v4574_v63 = vpop.f32.mrb[33].mxu1 }
0x2a66   :  { %v3485_v27 = vrot.slane %v3404_v51, %v3413_v17 }
0x2a68   :  { %v3486_v19 = vcombine.high %v3485_v27, %v3485_v27  ;;  %v3493_v40 = vrot.slane %v3485_v27, %v3413_v17 }
0x2a6a   :  { %v3500_v13 = vrot.slane %v3486_v19, %v3413_v17  ;;  %v3524_v39 = vrot.slane %v3493_v40, %v3503_v56 }
0x2a6c   :  { %v3528_v18 = vrot.slane %v3500_v13, %v3503_v56  ;;  %v3537_v4 = vsel %vm3536_vm9, %v3534_v28, %v3524_v39 }
0x2a6d   :  { %3540 = vst.msk [vmem:[#allocation2] sm:$0xf] %vm3539_vm10, %v3537_v4 }
0x2a6e   :  { %v3538_v3 = vsel %vm3536_vm9, %v3535_v11, %v3528_v18 }
0x2a6f   :  { %3541 = vst.msk [vmem:[#allocation2 + $0x4] sm:$0xf] %vm3539_vm10, %v3538_v3 }
0x2a70   :  { %5211 = shalt.err (!%p5208_p4)
}
0x2a71   :  { %s5212_s1 = scalar_lea.hbm %s6405_s13, 128 }
0x2a72   :  { %p5213_p5 = scmp.ne.s32.totalorder %s6405_s13, %s5212_s1  ;;  %p5216_p6 = scmp.lt.u32.totalorder %s5212_s1, %s6405_s13 }
0x2a74   :  { %p5218_p7 = pnand %p5216_p6, %p5213_p5 }
0x2a76   :  { %5221 = shalt.err (!%p5218_p7)
}
0x2a77   :  { %3553 = dma.vmem_to_hbm [thread:$0]  %s3548_s7, 128, %s6405_s13, [#allocation3], %s5229_s27, %s5229_s27, %s5225_s24  }
0x2a78   :  { %5222 = dma.done.wait [#allocation3], 128  }
0x2a79   :  { %5223 = vsyncadd [#allocation3], 4294967168 }
0x2a7a   :  { %3557 = vsyncpa [#allocation3], 1 }

// kernel: model_forward.2
= control target key start
LH: loop header
LB: loop body
LE: loop exit
PB: predicated region body
PF: predicated region fallthrough
CT: control target
= control target key end

     0   :  { %16 = vsyncpa [#allocation3], 0  ;;  %s6496_s0 = inlined_call_operand.vmem [shape: f32[2,8,4], index: 0, kind: input, shape index: {}]   ;;  %s6497_s1 = inlined_call_operand.hbm [shape: f32[36,128], index: 1, kind: input, shape index: {}]   ;;  %s6498_s2 = inlined_call_operand.vmem [shape: f32[1,128], index: 2, kind: input, shape index: {}]   ;;  %s6499_s3 = inlined_call_operand.hbm [shape: f32[36,128], index: 3, kind: input, shape index: {}]   ;;  %s6500_s4 = inlined_call_operand.vmem [shape: f32[1,128], index: 4, kind: input, shape index: {}]   ;;  %s6501_s5 = inlined_call_operand.hbm [shape: f32[96,128], index: 5, kind: input, shape index: {}]   ;;  %s6502_s6 = inlined_call_operand.vmem [shape: f32[1,128], index: 6, kind: input, shape index: {}]   ;;  %s6503_s7 = inlined_call_operand.hbm [shape: f32[96,128], index: 7, kind: input, shape index: {}]   ;;  %s6504_s8 = inlined_call_operand.vmem [shape: f32[1,128], index: 8, kind: input, shape index: {}]   ;;  %s6505_s9 = inlined_call_operand.vmem [shape: f32[4,2,32], index: 9, kind: output, shape index: {0}]   ;;  %s6506_s10 = inlined_call_operand.vmem [shape: f32[4,2,32], index: 10, kind: output, shape index: {1}]  }
   0x1   :  { %17 = vsyncpa [#allocation5], 0 }
   0x2   :  { %18 = vsyncpa [#allocation8], 0  ;;  %s5371_s13 = smov [#allocation4]   ;;  %s5372_s15 = smov [#allocation2]  }
   0x3   :  { %s40_s14 = sshll.u32 %s5371_s13, 4  ;;  %s26_s16 = sshll.u32 %s5372_s15, 4  ;;  %s41_s14 = int_to_ptr.vmem [resolvable:$true] %s40_s14  ;;  %s5439_s16 = int_to_ptr.vmem [resolvable:$true] %s26_s16 }
   0x4   :  { %s5277_s19 = scalar_lea.hbm %s6499_s3, 640 }
   0x5   :  { %p5278_p0 = scmp.ne.s32.totalorder %s6499_s3, %s5277_s19  ;;  %p5281_p1 = scmp.lt.u32.totalorder %s5277_s19, %s6499_s3 }
   0x7   :  { %p5283_p2 = pnand %p5281_p1, %p5278_p0 }
   0x9   :  { %5286 = shalt.err (!%p5283_p2)
}
   0xa   :  { %s5287_s24 = scalar_lea.vmem %s41_s14, 640  ;;  %p5292_p4 = scmp.lt.s32.totalorder %s41_s14, %s41_s14 }
   0xb   :  { %p5288_p3 = scmp.ne.s32.totalorder %s41_s14, %s5287_s24  ;;  %p5293_p5 = scmp.lt.s32.totalorder %s5287_s24, %s5287_s24 }
   0xd   :  { %p5294_p6 = por %p5293_p5, %p5292_p4 }
   0xf   :  { %p5295_p7 = pnand %p5294_p6, %p5288_p3 }
  0x11   :  { %5298 = shalt.err (!%p5295_p7)
}
  0x12   :  { %s5373_s25 = smov 128   ;;  %s5374_s26 = smov 8  }
  0x13   :  { %46 = dma.hbm_to_vmem [thread:$0]  %s6499_s3, 640, %s41_s14, [#allocation5], %s5373_s25, %s5373_s25, %s5374_s26  }
  0x14   :  { %s5299_s11 = scalar_lea.hbm %s6497_s1, 640 }
  0x15   :  { %p5300_p8 = scmp.ne.s32.totalorder %s6497_s1, %s5299_s11  ;;  %p5303_p9 = scmp.lt.u32.totalorder %s5299_s11, %s6497_s1 }
  0x17   :  { %p5305_p10 = pnand %p5303_p9, %p5300_p8 }
  0x19   :  { %5308 = shalt.err (!%p5305_p10)
}
  0x1a   :  { %s5309_s18 = scalar_lea.vmem %s5439_s16, 640  ;;  %p5314_p12 = scmp.lt.s32.totalorder %s5439_s16, %s5439_s16 }
  0x1b   :  { %p5310_p11 = scmp.ne.s32.totalorder %s5439_s16, %s5309_s18  ;;  %p5315_p13 = scmp.lt.s32.totalorder %s5309_s18, %s5309_s18 }
  0x1d   :  { %p5316_p0 = por %p5315_p13, %p5314_p12 }
  0x1f   :  { %p5317_p1 = pnand %p5316_p0, %p5310_p11 }
  0x21   :  { %5320 = shalt.err (!%p5317_p1)
}
  0x22   :  { %32 = dma.hbm_to_vmem [thread:$0]  %s6497_s1, 640, %s5439_s16, [#allocation3], %s5373_s25, %s5373_s25, %s5374_s26  }
  0x23   :  { %s5375_s19 = smov [#allocation6]   ;;  %s5376_s21 = smov [#allocation7]  }
  0x24   :  { %s54_s20 = sshll.u32 %s5375_s19, 4  ;;  %s68_s22 = sshll.u32 %s5376_s21, 4  ;;  %s55_s20 = int_to_ptr.vmem [resolvable:$true] %s54_s20  ;;  %s5476_s22 = int_to_ptr.vmem [resolvable:$true] %s68_s22 }
  0x25   :  { %s5321_s27 = scalar_lea.hbm %s6501_s5, 1536 }
  0x26   :  { %p5322_p2 = scmp.ne.s32.totalorder %s6501_s5, %s5321_s27  ;;  %p5325_p3 = scmp.lt.u32.totalorder %s5321_s27, %s6501_s5 }
  0x28   :  { %p5327_p4 = pnand %p5325_p3, %p5322_p2 }
  0x2a   :  { %5330 = shalt.err (!%p5327_p4)
}
  0x2b   :  { %s5331_s1 = scalar_lea.vmem %s55_s20, 1536  ;;  %p5336_p6 = scmp.lt.s32.totalorder %s55_s20, %s55_s20 }
  0x2c   :  { %p5332_p5 = scmp.ne.s32.totalorder %s55_s20, %s5331_s1  ;;  %p5337_p7 = scmp.lt.s32.totalorder %s5331_s1, %s5331_s1 }
  0x2e   :  { %p5338_p8 = por %p5337_p7, %p5336_p6 }
  0x30   :  { %p5339_p9 = pnand %p5338_p8, %p5332_p5 }
  0x32   :  { %5342 = shalt.err (!%p5339_p9)
}
  0x33   :  { %60 = dma.hbm_to_vmem [thread:$0]  %s6501_s5, 1536, %s55_s20, [#allocation5], %s5373_s25, %s5373_s25, %s5374_s26  }
  0x34   :  { %s5343_s17 = scalar_lea.hbm %s6503_s7, 1536 }
  0x35   :  { %p5344_p10 = scmp.ne.s32.totalorder %s6503_s7, %s5343_s17  ;;  %p5347_p11 = scmp.lt.u32.totalorder %s5343_s17, %s6503_s7 }
  0x37   :  { %p5349_p12 = pnand %p5347_p11, %p5344_p10 }
  0x39   :  { %5352 = shalt.err (!%p5349_p12)
}
  0x3a   :  { %s5353_s21 = scalar_lea.vmem %s5476_s22, 1536  ;;  %p5358_p0 = scmp.lt.s32.totalorder %s5476_s22, %s5476_s22 }
  0x3b   :  { %p5354_p13 = scmp.ne.s32.totalorder %s5476_s22, %s5353_s21  ;;  %p5359_p1 = scmp.lt.s32.totalorder %s5353_s21, %s5353_s21 }
  0x3d   :  { %p5360_p2 = por %p5359_p1, %p5358_p0 }
  0x3f   :  { %p5361_p3 = pnand %p5360_p2, %p5354_p13 }
  0x41   :  { %5364 = shalt.err (!%p5361_p3)
}
  0x42   :  { %74 = dma.hbm_to_vmem [thread:$0]  %s6503_s7, 1536, %s5476_s22, [#allocation8], %s5373_s25, %s5373_s25, %s5374_s26  }
  0x43   :  { %5365 = dma.done.wait [#allocation3], 640  }
  0x44   :  { %5366 = vsyncadd [#allocation3], 4294966656 }
  0x45   :  { %5367 = dma.done.wait [#allocation5], 2176  }
  0x46   :  { %5368 = vsyncadd [#allocation5], 4294965120 }
  0x47   :  { %5369 = dma.done.wait [#allocation8], 1536  }
  0x48   :  { %5370 = vsyncadd [#allocation8], 4294965760  ;;  %v5377_v0 = vmov 0.0|0.0   ;;  %vm5378_vm0 = vmmov 0   ;;  %v5379_v1 = vmov 0.0   ;;  %v91_v2 = vld [vmem:[#allocation2] sm:$0xff] }
  0x49   :  { %4620 = vmatprep.subr.bf16.mxu0 %v5377_v0  ;;  %4626 = vmatprep.subr.bf16.mxu1 %v5377_v0  ;;  %v92_v3 = vld [vmem:[#allocation2 + $0x8] sm:$0xff]  ;;  %v98_v6 = vld [vmem:[#allocation4 + $0x8] sm:$0xff]  ;;  %v94_v8 = vld [vmem:[#allocation2 + $0x18] sm:$0xff]  ;;  %vm109_vm1 = vcmask 31744   ;;  %vm106_vm2 = vcmask 1041409   ;;  %vm231_vm3 = vcmask 1040384  }
  0x4a   :  { %3990 = vmatprep.mubr.msk.f32.mxu0 %vm5378_vm0, %v5379_v1  ;;  %4003 = vmatprep.mubr.msk.f32.mxu1 %vm5378_vm0, %v5379_v1  ;;  %v97_v4 = vld [vmem:[#allocation4] sm:$0xff]  ;;  %v5519_v5 = vpack.c.bf16 %v92_v3, %v91_v2  ;;  %v93_v7 = vld [vmem:[#allocation2 + $0x10] sm:$0xff]  ;;  %v99_v10 = vld [vmem:[#allocation4 + $0x10] sm:$0xff]  ;;  %vm121_vm4 = vcmask 1043456   ;;  %vm117_vm5 = vcmask 293888   ;;  %s5380_s29 = smov 64  }
  0x4b   :  { %v5521_v9 = vpack.c.bf16 %v98_v6, %v97_v4  ;;  %v100_v11 = vld [vmem:[#allocation4 + $0x18] sm:$0xff]  ;;  %v5524_v12 = vpack.c.bf16 %v94_v8, %v93_v7  ;;  %v90_v14 = vld [vmem:[%s6496_s0 + $0x8] sm:$0xff]  ;;  %s5382_s30 = smov 36   ;;  %vm334_vm6 = vcmask 1042434   ;;  %vm441_vm7 = vcmask 1047559   ;;  %s5383_s3 = smov 96  }
  0x4c   :  { %4622 = vmatpush3.bf16.msra.mxu0 %v5519_v5  ;;  %v5529_v13 = vld [vmem:[%s6496_s0] sm:$0xff]  ;;  %v5536_v15 = vpack.c.bf16 %v100_v11, %v99_v10  ;;  %v5538_v16 = vrot.slane %v90_v14, 7  ;;  %v5557_v24 = vld [vmem:[#allocation4 + $0x20] sm:$0xf]  ;;  %vm548_vm8 = vcmask 1043459   ;;  %vm655_vm9 = vcmask 1046534  }
  0x4d   :  { %4623 = vmatprep.subr.bf16.mxu0 %v5377_v0  ;;  %4628 = vmatpush3.bf16.msra.mxu1 %v5521_v9  ;;  %v221_v17 = vsel %vm109_vm1, %v5529_v13, 0.0  ;;  %v5552_v22 = vld [vmem:[#allocation2 + $0x20] sm:$0xf]  ;;  %vm762_vm10 = vcmask 1044484   ;;  %vm869_vm11 = vcmask 1045509   ;;  %vm1817_vm12 = vcmask 261120  }
  0x4e   :  { %4629 = vmatprep.subr.bf16.mxu1 %v5377_v0  ;;  %v5545_v18 = vsel %vm106_vm2, %v5538_v16, %v5529_v13  ;;  %v222_v19 = vsel %vm109_vm1, %v5538_v16, 0.0  ;;  %v232_v20 = vrot.slane %v221_v17, 7  ;;  %v5589_v26 = vld [vmem:[%s6498_s2] ss:$0 sm:$0xff]  ;;  %v5620_v62 = vsel %vm334_vm6, %v5538_v16, %v5529_v13 }
  0x4f   :  { %v233_v21 = vrot.slane %v222_v19, 7  ;;  %v110_v23 = vsel %vm109_vm1, %v5545_v18, 0.0  ;;  %v5594_v27 = vld [vmem:[%s6500_s4] ss:$0 sm:$0xff]  ;;  %s5381_s4 = smov 32   ;;  %v5626_v4 = vsel %vm441_vm7, %v5538_v16, %v5529_v13  ;;  %vm1913_vm13 = vcmask 523264  }
  0x50   :  { %4625 = vmatpush3.bf16.msra.mxu0 %v5524_v12  ;;  %vm1869_vm14 = vcmask 254976   ;;  %vm1921_vm15 = vcmask 785408  }
  0x51   :  { %3988 = vmatprep.subr.mxu0 %v5379_v1  ;;  %4631 = vmatpush3.bf16.msra.mxu1 %v5536_v15  ;;  %v234_v25 = vsel %vm231_vm3, %v232_v20, %v233_v21 }
  0x52   :  { %4001 = vmatprep.subr.mxu1 %v5379_v1 }
  0x54   :  { %3989 = vmatpush3.msk.msra.mxu0 %vm121_vm4, %v5552_v22 }
  0x55   :  { %3991 = vmatmul.mubr.msk.f32.vlgmr.msra.gmra.mrb[0].mxu0 %vm117_vm5, %v110_v23  ;;  %4002 = vmatpush3.msk.msra.mxu1 %vm121_vm4, %v5557_v24 }
  0x56   :  { %4004 = vmatmul.mubr.msk.f32.vlgmr.msra.gmra.mrb[0].mxu1 %vm117_vm5, %v234_v25  ;;  %4632 = vmatprep.subr.bf16.mxu0 %v5377_v0 }
  0x57   :  { %4634 = vmatpush3.bf16.msra.mxu0 %v5519_v5  ;;  %4638 = vmatprep.subr.bf16.mxu1 %v5377_v0 }
  0x58   :  { %4635 = vmatprep.subr.bf16.mxu0 %v5377_v0  ;;  %4640 = vmatpush3.bf16.msra.mxu1 %v5521_v9 }
  0x59   :  { %4641 = vmatprep.subr.bf16.mxu1 %v5377_v0  ;;  %4016 = vmatprep.mubr.msk.f32.mxu0 %vm5378_vm0, %v5379_v1 }
  0x5a   :  { %4029 = vmatprep.mubr.msk.f32.mxu1 %vm5378_vm0, %v5379_v1 }
  0x5b   :  { %4637 = vmatpush3.bf16.msra.mxu0 %v5524_v12 }
  0x5c   :  { %4014 = vmatprep.subr.mxu0 %v5379_v1  ;;  %4643 = vmatpush3.bf16.msra.mxu1 %v5536_v15 }
  0x5d   :  { %4027 = vmatprep.subr.mxu1 %v5379_v1 }
  0x5f   :  { %4015 = vmatpush3.msk.msra.mxu0 %vm121_vm4, %v5552_v22 }
  0x60   :  { %4028 = vmatpush3.msk.msra.mxu1 %vm121_vm4, %v5557_v24  ;;  %4644 = vmatprep.subr.bf16.mxu0 %v5377_v0 }
  0x61   :  { %4650 = vmatprep.subr.bf16.mxu1 %v5377_v0 }
 0x128   :  { %v191_v28 = vpop.f32.mrb[0].mxu0 }
 0x129   :  { %v192_v29 = vadd.f32 %v5589_v26, %v191_v28  ;;  %v3992_v30 = vpop.f32.mrb[1].mxu0  ;;  %v306_v31 = vpop.f32.mrb[0].mxu1 }
 0x12a   :  { %v307_v32 = vadd.f32 %v5594_v27, %v306_v31  ;;  %v4005_v33 = vpop.f32.mrb[1].mxu1 }
 0x12b   :  { %5017 = vtanh.f32 %v192_v29  ;;  %v3589_v36 = vmul.f32 -1.442695, %v192_v29 }
 0x12c   :  { %5019 = vtanh.f32 %v307_v32  ;;  %v3593_v37 = vmul.f32 -1.442695, %v307_v32 }
 0x12d   :  { %5021 = vpow2.f32 %v3589_v36 }
 0x12e   :  { %5023 = vpow2.f32 %v3593_v37 }
 0x135   :  { %v5018_v34 = vpop.eup %5017 }
 0x136   :  { %204 = vrot.lane.b32.xlu0 %v5018_v34, %s5380_s29  ;;  %v5020_v35 = vpop.eup %5019 }
 0x137   :  { %v5022_v38 = vpop.eup %5021 }
 0x138   :  { %v198_v39 = vadd.f32 1.0, %v5022_v38  ;;  %v5024_v40 = vpop.eup %5023 }
 0x139   :  { %v313_v41 = vadd.f32 1.0, %v5024_v40 }
 0x13a   :  { %319 = vrot.lane.b32.xlu0 %v5020_v35, %s5380_s29  ;;  %5025 = vrcp.f32 %v198_v39 }
 0x13b   :  { %5027 = vrcp.f32 %v313_v41 }
 0x144   :  { %v5026_v42 = vpop.eup %5025 }
 0x145   :  { %v5028_v45 = vpop.eup %5027  ;;  %v202_v48 = vmul.f32 0.0, %v5026_v42 }
 0x146   :  { %v317_v51 = vmul.f32 0.0, %v5028_v45 }
 0x1a8   :  { %v205_v43 = vpop.permute.xlu0 %204 }
 0x1a9   :  { %v207_v44 = vmul.f32 %v5026_v42, %v205_v43 }
 0x1ab   :  { %209 = vrot.lane.b32.xlu1 %v207_v44, %s5381_s4 }
 0x1ac   :  { %v320_v46 = vpop.permute.xlu0 %319 }
 0x1ad   :  { %v322_v47 = vmul.f32 %v5028_v45, %v320_v46 }
 0x1af   :  { %324 = vrot.lane.b32.xlu1 %v322_v47, %s5381_s4 }
 0x21d   :  { %v210_v49 = vpop.permute.xlu1 %209 }
 0x21e   :  { %v5602_v50 = vadd.f32 %v210_v49, %v202_v48 }
 0x220   :  { %5029 = vtanh.f32 %v5602_v50 }
 0x221   :  { %v325_v52 = vpop.permute.xlu1 %324 }
 0x222   :  { %v5605_v53 = vadd.f32 %v325_v52, %v317_v51 }
 0x224   :  { %5031 = vtanh.f32 %v5605_v53 }
 0x22a   :  { %v5030_v54 = vpop.eup %5029 }
 0x22b   :  { %215 = vrot.lane.b32.xlu0 %v5030_v54, %s5380_s29 }
 0x22e   :  { %v5032_v55 = vpop.eup %5031 }
 0x22f   :  { %330 = vrot.lane.b32.xlu1 %v5032_v55, %s5380_s29 }
 0x29d   :  { %v216_v56 = vpop.permute.xlu0 %215 }
 0x29e   :  { %v5610_v57 = vmul.f32 %v5026_v42, %v216_v56 }
 0x2a0   :  { %v338_v58 = vrot.slane %v5610_v57, 7 }
 0x2a1   :  { %v331_v59 = vpop.permute.xlu1 %330 }
 0x2a2   :  { %v5613_v60 = vmul.f32 %v5028_v45, %v331_v59  ;;  %339 = vrot.lane.b32.xlu0 %v338_v58, %s5382_s30  ;;  %v5682_v58 = vsel %vm655_vm9, %v5538_v16, %v5529_v13 }
 0x2a4   :  { %v445_v61 = vrot.slane %v5613_v60, 2 }
 0x2a6   :  { %446 = vrot.lane.b32.xlu1 %v445_v61, %s5382_s30 }
 0x314   :  { %v340_v63 = vpop.permute.xlu0 %339 }
 0x315   :  { %v342_v2 = vsel %vm109_vm1, %v5620_v62, %v340_v63 }
 0x316   :  { %v344_v3 = vrot.slane %v342_v2, 1 }
 0x318   :  { %v447_v6 = vpop.permute.xlu1 %446  ;;  %4017 = vmatmul.mubr.msk.f32.vlgmr.msra.gmra.mrb[2].mxu0 %vm117_vm5, %v344_v3 }
 0x319   :  { %v449_v7 = vsel %vm109_vm1, %v5626_v4, %v447_v6  ;;  %4646 = vmatpush3.bf16.msra.mxu0 %v5519_v5  ;;  %4042 = vmatprep.mubr.msk.f32.mxu0 %vm5378_vm0, %v5379_v1 }
 0x31a   :  { %v451_v8 = vrot.slane %v449_v7, 6  ;;  %4647 = vmatprep.subr.bf16.mxu0 %v5377_v0 }
 0x31c   :  { %4030 = vmatmul.mubr.msk.f32.vlgmr.msra.gmra.mrb[2].mxu1 %vm117_vm5, %v451_v8 }
 0x31d   :  { %4649 = vmatpush3.bf16.msra.mxu0 %v5524_v12  ;;  %4652 = vmatpush3.bf16.msra.mxu1 %v5521_v9 }
 0x31e   :  { %4040 = vmatprep.subr.mxu0 %v5379_v1  ;;  %4653 = vmatprep.subr.bf16.mxu1 %v5377_v0 }
 0x31f   :  { %4055 = vmatprep.mubr.msk.f32.mxu1 %vm5378_vm0, %v5379_v1 }
 0x321   :  { %4041 = vmatpush3.msk.msra.mxu0 %vm121_vm4, %v5552_v22  ;;  %4655 = vmatpush3.bf16.msra.mxu1 %v5536_v15 }
 0x322   :  { %4053 = vmatprep.subr.mxu1 %v5379_v1  ;;  %4656 = vmatprep.subr.bf16.mxu0 %v5377_v0 }
 0x325   :  { %4054 = vmatpush3.msk.msra.mxu1 %vm121_vm4, %v5557_v24 }
 0x326   :  { %4662 = vmatprep.subr.bf16.mxu1 %v5377_v0 }
 0x3eb   :  { %v413_v10 = vpop.f32.mrb[2].mxu0 }
 0x3ec   :  { %v414_v11 = vadd.f32 %v5589_v26, %v413_v10  ;;  %v4018_v14 = vpop.f32.mrb[3].mxu0 }
 0x3ee   :  { %5033 = vtanh.f32 %v414_v11  ;;  %v3596_v25 = vmul.f32 -1.442695, %v414_v11 }
 0x3ef   :  { %v520_v17 = vpop.f32.mrb[2].mxu1 }
 0x3f0   :  { %v521_v19 = vadd.f32 %v5594_v27, %v520_v17  ;;  %v4031_v20 = vpop.f32.mrb[3].mxu1 }
 0x3f2   :  { %5035 = vtanh.f32 %v521_v19  ;;  %v3599_v28 = vmul.f32 -1.442695, %v521_v19 }
 0x3f3   :  { %5037 = vpow2.f32 %v3596_v25 }
 0x3f4   :  { %5039 = vpow2.f32 %v3599_v28 }
 0x3f8   :  { %v5034_v21 = vpop.eup %5033 }
 0x3f9   :  { %426 = vrot.lane.b32.xlu0 %v5034_v21, %s5380_s29 }
 0x3fc   :  { %v5036_v23 = vpop.eup %5035 }
 0x3fd   :  { %533 = vrot.lane.b32.xlu1 %v5036_v23, %s5380_s29  ;;  %v5038_v29 = vpop.eup %5037 }
 0x3fe   :  { %v420_v30 = vadd.f32 1.0, %v5038_v29  ;;  %v5040_v31 = vpop.eup %5039 }
 0x3ff   :  { %v527_v32 = vadd.f32 1.0, %v5040_v31 }
 0x400   :  { %5041 = vrcp.f32 %v420_v30 }
 0x401   :  { %5043 = vrcp.f32 %v527_v32 }
 0x40a   :  { %v5042_v33 = vpop.eup %5041 }
 0x40b   :  { %v5044_v36 = vpop.eup %5043  ;;  %v424_v39 = vmul.f32 %v5042_v33, %v5602_v50 }
 0x40c   :  { %v531_v42 = vmul.f32 %v5044_v36, %v5605_v53  ;;  %v5676_v53 = vsel %vm548_vm8, %v5538_v16, %v5529_v13 }
 0x46b   :  { %v427_v34 = vpop.permute.xlu0 %426 }
 0x46c   :  { %v429_v35 = vmul.f32 %v5042_v33, %v427_v34 }
 0x46e   :  { %431 = vrot.lane.b32.xlu0 %v429_v35, %s5381_s4 }
 0x46f   :  { %v534_v37 = vpop.permute.xlu1 %533 }
 0x470   :  { %v536_v38 = vmul.f32 %v5044_v36, %v534_v37 }
 0x472   :  { %538 = vrot.lane.b32.xlu1 %v536_v38, %s5381_s4 }
 0x4e0   :  { %v432_v40 = vpop.permute.xlu0 %431 }
 0x4e1   :  { %v5657_v41 = vadd.f32 %v432_v40, %v424_v39 }
 0x4e3   :  { %5045 = vtanh.f32 %v5657_v41 }
 0x4e4   :  { %v539_v43 = vpop.permute.xlu1 %538 }
 0x4e5   :  { %v5661_v44 = vadd.f32 %v539_v43, %v531_v42 }
 0x4e7   :  { %5047 = vtanh.f32 %v5661_v44 }
 0x4ed   :  { %v5046_v45 = vpop.eup %5045 }
 0x4ee   :  { %437 = vrot.lane.b32.xlu0 %v5046_v45, %s5380_s29 }
 0x4f1   :  { %v5048_v46 = vpop.eup %5047 }
 0x4f2   :  { %544 = vrot.lane.b32.xlu1 %v5048_v46, %s5380_s29 }
 0x560   :  { %v438_v47 = vpop.permute.xlu0 %437 }
 0x561   :  { %v5666_v48 = vmul.f32 %v5042_v33, %v438_v47 }
 0x563   :  { %v552_v49 = vrot.slane %v5666_v48, 6 }
 0x564   :  { %v545_v50 = vpop.permute.xlu1 %544 }
 0x565   :  { %v5669_v51 = vmul.f32 %v5044_v36, %v545_v50  ;;  %553 = vrot.lane.b32.xlu0 %v552_v49, %s5382_s30  ;;  %v5732_v49 = vsel %vm762_vm10, %v5538_v16, %v5529_v13 }
 0x567   :  { %v659_v52 = vrot.slane %v5669_v51, 3 }
 0x569   :  { %660 = vrot.lane.b32.xlu1 %v659_v52, %s5382_s30 }
 0x5d7   :  { %v554_v54 = vpop.permute.xlu0 %553 }
 0x5d8   :  { %v556_v55 = vsel %vm109_vm1, %v5676_v53, %v554_v54 }
 0x5d9   :  { %v558_v56 = vrot.slane %v556_v55, 2  ;;  %v5738_v55 = vsel %vm869_vm11, %v5538_v16, %v5529_v13 }
 0x5db   :  { %v661_v59 = vpop.permute.xlu1 %660  ;;  %4043 = vmatmul.mubr.msk.f32.vlgmr.msra.gmra.mrb[4].mxu0 %vm117_vm5, %v558_v56 }
 0x5dc   :  { %v663_v61 = vsel %vm109_vm1, %v5682_v58, %v661_v59  ;;  %4658 = vmatpush3.bf16.msra.mxu0 %v5519_v5  ;;  %4068 = vmatprep.mubr.msk.f32.mxu0 %vm5378_vm0, %v5379_v1 }
 0x5dd   :  { %v665_v63 = vrot.slane %v663_v61, 5  ;;  %4659 = vmatprep.subr.bf16.mxu0 %v5377_v0 }
 0x5df   :  { %4056 = vmatmul.mubr.msk.f32.vlgmr.msra.gmra.mrb[4].mxu1 %vm117_vm5, %v665_v63 }
 0x5e0   :  { %4661 = vmatpush3.bf16.msra.mxu0 %v5524_v12  ;;  %4664 = vmatpush3.bf16.msra.mxu1 %v5521_v9 }
 0x5e1   :  { %4066 = vmatprep.subr.mxu0 %v5379_v1  ;;  %4665 = vmatprep.subr.bf16.mxu1 %v5377_v0 }
 0x5e2   :  { %4081 = vmatprep.mubr.msk.f32.mxu1 %vm5378_vm0, %v5379_v1 }
 0x5e4   :  { %4067 = vmatpush3.msk.msra.mxu0 %vm121_vm4, %v5552_v22  ;;  %4667 = vmatpush3.bf16.msra.mxu1 %v5536_v15 }
 0x5e5   :  { %4079 = vmatprep.subr.mxu1 %v5379_v1  ;;  %4668 = vmatprep.subr.bf16.mxu0 %v5377_v0 }
 0x5e8   :  { %4080 = vmatpush3.msk.msra.mxu1 %vm121_vm4, %v5557_v24 }
 0x5e9   :  { %4674 = vmatprep.subr.bf16.mxu1 %v5377_v0 }
 0x6ae   :  { %v627_v2 = vpop.f32.mrb[4].mxu0 }
 0x6af   :  { %v628_v3 = vadd.f32 %v5589_v26, %v627_v2  ;;  %v4044_v6 = vpop.f32.mrb[5].mxu0 }
 0x6b1   :  { %5049 = vtanh.f32 %v628_v3  ;;  %v3602_v17 = vmul.f32 -1.442695, %v628_v3 }
 0x6b2   :  { %v734_v7 = vpop.f32.mrb[4].mxu1 }
 0x6b3   :  { %v735_v8 = vadd.f32 %v5594_v27, %v734_v7  ;;  %v4057_v10 = vpop.f32.mrb[5].mxu1 }
 0x6b5   :  { %5051 = vtanh.f32 %v735_v8  ;;  %v3605_v19 = vmul.f32 -1.442695, %v735_v8 }
 0x6b6   :  { %5053 = vpow2.f32 %v3602_v17 }
 0x6b7   :  { %5055 = vpow2.f32 %v3605_v19 }
 0x6bb   :  { %v5050_v11 = vpop.eup %5049 }
 0x6bc   :  { %640 = vrot.lane.b32.xlu0 %v5050_v11, %s5380_s29 }
 0x6bf   :  { %v5052_v14 = vpop.eup %5051 }
 0x6c0   :  { %747 = vrot.lane.b32.xlu1 %v5052_v14, %s5380_s29  ;;  %v5054_v20 = vpop.eup %5053 }
 0x6c1   :  { %v634_v21 = vadd.f32 1.0, %v5054_v20  ;;  %v5056_v23 = vpop.eup %5055 }
 0x6c2   :  { %v741_v25 = vadd.f32 1.0, %v5056_v23 }
 0x6c3   :  { %5057 = vrcp.f32 %v634_v21 }
 0x6c4   :  { %5059 = vrcp.f32 %v741_v25 }
 0x6cd   :  { %v5058_v28 = vpop.eup %5057 }
 0x6ce   :  { %v5060_v31 = vpop.eup %5059  ;;  %v638_v34 = vmul.f32 %v5058_v28, %v5657_v41 }
 0x6cf   :  { %v745_v37 = vmul.f32 %v5060_v31, %v5661_v44 }
 0x72e   :  { %v641_v29 = vpop.permute.xlu0 %640 }
 0x72f   :  { %v643_v30 = vmul.f32 %v5058_v28, %v641_v29 }
 0x731   :  { %645 = vrot.lane.b32.xlu0 %v643_v30, %s5381_s4 }
 0x732   :  { %v748_v32 = vpop.permute.xlu1 %747 }
 0x733   :  { %v750_v33 = vmul.f32 %v5060_v31, %v748_v32 }
 0x735   :  { %752 = vrot.lane.b32.xlu1 %v750_v33, %s5381_s4 }
 0x7a3   :  { %v646_v35 = vpop.permute.xlu0 %645 }
 0x7a4   :  { %v5713_v36 = vadd.f32 %v646_v35, %v638_v34 }
 0x7a6   :  { %5061 = vtanh.f32 %v5713_v36 }
 0x7a7   :  { %v753_v38 = vpop.permute.xlu1 %752 }
 0x7a8   :  { %v5717_v39 = vadd.f32 %v753_v38, %v745_v37 }
 0x7aa   :  { %5063 = vtanh.f32 %v5717_v39 }
 0x7b0   :  { %v5062_v40 = vpop.eup %5061 }
 0x7b1   :  { %651 = vrot.lane.b32.xlu0 %v5062_v40, %s5380_s29 }
 0x7b4   :  { %v5064_v42 = vpop.eup %5063 }
 0x7b5   :  { %758 = vrot.lane.b32.xlu1 %v5064_v42, %s5380_s29 }
 0x823   :  { %v652_v43 = vpop.permute.xlu0 %651 }
 0x824   :  { %v5722_v41 = vmul.f32 %v5058_v28, %v652_v43 }
 0x826   :  { %v766_v45 = vrot.slane %v5722_v41, 5 }
 0x827   :  { %v759_v46 = vpop.permute.xlu1 %758 }
 0x828   :  { %v5725_v47 = vmul.f32 %v5060_v31, %v759_v46  ;;  %767 = vrot.lane.b32.xlu0 %v766_v45, %s5382_s30 }
 0x82a   :  { %v873_v44 = vrot.slane %v5725_v47, 4 }
 0x82c   :  { %874 = vrot.lane.b32.xlu1 %v873_v44, %s5382_s30 }
 0x89a   :  { %v768_v50 = vpop.permute.xlu0 %767 }
 0x89b   :  { %v770_v52 = vsel %vm109_vm1, %v5732_v49, %v768_v50 }
 0x89c   :  { %v772_v54 = vrot.slane %v770_v52, 3 }
 0x89e   :  { %v875_v56 = vpop.permute.xlu1 %874  ;;  %4069 = vmatmul.mubr.msk.f32.vlgmr.msra.gmra.mrb[6].mxu0 %vm117_vm5, %v772_v54 }
 0x89f   :  { %v877_v59 = vsel %vm109_vm1, %v5738_v55, %v875_v56  ;;  %4670 = vmatpush3.bf16.msra.mxu0 %v5519_v5  ;;  %4094 = vmatprep.mubr.msk.f32.mxu0 %vm5378_vm0, %v5379_v1 }
 0x8a0   :  { %v879_v61 = vrot.slane %v877_v59, 4  ;;  %4671 = vmatprep.subr.bf16.mxu0 %v5377_v0 }
 0x8a2   :  { %4082 = vmatmul.mubr.msk.f32.vlgmr.msra.gmra.mrb[6].mxu1 %vm117_vm5, %v879_v61 }
 0x8a3   :  { %4673 = vmatpush3.bf16.msra.mxu0 %v5524_v12  ;;  %4676 = vmatpush3.bf16.msra.mxu1 %v5521_v9 }
 0x8a4   :  { %4092 = vmatprep.subr.mxu0 %v5379_v1  ;;  %4677 = vmatprep.subr.bf16.mxu1 %v5377_v0 }
 0x8a5   :  { %4107 = vmatprep.mubr.msk.f32.mxu1 %vm5378_vm0, %v5379_v1 }
 0x8a7   :  { %4093 = vmatpush3.msk.msra.mxu0 %vm121_vm4, %v5552_v22  ;;  %4679 = vmatpush3.bf16.msra.mxu1 %v5536_v15 }
 0x8a8   :  { %4105 = vmatprep.subr.mxu1 %v5379_v1  ;;  %4680 = vmatprep.subr.bf16.mxu0 %v5377_v0 }
 0x8ab   :  { %4106 = vmatpush3.msk.msra.mxu1 %vm121_vm4, %v5557_v24 }
 0x8ac   :  { %4686 = vmatprep.subr.bf16.mxu1 %v5377_v0 }
 0x971   :  { %v841_v13 = vpop.f32.mrb[6].mxu0 }
 0x972   :  { %v842_v63 = vadd.f32 %v5589_v26, %v841_v13  ;;  %v4070_v2 = vpop.f32.mrb[7].mxu0 }
 0x974   :  { %5065 = vtanh.f32 %v842_v63  ;;  %v3608_v11 = vmul.f32 -1.442695, %v842_v63 }
 0x975   :  { %v948_v3 = vpop.f32.mrb[6].mxu1 }
 0x976   :  { %v949_v6 = vadd.f32 %v5594_v27, %v948_v3  ;;  %v4083_v7 = vpop.f32.mrb[7].mxu1 }
 0x978   :  { %5067 = vtanh.f32 %v949_v6  ;;  %v3611_v14 = vmul.f32 -1.442695, %v949_v6 }
 0x979   :  { %5069 = vpow2.f32 %v3608_v11 }
 0x97a   :  { %5071 = vpow2.f32 %v3611_v14 }
 0x97e   :  { %v5066_v8 = vpop.eup %5065 }
 0x97f   :  { %854 = vrot.lane.b32.xlu0 %v5066_v8, %s5380_s29 }
 0x982   :  { %v5068_v10 = vpop.eup %5067 }
 0x983   :  { %961 = vrot.lane.b32.xlu1 %v5068_v10, %s5380_s29  ;;  %v5070_v17 = vpop.eup %5069 }
 0x984   :  { %v848_v19 = vadd.f32 1.0, %v5070_v17  ;;  %v5072_v20 = vpop.eup %5071 }
 0x985   :  { %v955_v21 = vadd.f32 1.0, %v5072_v20 }
 0x986   :  { %5073 = vrcp.f32 %v848_v19 }
 0x987   :  { %5075 = vrcp.f32 %v955_v21 }
 0x990   :  { %v5074_v23 = vpop.eup %5073 }
 0x991   :  { %v5076_v29 = vpop.eup %5075  ;;  %v852_v32 = vmul.f32 %v5074_v23, %v5713_v36 }
 0x992   :  { %v959_v35 = vmul.f32 %v5076_v29, %v5717_v39 }
 0x9f1   :  { %v855_v25 = vpop.permute.xlu0 %854 }
 0x9f2   :  { %v857_v28 = vmul.f32 %v5074_v23, %v855_v25 }
 0x9f4   :  { %859 = vrot.lane.b32.xlu0 %v857_v28, %s5381_s4 }
 0x9f5   :  { %v962_v30 = vpop.permute.xlu1 %961 }
 0x9f6   :  { %v964_v31 = vmul.f32 %v5076_v29, %v962_v30 }
 0x9f8   :  { %966 = vrot.lane.b32.xlu1 %v964_v31, %s5381_s4 }
 0xa66   :  { %v860_v33 = vpop.permute.xlu0 %859 }
 0xa67   :  { %v5769_v34 = vadd.f32 %v860_v33, %v852_v32 }
 0xa69   :  { %5077 = vtanh.f32 %v5769_v34 }
 0xa6a   :  { %v967_v37 = vpop.permute.xlu1 %966 }
 0xa6b   :  { %v5773_v38 = vadd.f32 %v967_v37, %v959_v35 }
 0xa6d   :  { %5079 = vtanh.f32 %v5773_v38 }
 0xa73   :  { %v5078_v40 = vpop.eup %5077 }
 0xa74   :  { %865 = vrot.lane.b32.xlu0 %v5078_v40, %s5380_s29 }
 0xa77   :  { %v5080_v42 = vpop.eup %5079 }
 0xa78   :  { %972 = vrot.lane.b32.xlu1 %v5080_v42, %s5380_s29 }
 0xae6   :  { %v866_v43 = vpop.permute.xlu0 %865 }
 0xae7   :  { %v5778_v36 = vmul.f32 %v5074_v23, %v866_v43 }
 0xae9   :  { %v977_v45 = vrot.slane %v5778_v36, 4 }
 0xaea   :  { %v973_v46 = vpop.permute.xlu1 %972 }
 0xaeb   :  { %v5781_v44 = vmul.f32 %v5076_v29, %v973_v46  ;;  %978 = vrot.lane.b32.xlu0 %v977_v45, %s5382_s30 }
 0xaed   :  { %v1081_v39 = vrot.slane %v5781_v44, 5 }
 0xaef   :  { %1082 = vrot.lane.b32.xlu1 %v1081_v39, %s5382_s30 }
 0xb5d   :  { %v979_v50 = vpop.permute.xlu0 %978 }
 0xb5e   :  { %v981_v52 = vsel %vm109_vm1, %v5738_v55, %v979_v50 }
 0xb5f   :  { %v983_v54 = vrot.slane %v981_v52, 4 }
 0xb61   :  { %v1083_v56 = vpop.permute.xlu1 %1082  ;;  %4095 = vmatmul.mubr.msk.f32.vlgmr.msra.gmra.mrb[8].mxu0 %vm117_vm5, %v983_v54 }
 0xb62   :  { %v1085_v59 = vsel %vm109_vm1, %v5732_v49, %v1083_v56  ;;  %4682 = vmatpush3.bf16.msra.mxu0 %v5519_v5  ;;  %4120 = vmatprep.mubr.msk.f32.mxu0 %vm5378_vm0, %v5379_v1 }
 0xb63   :  { %v1087_v61 = vrot.slane %v1085_v59, 3  ;;  %4683 = vmatprep.subr.bf16.mxu0 %v5377_v0 }
 0xb65   :  { %4108 = vmatmul.mubr.msk.f32.vlgmr.msra.gmra.mrb[8].mxu1 %vm117_vm5, %v1087_v61 }
 0xb66   :  { %4685 = vmatpush3.bf16.msra.mxu0 %v5524_v12  ;;  %4688 = vmatpush3.bf16.msra.mxu1 %v5521_v9 }
 0xb67   :  { %4118 = vmatprep.subr.mxu0 %v5379_v1  ;;  %4689 = vmatprep.subr.bf16.mxu1 %v5377_v0 }
 0xb68   :  { %4133 = vmatprep.mubr.msk.f32.mxu1 %vm5378_vm0, %v5379_v1 }
 0xb6a   :  { %4119 = vmatpush3.msk.msra.mxu0 %vm121_vm4, %v5552_v22  ;;  %4691 = vmatpush3.bf16.msra.mxu1 %v5536_v15 }
 0xb6b   :  { %4131 = vmatprep.subr.mxu1 %v5379_v1  ;;  %4692 = vmatprep.subr.bf16.mxu0 %v5377_v0 }
 0xb6e   :  { %4132 = vmatpush3.msk.msra.mxu1 %vm121_vm4, %v5557_v24 }
 0xb6f   :  { %4698 = vmatprep.subr.bf16.mxu1 %v5377_v0 }
 0xc34   :  { %v1052_v49 = vpop.f32.mrb[8].mxu0 }
 0xc35   :  { %v1053_v55 = vadd.f32 %v5589_v26, %v1052_v49  ;;  %v4096_v13 = vpop.f32.mrb[9].mxu0 }
 0xc37   :  { %5081 = vtanh.f32 %v1053_v55  ;;  %v3614_v8 = vmul.f32 -1.442695, %v1053_v55 }
 0xc38   :  { %v1156_v63 = vpop.f32.mrb[8].mxu1 }
 0xc39   :  { %v1157_v2 = vadd.f32 %v5594_v27, %v1156_v63  ;;  %v4109_v3 = vpop.f32.mrb[9].mxu1 }
 0xc3b   :  { %5083 = vtanh.f32 %v1157_v2  ;;  %v3617_v10 = vmul.f32 -1.442695, %v1157_v2 }
 0xc3c   :  { %5085 = vpow2.f32 %v3614_v8 }
 0xc3d   :  { %5087 = vpow2.f32 %v3617_v10 }
 0xc41   :  { %v5082_v6 = vpop.eup %5081 }
 0xc42   :  { %1065 = vrot.lane.b32.xlu0 %v5082_v6, %s5380_s29 }
 0xc45   :  { %v5084_v7 = vpop.eup %5083 }
 0xc46   :  { %1169 = vrot.lane.b32.xlu1 %v5084_v7, %s5380_s29  ;;  %v5086_v11 = vpop.eup %5085 }
 0xc47   :  { %v1059_v14 = vadd.f32 1.0, %v5086_v11  ;;  %v5088_v17 = vpop.eup %5087 }
 0xc48   :  { %v1163_v19 = vadd.f32 1.0, %v5088_v17 }
 0xc49   :  { %5089 = vrcp.f32 %v1059_v14 }
 0xc4a   :  { %5091 = vrcp.f32 %v1163_v19 }
 0xc53   :  { %v5090_v20 = vpop.eup %5089 }
 0xc54   :  { %v5092_v25 = vpop.eup %5091  ;;  %v1063_v30 = vmul.f32 %v5090_v20, %v5769_v34 }
 0xc55   :  { %v1167_v33 = vmul.f32 %v5092_v25, %v5773_v38 }
 0xcb4   :  { %v1066_v21 = vpop.permute.xlu0 %1065 }
 0xcb5   :  { %v1068_v23 = vmul.f32 %v5090_v20, %v1066_v21 }
 0xcb7   :  { %1070 = vrot.lane.b32.xlu0 %v1068_v23, %s5381_s4 }
 0xcb8   :  { %v1170_v28 = vpop.permute.xlu1 %1169 }
 0xcb9   :  { %v1172_v29 = vmul.f32 %v5092_v25, %v1170_v28 }
 0xcbb   :  { %1174 = vrot.lane.b32.xlu1 %v1172_v29, %s5381_s4 }
 0xd29   :  { %v1071_v31 = vpop.permute.xlu0 %1070 }
 0xd2a   :  { %v5817_v32 = vadd.f32 %v1071_v31, %v1063_v30 }
 0xd2c   :  { %5093 = vtanh.f32 %v5817_v32 }
 0xd2d   :  { %v1175_v35 = vpop.permute.xlu1 %1174 }
 0xd2e   :  { %v5821_v37 = vadd.f32 %v1175_v35, %v1167_v33 }
 0xd30   :  { %5095 = vtanh.f32 %v5821_v37 }
 0xd36   :  { %v5094_v40 = vpop.eup %5093 }
 0xd37   :  { %1076 = vrot.lane.b32.xlu0 %v5094_v40, %s5380_s29 }
 0xd3a   :  { %v5096_v42 = vpop.eup %5095 }
 0xd3b   :  { %1180 = vrot.lane.b32.xlu1 %v5096_v42, %s5380_s29 }
 0xda9   :  { %v1077_v43 = vpop.permute.xlu0 %1076 }
 0xdaa   :  { %v5826_v34 = vmul.f32 %v5090_v20, %v1077_v43 }
 0xdac   :  { %v1185_v45 = vrot.slane %v5826_v34, 3 }
 0xdad   :  { %v1181_v46 = vpop.permute.xlu1 %1180 }
 0xdae   :  { %v5829_v39 = vmul.f32 %v5092_v25, %v1181_v46  ;;  %1186 = vrot.lane.b32.xlu0 %v1185_v45, %s5382_s30 }
 0xdb0   :  { %v1289_v38 = vrot.slane %v5829_v39, 6 }
 0xdb2   :  { %1290 = vrot.lane.b32.xlu1 %v1289_v38, %s5382_s30 }
 0xe20   :  { %v1187_v50 = vpop.permute.xlu0 %1186 }
 0xe21   :  { %v1189_v52 = vsel %vm109_vm1, %v5682_v58, %v1187_v50 }
 0xe22   :  { %v1191_v54 = vrot.slane %v1189_v52, 5 }
 0xe24   :  { %v1291_v56 = vpop.permute.xlu1 %1290  ;;  %4121 = vmatmul.mubr.msk.f32.vlgmr.msra.gmra.mrb[10].mxu0 %vm117_vm5, %v1191_v54 }
 0xe25   :  { %v1293_v59 = vsel %vm109_vm1, %v5676_v53, %v1291_v56  ;;  %4694 = vmatpush3.bf16.msra.mxu0 %v5519_v5  ;;  %4146 = vmatprep.mubr.msk.f32.mxu0 %vm5378_vm0, %v5379_v1 }
 0xe26   :  { %v1295_v61 = vrot.slane %v1293_v59, 2  ;;  %4695 = vmatprep.subr.bf16.mxu0 %v5377_v0 }
 0xe28   :  { %4134 = vmatmul.mubr.msk.f32.vlgmr.msra.gmra.mrb[10].mxu1 %vm117_vm5, %v1295_v61 }
 0xe29   :  { %4697 = vmatpush3.bf16.msra.mxu0 %v5524_v12  ;;  %4700 = vmatpush3.bf16.msra.mxu1 %v5521_v9 }
 0xe2a   :  { %4144 = vmatprep.subr.mxu0 %v5379_v1  ;;  %4701 = vmatprep.subr.bf16.mxu1 %v5377_v0 }
 0xe2b   :  { %4159 = vmatprep.mubr.msk.f32.mxu1 %vm5378_vm0, %v5379_v1 }
 0xe2d   :  { %4145 = vmatpush3.msk.msra.mxu0 %vm121_vm4, %v5552_v22  ;;  %4703 = vmatpush3.bf16.msra.mxu1 %v5536_v15 }
 0xe2e   :  { %4157 = vmatprep.subr.mxu1 %v5379_v1  ;;  %4704 = vmatprep.subr.bf16.mxu0 %v5377_v0 }
 0xe31   :  { %4158 = vmatpush3.msk.msra.mxu1 %vm121_vm4, %v5557_v24 }
 0xe32   :  { %4710 = vmatprep.subr.bf16.mxu1 %v5377_v0 }
 0xef7   :  { %v1260_v53 = vpop.f32.mrb[10].mxu0 }
 0xef8   :  { %v1261_v58 = vadd.f32 %v5589_v26, %v1260_v53  ;;  %v4122_v49 = vpop.f32.mrb[11].mxu0 }
 0xefa   :  { %5097 = vtanh.f32 %v1261_v58  ;;  %v3620_v6 = vmul.f32 -1.442695, %v1261_v58 }
 0xefb   :  { %v1364_v55 = vpop.f32.mrb[10].mxu1 }
 0xefc   :  { %v1365_v13 = vadd.f32 %v5594_v27, %v1364_v55  ;;  %v4135_v63 = vpop.f32.mrb[11].mxu1 }
 0xefe   :  { %5099 = vtanh.f32 %v1365_v13  ;;  %v3623_v7 = vmul.f32 -1.442695, %v1365_v13 }
 0xeff   :  { %5101 = vpow2.f32 %v3620_v6 }
 0xf00   :  { %5103 = vpow2.f32 %v3623_v7 }
 0xf04   :  { %v5098_v2 = vpop.eup %5097 }
 0xf05   :  { %1273 = vrot.lane.b32.xlu0 %v5098_v2, %s5380_s29 }
 0xf08   :  { %v5100_v3 = vpop.eup %5099 }
 0xf09   :  { %1377 = vrot.lane.b32.xlu1 %v5100_v3, %s5380_s29  ;;  %v5102_v8 = vpop.eup %5101 }
 0xf0a   :  { %v1267_v10 = vadd.f32 1.0, %v5102_v8  ;;  %v5104_v11 = vpop.eup %5103 }
 0xf0b   :  { %v1371_v14 = vadd.f32 1.0, %v5104_v11 }
 0xf0c   :  { %5105 = vrcp.f32 %v1267_v10 }
 0xf0d   :  { %5107 = vrcp.f32 %v1371_v14 }
 0xf16   :  { %v5106_v17 = vpop.eup %5105 }
 0xf17   :  { %v5108_v21 = vpop.eup %5107  ;;  %v1271_v28 = vmul.f32 %v5106_v17, %v5817_v32 }
 0xf18   :  { %v1375_v31 = vmul.f32 %v5108_v21, %v5821_v37 }
 0xf77   :  { %v1274_v19 = vpop.permute.xlu0 %1273 }
 0xf78   :  { %v1276_v20 = vmul.f32 %v5106_v17, %v1274_v19 }
 0xf7a   :  { %1278 = vrot.lane.b32.xlu0 %v1276_v20, %s5381_s4 }
 0xf7b   :  { %v1378_v23 = vpop.permute.xlu1 %1377 }
 0xf7c   :  { %v1380_v25 = vmul.f32 %v5108_v21, %v1378_v23 }
 0xf7e   :  { %1382 = vrot.lane.b32.xlu1 %v1380_v25, %s5381_s4 }
 0xfec   :  { %v1279_v29 = vpop.permute.xlu0 %1278 }
 0xfed   :  { %v5865_v30 = vadd.f32 %v1279_v29, %v1271_v28 }
 0xfef   :  { %5109 = vtanh.f32 %v5865_v30 }
 0xff0   :  { %v1383_v33 = vpop.permute.xlu1 %1382 }
 0xff1   :  { %v5869_v35 = vadd.f32 %v1383_v33, %v1375_v31 }
 0xff3   :  { %5111 = vtanh.f32 %v5869_v35 }
 0xff9   :  { %v5110_v40 = vpop.eup %5109 }
 0xffa   :  { %1284 = vrot.lane.b32.xlu0 %v5110_v40, %s5380_s29 }
 0xffd   :  { %v5112_v42 = vpop.eup %5111 }
 0xffe   :  { %1388 = vrot.lane.b32.xlu1 %v5112_v42, %s5380_s29 }
0x106c   :  { %v1285_v43 = vpop.permute.xlu0 %1284 }
0x106d   :  { %v5874_v32 = vmul.f32 %v5106_v17, %v1285_v43 }
0x106f   :  { %v1393_v45 = vrot.slane %v5874_v32, 2 }
0x1070   :  { %v1389_v46 = vpop.permute.xlu1 %1388 }
0x1071   :  { %v5877_v38 = vmul.f32 %v5108_v21, %v1389_v46  ;;  %1394 = vrot.lane.b32.xlu0 %v1393_v45, %s5382_s30 }
0x1073   :  { %v1497_v37 = vrot.slane %v5877_v38, 7 }
0x1075   :  { %1498 = vrot.lane.b32.xlu1 %v1497_v37, %s5382_s30 }
0x10e3   :  { %v1395_v50 = vpop.permute.xlu0 %1394 }
0x10e4   :  { %v1397_v52 = vsel %vm109_vm1, %v5626_v4, %v1395_v50 }
0x10e5   :  { %v1399_v54 = vrot.slane %v1397_v52, 6 }
0x10e7   :  { %v1499_v56 = vpop.permute.xlu1 %1498  ;;  %4147 = vmatmul.mubr.msk.f32.vlgmr.msra.gmra.mrb[12].mxu0 %vm117_vm5, %v1399_v54 }
0x10e8   :  { %v1501_v59 = vsel %vm109_vm1, %v5620_v62, %v1499_v56  ;;  %4706 = vmatpush3.bf16.msra.mxu0 %v5519_v5  ;;  %4172 = vmatprep.mubr.msk.f32.mxu0 %vm5378_vm0, %v5379_v1 }
0x10e9   :  { %v1503_v61 = vrot.slane %v1501_v59, 1  ;;  %4707 = vmatprep.subr.bf16.mxu0 %v5377_v0 }
0x10eb   :  { %4160 = vmatmul.mubr.msk.f32.vlgmr.msra.gmra.mrb[12].mxu1 %vm117_vm5, %v1503_v61 }
0x10ec   :  { %4712 = vmatpush3.bf16.msra.mxu1 %v5521_v9  ;;  %4709 = vmatpush3.bf16.msra.mxu0 %v5524_v12 }
0x10ed   :  { %4713 = vmatprep.subr.bf16.mxu1 %v5377_v0  ;;  %4170 = vmatprep.subr.mxu0 %v5379_v1 }
0x10ee   :  { %4185 = vmatprep.mubr.msk.f32.mxu1 %vm5378_vm0, %v5379_v1 }
0x10f0   :  { %4715 = vmatpush3.bf16.msra.mxu1 %v5536_v15  ;;  %4171 = vmatpush3.msk.msra.mxu0 %vm121_vm4, %v5552_v22 }
0x10f1   :  { %4183 = vmatprep.subr.mxu1 %v5379_v1  ;;  %4716 = vmatprep.subr.bf16.mxu0 %v5377_v0 }
0x10f4   :  { %4184 = vmatpush3.msk.msra.mxu1 %vm121_vm4, %v5557_v24 }
0x10f5   :  { %4734 = vmatprep.subr.bf16.mxu1 %v5377_v0 }
0x11ba   :  { %v1468_v5 = vpop.f32.mrb[12].mxu0 }
0x11bb   :  { %v1469_v9 = vadd.f32 %v5589_v26, %v1468_v5  ;;  %v4148_v12 = vpop.f32.mrb[13].mxu0 }
0x11bd   :  { %5113 = vtanh.f32 %v1469_v9  ;;  %v3626_v58 = vmul.f32 -1.442695, %v1469_v9 }
0x11be   :  { %v1572_v62 = vpop.f32.mrb[12].mxu1 }
0x11bf   :  { %v1573_v15 = vadd.f32 %v5594_v27, %v1572_v62  ;;  %v4161_v4 = vpop.f32.mrb[13].mxu1 }
0x11c1   :  { %5115 = vtanh.f32 %v1573_v15  ;;  %v3629_v24 = vmul.f32 -1.442695, %v1573_v15 }
0x11c2   :  { %5117 = vpow2.f32 %v3626_v58 }
0x11c3   :  { %5119 = vpow2.f32 %v3629_v24 }
0x11c7   :  { %v5114_v22 = vpop.eup %5113 }
0x11c8   :  { %1481 = vrot.lane.b32.xlu0 %v5114_v22, %s5380_s29 }
0x11cb   :  { %v5116_v53 = vpop.eup %5115 }
0x11cc   :  { %1585 = vrot.lane.b32.xlu1 %v5116_v53, %s5380_s29  ;;  %v5118_v49 = vpop.eup %5117 }
0x11cd   :  { %v1475_v55 = vadd.f32 1.0, %v5118_v49  ;;  %v5120_v26 = vpop.eup %5119 }
0x11ce   :  { %v1579_v13 = vadd.f32 1.0, %v5120_v26 }
0x11cf   :  { %5121 = vrcp.f32 %v1475_v55 }
0x11d0   :  { %5123 = vrcp.f32 %v1579_v13 }
0x11d9   :  { %v5122_v63 = vpop.eup %5121 }
0x11da   :  { %v5124_v6 = vpop.eup %5123  ;;  %v1479_v10 = vmul.f32 %v5122_v63, %v5865_v30 }
0x11db   :  { %v1583_v17 = vmul.f32 %v5124_v6, %v5869_v35  ;;  %v5273_v35 = vld [vmem:[%s6496_s0] sm:$0xff] }
0x123a   :  { %v1482_v2 = vpop.permute.xlu0 %1481 }
0x123b   :  { %v1484_v3 = vmul.f32 %v5122_v63, %v1482_v2 }
0x123d   :  { %1486 = vrot.lane.b32.xlu0 %v1484_v3, %s5381_s4 }
0x123e   :  { %v1586_v7 = vpop.permute.xlu1 %1585 }
0x123f   :  { %v1588_v8 = vmul.f32 %v5124_v6, %v1586_v7 }
0x1241   :  { %1590 = vrot.lane.b32.xlu1 %v1588_v8, %s5381_s4  ;;  %v1887_v8 = vld [vmem:[#allocation6] sm:$0xff] }
0x12af   :  { %v1487_v11 = vpop.permute.xlu0 %1486 }
0x12b0   :  { %v5913_v14 = vadd.f32 %v1487_v11, %v1479_v10  ;;  %v1888_v10 = vld [vmem:[#allocation6 + $0x8] sm:$0xff]  ;;  %v1889_v11 = vld [vmem:[#allocation6 + $0x10] sm:$0xff] }
0x12b2   :  { %5125 = vtanh.f32 %v5913_v14 }
0x12b3   :  { %v1591_v19 = vpop.permute.xlu1 %1590 }
0x12b4   :  { %v1593_v20 = vadd.f32 %v1591_v19, %v1583_v17  ;;  %v5965_v17 = vpack.c.bf16 %v1888_v10, %v1887_v8  ;;  %v1890_v19 = vld [vmem:[#allocation6 + $0x18] sm:$0xff] }
0x12b6   :  { %5127 = vtanh.f32 %v1593_v20 }
0x12bc   :  { %v5126_v21 = vpop.eup %5125 }
0x12bd   :  { %1492 = vrot.lane.b32.xlu0 %v5126_v21, %s5380_s29  ;;  %v1901_v21 = vld [vmem:[#allocation7 + $0x8] sm:$0xff] }
0x12c0   :  { %v5128_v23 = vpop.eup %5127 }
0x12c1   :  { %1596 = vrot.lane.b32.xlu1 %v5128_v23, %s5380_s29 }
0x132f   :  { %v1493_v25 = vpop.permute.xlu0 %1492 }
0x1330   :  { %v5919_v28 = vmul.f32 %v5122_v63, %v1493_v25  ;;  %v5970_v25 = vpack.c.bf16 %v1890_v19, %v1889_v11  ;;  %v6073_v11 = vld [vmem:[%s6502_s6] ss:$0 sm:$0xff] }
0x1332   :  { %v1601_v29 = vrot.slane %v5919_v28, 1 }
0x1333   :  { %v1597_v30 = vpop.permute.xlu1 %1596 }
0x1334   :  { %v5922_v31 = vmul.f32 %v5124_v6, %v1597_v30  ;;  %1602 = vrot.lane.b32.xlu0 %v1601_v29, %s5382_s30  ;;  %v1903_v29 = vld [vmem:[#allocation7 + $0x18] sm:$0xff]  ;;  %v1891_v30 = vld [vmem:[#allocation6 + $0x20] sm:$0xff] }
0x1336   :  { %1709 = vrot.lane.b32.xlu1 %v5922_v31, %s5382_s30 }
0x13a6   :  { %v1603_v33 = vpop.permute.xlu0 %1602 }
0x13a7   :  { %v1605_v40 = vsel %vm109_vm1, %v5273_v35, %v1603_v33  ;;  %v1606_v42 = vsel %vm109_vm1, %v5538_v16, %v1603_v33  ;;  %v1892_v33 = vld [vmem:[#allocation6 + $0x28] sm:$0xff] }
0x13a8   :  { %v1609_v43 = vrot.slane %v1605_v40, 7  ;;  %v1610_v45 = vrot.slane %v1606_v42, 7  ;;  %v1710_v46 = vpop.permute.xlu1 %1709  ;;  %v1904_v42 = vld [vmem:[#allocation7 + $0x20] sm:$0xff] }
0x13a9   :  { %v1712_v37 = vsel %vm109_vm1, %v5545_v18, %v1710_v46  ;;  %v5274_v18 = vld [vmem:[%s6498_s2] ss:$0 sm:$0xff]  ;;  %v5979_v46 = vpack.c.bf16 %v1892_v33, %v1891_v30 }
0x13aa   :  { %4186 = vmatmul.mubr.msk.f32.vlgmr.msra.gmra.mrb[14].mxu1 %vm117_vm5, %v1712_v37  ;;  %v1611_v50 = vsel %vm231_vm3, %v1609_v43, %v1610_v45  ;;  %v1905_v43 = vld [vmem:[#allocation7 + $0x28] sm:$0xff]  ;;  %v1893_v37 = vld [vmem:[#allocation6 + $0x30] sm:$0xff] }
0x13ab   :  { %4173 = vmatmul.mubr.msk.f32.vlgmr.msra.gmra.mrb[14].mxu0 %vm117_vm5, %v1611_v50  ;;  %4239 = vmatprep.mubr.msk.f32.mxu1 %vm5378_vm0, %v5379_v1  ;;  %v1894_v50 = vld [vmem:[#allocation6 + $0x38] sm:$0xff] }
0x13ac   :  { %4212 = vmatprep.mubr.msk.f32.mxu0 %vm5378_vm0, %v5379_v1  ;;  %4718 = vmatpush3.bf16.msra.mxu0 %v5965_v17 }
0x13ad   :  { %4719 = vmatprep.subr.bf16.mxu0 %v5377_v0 }
0x13b0   :  { %4721 = vmatpush3.bf16.msra.mxu0 %v5970_v25 }
0x13b1   :  { %4722 = vmatprep.subr.bf16.mxu0 %v5377_v0 }
0x13b4   :  { %4724 = vmatpush3.bf16.msra.mxu0 %v5979_v46 }
0x13b5   :  { %4725 = vmatprep.subr.bf16.mxu0 %v5377_v0 }
0x147d   :  { %v1782_v52 = vpop.f32.mrb[14].mxu1 }
0x147e   :  { %v1783_v16 = vadd.f32 %v5594_v27, %v1782_v52  ;;  %v1680_v54 = vpop.f32.mrb[14].mxu0  ;;  %v4187_v56 = vpop.f32.mrb[15].mxu1  ;;  %v5984_v52 = vpack.c.bf16 %v1905_v43, %v1904_v42 }
0x147f   :  { %v1681_v59 = vadd.f32 %v5274_v18, %v1680_v54  ;;  %v4174_v61 = vpop.f32.mrb[15].mxu0  ;;  %v1907_v54 = vld [vmem:[#allocation7 + $0x38] sm:$0xff]  ;;  %v5988_v56 = vpack.c.bf16 %v1894_v50, %v1893_v37  ;;  %v1895_v18 = vld [vmem:[#allocation6 + $0x40] sm:$0xff] }
0x1480   :  { %5129 = vtanh.f32 %v1783_v16  ;;  %v3635_v12 = vmul.f32 -1.442695, %v1783_v16  ;;  %v1906_v16 = vld [vmem:[#allocation7 + $0x30] sm:$0xff] }
0x1481   :  { %5131 = vtanh.f32 %v1681_v59  ;;  %v3632_v62 = vmul.f32 -1.442695, %v1681_v59  ;;  %v1896_v59 = vld [vmem:[#allocation6 + $0x48] sm:$0xff]  ;;  %v5994_v61 = vpack.c.bf16 %v1907_v54, %v1906_v16  ;;  %4727 = vmatpush3.bf16.msra.mxu0 %v5988_v56 }
0x1482   :  { %5133 = vpow2.f32 %v3635_v12  ;;  %v5998_v12 = vpack.c.bf16 %v1896_v59, %v1895_v18  ;;  %4728 = vmatprep.subr.bf16.mxu0 %v5377_v0 }
0x1483   :  { %5135 = vpow2.f32 %v3632_v62  ;;  %v1897_v62 = vld [vmem:[#allocation6 + $0x50] sm:$0xff] }
0x1485   :  { %4730 = vmatpush3.bf16.msra.mxu0 %v5998_v12 }
0x1486   :  { %4731 = vmatprep.subr.bf16.mxu0 %v5377_v0 }
0x148a   :  { %v5130_v5 = vpop.eup %5129 }
0x148b   :  { %v5132_v9 = vpop.eup %5131  ;;  %1795 = vrot.lane.b32.xlu1 %v5130_v5, %s5380_s29  ;;  %v1908_v5 = vld [vmem:[#allocation7 + $0x40] sm:$0xff] }
0x148c   :  { %1693 = vrot.lane.b32.xlu0 %v5132_v9, %s5380_s29  ;;  %v5134_v27 = vpop.eup %5133  ;;  %v1909_v9 = vld [vmem:[#allocation7 + $0x48] sm:$0xff] }
0x148d   :  { %v5136_v15 = vpop.eup %5135  ;;  %v1789_v4 = vadd.f32 1.0, %v5134_v27  ;;  %v1898_v27 = vld [vmem:[#allocation6 + $0x58] sm:$0xff] }
0x148e   :  { %v1687_v22 = vadd.f32 1.0, %v5136_v15  ;;  %v6009_v15 = vpack.c.bf16 %v1898_v27, %v1897_v62 }
0x148f   :  { %5137 = vrcp.f32 %v1789_v4  ;;  %v1910_v4 = vld [vmem:[#allocation7 + $0x50] sm:$0xff] }
0x1490   :  { %5139 = vrcp.f32 %v1687_v22  ;;  %4733 = vmatpush3.bf16.msra.mxu0 %v6009_v15  ;;  %v1911_v22 = vld [vmem:[#allocation7 + $0x58] sm:$0xff] }
0x1491   :  { %4752 = vmatprep.subr.bf16.mxu0 %v5377_v0 }
0x1499   :  { %v5948_v53 = vpop.eup %5137 }
0x149a   :  { %v5950_v24 = vpop.eup %5139  ;;  %v1793_v13 = vmul.f32 %v5948_v53, %v1593_v20  ;;  %v1900_v20 = vld [vmem:[#allocation7] sm:$0xff] }
0x149b   :  { %v1691_v2 = vmul.f32 %v5950_v24, %v5913_v14  ;;  %v5967_v23 = vpack.c.bf16 %v1901_v21, %v1900_v20  ;;  %v1902_v14 = vld [vmem:[#allocation7 + $0x10] sm:$0xff] }
0x149c   :  { %v5975_v35 = vpack.c.bf16 %v1903_v29, %v1902_v14  ;;  %v6079_v14 = vld [vmem:[%s6504_s8] ss:$0 sm:$0xff] }
0x149d   :  { %4736 = vmatpush3.bf16.msra.mxu1 %v5967_v23 }
0x149e   :  { %4737 = vmatprep.subr.bf16.mxu1 %v5377_v0 }
0x14a1   :  { %4739 = vmatpush3.bf16.msra.mxu1 %v5975_v35 }
0x14a2   :  { %4740 = vmatprep.subr.bf16.mxu1 %v5377_v0 }
0x14a5   :  { %4742 = vmatpush3.bf16.msra.mxu1 %v5984_v52 }
0x14a6   :  { %4743 = vmatprep.subr.bf16.mxu1 %v5377_v0 }
0x14a9   :  { %4745 = vmatpush3.bf16.msra.mxu1 %v5994_v61 }
0x14aa   :  { %4746 = vmatprep.subr.bf16.mxu1 %v5377_v0 }
0x14fd   :  { %v1796_v58 = vpop.permute.xlu1 %1795 }
0x14fe   :  { %v1798_v49 = vmul.f32 %v5948_v53, %v1796_v58  ;;  %v1694_v55 = vpop.permute.xlu0 %1693  ;;  %v6013_v58 = vpack.c.bf16 %v1911_v22, %v1910_v4 }
0x14ff   :  { %v1696_v26 = vmul.f32 %v5950_v24, %v1694_v55 }
0x1500   :  { %1800 = vrot.lane.b32.xlu1 %v1798_v49, %s5381_s4 }
0x1501   :  { %1698 = vrot.lane.b32.xlu0 %v1696_v26, %s5381_s4 }
0x1572   :  { %v1801_v63 = vpop.permute.xlu1 %1800 }
0x1573   :  { %v5959_v3 = vadd.f32 %v1801_v63, %v1793_v13  ;;  %v1699_v6 = vpop.permute.xlu0 %1698 }
0x1574   :  { %v5961_v7 = vadd.f32 %v1699_v6, %v1691_v2 }
0x1575   :  { %5141 = vtanh.f32 %v5959_v3 }
0x1576   :  { %5143 = vtanh.f32 %v5961_v7 }
0x157f   :  { %v5142_v40 = vpop.eup %5141 }
0x1580   :  { %v5144_v45 = vpop.eup %5143  ;;  %1806 = vrot.lane.b32.xlu1 %v5142_v40, %s5380_s29 }
0x1581   :  { %1704 = vrot.lane.b32.xlu0 %v5144_v45, %s5380_s29 }
0x1585   :  { %1810 = vrot.lane.b32.xlu0 %v5610_v57, %s5381_s4  ;;  %v6002_v57 = vpack.c.bf16 %v1909_v9, %v1908_v5 }
0x1587   :  { %4748 = vmatpush3.bf16.msra.mxu1 %v6002_v57 }
0x1588   :  { %4749 = vmatprep.subr.bf16.mxu1 %v5377_v0 }
0x158b   :  { %4751 = vmatpush3.bf16.msra.mxu1 %v6013_v58 }
0x158c   :  { %4770 = vmatprep.subr.bf16.mxu1 %v5377_v0 }
0x15f2   :  { %v1807_v49 = vpop.permute.xlu1 %1806 }
0x15f3   :  { %v6018_v55 = vmul.f32 %v5948_v53, %v1807_v49  ;;  %v1705_v26 = vpop.permute.xlu0 %1704 }
0x15f4   :  { %v1707_v13 = vmul.f32 %v5950_v24, %v1705_v26 }
0x15f5   :  { %1814 = vrot.lane.b32.xlu1 %v6018_v55, %s5380_s29 }
0x15f6   :  { %1862 = vrot.lane.b32.xlu0 %v1707_v13, %s5381_s4 }
0x15f7   :  { %v1811_v63 = vpop.permute.xlu0 %1810 }
0x15f9   :  { %1865 = vrot.lane.b32.xlu1 %v5613_v60, %s5380_s29 }
0x1667   :  { %v1815_v2 = vpop.permute.xlu1 %1814 }
0x1668   :  { %v6027_v53 = vsel %vm1817_vm12, %v1811_v63, %v1815_v2  ;;  %v1863_v6 = vpop.permute.xlu0 %1862 }
0x1669   :  { %v1914_v24 = vsel %vm1913_vm13, %v6027_v53, 0.0  ;;  %1870 = vst.msk [vmem:[%s6505_s9] sm:$0x3] %vm1869_vm14, %v1863_v6 }
0x166a   :  { %4213 = vmatmul.mubr.msk.f32.vlgmr.msra.gmra.mrb[16].mxu0 %vm1921_vm15, %v1914_v24 }
0x166b   :  { %v1866_v60 = vpop.permute.xlu1 %1865  ;;  %4754 = vmatpush3.bf16.msra.mxu0 %v5965_v17  ;;  %4266 = vmatprep.mubr.msk.f32.mxu0 %vm5378_vm0, %v5379_v1 }
0x166c   :  { %v6040_v8 = vsel %vm1817_vm12, %v1863_v6, %v1866_v60  ;;  %4755 = vmatprep.subr.bf16.mxu0 %v5377_v0 }
0x166d   :  { %v2019_v10 = vsel %vm1913_vm13, %v6040_v8, 0.0 }
0x166e   :  { %4240 = vmatmul.mubr.msk.f32.vlgmr.msra.gmra.mrb[16].mxu1 %vm1921_vm15, %v2019_v10 }
0x166f   :  { %4757 = vmatpush3.bf16.msra.mxu0 %v5970_v25  ;;  %4772 = vmatpush3.bf16.msra.mxu1 %v5967_v23 }
0x1670   :  { %4758 = vmatprep.subr.bf16.mxu0 %v5377_v0  ;;  %4773 = vmatprep.subr.bf16.mxu1 %v5377_v0 }
0x1671   :  { %4293 = vmatprep.mubr.msk.f32.mxu1 %vm5378_vm0, %v5379_v1 }
0x1673   :  { %4760 = vmatpush3.bf16.msra.mxu0 %v5979_v46  ;;  %4775 = vmatpush3.bf16.msra.mxu1 %v5975_v35 }
0x1674   :  { %4761 = vmatprep.subr.bf16.mxu0 %v5377_v0  ;;  %4776 = vmatprep.subr.bf16.mxu1 %v5377_v0 }
0x1677   :  { %4763 = vmatpush3.bf16.msra.mxu0 %v5988_v56  ;;  %4778 = vmatpush3.bf16.msra.mxu1 %v5984_v52 }
0x1678   :  { %4764 = vmatprep.subr.bf16.mxu0 %v5377_v0  ;;  %4779 = vmatprep.subr.bf16.mxu1 %v5377_v0 }
0x167b   :  { %4766 = vmatpush3.bf16.msra.mxu0 %v5998_v12  ;;  %4781 = vmatpush3.bf16.msra.mxu1 %v5994_v61 }
0x167c   :  { %4767 = vmatprep.subr.bf16.mxu0 %v5377_v0  ;;  %4782 = vmatprep.subr.bf16.mxu1 %v5377_v0 }
0x167f   :  { %4769 = vmatpush3.bf16.msra.mxu0 %v6009_v15  ;;  %4784 = vmatpush3.bf16.msra.mxu1 %v6002_v57 }
0x1680   :  { %4785 = vmatprep.subr.bf16.mxu1 %v5377_v0  ;;  %4788 = vmatprep.subr.bf16.mxu0 %v5377_v0 }
0x1683   :  { %4787 = vmatpush3.bf16.msra.mxu1 %v6013_v58 }
0x1684   :  { %4806 = vmatprep.subr.bf16.mxu1 %v5377_v0 }
0x173d   :  { %v1991_v19 = vpop.f32.mrb[16].mxu0 }
0x173e   :  { %v1992_v20 = vadd.f32 %v6073_v11, %v1991_v19  ;;  %v4214_v21 = vpop.f32.mrb[17].mxu0 }
0x1740   :  { %5145 = vtanh.f32 %v1992_v20  ;;  %v3640_v43 = vmul.f32 -1.442695, %v1992_v20 }
0x1741   :  { %v2095_v29 = vpop.f32.mrb[16].mxu1 }
0x1742   :  { %v2096_v30 = vadd.f32 %v6079_v14, %v2095_v29  ;;  %v4241_v33 = vpop.f32.mrb[17].mxu1 }
0x1744   :  { %5147 = vtanh.f32 %v2096_v30  ;;  %v3643_v45 = vmul.f32 -1.442695, %v2096_v30 }
0x1745   :  { %5149 = vpow2.f32 %v3640_v43 }
0x1746   :  { %5151 = vpow2.f32 %v3643_v45 }
0x174a   :  { %v5146_v40 = vpop.eup %5145 }
0x174b   :  { %2004 = vrot.lane.b32.xlu0 %v5146_v40, %s5380_s29 }
0x174e   :  { %v5148_v42 = vpop.eup %5147 }
0x174f   :  { %2108 = vrot.lane.b32.xlu1 %v5148_v42, %s5380_s29  ;;  %v5150_v37 = vpop.eup %5149 }
0x1750   :  { %v1998_v50 = vadd.f32 1.0, %v5150_v37  ;;  %v5152_v16 = vpop.eup %5151 }
0x1751   :  { %v2102_v54 = vadd.f32 1.0, %v5152_v16 }
0x1752   :  { %5153 = vrcp.f32 %v1998_v50 }
0x1753   :  { %5155 = vrcp.f32 %v2102_v54 }
0x175c   :  { %v5154_v18 = vpop.eup %5153 }
0x175d   :  { %v5156_v9 = vpop.eup %5155  ;;  %v2002_v4 = vmul.f32 0.0, %v5154_v18 }
0x175e   :  { %v2106_v26 = vmul.f32 0.0, %v5156_v9 }
0x17bd   :  { %v2005_v59 = vpop.permute.xlu0 %2004 }
0x17be   :  { %v2007_v5 = vmul.f32 %v5154_v18, %v2005_v59 }
0x17c0   :  { %2009 = vrot.lane.b32.xlu0 %v2007_v5, %s5381_s4 }
0x17c1   :  { %v2109_v62 = vpop.permute.xlu1 %2108 }
0x17c2   :  { %v2111_v27 = vmul.f32 %v5156_v9, %v2109_v62 }
0x17c4   :  { %2113 = vrot.lane.b32.xlu1 %v2111_v27, %s5381_s4 }
0x1832   :  { %v2010_v22 = vpop.permute.xlu0 %2009 }
0x1833   :  { %v6086_v49 = vadd.f32 %v2010_v22, %v2002_v4 }
0x1835   :  { %5157 = vtanh.f32 %v6086_v49 }
0x1836   :  { %v2114_v13 = vpop.permute.xlu1 %2113 }
0x1837   :  { %v6089_v63 = vadd.f32 %v2114_v13, %v2106_v26 }
0x1839   :  { %5159 = vtanh.f32 %v6089_v63 }
0x183f   :  { %v5158_v2 = vpop.eup %5157 }
0x1840   :  { %2015 = vrot.lane.b32.xlu0 %v5158_v2, %s5380_s29 }
0x1843   :  { %v5160_v6 = vpop.eup %5159 }
0x1844   :  { %2119 = vrot.lane.b32.xlu1 %v5160_v6, %s5380_s29  ;;  %1819 = vrot.lane.b32.xlu0 %v5666_v48, %s5381_s4 }
0x1848   :  { %1822 = vrot.lane.b32.xlu1 %v5922_v31, %s5380_s29  ;;  %1854 = vrot.lane.b32.xlu0 %v5919_v28, %s5381_s4 }
0x184c   :  { %1857 = vrot.lane.b32.xlu1 %v5669_v51, %s5380_s29 }
0x18b2   :  { %v2016_v24 = vpop.permute.xlu0 %2015 }
0x18b3   :  { %v2018_v60 = vmul.f32 %v5154_v18, %v2016_v24 }
0x18b5   :  { %2124 = vrot.lane.b32.xlu0 %v2018_v60, %s5383_s3 }
0x18b6   :  { %v2120_v10 = vpop.permute.xlu1 %2119  ;;  %v1820_v20 = vpop.permute.xlu0 %1819 }
0x18b7   :  { %v2122_v19 = vmul.f32 %v5156_v9, %v2120_v10 }
0x18b9   :  { %2226 = vrot.lane.b32.xlu1 %v2122_v19, %s5383_s3 }
0x18ba   :  { %v1823_v48 = vpop.permute.xlu1 %1822  ;;  %v1855_v21 = vpop.permute.xlu0 %1854 }
0x18bb   :  { %v6105_v31 = vsel %vm1817_vm12, %v1820_v20, %v1823_v48 }
0x18be   :  { %v1858_v29 = vpop.permute.xlu1 %1857 }
0x18bf   :  { %v6114_v30 = vsel %vm1817_vm12, %v1855_v21, %v1858_v29 }
0x1927   :  { %v2125_v28 = vpop.permute.xlu0 %2124 }
0x1928   :  { %v2127_v51 = vsel %vm1913_vm13, %v6105_v31, %v2125_v28 }
0x1929   :  { %4267 = vmatmul.mubr.msk.f32.vlgmr.msra.gmra.mrb[18].mxu0 %vm1921_vm15, %v2127_v51 }
0x192a   :  { %4790 = vmatpush3.bf16.msra.mxu0 %v5965_v17  ;;  %4320 = vmatprep.mubr.msk.f32.mxu0 %vm5378_vm0, %v5379_v1 }
0x192b   :  { %v2227_v33 = vpop.permute.xlu1 %2226  ;;  %4791 = vmatprep.subr.bf16.mxu0 %v5377_v0 }
0x192c   :  { %v2229_v40 = vsel %vm1913_vm13, %v6114_v30, %v2227_v33 }
0x192d   :  { %4294 = vmatmul.mubr.msk.f32.vlgmr.msra.gmra.mrb[18].mxu1 %vm1921_vm15, %v2229_v40 }
0x192e   :  { %4793 = vmatpush3.bf16.msra.mxu0 %v5970_v25  ;;  %4808 = vmatpush3.bf16.msra.mxu1 %v5967_v23 }
0x192f   :  { %4794 = vmatprep.subr.bf16.mxu0 %v5377_v0  ;;  %4809 = vmatprep.subr.bf16.mxu1 %v5377_v0 }
0x1930   :  { %4347 = vmatprep.mubr.msk.f32.mxu1 %vm5378_vm0, %v5379_v1 }
0x1932   :  { %4796 = vmatpush3.bf16.msra.mxu0 %v5979_v46  ;;  %4811 = vmatpush3.bf16.msra.mxu1 %v5975_v35 }
0x1933   :  { %4797 = vmatprep.subr.bf16.mxu0 %v5377_v0  ;;  %4812 = vmatprep.subr.bf16.mxu1 %v5377_v0 }
0x1936   :  { %4799 = vmatpush3.bf16.msra.mxu0 %v5988_v56  ;;  %4814 = vmatpush3.bf16.msra.mxu1 %v5984_v52 }
0x1937   :  { %4800 = vmatprep.subr.bf16.mxu0 %v5377_v0  ;;  %4815 = vmatprep.subr.bf16.mxu1 %v5377_v0 }
0x193a   :  { %4802 = vmatpush3.bf16.msra.mxu0 %v5998_v12  ;;  %4817 = vmatpush3.bf16.msra.mxu1 %v5994_v61 }
0x193b   :  { %4803 = vmatprep.subr.bf16.mxu0 %v5377_v0  ;;  %4818 = vmatprep.subr.bf16.mxu1 %v5377_v0 }
0x193e   :  { %4805 = vmatpush3.bf16.msra.mxu0 %v6009_v15  ;;  %4820 = vmatpush3.bf16.msra.mxu1 %v6002_v57 }
0x193f   :  { %4821 = vmatprep.subr.bf16.mxu1 %v5377_v0  ;;  %4824 = vmatprep.subr.bf16.mxu0 %v5377_v0 }
0x1942   :  { %4823 = vmatpush3.bf16.msra.mxu1 %v6013_v58 }
0x1943   :  { %4842 = vmatprep.subr.bf16.mxu1 %v5377_v0 }
0x19fc   :  { %v2197_v42 = vpop.f32.mrb[18].mxu0 }
0x19fd   :  { %v2198_v43 = vadd.f32 %v6073_v11, %v2197_v42  ;;  %v4268_v45 = vpop.f32.mrb[19].mxu0 }
0x19ff   :  { %5161 = vtanh.f32 %v2198_v43  ;;  %v3645_v59 = vmul.f32 -1.442695, %v2198_v43 }
0x1a00   :  { %v2299_v37 = vpop.f32.mrb[18].mxu1 }
0x1a01   :  { %v2300_v50 = vadd.f32 %v6079_v14, %v2299_v37  ;;  %v4295_v16 = vpop.f32.mrb[19].mxu1 }
0x1a03   :  { %5163 = vtanh.f32 %v2300_v50  ;;  %v3647_v5 = vmul.f32 -1.442695, %v2300_v50 }
0x1a04   :  { %5165 = vpow2.f32 %v3645_v59 }
0x1a05   :  { %5167 = vpow2.f32 %v3647_v5 }
0x1a09   :  { %v5162_v54 = vpop.eup %5161 }
0x1a0a   :  { %2210 = vrot.lane.b32.xlu0 %v5162_v54, %s5380_s29 }
0x1a0d   :  { %v5164_v18 = vpop.eup %5163 }
0x1a0e   :  { %2312 = vrot.lane.b32.xlu1 %v5164_v18, %s5380_s29  ;;  %v5166_v9 = vpop.eup %5165 }
0x1a0f   :  { %v2204_v62 = vadd.f32 1.0, %v5166_v9  ;;  %v5168_v27 = vpop.eup %5167 }
0x1a10   :  { %v2306_v4 = vadd.f32 1.0, %v5168_v27 }
0x1a11   :  { %5169 = vrcp.f32 %v2204_v62 }
0x1a12   :  { %5171 = vrcp.f32 %v2306_v4 }
0x1a1b   :  { %v5170_v22 = vpop.eup %5169 }
0x1a1c   :  { %v5172_v2 = vpop.eup %5171  ;;  %v2208_v60 = vmul.f32 %v5170_v22, %v6086_v49 }
0x1a1d   :  { %v2310_v20 = vmul.f32 %v5172_v2, %v6089_v63 }
0x1a7c   :  { %v2211_v26 = vpop.permute.xlu0 %2210 }
0x1a7d   :  { %v2213_v13 = vmul.f32 %v5170_v22, %v2211_v26 }
0x1a7f   :  { %2215 = vrot.lane.b32.xlu0 %v2213_v13, %s5381_s4 }
0x1a80   :  { %v2313_v6 = vpop.permute.xlu1 %2312 }
0x1a81   :  { %v2315_v24 = vmul.f32 %v5172_v2, %v2313_v6 }
0x1a83   :  { %2317 = vrot.lane.b32.xlu1 %v2315_v24, %s5381_s4 }
0x1af1   :  { %v2216_v10 = vpop.permute.xlu0 %2215 }
0x1af2   :  { %v6151_v19 = vadd.f32 %v2216_v10, %v2208_v60 }
0x1af4   :  { %5173 = vtanh.f32 %v6151_v19 }
0x1af5   :  { %v2318_v48 = vpop.permute.xlu1 %2317 }
0x1af6   :  { %v6155_v21 = vadd.f32 %v2318_v48, %v2310_v20 }
0x1af8   :  { %5175 = vtanh.f32 %v6155_v21 }
0x1afe   :  { %v5174_v29 = vpop.eup %5173 }
0x1aff   :  { %2221 = vrot.lane.b32.xlu0 %v5174_v29, %s5380_s29 }
0x1b02   :  { %v5176_v28 = vpop.eup %5175 }
0x1b03   :  { %2323 = vrot.lane.b32.xlu1 %v5176_v28, %s5380_s29  ;;  %1826 = vrot.lane.b32.xlu0 %v5722_v41, %s5381_s4 }
0x1b07   :  { %1829 = vrot.lane.b32.xlu1 %v5877_v38, %s5380_s29  ;;  %1847 = vrot.lane.b32.xlu0 %v5874_v32, %s5381_s4 }
0x1b0b   :  { %1850 = vrot.lane.b32.xlu1 %v5725_v47, %s5380_s29 }
0x1b71   :  { %v2222_v49 = vpop.permute.xlu0 %2221 }
0x1b72   :  { %v2224_v63 = vmul.f32 %v5170_v22, %v2222_v49 }
0x1b74   :  { %2328 = vrot.lane.b32.xlu0 %v2224_v63, %s5383_s3 }
0x1b75   :  { %v2324_v51 = vpop.permute.xlu1 %2323  ;;  %v1827_v40 = vpop.permute.xlu0 %1826 }
0x1b76   :  { %v2326_v33 = vmul.f32 %v5172_v2, %v2324_v51 }
0x1b78   :  { %2430 = vrot.lane.b32.xlu1 %v2326_v33, %s5383_s3 }
0x1b79   :  { %v1830_v42 = vpop.permute.xlu1 %1829  ;;  %v1848_v41 = vpop.permute.xlu0 %1847 }
0x1b7a   :  { %v6171_v43 = vsel %vm1817_vm12, %v1827_v40, %v1830_v42 }
0x1b7d   :  { %v1851_v38 = vpop.permute.xlu1 %1850 }
0x1b7e   :  { %v6180_v47 = vsel %vm1817_vm12, %v1848_v41, %v1851_v38 }
0x1be6   :  { %v2329_v45 = vpop.permute.xlu0 %2328 }
0x1be7   :  { %v2331_v32 = vsel %vm1913_vm13, %v6171_v43, %v2329_v45 }
0x1be8   :  { %4321 = vmatmul.mubr.msk.f32.vlgmr.msra.gmra.mrb[20].mxu0 %vm1921_vm15, %v2331_v32 }
0x1be9   :  { %4826 = vmatpush3.bf16.msra.mxu0 %v5965_v17  ;;  %4374 = vmatprep.mubr.msk.f32.mxu0 %vm5378_vm0, %v5379_v1 }
0x1bea   :  { %v2431_v37 = vpop.permute.xlu1 %2430  ;;  %4827 = vmatprep.subr.bf16.mxu0 %v5377_v0 }
0x1beb   :  { %v2433_v50 = vsel %vm1913_vm13, %v6180_v47, %v2431_v37 }
0x1bec   :  { %4348 = vmatmul.mubr.msk.f32.vlgmr.msra.gmra.mrb[20].mxu1 %vm1921_vm15, %v2433_v50 }
0x1bed   :  { %4829 = vmatpush3.bf16.msra.mxu0 %v5970_v25  ;;  %4844 = vmatpush3.bf16.msra.mxu1 %v5967_v23 }
0x1bee   :  { %4830 = vmatprep.subr.bf16.mxu0 %v5377_v0  ;;  %4845 = vmatprep.subr.bf16.mxu1 %v5377_v0 }
0x1bef   :  { %4401 = vmatprep.mubr.msk.f32.mxu1 %vm5378_vm0, %v5379_v1 }
0x1bf1   :  { %4832 = vmatpush3.bf16.msra.mxu0 %v5979_v46  ;;  %4847 = vmatpush3.bf16.msra.mxu1 %v5975_v35 }
0x1bf2   :  { %4833 = vmatprep.subr.bf16.mxu0 %v5377_v0  ;;  %4848 = vmatprep.subr.bf16.mxu1 %v5377_v0 }
0x1bf5   :  { %4835 = vmatpush3.bf16.msra.mxu0 %v5988_v56  ;;  %4850 = vmatpush3.bf16.msra.mxu1 %v5984_v52 }
0x1bf6   :  { %4836 = vmatprep.subr.bf16.mxu0 %v5377_v0  ;;  %4851 = vmatprep.subr.bf16.mxu1 %v5377_v0 }
0x1bf9   :  { %4838 = vmatpush3.bf16.msra.mxu0 %v5998_v12  ;;  %4853 = vmatpush3.bf16.msra.mxu1 %v5994_v61 }
0x1bfa   :  { %4839 = vmatprep.subr.bf16.mxu0 %v5377_v0  ;;  %4854 = vmatprep.subr.bf16.mxu1 %v5377_v0 }
0x1bfd   :  { %4841 = vmatpush3.bf16.msra.mxu0 %v6009_v15  ;;  %4856 = vmatpush3.bf16.msra.mxu1 %v6002_v57 }
0x1bfe   :  { %4857 = vmatprep.subr.bf16.mxu1 %v5377_v0  ;;  %4860 = vmatprep.subr.bf16.mxu0 %v5377_v0 }
0x1c01   :  { %4859 = vmatpush3.bf16.msra.mxu1 %v6013_v58 }
0x1c02   :  { %4878 = vmatprep.subr.bf16.mxu1 %v5377_v0 }
0x1cbb   :  { %v2401_v16 = vpop.f32.mrb[20].mxu0 }
0x1cbc   :  { %v2402_v54 = vadd.f32 %v6073_v11, %v2401_v16  ;;  %v4322_v18 = vpop.f32.mrb[21].mxu0 }
0x1cbe   :  { %5177 = vtanh.f32 %v2402_v54  ;;  %v3649_v4 = vmul.f32 -1.442695, %v2402_v54 }
0x1cbf   :  { %v2503_v59 = vpop.f32.mrb[20].mxu1 }
0x1cc0   :  { %v2504_v5 = vadd.f32 %v6079_v14, %v2503_v59  ;;  %v4349_v9 = vpop.f32.mrb[21].mxu1 }
0x1cc2   :  { %5179 = vtanh.f32 %v2504_v5  ;;  %v3651_v22 = vmul.f32 -1.442695, %v2504_v5 }
0x1cc3   :  { %5181 = vpow2.f32 %v3649_v4 }
0x1cc4   :  { %5183 = vpow2.f32 %v3651_v22 }
0x1cc8   :  { %v5178_v62 = vpop.eup %5177 }
0x1cc9   :  { %2414 = vrot.lane.b32.xlu0 %v5178_v62, %s5380_s29 }
0x1ccc   :  { %v5180_v27 = vpop.eup %5179 }
0x1ccd   :  { %2516 = vrot.lane.b32.xlu1 %v5180_v27, %s5380_s29  ;;  %v5182_v26 = vpop.eup %5181 }
0x1cce   :  { %v2408_v13 = vadd.f32 1.0, %v5182_v26  ;;  %v5184_v2 = vpop.eup %5183 }
0x1ccf   :  { %v2510_v6 = vadd.f32 1.0, %v5184_v2 }
0x1cd0   :  { %5185 = vrcp.f32 %v2408_v13 }
0x1cd1   :  { %5187 = vrcp.f32 %v2510_v6 }
0x1cda   :  { %v5186_v24 = vpop.eup %5185 }
0x1cdb   :  { %v5188_v20 = vpop.eup %5187  ;;  %v2412_v28 = vmul.f32 %v5186_v24, %v6151_v19 }
0x1cdc   :  { %v2514_v51 = vmul.f32 %v5188_v20, %v6155_v21 }
0x1d3b   :  { %v2415_v60 = vpop.permute.xlu0 %2414 }
0x1d3c   :  { %v2417_v10 = vmul.f32 %v5186_v24, %v2415_v60 }
0x1d3e   :  { %2419 = vrot.lane.b32.xlu0 %v2417_v10, %s5381_s4 }
0x1d3f   :  { %v2517_v48 = vpop.permute.xlu1 %2516 }
0x1d40   :  { %v2519_v29 = vmul.f32 %v5188_v20, %v2517_v48 }
0x1d42   :  { %2521 = vrot.lane.b32.xlu1 %v2519_v29, %s5381_s4 }
0x1db0   :  { %v2420_v49 = vpop.permute.xlu0 %2419 }
0x1db1   :  { %v6217_v63 = vadd.f32 %v2420_v49, %v2412_v28 }
0x1db3   :  { %5189 = vtanh.f32 %v6217_v63 }
0x1db4   :  { %v2522_v33 = vpop.permute.xlu1 %2521 }
0x1db5   :  { %v6221_v40 = vadd.f32 %v2522_v33, %v2514_v51 }
0x1db7   :  { %5191 = vtanh.f32 %v6221_v40 }
0x1dbd   :  { %v5190_v42 = vpop.eup %5189 }
0x1dbe   :  { %2425 = vrot.lane.b32.xlu0 %v5190_v42, %s5380_s29 }
0x1dc1   :  { %v5192_v41 = vpop.eup %5191 }
0x1dc2   :  { %2527 = vrot.lane.b32.xlu1 %v5192_v41, %s5380_s29  ;;  %1833 = vrot.lane.b32.xlu0 %v5778_v36, %s5381_s4 }
0x1dc6   :  { %1836 = vrot.lane.b32.xlu1 %v5829_v39, %s5380_s29  ;;  %1840 = vrot.lane.b32.xlu0 %v5826_v34, %s5381_s4 }
0x1dca   :  { %1843 = vrot.lane.b32.xlu1 %v5781_v44, %s5380_s29 }
0x1e30   :  { %v2426_v19 = vpop.permute.xlu0 %2425 }
0x1e31   :  { %v2428_v21 = vmul.f32 %v5186_v24, %v2426_v19 }
0x1e33   :  { %2532 = vrot.lane.b32.xlu0 %v2428_v21, %s5383_s3 }
0x1e34   :  { %v2528_v38 = vpop.permute.xlu1 %2527  ;;  %v1834_v32 = vpop.permute.xlu0 %1833 }
0x1e35   :  { %v2530_v45 = vmul.f32 %v5188_v20, %v2528_v38 }
0x1e37   :  { %2634 = vrot.lane.b32.xlu1 %v2530_v45, %s5383_s3 }
0x1e38   :  { %v1837_v37 = vpop.permute.xlu1 %1836  ;;  %v1841_v36 = vpop.permute.xlu0 %1840 }
0x1e39   :  { %v6237_v50 = vsel %vm1817_vm12, %v1834_v32, %v1837_v37 }
0x1e3c   :  { %v1844_v39 = vpop.permute.xlu1 %1843 }
0x1e3d   :  { %v6246_v44 = vsel %vm1817_vm12, %v1841_v36, %v1844_v39 }
0x1ea5   :  { %v2533_v16 = vpop.permute.xlu0 %2532 }
0x1ea6   :  { %v2535_v34 = vsel %vm1913_vm13, %v6237_v50, %v2533_v16 }
0x1ea7   :  { %4375 = vmatmul.mubr.msk.f32.vlgmr.msra.gmra.mrb[22].mxu0 %vm1921_vm15, %v2535_v34 }
0x1ea8   :  { %4862 = vmatpush3.bf16.msra.mxu0 %v5965_v17  ;;  %4428 = vmatprep.mubr.msk.f32.mxu0 %vm5378_vm0, %v5379_v1 }
0x1ea9   :  { %v2635_v54 = vpop.permute.xlu1 %2634  ;;  %4863 = vmatprep.subr.bf16.mxu0 %v5377_v0 }
0x1eaa   :  { %v2637_v18 = vsel %vm1913_vm13, %v6246_v44, %v2635_v54 }
0x1eab   :  { %4402 = vmatmul.mubr.msk.f32.vlgmr.msra.gmra.mrb[22].mxu1 %vm1921_vm15, %v2637_v18 }
0x1eac   :  { %4865 = vmatpush3.bf16.msra.mxu0 %v5970_v25  ;;  %4880 = vmatpush3.bf16.msra.mxu1 %v5967_v23 }
0x1ead   :  { %4866 = vmatprep.subr.bf16.mxu0 %v5377_v0  ;;  %4881 = vmatprep.subr.bf16.mxu1 %v5377_v0 }
0x1eae   :  { %4455 = vmatprep.mubr.msk.f32.mxu1 %vm5378_vm0, %v5379_v1 }
0x1eb0   :  { %4868 = vmatpush3.bf16.msra.mxu0 %v5979_v46  ;;  %4883 = vmatpush3.bf16.msra.mxu1 %v5975_v35 }
0x1eb1   :  { %4869 = vmatprep.subr.bf16.mxu0 %v5377_v0  ;;  %4884 = vmatprep.subr.bf16.mxu1 %v5377_v0 }
0x1eb4   :  { %4871 = vmatpush3.bf16.msra.mxu0 %v5988_v56  ;;  %4886 = vmatpush3.bf16.msra.mxu1 %v5984_v52 }
0x1eb5   :  { %4872 = vmatprep.subr.bf16.mxu0 %v5377_v0  ;;  %4887 = vmatprep.subr.bf16.mxu1 %v5377_v0 }
0x1eb8   :  { %4874 = vmatpush3.bf16.msra.mxu0 %v5998_v12  ;;  %4889 = vmatpush3.bf16.msra.mxu1 %v5994_v61 }
0x1eb9   :  { %4875 = vmatprep.subr.bf16.mxu0 %v5377_v0  ;;  %4890 = vmatprep.subr.bf16.mxu1 %v5377_v0 }
0x1ebc   :  { %4877 = vmatpush3.bf16.msra.mxu0 %v6009_v15  ;;  %4892 = vmatpush3.bf16.msra.mxu1 %v6002_v57 }
0x1ebd   :  { %4893 = vmatprep.subr.bf16.mxu1 %v5377_v0  ;;  %4896 = vmatprep.subr.bf16.mxu0 %v5377_v0 }
0x1ec0   :  { %4895 = vmatpush3.bf16.msra.mxu1 %v6013_v58 }
0x1ec1   :  { %4914 = vmatprep.subr.bf16.mxu1 %v5377_v0 }
0x1f7a   :  { %v2605_v59 = vpop.f32.mrb[22].mxu0 }
0x1f7b   :  { %v2606_v5 = vadd.f32 %v6073_v11, %v2605_v59  ;;  %v4376_v9 = vpop.f32.mrb[23].mxu0 }
0x1f7d   :  { %5193 = vtanh.f32 %v2606_v5  ;;  %v3653_v13 = vmul.f32 -1.442695, %v2606_v5 }
0x1f7e   :  { %v2707_v62 = vpop.f32.mrb[22].mxu1 }
0x1f7f   :  { %v2708_v27 = vadd.f32 %v6079_v14, %v2707_v62  ;;  %v4403_v4 = vpop.f32.mrb[23].mxu1 }
0x1f81   :  { %5195 = vtanh.f32 %v2708_v27  ;;  %v3655_v2 = vmul.f32 -1.442695, %v2708_v27 }
0x1f82   :  { %5197 = vpow2.f32 %v3653_v13 }
0x1f83   :  { %5199 = vpow2.f32 %v3655_v2 }
0x1f87   :  { %v5194_v22 = vpop.eup %5193 }
0x1f88   :  { %2618 = vrot.lane.b32.xlu0 %v5194_v22, %s5380_s29 }
0x1f8b   :  { %v5196_v26 = vpop.eup %5195 }
0x1f8c   :  { %2720 = vrot.lane.b32.xlu1 %v5196_v26, %s5380_s29  ;;  %v5198_v6 = vpop.eup %5197 }
0x1f8d   :  { %v2612_v24 = vadd.f32 1.0, %v5198_v6  ;;  %v5200_v60 = vpop.eup %5199 }
0x1f8e   :  { %v2714_v10 = vadd.f32 1.0, %v5200_v60 }
0x1f8f   :  { %5201 = vrcp.f32 %v2612_v24 }
0x1f90   :  { %5203 = vrcp.f32 %v2714_v10 }
0x1f99   :  { %v5202_v20 = vpop.eup %5201 }
0x1f9a   :  { %v5204_v28 = vpop.eup %5203  ;;  %v2616_v33 = vmul.f32 %v5202_v20, %v6217_v63 }
0x1f9b   :  { %v2718_v19 = vmul.f32 %v5204_v28, %v6221_v40 }
0x1ffa   :  { %v2619_v48 = vpop.permute.xlu0 %2618 }
0x1ffb   :  { %v2621_v29 = vmul.f32 %v5202_v20, %v2619_v48 }
0x1ffd   :  { %2623 = vrot.lane.b32.xlu0 %v2621_v29, %s5381_s4 }
0x1ffe   :  { %v2721_v49 = vpop.permute.xlu1 %2720 }
0x1fff   :  { %v2723_v51 = vmul.f32 %v5204_v28, %v2721_v49 }
0x2001   :  { %2725 = vrot.lane.b32.xlu1 %v2723_v51, %s5381_s4 }
0x206f   :  { %v2624_v42 = vpop.permute.xlu0 %2623 }
0x2070   :  { %v6283_v41 = vadd.f32 %v2624_v42, %v2616_v33 }
0x2072   :  { %5205 = vtanh.f32 %v6283_v41 }
0x2073   :  { %v2726_v21 = vpop.permute.xlu1 %2725 }
0x2074   :  { %v6287_v38 = vadd.f32 %v2726_v21, %v2718_v19 }
0x2076   :  { %5207 = vtanh.f32 %v6287_v38 }
0x207c   :  { %v5206_v45 = vpop.eup %5205 }
0x207d   :  { %2629 = vrot.lane.b32.xlu0 %v5206_v45, %s5380_s29 }
0x2080   :  { %v5208_v32 = vpop.eup %5207 }
0x2081   :  { %2731 = vrot.lane.b32.xlu1 %v5208_v32, %s5380_s29 }
0x20ef   :  { %v2630_v37 = vpop.permute.xlu0 %2629 }
0x20f0   :  { %v2632_v63 = vmul.f32 %v5202_v20, %v2630_v37 }
0x20f2   :  { %2736 = vrot.lane.b32.xlu0 %v2632_v63, %s5383_s3 }
0x20f3   :  { %v2732_v36 = vpop.permute.xlu1 %2731 }
0x20f4   :  { %v2734_v39 = vmul.f32 %v5204_v28, %v2732_v36 }
0x20f6   :  { %2838 = vrot.lane.b32.xlu1 %v2734_v39, %s5383_s3 }
0x2164   :  { %v2737_v40 = vpop.permute.xlu0 %2736 }
0x2165   :  { %v2739_v16 = vsel %vm1913_vm13, %v6246_v44, %v2737_v40 }
0x2166   :  { %4429 = vmatmul.mubr.msk.f32.vlgmr.msra.gmra.mrb[24].mxu0 %vm1921_vm15, %v2739_v16 }
0x2167   :  { %4898 = vmatpush3.bf16.msra.mxu0 %v5965_v17  ;;  %4482 = vmatprep.mubr.msk.f32.mxu0 %vm5378_vm0, %v5379_v1 }
0x2168   :  { %v2839_v34 = vpop.permute.xlu1 %2838  ;;  %4899 = vmatprep.subr.bf16.mxu0 %v5377_v0 }
0x2169   :  { %v2841_v54 = vsel %vm1913_vm13, %v6237_v50, %v2839_v34 }
0x216a   :  { %4456 = vmatmul.mubr.msk.f32.vlgmr.msra.gmra.mrb[24].mxu1 %vm1921_vm15, %v2841_v54 }
0x216b   :  { %4901 = vmatpush3.bf16.msra.mxu0 %v5970_v25  ;;  %4916 = vmatpush3.bf16.msra.mxu1 %v5967_v23 }
0x216c   :  { %4902 = vmatprep.subr.bf16.mxu0 %v5377_v0  ;;  %4917 = vmatprep.subr.bf16.mxu1 %v5377_v0 }
0x216d   :  { %4509 = vmatprep.mubr.msk.f32.mxu1 %vm5378_vm0, %v5379_v1 }
0x216f   :  { %4904 = vmatpush3.bf16.msra.mxu0 %v5979_v46  ;;  %4919 = vmatpush3.bf16.msra.mxu1 %v5975_v35 }
0x2170   :  { %4905 = vmatprep.subr.bf16.mxu0 %v5377_v0  ;;  %4920 = vmatprep.subr.bf16.mxu1 %v5377_v0 }
0x2173   :  { %4907 = vmatpush3.bf16.msra.mxu0 %v5988_v56  ;;  %4922 = vmatpush3.bf16.msra.mxu1 %v5984_v52 }
0x2174   :  { %4908 = vmatprep.subr.bf16.mxu0 %v5377_v0  ;;  %4923 = vmatprep.subr.bf16.mxu1 %v5377_v0 }
0x2177   :  { %4910 = vmatpush3.bf16.msra.mxu0 %v5998_v12  ;;  %4925 = vmatpush3.bf16.msra.mxu1 %v5994_v61 }
0x2178   :  { %4911 = vmatprep.subr.bf16.mxu0 %v5377_v0  ;;  %4926 = vmatprep.subr.bf16.mxu1 %v5377_v0 }
0x217b   :  { %4913 = vmatpush3.bf16.msra.mxu0 %v6009_v15  ;;  %4928 = vmatpush3.bf16.msra.mxu1 %v6002_v57 }
0x217c   :  { %4929 = vmatprep.subr.bf16.mxu1 %v5377_v0  ;;  %4932 = vmatprep.subr.bf16.mxu0 %v5377_v0 }
0x217f   :  { %4931 = vmatpush3.bf16.msra.mxu1 %v6013_v58 }
0x2180   :  { %4950 = vmatprep.subr.bf16.mxu1 %v5377_v0 }
0x2239   :  { %v2809_v50 = vpop.f32.mrb[24].mxu0 }
0x223a   :  { %v2810_v44 = vadd.f32 %v6073_v11, %v2809_v50  ;;  %v4430_v18 = vpop.f32.mrb[25].mxu0 }
0x223c   :  { %5209 = vtanh.f32 %v2810_v44  ;;  %v3657_v4 = vmul.f32 -1.442695, %v2810_v44 }
0x223d   :  { %v2911_v59 = vpop.f32.mrb[24].mxu1 }
0x223e   :  { %v2912_v5 = vadd.f32 %v6079_v14, %v2911_v59  ;;  %v4457_v9 = vpop.f32.mrb[25].mxu1 }
0x2240   :  { %5211 = vtanh.f32 %v2912_v5  ;;  %v3659_v22 = vmul.f32 -1.442695, %v2912_v5 }
0x2241   :  { %5213 = vpow2.f32 %v3657_v4 }
0x2242   :  { %5215 = vpow2.f32 %v3659_v22 }
0x2246   :  { %v5210_v62 = vpop.eup %5209 }
0x2247   :  { %2822 = vrot.lane.b32.xlu0 %v5210_v62, %s5380_s29 }
0x224a   :  { %v5212_v27 = vpop.eup %5211 }
0x224b   :  { %2924 = vrot.lane.b32.xlu1 %v5212_v27, %s5380_s29  ;;  %v5214_v26 = vpop.eup %5213 }
0x224c   :  { %v2816_v13 = vadd.f32 1.0, %v5214_v26  ;;  %v5216_v2 = vpop.eup %5215 }
0x224d   :  { %v2918_v6 = vadd.f32 1.0, %v5216_v2 }
0x224e   :  { %5217 = vrcp.f32 %v2816_v13 }
0x224f   :  { %5219 = vrcp.f32 %v2918_v6 }
0x2258   :  { %v5218_v24 = vpop.eup %5217 }
0x2259   :  { %v5220_v20 = vpop.eup %5219  ;;  %v2820_v28 = vmul.f32 %v5218_v24, %v6283_v41 }
0x225a   :  { %v2922_v33 = vmul.f32 %v5220_v20, %v6287_v38 }
0x22b9   :  { %v2823_v60 = vpop.permute.xlu0 %2822 }
0x22ba   :  { %v2825_v10 = vmul.f32 %v5218_v24, %v2823_v60 }
0x22bc   :  { %2827 = vrot.lane.b32.xlu0 %v2825_v10, %s5381_s4 }
0x22bd   :  { %v2925_v48 = vpop.permute.xlu1 %2924 }
0x22be   :  { %v2927_v29 = vmul.f32 %v5220_v20, %v2925_v48 }
0x22c0   :  { %2929 = vrot.lane.b32.xlu1 %v2927_v29, %s5381_s4 }
0x232e   :  { %v2828_v49 = vpop.permute.xlu0 %2827 }
0x232f   :  { %v6335_v51 = vadd.f32 %v2828_v49, %v2820_v28 }
0x2331   :  { %5221 = vtanh.f32 %v6335_v51 }
0x2332   :  { %v2930_v42 = vpop.permute.xlu1 %2929 }
0x2333   :  { %v6339_v19 = vadd.f32 %v2930_v42, %v2922_v33 }
0x2335   :  { %5223 = vtanh.f32 %v6339_v19 }
0x233b   :  { %v5222_v21 = vpop.eup %5221 }
0x233c   :  { %2833 = vrot.lane.b32.xlu0 %v5222_v21, %s5380_s29 }
0x233f   :  { %v5224_v45 = vpop.eup %5223 }
0x2340   :  { %2935 = vrot.lane.b32.xlu1 %v5224_v45, %s5380_s29 }
0x23ae   :  { %v2834_v32 = vpop.permute.xlu0 %2833 }
0x23af   :  { %v2836_v41 = vmul.f32 %v5218_v24, %v2834_v32 }
0x23b1   :  { %2940 = vrot.lane.b32.xlu0 %v2836_v41, %s5383_s3 }
0x23b2   :  { %v2936_v37 = vpop.permute.xlu1 %2935 }
0x23b3   :  { %v2938_v63 = vmul.f32 %v5220_v20, %v2936_v37 }
0x23b5   :  { %3042 = vrot.lane.b32.xlu1 %v2938_v63, %s5383_s3 }
0x2423   :  { %v2941_v38 = vpop.permute.xlu0 %2940 }
0x2424   :  { %v2943_v36 = vsel %vm1913_vm13, %v6180_v47, %v2941_v38 }
0x2425   :  { %4483 = vmatmul.mubr.msk.f32.vlgmr.msra.gmra.mrb[26].mxu0 %vm1921_vm15, %v2943_v36 }
0x2426   :  { %4934 = vmatpush3.bf16.msra.mxu0 %v5965_v17  ;;  %4536 = vmatprep.mubr.msk.f32.mxu0 %vm5378_vm0, %v5379_v1 }
0x2427   :  { %v3043_v39 = vpop.permute.xlu1 %3042  ;;  %4935 = vmatprep.subr.bf16.mxu0 %v5377_v0 }
0x2428   :  { %v3045_v40 = vsel %vm1913_vm13, %v6171_v43, %v3043_v39 }
0x2429   :  { %4510 = vmatmul.mubr.msk.f32.vlgmr.msra.gmra.mrb[26].mxu1 %vm1921_vm15, %v3045_v40 }
0x242a   :  { %4937 = vmatpush3.bf16.msra.mxu0 %v5970_v25  ;;  %4952 = vmatpush3.bf16.msra.mxu1 %v5967_v23 }
0x242b   :  { %4938 = vmatprep.subr.bf16.mxu0 %v5377_v0  ;;  %4953 = vmatprep.subr.bf16.mxu1 %v5377_v0 }
0x242c   :  { %4563 = vmatprep.mubr.msk.f32.mxu1 %vm5378_vm0, %v5379_v1 }
0x242e   :  { %4940 = vmatpush3.bf16.msra.mxu0 %v5979_v46  ;;  %4955 = vmatpush3.bf16.msra.mxu1 %v5975_v35 }
0x242f   :  { %4941 = vmatprep.subr.bf16.mxu0 %v5377_v0  ;;  %4956 = vmatprep.subr.bf16.mxu1 %v5377_v0 }
0x2432   :  { %4943 = vmatpush3.bf16.msra.mxu0 %v5988_v56  ;;  %4958 = vmatpush3.bf16.msra.mxu1 %v5984_v52 }
0x2433   :  { %4944 = vmatprep.subr.bf16.mxu0 %v5377_v0  ;;  %4959 = vmatprep.subr.bf16.mxu1 %v5377_v0 }
0x2436   :  { %4946 = vmatpush3.bf16.msra.mxu0 %v5998_v12  ;;  %4961 = vmatpush3.bf16.msra.mxu1 %v5994_v61 }
0x2437   :  { %4947 = vmatprep.subr.bf16.mxu0 %v5377_v0  ;;  %4962 = vmatprep.subr.bf16.mxu1 %v5377_v0 }
0x243a   :  { %4949 = vmatpush3.bf16.msra.mxu0 %v6009_v15  ;;  %4964 = vmatpush3.bf16.msra.mxu1 %v6002_v57 }
0x243b   :  { %4965 = vmatprep.subr.bf16.mxu1 %v5377_v0  ;;  %4968 = vmatprep.subr.bf16.mxu0 %v5377_v0 }
0x243e   :  { %4967 = vmatpush3.bf16.msra.mxu1 %v6013_v58 }
0x243f   :  { %4986 = vmatprep.subr.bf16.mxu1 %v5377_v0 }
0x24f8   :  { %v3013_v43 = vpop.f32.mrb[26].mxu0 }
0x24f9   :  { %v3014_v47 = vadd.f32 %v6073_v11, %v3013_v43  ;;  %v4484_v16 = vpop.f32.mrb[27].mxu0 }
0x24fb   :  { %5225 = vtanh.f32 %v3014_v47  ;;  %v3661_v59 = vmul.f32 -1.442695, %v3014_v47 }
0x24fc   :  { %v3115_v34 = vpop.f32.mrb[26].mxu1 }
0x24fd   :  { %v3116_v54 = vadd.f32 %v6079_v14, %v3115_v34  ;;  %v4511_v50 = vpop.f32.mrb[27].mxu1 }
0x24ff   :  { %5227 = vtanh.f32 %v3116_v54  ;;  %v3663_v5 = vmul.f32 -1.442695, %v3116_v54 }
0x2500   :  { %5229 = vpow2.f32 %v3661_v59 }
0x2501   :  { %5231 = vpow2.f32 %v3663_v5 }
0x2505   :  { %v5226_v44 = vpop.eup %5225 }
0x2506   :  { %3026 = vrot.lane.b32.xlu0 %v5226_v44, %s5380_s29 }
0x2509   :  { %v5228_v18 = vpop.eup %5227 }
0x250a   :  { %3128 = vrot.lane.b32.xlu1 %v5228_v18, %s5380_s29  ;;  %v5230_v9 = vpop.eup %5229 }
0x250b   :  { %v3020_v62 = vadd.f32 1.0, %v5230_v9  ;;  %v5232_v11 = vpop.eup %5231 }
0x250c   :  { %v3122_v27 = vadd.f32 1.0, %v5232_v11 }
0x250d   :  { %5233 = vrcp.f32 %v3020_v62 }
0x250e   :  { %5235 = vrcp.f32 %v3122_v27 }
0x2517   :  { %v5234_v4 = vpop.eup %5233 }
0x2518   :  { %v5236_v26 = vpop.eup %5235  ;;  %v3024_v6 = vmul.f32 %v5234_v4, %v6335_v51 }
0x2519   :  { %v3126_v10 = vmul.f32 %v5236_v26, %v6339_v19 }
0x2578   :  { %v3027_v14 = vpop.permute.xlu0 %3026 }
0x2579   :  { %v3029_v22 = vmul.f32 %v5234_v4, %v3027_v14 }
0x257b   :  { %3031 = vrot.lane.b32.xlu0 %v3029_v22, %s5381_s4 }
0x257c   :  { %v3129_v13 = vpop.permute.xlu1 %3128 }
0x257d   :  { %v3131_v2 = vmul.f32 %v5236_v26, %v3129_v13 }
0x257f   :  { %3133 = vrot.lane.b32.xlu1 %v3131_v2, %s5381_s4 }
0x25ed   :  { %v3032_v24 = vpop.permute.xlu0 %3031 }
0x25ee   :  { %v6387_v60 = vadd.f32 %v3032_v24, %v3024_v6 }
0x25f0   :  { %5237 = vtanh.f32 %v6387_v60 }
0x25f1   :  { %v3134_v20 = vpop.permute.xlu1 %3133 }
0x25f2   :  { %v6391_v48 = vadd.f32 %v3134_v20, %v3126_v10 }
0x25f4   :  { %5239 = vtanh.f32 %v6391_v48 }
0x25fa   :  { %v5238_v29 = vpop.eup %5237 }
0x25fb   :  { %3037 = vrot.lane.b32.xlu0 %v5238_v29, %s5380_s29 }
0x25fe   :  { %v5240_v28 = vpop.eup %5239 }
0x25ff   :  { %3139 = vrot.lane.b32.xlu1 %v5240_v28, %s5380_s29 }
0x266d   :  { %v3038_v49 = vpop.permute.xlu0 %3037 }
0x266e   :  { %v3040_v51 = vmul.f32 %v5234_v4, %v3038_v49 }
0x2670   :  { %3144 = vrot.lane.b32.xlu0 %v3040_v51, %s5383_s3 }
0x2671   :  { %v3140_v33 = vpop.permute.xlu1 %3139 }
0x2672   :  { %v3142_v42 = vmul.f32 %v5236_v26, %v3140_v33 }
0x2674   :  { %3246 = vrot.lane.b32.xlu1 %v3142_v42, %s5383_s3 }
0x26e2   :  { %v3145_v19 = vpop.permute.xlu0 %3144 }
0x26e3   :  { %v3147_v21 = vsel %vm1913_vm13, %v6114_v30, %v3145_v19 }
0x26e4   :  { %4537 = vmatmul.mubr.msk.f32.vlgmr.msra.gmra.mrb[28].mxu0 %vm1921_vm15, %v3147_v21 }
0x26e5   :  { %4970 = vmatpush3.bf16.msra.mxu0 %v5965_v17  ;;  %4590 = vmatprep.mubr.msk.f32.mxu0 %vm5378_vm0, %v5379_v1  ;;  %v5275_v17 = vld [vmem:[%s6502_s6] ss:$0 sm:$0xff] }
0x26e6   :  { %v3247_v45 = vpop.permute.xlu1 %3246  ;;  %4971 = vmatprep.subr.bf16.mxu0 %v5377_v0 }
0x26e7   :  { %v3249_v32 = vsel %vm1913_vm13, %v6105_v31, %v3247_v45 }
0x26e8   :  { %4564 = vmatmul.mubr.msk.f32.vlgmr.msra.gmra.mrb[28].mxu1 %vm1921_vm15, %v3249_v32 }
0x26e9   :  { %4973 = vmatpush3.bf16.msra.mxu0 %v5970_v25  ;;  %4988 = vmatpush3.bf16.msra.mxu1 %v5967_v23 }
0x26ea   :  { %4974 = vmatprep.subr.bf16.mxu0 %v5377_v0  ;;  %4989 = vmatprep.subr.bf16.mxu1 %v5377_v0 }
0x26eb   :  { %4617 = vmatprep.mubr.msk.f32.mxu1 %vm5378_vm0, %v5379_v1 }
0x26ed   :  { %4976 = vmatpush3.bf16.msra.mxu0 %v5979_v46  ;;  %4991 = vmatpush3.bf16.msra.mxu1 %v5975_v35  ;;  %v5276_v46 = vld [vmem:[%s6504_s8] ss:$0 sm:$0xff] }
0x26ee   :  { %4977 = vmatprep.subr.bf16.mxu0 %v5377_v0  ;;  %4992 = vmatprep.subr.bf16.mxu1 %v5377_v0 }
0x26f1   :  { %4979 = vmatpush3.bf16.msra.mxu0 %v5988_v56  ;;  %4994 = vmatpush3.bf16.msra.mxu1 %v5984_v52 }
0x26f2   :  { %4980 = vmatprep.subr.bf16.mxu0 %v5377_v0  ;;  %4995 = vmatprep.subr.bf16.mxu1 %v5377_v0 }
0x26f5   :  { %4982 = vmatpush3.bf16.msra.mxu0 %v5998_v12  ;;  %4997 = vmatpush3.bf16.msra.mxu1 %v5994_v61 }
0x26f6   :  { %4983 = vmatprep.subr.bf16.mxu0 %v5377_v0  ;;  %4998 = vmatprep.subr.bf16.mxu1 %v5377_v0 }
0x26f9   :  { %4985 = vmatpush3.bf16.msra.mxu0 %v6009_v15  ;;  %5000 = vmatpush3.bf16.msra.mxu1 %v6002_v57 }
0x26fa   :  { %5001 = vmatprep.subr.bf16.mxu1 %v5377_v0 }
0x26fd   :  { %5003 = vmatpush3.bf16.msra.mxu1 %v6013_v58 }
0x27b7   :  { %v3217_v1 = vpop.f32.mrb[28].mxu0 }
0x27b8   :  { %v3218_v23 = vadd.f32 %v5275_v17, %v3217_v1  ;;  %v4538_v25 = vpop.f32.mrb[29].mxu0 }
0x27ba   :  { %5241 = vtanh.f32 %v3218_v23  ;;  %v3665_v12 = vmul.f32 -1.442695, %v3218_v23 }
0x27bb   :  { %v3319_v35 = vpop.f32.mrb[28].mxu1 }
0x27bc   :  { %v3320_v52 = vadd.f32 %v5276_v46, %v3319_v35  ;;  %v4565_v56 = vpop.f32.mrb[29].mxu1 }
0x27be   :  { %5243 = vtanh.f32 %v3320_v52  ;;  %v3667_v57 = vmul.f32 -1.442695, %v3320_v52 }
0x27bf   :  { %5245 = vpow2.f32 %v3665_v12 }
0x27c0   :  { %5247 = vpow2.f32 %v3667_v57 }
0x27c4   :  { %v5242_v61 = vpop.eup %5241 }
0x27c5   :  { %3230 = vrot.lane.b32.xlu0 %v5242_v61, %s5380_s29 }
0x27c8   :  { %v5244_v0 = vpop.eup %5243 }
0x27c9   :  { %3332 = vrot.lane.b32.xlu1 %v5244_v0, %s5380_s29  ;;  %v5246_v15 = vpop.eup %5245 }
0x27ca   :  { %v3224_v58 = vadd.f32 1.0, %v5246_v15  ;;  %v5248_v31 = vpop.eup %5247 }
0x27cb   :  { %v3326_v30 = vadd.f32 1.0, %v5248_v31 }
0x27cc   :  { %5249 = vrcp.f32 %v3224_v58 }
0x27cd   :  { %5251 = vrcp.f32 %v3326_v30 }
0x27d6   :  { %v5250_v41 = vpop.eup %5249 }
0x27d7   :  { %v5252_v38 = vpop.eup %5251  ;;  %v3228_v40 = vmul.f32 %v5250_v41, %v6387_v60 }
0x27d8   :  { %v3330_v16 = vmul.f32 %v5252_v38, %v6391_v48 }
0x2837   :  { %v3231_v37 = vpop.permute.xlu0 %3230 }
0x2838   :  { %v3233_v63 = vmul.f32 %v5250_v41, %v3231_v37 }
0x283a   :  { %3235 = vrot.lane.b32.xlu0 %v3233_v63, %s5381_s4 }
0x283b   :  { %v3333_v36 = vpop.permute.xlu1 %3332 }
0x283c   :  { %v3335_v39 = vmul.f32 %v5252_v38, %v3333_v36 }
0x283e   :  { %3337 = vrot.lane.b32.xlu1 %v3335_v39, %s5381_s4 }
0x28ac   :  { %v3236_v43 = vpop.permute.xlu0 %3235 }
0x28ad   :  { %v3238_v47 = vadd.f32 %v3236_v43, %v3228_v40 }
0x28af   :  { %5253 = vtanh.f32 %v3238_v47 }
0x28b0   :  { %v3338_v34 = vpop.permute.xlu1 %3337 }
0x28b1   :  { %v3340_v54 = vadd.f32 %v3338_v34, %v3330_v16 }
0x28b3   :  { %5255 = vtanh.f32 %v3340_v54 }
0x28b9   :  { %v5254_v50 = vpop.eup %5253 }
0x28ba   :  { %3241 = vrot.lane.b32.xlu0 %v5254_v50, %s5380_s29 }
0x28bd   :  { %v5256_v44 = vpop.eup %5255 }
0x28be   :  { %3343 = vrot.lane.b32.xlu1 %v5256_v44, %s5380_s29 }
0x292c   :  { %v3242_v18 = vpop.permute.xlu0 %3241 }
0x292d   :  { %v3244_v59 = vmul.f32 %v5250_v41, %v3242_v18 }
0x292f   :  { %3348 = vrot.lane.b32.xlu0 %v3244_v59, %s5383_s3 }
0x2930   :  { %v3344_v5 = vpop.permute.xlu1 %3343 }
0x2931   :  { %v3346_v9 = vmul.f32 %v5252_v38, %v3344_v5 }
0x2933   :  { %3450 = vrot.lane.b32.xlu1 %v3346_v9, %s5383_s3 }
0x29a1   :  { %v3349_v62 = vpop.permute.xlu0 %3348 }
0x29a2   :  { %v3351_v11 = vsel %vm1913_vm13, %v6040_v8, %v3349_v62 }
0x29a3   :  { %4591 = vmatmul.mubr.msk.f32.vlgmr.msra.gmra.mrb[30].mxu0 %vm1921_vm15, %v3351_v11 }
0x29a5   :  { %v3451_v27 = vpop.permute.xlu1 %3450 }
0x29a6   :  { %v3453_v4 = vsel %vm1913_vm13, %v6027_v53, %v3451_v27 }
0x29a7   :  { %4618 = vmatmul.mubr.msk.f32.vlgmr.msra.gmra.mrb[30].mxu1 %vm1921_vm15, %v3453_v4 }
0x2a76   :  { %v3421_v14 = vpop.f32.mrb[30].mxu0 }
0x2a77   :  { %v3422_v22 = vadd.f32 %v5275_v17, %v3421_v14  ;;  %v4592_v26 = vpop.f32.mrb[31].mxu0 }
0x2a79   :  { %5257 = vtanh.f32 %v3422_v22  ;;  %v3669_v60 = vmul.f32 -1.442695, %v3422_v22 }
0x2a7a   :  { %v3523_v13 = vpop.f32.mrb[30].mxu1 }
0x2a7b   :  { %v3524_v2 = vadd.f32 %v5276_v46, %v3523_v13  ;;  %v4619_v6 = vpop.f32.mrb[31].mxu1 }
0x2a7d   :  { %5259 = vtanh.f32 %v3524_v2  ;;  %v3671_v10 = vmul.f32 -1.442695, %v3524_v2 }
0x2a7e   :  { %5261 = vpow2.f32 %v3669_v60 }
0x2a7f   :  { %5263 = vpow2.f32 %v3671_v10 }
0x2a83   :  { %v5258_v24 = vpop.eup %5257 }
0x2a84   :  { %3434 = vrot.lane.b32.xlu0 %v5258_v24, %s5380_s29 }
0x2a87   :  { %v5260_v8 = vpop.eup %5259 }
0x2a88   :  { %3536 = vrot.lane.b32.xlu1 %v5260_v8, %s5380_s29  ;;  %v5262_v53 = vpop.eup %5261 }
0x2a89   :  { %v3428_v20 = vadd.f32 1.0, %v5262_v53  ;;  %v5264_v48 = vpop.eup %5263 }
0x2a8a   :  { %v3530_v29 = vadd.f32 1.0, %v5264_v48 }
0x2a8b   :  { %5265 = vrcp.f32 %v3428_v20 }
0x2a8c   :  { %5267 = vrcp.f32 %v3530_v29 }
0x2a95   :  { %v5266_v28 = vpop.eup %5265 }
0x2a96   :  { %v5268_v33 = vpop.eup %5267  ;;  %v3432_v21 = vmul.f32 %v5266_v28, %v3238_v47 }
0x2a97   :  { %v3534_v1 = vmul.f32 %v5268_v33, %v3340_v54 }
0x2af6   :  { %v3435_v49 = vpop.permute.xlu0 %3434 }
0x2af7   :  { %v3437_v51 = vmul.f32 %v5266_v28, %v3435_v49 }
0x2af9   :  { %3439 = vrot.lane.b32.xlu0 %v3437_v51, %s5381_s4 }
0x2afa   :  { %v3537_v42 = vpop.permute.xlu1 %3536 }
0x2afb   :  { %v3539_v19 = vmul.f32 %v5268_v33, %v3537_v42 }
0x2afd   :  { %3541 = vrot.lane.b32.xlu1 %v3539_v19, %s5381_s4 }
0x2b6b   :  { %v3440_v45 = vpop.permute.xlu0 %3439 }
0x2b6c   :  { %v3442_v32 = vadd.f32 %v3440_v45, %v3432_v21 }
0x2b6e   :  { %5269 = vtanh.f32 %v3442_v32 }
0x2b6f   :  { %v3542_v17 = vpop.permute.xlu1 %3541 }
0x2b70   :  { %v3544_v23 = vadd.f32 %v3542_v17, %v3534_v1 }
0x2b72   :  { %5271 = vtanh.f32 %v3544_v23 }
0x2b78   :  { %v5270_v25 = vpop.eup %5269 }
0x2b79   :  { %3445 = vrot.lane.b32.xlu0 %v5270_v25, %s5380_s29 }
0x2b7c   :  { %v5272_v35 = vpop.eup %5271 }
0x2b7d   :  { %3547 = vrot.lane.b32.xlu1 %v5272_v35, %s5380_s29  ;;  %1871 = vrot.lane.b32.xlu0 %v6018_v55, %s5381_s4 }
0x2b81   :  { %1877 = vrot.lane.b32.xlu1 %v5961_v7, %s5383_s3  ;;  %1882 = vrot.lane.b32.xlu0 %v5959_v3, %s5383_s3 }
0x2beb   :  { %v3446_v46 = vpop.permute.xlu0 %3445 }
0x2bec   :  { %v3448_v52 = vmul.f32 %v5266_v28, %v3446_v46 }
0x2bee   :  { %3552 = vrot.lane.b32.xlu1 %v3448_v52, %s5381_s4 }
0x2bef   :  { %v3548_v56 = vpop.permute.xlu1 %3547  ;;  %v1872_v61 = vpop.permute.xlu0 %1871 }
0x2bf0   :  { %v3550_v0 = vmul.f32 %v5268_v33, %v3548_v56  ;;  %3636 = vst.msk [vmem:[%s6505_s9 + $0x2] sm:$0x3] %vm1869_vm14, %v1872_v61 }
0x2bf2   :  { %3558 = vrot.lane.b32.xlu0 %v3550_v0, %s5381_s4  ;;  %3564 = vrot.lane.b32.xlu1 %v3442_v32, %s5383_s3 }
0x2bf3   :  { %v1878_v7 = vpop.permute.xlu1 %1877  ;;  %v1883_v55 = vpop.permute.xlu0 %1882 }
0x2bf4   :  { %1880 = vst.msk [vmem:[%s6506_s10] sm:$0x3] %vm1869_vm14, %v1878_v7  ;;  %3637 = vst.msk [vmem:[%s6506_s10 + $0x2] sm:$0x3] %vm1869_vm14, %v1883_v55 }
0x2bf6   :  { %3570 = vrot.lane.b32.xlu0 %v3544_v23, %s5383_s3 }
0x2c60   :  { %v3553_v3 = vpop.permute.xlu1 %3552 }
0x2c61   :  { %3672 = vst.msk [vmem:[%s6505_s9 + $0x4] sm:$0x3] %vm1869_vm14, %v3553_v3 }
0x2c64   :  { %v3565_v12 = vpop.permute.xlu1 %3564  ;;  %v3559_v57 = vpop.permute.xlu0 %3558 }
0x2c65   :  { %3674 = vst.msk [vmem:[%s6506_s10 + $0x4] sm:$0x3] %vm1869_vm14, %v3565_v12  ;;  %3673 = vst.msk [vmem:[%s6505_s9 + $0x6] sm:$0x3] %vm1869_vm14, %v3559_v57 }
0x2c68   :  { %v3571_v15 = vpop.permute.xlu0 %3570 }
0x2c69   :  { %3675 = vst.msk [vmem:[%s6506_s10 + $0x6] sm:$0x3] %vm1869_vm14, %v3571_v15 }
0x2c6a   :  { %3583 = vsyncpa [#allocation3], 1 }
0x2c6b   :  { %3584 = vsyncpa [#allocation5], 1 }
0x2c6c   :  { %3585 = vsyncpa [#allocation8], 1 }

</bundles_post_ra>
